<compile_context>
chip_gen: v6e
topology: v6e:2x2x1
jax: 0.10.0
libtpu: 0.0.40
codegen_flags: <defaults>
</compile_context>

<pallas_src>
import functools
import math

import jax
import jax.numpy as jnp
from jax.experimental import pallas as pl
from jax.experimental.pallas import tpu as pltpu

_EPS = 1e-5


def _round_up(n, m):
    return ((n + m - 1) // m) * m


def _num_tensorcores():
    """2 on v7x (two TensorCores per device -> column split pays off);
    1 on single-TC v5e/v6e (avoids redundant layer 1-4 recompute)."""
    try:
        kind = jax.devices()[0].device_kind.lower()
    except Exception:
        return 1
    return 2 if ("v7" in kind or "7x" in kind) else 1


def _pick_tile_n(per_outer):
    """Largest lane-aligned (multiple of 128) final-layer column tile <= 512
    that yields >= 2 inner steps (so the next w5 tile's DMA overlaps this
    step's compute); otherwise the whole extent (already a multiple of 128)."""
    for cand in (512, 384, 256, 128):
        if per_outer % cand == 0 and per_outer // cand >= 2:
            return cand
    return per_outer


def _generator_kernel(
    z_ref,
    w1_ref, b1_ref,
    w2_ref, g2_ref, be2_ref,
    w3_ref, g3_ref, be3_ref,
    w4_ref, g4_ref, be4_ref,
    w5_ref, b5_ref,
    out_ref,
    h4_ref,
):
    """Fused generator MLP: 5x Linear, 3x BatchNorm1d, ReLU, Tanh.

    Layers 1-4 run once per core (first inner step) into bf16 VMEM scratch;
    each grid step then does one (B,1024) x (1024,tn) matmul + bias + tanh for
    its column tile of the final Linear.
    """

    def dot_bf16(x, w_ref):
        # bf16 x bf16 -> f32 accumulation on the MXU.
        return jnp.dot(x.astype(jnp.bfloat16), w_ref[...],
                       preferred_element_type=jnp.float32)

    def batchnorm(x, gamma_ref, beta_ref):
        # Training-mode BatchNorm1d, biased variance, single-pass f32 stats.
        inv_n = 1.0 / x.shape[0]
        mean = jnp.sum(x, axis=0, keepdims=True) * inv_n
        ex2 = jnp.sum(x * x, axis=0, keepdims=True) * inv_n
        var = jnp.maximum(ex2 - mean * mean, 0.0)
        scale = jax.lax.rsqrt(var + _EPS) * gamma_ref[...]
        shift = beta_ref[...] - mean * scale
        return x * scale + shift

    @pl.when(pl.program_id(1) == 0)
    def _():
        x = z_ref[...]                                              # (B, latent_pad) f32
        # Linear(latent, 128) + ReLU
        h = jnp.maximum(dot_bf16(x, w1_ref) + b1_ref[...], 0.0)
        # Linear + BN + ReLU (x3).  Pre-BN biases dropped: BN(Wx+b) == BN(Wx).
        h = jnp.maximum(batchnorm(dot_bf16(h, w2_ref), g2_ref, be2_ref), 0.0)
        h = jnp.maximum(batchnorm(dot_bf16(h, w3_ref), g3_ref, be3_ref), 0.0)
        h = jnp.maximum(batchnorm(dot_bf16(h, w4_ref), g4_ref, be4_ref), 0.0)
        h4_ref[...] = h.astype(jnp.bfloat16)                        # park for all w5 tiles

    # Final Linear (this grid step's column tile) + Tanh.
    h5 = jnp.dot(h4_ref[...], w5_ref[...],
                 preferred_element_type=jnp.float32) + b5_ref[...]
    out_ref[...] = jnp.tanh(h5)


def init_params(key, latent_dim, img_shape):
    """Parameters matching the PyTorch module shapes.

    Weights stored as (in, out) bf16; biases / BN affine as (1, N) f32.
    w1's input dim is zero-padded to a multiple of 128; the last layer's
    output dim is zero-padded (zero columns) to a multiple of 256.
    """
    out_dim = math.prod(img_shape)
    out_dim_padded = max(_round_up(out_dim, 256), 256)
    latent_padded = max(_round_up(latent_dim, 128), 128)

    dims = [latent_dim, 128, 256, 512, 1024, out_dim]
    pad_in = [latent_padded - latent_dim, 0, 0, 0, 0]
    pad_out = [0, 0, 0, 0, out_dim_padded - out_dim]

    keys = jax.random.split(key, 13)
    params = {}
    for i in range(5):
        fan_in, fan_out = dims[i], dims[i + 1]
        w = jax.random.normal(keys[2 * i], (fan_in, fan_out), jnp.float32) * 0.05
        b = jax.random.normal(keys[2 * i + 1], (1, fan_out), jnp.float32) * 0.02
        if pad_in[i] or pad_out[i]:
            w = jnp.pad(w, ((0, pad_in[i]), (0, pad_out[i])))
            b = jnp.pad(b, ((0, 0), (0, pad_out[i])))
        params[f"w{i + 1}"] = w.astype(jnp.bfloat16)   # bf16: halves weight DMA
        params[f"b{i + 1}"] = b                        # f32, (1, N) lane-dense
    for j, (i, feat) in enumerate(zip((2, 3, 4), (256, 512, 1024))):
        params[f"g{i}"] = jnp.ones((1, feat), jnp.float32)
        params[f"be{i}"] = jax.random.normal(keys[10 + j], (1, feat), jnp.float32) * 0.02
    return params


@functools.partial(jax.jit, static_argnames=("img_shape", "num_tc"))
def _generator_forward(z, params, img_shape, num_tc):
    batch = z.shape[0]
    out_dim = math.prod(img_shape)
    latent_padded = params["w1"].shape[0]
    hidden_last, out_dim_padded = params["w5"].shape

    # Zero-pad the latent so the first matmul has an aligned K (mult of 128).
    if z.shape[1] != latent_padded:
        z = jnp.pad(z, ((0, 0), (0, latent_padded - z.shape[1])))
    z = z.astype(jnp.float32)

    # Outer "parallel" axis: split the final layer's columns across the two
    # TensorCores on v7x only.  Inner "arbitrary" axis: stream w5 column tiles
    # so their DMA overlaps compute.
    n_outer = 2 if (num_tc >= 2 and out_dim_padded % 256 == 0
                    and out_dim_padded >= 512) else 1
    per_outer = out_dim_padded // n_outer
    tn = _pick_tile_n(per_outer)
    n_inner = per_outer // tn

    args = (
        z,
        params["w1"], params["b1"],
        params["w2"], params["g2"], params["be2"],
        params["w3"], params["g3"], params["be3"],
        params["w4"], params["g4"], params["be4"],
        params["w5"], params["b5"],
    )

    def resident(arr):
        # Whole array in VMEM; constant block index -> fetched once, no re-DMA.
        return pl.BlockSpec(arr.shape, lambda i, j: (0, 0))

    col = lambda i, j: (0, i * n_inner + j)
    in_specs = [resident(a) for a in args[:-2]]
    in_specs.append(pl.BlockSpec((hidden_last, tn), col))   # w5: streamed tiles
    in_specs.append(pl.BlockSpec((1, tn), col))             # b5
    out_spec = pl.BlockSpec((batch, tn), col)

    img_flat = pl.pallas_call(
        _generator_kernel,
        out_shape=jax.ShapeDtypeStruct((batch, out_dim_padded), jnp.float32),
        grid=(n_outer, n_inner),
        in_specs=in_specs,
        out_specs=out_spec,
        scratch_shapes=[pltpu.VMEM((batch, hidden_last), jnp.bfloat16)],
        compiler_params=pltpu.CompilerParams(
            dimension_semantics=("parallel", "arbitrary")),
    )(*args)

    # Drop lane padding, then img_flat.view(B, *img_shape).
    return img_flat[:, :out_dim].reshape((batch,) + tuple(img_shape))


def generator_forward(z, params, img_shape):
    return _generator_forward(z, params, img_shape, _num_tensorcores())


def _reference_forward(z, params, img_shape):
    """Pure-JAX reference mirroring the PyTorch forward (incl. pre-BN biases,
    which cancel exactly inside BatchNorm)."""
    latent_padded = params["w1"].shape[0]
    if z.shape[1] != latent_padded:
        z = jnp.pad(z, ((0, 0), (0, latent_padded - z.shape[1])))

    def dot(x, w):
        return jnp.dot(x.astype(jnp.bfloat16), w, preferred_element_type=jnp.float32)

    def bn(x, g, b):
        m = jnp.mean(x, axis=0, keepdims=True)
        v = jnp.maximum(jnp.mean(x * x, axis=0, keepdims=True) - m * m, 0.0)
        return (x - m) * jax.lax.rsqrt(v + _EPS) * g + b

    h = jnp.maximum(dot(z, params["w1"]) + params["b1"], 0.0)
    h = jnp.maximum(bn(dot(h, params["w2"]) + params["b2"], params["g2"], params["be2"]), 0.0)
    h = jnp.maximum(bn(dot(h, params["w3"]) + params["b3"], params["g3"], params["be3"]), 0.0)
    h = jnp.maximum(bn(dot(h, params["w4"]) + params["b4"], params["g4"], params["be4"]), 0.0)
    h = jnp.tanh(dot(h, params["w5"]) + params["b5"])
    out_dim = math.prod(img_shape)
    return h[:, :out_dim].reshape((z.shape[0],) + tuple(img_shape))


if __name__ == "__main__":
    latent_dim = 100
    img_shape = (1, 28, 28)   # (C, H, W); prod = 784 -> lane-padded to 1024
    batch = 128               # amortizes the ~3 MiB weight DMA; the whole
                              # batch stays in one block (full-batch BN stats)

    key = jax.random.PRNGKey(0)
    k_param, k_z = jax.random.split(key)
    params = init_params(k_param, latent_dim, img_shape)
    z = jax.random.normal(k_z, (batch, latent_dim), jnp.float32)

    img = generator_forward(z, params, img_shape)
    img = jax.block_until_ready(img)

    assert img.shape == (batch,) + img_shape, img.shape

    ref = _reference_forward(z, params, img_shape)
    max_err = float(jnp.max(jnp.abs(img - ref)))
    assert max_err < 1e-2, max_err

    print("KERNEL_OK")
</pallas_src>

<mosaic_0001>
module attributes {stable_mosaic.version = 11 : i64} {
  func.func @_generator_kernel(%arg0: i32, %arg1: i32, %arg2: memref<128x128xf32, #tpu.memory_space<vmem>>, %arg3: memref<128x128xbf16, #tpu.memory_space<vmem>>, %arg4: memref<1x128xf32, #tpu.memory_space<vmem>>, %arg5: memref<128x256xbf16, #tpu.memory_space<vmem>>, %arg6: memref<1x256xf32, #tpu.memory_space<vmem>>, %arg7: memref<1x256xf32, #tpu.memory_space<vmem>>, %arg8: memref<256x512xbf16, #tpu.memory_space<vmem>>, %arg9: memref<1x512xf32, #tpu.memory_space<vmem>>, %arg10: memref<1x512xf32, #tpu.memory_space<vmem>>, %arg11: memref<512x1024xbf16, #tpu.memory_space<vmem>>, %arg12: memref<1x1024xf32, #tpu.memory_space<vmem>>, %arg13: memref<1x1024xf32, #tpu.memory_space<vmem>>, %arg14: memref<1024x512xbf16, #tpu.memory_space<vmem>>, %arg15: memref<1x512xf32, #tpu.memory_space<vmem>>, %arg16: memref<128x512xf32, #tpu.memory_space<vmem>>, %arg17: memref<128x1024xbf16, #tpu.memory_space<vmem>>) attributes {dimension_semantics = [#tpu.dimension_semantics<parallel>, #tpu.dimension_semantics<arbitrary>], iteration_bounds = array<i64: 1, 2>, scalar_prefetch = 0 : i64, scratch_operands = 1 : i64, tpu.core_type = #tpu.core_type<tc>, window_params = [{pipeline_mode = #tpu.pipeline_mode<synchronous>, transform_indices = @transform_0, window_bounds = array<i64: 128, 128>}, {pipeline_mode = #tpu.pipeline_mode<synchronous>, transform_indices = @transform_1, window_bounds = array<i64: 128, 128>}, {pipeline_mode = #tpu.pipeline_mode<synchronous>, transform_indices = @transform_2, window_bounds = array<i64: 1, 128>}, {pipeline_mode = #tpu.pipeline_mode<synchronous>, transform_indices = @transform_3, window_bounds = array<i64: 128, 256>}, {pipeline_mode = #tpu.pipeline_mode<synchronous>, transform_indices = @transform_4, window_bounds = array<i64: 1, 256>}, {pipeline_mode = #tpu.pipeline_mode<synchronous>, transform_indices = @transform_5, window_bounds = array<i64: 1, 256>}, {pipeline_mode = #tpu.pipeline_mode<synchronous>, transform_indices = @transform_6, window_bounds = array<i64: 256, 512>}, {pipeline_mode = #tpu.pipeline_mode<synchronous>, transform_indices = @transform_7, window_bounds = array<i64: 1, 512>}, {pipeline_mode = #tpu.pipeline_mode<synchronous>, transform_indices = @transform_8, window_bounds = array<i64: 1, 512>}, {pipeline_mode = #tpu.pipeline_mode<synchronous>, transform_indices = @transform_9, window_bounds = array<i64: 512, 1024>}, {pipeline_mode = #tpu.pipeline_mode<synchronous>, transform_indices = @transform_10, window_bounds = array<i64: 1, 1024>}, {pipeline_mode = #tpu.pipeline_mode<synchronous>, transform_indices = @transform_11, window_bounds = array<i64: 1, 1024>}, {transform_indices = @transform_12, window_bounds = array<i64: 1024, 512>}, {transform_indices = @transform_13, window_bounds = array<i64: 1, 512>}, {transform_indices = @transform_14, window_bounds = array<i64: 128, 512>}]} {
    %c0_i32 = arith.constant 0 : i32
    %0 = arith.cmpi eq, %arg1, %c0_i32 : i32
    %1 = arith.extui %0 : i1 to i32
    %c0_i32_0 = arith.constant 0 : i32
    %2 = arith.cmpi ne, %1, %c0_i32_0 : i32
    scf.if %2 {
      %c0_8 = arith.constant 0 : index
      %c0_9 = arith.constant 0 : index
      %11 = vector.load %arg2[%c0_8, %c0_9] : memref<128x128xf32, #tpu.memory_space<vmem>>, vector<128x128xf32>
      %12 = arith.truncf %11 : vector<128x128xf32> to vector<128x128xbf16>
      %c0_10 = arith.constant 0 : index
      %c0_11 = arith.constant 0 : index
      %13 = vector.load %arg3[%c0_10, %c0_11] : memref<128x128xbf16, #tpu.memory_space<vmem>>, vector<128x128xbf16>
      %cst_12 = arith.constant dense<0.000000e+00> : vector<128x128xf32>
      %14 = tpu.matmul %12, %13, %cst_12 {dimension_numbers = #tpu.dot_dimension_numbers<[1], [0], [0], [1], [0, 0, 1, 1], [], []>} : vector<128x128xbf16>, vector<128x128xbf16>, vector<128x128xf32> -> vector<128x128xf32>
      %c0_13 = arith.constant 0 : index
      %c0_14 = arith.constant 0 : index
      %15 = vector.load %arg4[%c0_13, %c0_14] : memref<1x128xf32, #tpu.memory_space<vmem>>, vector<1x128xf32>
      %16 = vector.broadcast %15 : vector<1x128xf32> to vector<128x128xf32>
      %17 = arith.addf %14, %16 : vector<128x128xf32>
      %cst_15 = arith.constant 0.000000e+00 : f32
      %18 = vector.broadcast %cst_15 : f32 to vector<128x128xf32>
      %19 = arith.maximumf %17, %18 : vector<128x128xf32>
      %20 = arith.truncf %19 : vector<128x128xf32> to vector<128x128xbf16>
      %c0_16 = arith.constant 0 : index
      %c0_17 = arith.constant 0 : index
      %21 = vector.load %arg5[%c0_16, %c0_17] : memref<128x256xbf16, #tpu.memory_space<vmem>>, vector<128x256xbf16>
      %cst_18 = arith.constant dense<0.000000e+00> : vector<128x256xf32>
      %22 = tpu.matmul %20, %21, %cst_18 {dimension_numbers = #tpu.dot_dimension_numbers<[1], [0], [0], [1], [0, 0, 1, 1], [], []>} : vector<128x128xbf16>, vector<128x256xbf16>, vector<128x256xf32> -> vector<128x256xf32>
      %cst_19 = arith.constant dense<0.000000e+00> : vector<256xf32>
      %23 = vector.multi_reduction <add>, %22, %cst_19 [0] : vector<128x256xf32> to vector<256xf32>
      %24 = vector.shape_cast %23 : vector<256xf32> to vector<1x256xf32>
      %cst_20 = arith.constant 7.812500e-03 : f32
      %25 = vector.broadcast %cst_20 : f32 to vector<1x256xf32>
      %26 = arith.mulf %24, %25 : vector<1x256xf32>
      %27 = arith.mulf %22, %22 : vector<128x256xf32>
      %cst_21 = arith.constant dense<0.000000e+00> : vector<256xf32>
      %28 = vector.multi_reduction <add>, %27, %cst_21 [0] : vector<128x256xf32> to vector<256xf32>
      %29 = vector.shape_cast %28 : vector<256xf32> to vector<1x256xf32>
      %cst_22 = arith.constant 7.812500e-03 : f32
      %30 = vector.broadcast %cst_22 : f32 to vector<1x256xf32>
      %31 = arith.mulf %29, %30 : vector<1x256xf32>
      %32 = arith.mulf %26, %26 : vector<1x256xf32>
      %33 = arith.subf %31, %32 : vector<1x256xf32>
      %cst_23 = arith.constant 0.000000e+00 : f32
      %34 = vector.broadcast %cst_23 : f32 to vector<1x256xf32>
      %35 = arith.maximumf %33, %34 : vector<1x256xf32>
      %cst_24 = arith.constant 9.99999974E-6 : f32
      %36 = vector.broadcast %cst_24 : f32 to vector<1x256xf32>
      %37 = arith.addf %35, %36 : vector<1x256xf32>
      %38 = math.rsqrt %37 : vector<1x256xf32>
      %c0_25 = arith.constant 0 : index
      %c0_26 = arith.constant 0 : index
      %39 = vector.load %arg6[%c0_25, %c0_26] : memref<1x256xf32, #tpu.memory_space<vmem>>, vector<1x256xf32>
      %40 = arith.mulf %38, %39 : vector<1x256xf32>
      %c0_27 = arith.constant 0 : index
      %c0_28 = arith.constant 0 : index
      %41 = vector.load %arg7[%c0_27, %c0_28] : memref<1x256xf32, #tpu.memory_space<vmem>>, vector<1x256xf32>
      %42 = arith.mulf %26, %40 : vector<1x256xf32>
      %43 = arith.subf %41, %42 : vector<1x256xf32>
      %44 = vector.broadcast %40 : vector<1x256xf32> to vector<128x256xf32>
      %45 = arith.mulf %22, %44 : vector<128x256xf32>
      %46 = vector.broadcast %43 : vector<1x256xf32> to vector<128x256xf32>
      %47 = arith.addf %45, %46 : vector<128x256xf32>
      %cst_29 = arith.constant 0.000000e+00 : f32
      %48 = vector.broadcast %cst_29 : f32 to vector<128x256xf32>
      %49 = arith.maximumf %47, %48 : vector<128x256xf32>
      %50 = arith.truncf %49 : vector<128x256xf32> to vector<128x256xbf16>
      %c0_30 = arith.constant 0 : index
      %c0_31 = arith.constant 0 : index
      %51 = vector.load %arg8[%c0_30, %c0_31] : memref<256x512xbf16, #tpu.memory_space<vmem>>, vector<256x512xbf16>
      %cst_32 = arith.constant dense<0.000000e+00> : vector<128x512xf32>
      %52 = tpu.matmul %50, %51, %cst_32 {dimension_numbers = #tpu.dot_dimension_numbers<[1], [0], [0], [1], [0, 0, 1, 1], [], []>} : vector<128x256xbf16>, vector<256x512xbf16>, vector<128x512xf32> -> vector<128x512xf32>
      %cst_33 = arith.constant dense<0.000000e+00> : vector<512xf32>
      %53 = vector.multi_reduction <add>, %52, %cst_33 [0] : vector<128x512xf32> to vector<512xf32>
      %54 = vector.shape_cast %53 : vector<512xf32> to vector<1x512xf32>
      %cst_34 = arith.constant 7.812500e-03 : f32
      %55 = vector.broadcast %cst_34 : f32 to vector<1x512xf32>
      %56 = arith.mulf %54, %55 : vector<1x512xf32>
      %57 = arith.mulf %52, %52 : vector<128x512xf32>
      %cst_35 = arith.constant dense<0.000000e+00> : vector<512xf32>
      %58 = vector.multi_reduction <add>, %57, %cst_35 [0] : vector<128x512xf32> to vector<512xf32>
      %59 = vector.shape_cast %58 : vector<512xf32> to vector<1x512xf32>
      %cst_36 = arith.constant 7.812500e-03 : f32
      %60 = vector.broadcast %cst_36 : f32 to vector<1x512xf32>
      %61 = arith.mulf %59, %60 : vector<1x512xf32>
      %62 = arith.mulf %56, %56 : vector<1x512xf32>
      %63 = arith.subf %61, %62 : vector<1x512xf32>
      %cst_37 = arith.constant 0.000000e+00 : f32
      %64 = vector.broadcast %cst_37 : f32 to vector<1x512xf32>
      %65 = arith.maximumf %63, %64 : vector<1x512xf32>
      %cst_38 = arith.constant 9.99999974E-6 : f32
      %66 = vector.broadcast %cst_38 : f32 to vector<1x512xf32>
      %67 = arith.addf %65, %66 : vector<1x512xf32>
      %68 = math.rsqrt %67 : vector<1x512xf32>
      %c0_39 = arith.constant 0 : index
      %c0_40 = arith.constant 0 : index
      %69 = vector.load %arg9[%c0_39, %c0_40] : memref<1x512xf32, #tpu.memory_space<vmem>>, vector<1x512xf32>
      %70 = arith.mulf %68, %69 : vector<1x512xf32>
      %c0_41 = arith.constant 0 : index
      %c0_42 = arith.constant 0 : index
      %71 = vector.load %arg10[%c0_41, %c0_42] : memref<1x512xf32, #tpu.memory_space<vmem>>, vector<1x512xf32>
      %72 = arith.mulf %56, %70 : vector<1x512xf32>
      %73 = arith.subf %71, %72 : vector<1x512xf32>
      %74 = vector.broadcast %70 : vector<1x512xf32> to vector<128x512xf32>
      %75 = arith.mulf %52, %74 : vector<128x512xf32>
      %76 = vector.broadcast %73 : vector<1x512xf32> to vector<128x512xf32>
      %77 = arith.addf %75, %76 : vector<128x512xf32>
      %cst_43 = arith.constant 0.000000e+00 : f32
      %78 = vector.broadcast %cst_43 : f32 to vector<128x512xf32>
      %79 = arith.maximumf %77, %78 : vector<128x512xf32>
      %80 = arith.truncf %79 : vector<128x512xf32> to vector<128x512xbf16>
      %c0_44 = arith.constant 0 : index
      %c0_45 = arith.constant 0 : index
      %81 = vector.load %arg11[%c0_44, %c0_45] : memref<512x1024xbf16, #tpu.memory_space<vmem>>, vector<512x1024xbf16>
      %cst_46 = arith.constant dense<0.000000e+00> : vector<128x1024xf32>
      %82 = tpu.matmul %80, %81, %cst_46 {dimension_numbers = #tpu.dot_dimension_numbers<[1], [0], [0], [1], [0, 0, 1, 1], [], []>} : vector<128x512xbf16>, vector<512x1024xbf16>, vector<128x1024xf32> -> vector<128x1024xf32>
      %cst_47 = arith.constant dense<0.000000e+00> : vector<1024xf32>
      %83 = vector.multi_reduction <add>, %82, %cst_47 [0] : vector<128x1024xf32> to vector<1024xf32>
      %84 = vector.shape_cast %83 : vector<1024xf32> to vector<1x1024xf32>
      %cst_48 = arith.constant 7.812500e-03 : f32
      %85 = vector.broadcast %cst_48 : f32 to vector<1x1024xf32>
      %86 = arith.mulf %84, %85 : vector<1x1024xf32>
      %87 = arith.mulf %82, %82 : vector<128x1024xf32>
      %cst_49 = arith.constant dense<0.000000e+00> : vector<1024xf32>
      %88 = vector.multi_reduction <add>, %87, %cst_49 [0] : vector<128x1024xf32> to vector<1024xf32>
      %89 = vector.shape_cast %88 : vector<1024xf32> to vector<1x1024xf32>
      %cst_50 = arith.constant 7.812500e-03 : f32
      %90 = vector.broadcast %cst_50 : f32 to vector<1x1024xf32>
      %91 = arith.mulf %89, %90 : vector<1x1024xf32>
      %92 = arith.mulf %86, %86 : vector<1x1024xf32>
      %93 = arith.subf %91, %92 : vector<1x1024xf32>
      %cst_51 = arith.constant 0.000000e+00 : f32
      %94 = vector.broadcast %cst_51 : f32 to vector<1x1024xf32>
      %95 = arith.maximumf %93, %94 : vector<1x1024xf32>
      %cst_52 = arith.constant 9.99999974E-6 : f32
      %96 = vector.broadcast %cst_52 : f32 to vector<1x1024xf32>
      %97 = arith.addf %95, %96 : vector<1x1024xf32>
      %98 = math.rsqrt %97 : vector<1x1024xf32>
      %c0_53 = arith.constant 0 : index
      %c0_54 = arith.constant 0 : index
      %99 = vector.load %arg12[%c0_53, %c0_54] : memref<1x1024xf32, #tpu.memory_space<vmem>>, vector<1x1024xf32>
      %100 = arith.mulf %98, %99 : vector<1x1024xf32>
      %c0_55 = arith.constant 0 : index
      %c0_56 = arith.constant 0 : index
      %101 = vector.load %arg13[%c0_55, %c0_56] : memref<1x1024xf32, #tpu.memory_space<vmem>>, vector<1x1024xf32>
      %102 = arith.mulf %86, %100 : vector<1x1024xf32>
      %103 = arith.subf %101, %102 : vector<1x1024xf32>
      %104 = vector.broadcast %100 : vector<1x1024xf32> to vector<128x1024xf32>
      %105 = arith.mulf %82, %104 : vector<128x1024xf32>
      %106 = vector.broadcast %103 : vector<1x1024xf32> to vector<128x1024xf32>
      %107 = arith.addf %105, %106 : vector<128x1024xf32>
      %cst_57 = arith.constant 0.000000e+00 : f32
      %108 = vector.broadcast %cst_57 : f32 to vector<128x1024xf32>
      %109 = arith.maximumf %107, %108 : vector<128x1024xf32>
      %110 = arith.truncf %109 : vector<128x1024xf32> to vector<128x1024xbf16>
      %c0_58 = arith.constant 0 : index
      %c0_59 = arith.constant 0 : index
      %111 = vector.load %arg17[%c0_58, %c0_59] : memref<128x1024xbf16, #tpu.memory_space<vmem>>, vector<128x1024xbf16>
      tpu.vector_store %arg17[%c0_58, %c0_59], %110 {strides = array<i32>} : memref<128x1024xbf16, #tpu.memory_space<vmem>>, vector<128x1024xbf16>,
    } else {
    }
    %c0 = arith.constant 0 : index
    %c0_1 = arith.constant 0 : index
    %3 = vector.load %arg17[%c0, %c0_1] : memref<128x1024xbf16, #tpu.memory_space<vmem>>, vector<128x1024xbf16>
    %c0_2 = arith.constant 0 : index
    %c0_3 = arith.constant 0 : index
    %4 = vector.load %arg14[%c0_2, %c0_3] : memref<1024x512xbf16, #tpu.memory_space<vmem>>, vector<1024x512xbf16>
    %cst = arith.constant dense<0.000000e+00> : vector<128x512xf32>
    %5 = tpu.matmul %3, %4, %cst {dimension_numbers = #tpu.dot_dimension_numbers<[1], [0], [0], [1], [0, 0, 1, 1], [], []>} : vector<128x1024xbf16>, vector<1024x512xbf16>, vector<128x512xf32> -> vector<128x512xf32>
    %c0_4 = arith.constant 0 : index
    %c0_5 = arith.constant 0 : index
    %6 = vector.load %arg15[%c0_4, %c0_5] : memref<1x512xf32, #tpu.memory_space<vmem>>, vector<1x512xf32>
    %7 = vector.broadcast %6 : vector<1x512xf32> to vector<128x512xf32>
    %8 = arith.addf %5, %7 : vector<128x512xf32>
    %9 = math.tanh %8 : vector<128x512xf32>
    %c0_6 = arith.constant 0 : index
    %c0_7 = arith.constant 0 : index
    %10 = vector.load %arg16[%c0_6, %c0_7] : memref<128x512xf32, #tpu.memory_space<vmem>>, vector<128x512xf32>
    tpu.vector_store %arg16[%c0_6, %c0_7], %9 {strides = array<i32>} : memref<128x512xf32, #tpu.memory_space<vmem>>, vector<128x512xf32>,
    return
  }
  func.func @transform_0(%arg0: i32, %arg1: i32) -> (i32, i32) {
    %c0_i32 = arith.constant 0 : i32
    %c0_i32_0 = arith.constant 0 : i32
    %c0_i32_1 = arith.constant 0 : i32
    return %c0_i32, %c0_i32_0 : i32, i32
  }
  func.func @transform_1(%arg0: i32, %arg1: i32) -> (i32, i32) {
    %c0_i32 = arith.constant 0 : i32
    %c0_i32_0 = arith.constant 0 : i32
    %c0_i32_1 = arith.constant 0 : i32
    return %c0_i32, %c0_i32_0 : i32, i32
  }
  func.func @transform_2(%arg0: i32, %arg1: i32) -> (i32, i32) {
    %c0_i32 = arith.constant 0 : i32
    %c0_i32_0 = arith.constant 0 : i32
    %c0_i32_1 = arith.constant 0 : i32
    return %c0_i32, %c0_i32_0 : i32, i32
  }
  func.func @transform_3(%arg0: i32, %arg1: i32) -> (i32, i32) {
    %c0_i32 = arith.constant 0 : i32
    %c0_i32_0 = arith.constant 0 : i32
    %c0_i32_1 = arith.constant 0 : i32
    return %c0_i32, %c0_i32_0 : i32, i32
  }
  func.func @transform_4(%arg0: i32, %arg1: i32) -> (i32, i32) {
    %c0_i32 = arith.constant 0 : i32
    %c0_i32_0 = arith.constant 0 : i32
    %c0_i32_1 = arith.constant 0 : i32
    return %c0_i32, %c0_i32_0 : i32, i32
  }
  func.func @transform_5(%arg0: i32, %arg1: i32) -> (i32, i32) {
    %c0_i32 = arith.constant 0 : i32
    %c0_i32_0 = arith.constant 0 : i32
    %c0_i32_1 = arith.constant 0 : i32
    return %c0_i32, %c0_i32_0 : i32, i32
  }
  func.func @transform_6(%arg0: i32, %arg1: i32) -> (i32, i32) {
    %c0_i32 = arith.constant 0 : i32
    %c0_i32_0 = arith.constant 0 : i32
    %c0_i32_1 = arith.constant 0 : i32
    return %c0_i32, %c0_i32_0 : i32, i32
  }
  func.func @transform_7(%arg0: i32, %arg1: i32) -> (i32, i32) {
    %c0_i32 = arith.constant 0 : i32
    %c0_i32_0 = arith.constant 0 : i32
    %c0_i32_1 = arith.constant 0 : i32
    return %c0_i32, %c0_i32_0 : i32, i32
  }
  func.func @transform_8(%arg0: i32, %arg1: i32) -> (i32, i32) {
    %c0_i32 = arith.constant 0 : i32
    %c0_i32_0 = arith.constant 0 : i32
    %c0_i32_1 = arith.constant 0 : i32
    return %c0_i32, %c0_i32_0 : i32, i32
  }
  func.func @transform_9(%arg0: i32, %arg1: i32) -> (i32, i32) {
    %c0_i32 = arith.constant 0 : i32
    %c0_i32_0 = arith.constant 0 : i32
    %c0_i32_1 = arith.constant 0 : i32
    return %c0_i32, %c0_i32_0 : i32, i32
  }
  func.func @transform_10(%arg0: i32, %arg1: i32) -> (i32, i32) {
    %c0_i32 = arith.constant 0 : i32
    %c0_i32_0 = arith.constant 0 : i32
    %c0_i32_1 = arith.constant 0 : i32
    return %c0_i32, %c0_i32_0 : i32, i32
  }
  func.func @transform_11(%arg0: i32, %arg1: i32) -> (i32, i32) {
    %c0_i32 = arith.constant 0 : i32
    %c0_i32_0 = arith.constant 0 : i32
    %c0_i32_1 = arith.constant 0 : i32
    return %c0_i32, %c0_i32_0 : i32, i32
  }
  func.func @transform_12(%arg0: i32, %arg1: i32) -> (i32, i32) {
    %c2_i32 = arith.constant 2 : i32
    %0 = arith.muli %arg0, %c2_i32 : i32
    %1 = arith.addi %0, %arg1 : i32
    %c0_i32 = arith.constant 0 : i32
    %c0_i32_0 = arith.constant 0 : i32
    return %c0_i32, %1 : i32, i32
  }
  func.func @transform_13(%arg0: i32, %arg1: i32) -> (i32, i32) {
    %c2_i32 = arith.constant 2 : i32
    %0 = arith.muli %arg0, %c2_i32 : i32
    %1 = arith.addi %0, %arg1 : i32
    %c0_i32 = arith.constant 0 : i32
    %c0_i32_0 = arith.constant 0 : i32
    return %c0_i32, %1 : i32, i32
  }
  func.func @transform_14(%arg0: i32, %arg1: i32) -> (i32, i32) {
    %c2_i32 = arith.constant 2 : i32
    %0 = arith.muli %arg0, %c2_i32 : i32
    %1 = arith.addi %0, %arg1 : i32
    %c0_i32 = arith.constant 0 : i32
    %c0_i32_0 = arith.constant 0 : i32
    return %c0_i32, %1 : i32, i32
  }
}

</mosaic_0001>

<bundles_post_ra>
// kernel: _generator_forward.1
= control target key start
LH: loop header
LB: loop body
LE: loop exit
PB: predicated region body
PF: predicated region fallthrough
CT: control target
= control target key end

     0   :  { %s17245_s0 = inlined_call_operand.vmem [shape: f32[128,128], index: 0, kind: input, shape index: {}]   ;;  %s17246_s1 = inlined_call_operand.hbm [shape: bf16[128,128], index: 1, kind: input, shape index: {}]   ;;  %s17247_s2 = inlined_call_operand.hbm [shape: f32[1,128], index: 2, kind: input, shape index: {}]   ;;  %s17248_s3 = inlined_call_operand.hbm [shape: bf16[128,256], index: 3, kind: input, shape index: {}]   ;;  %s17249_s4 = inlined_call_operand.hbm [shape: f32[1,256], index: 4, kind: input, shape index: {}]   ;;  %s17250_s5 = inlined_call_operand.hbm [shape: f32[1,256], index: 5, kind: input, shape index: {}]   ;;  %s17251_s6 = inlined_call_operand.hbm [shape: bf16[256,512], index: 6, kind: input, shape index: {}]   ;;  %s17252_s7 = inlined_call_operand.hbm [shape: f32[1,512], index: 7, kind: input, shape index: {}]   ;;  %s17253_s8 = inlined_call_operand.hbm [shape: f32[1,512], index: 8, kind: input, shape index: {}]   ;;  %s17254_s9 = inlined_call_operand.hbm [shape: bf16[512,1024], index: 9, kind: input, shape index: {}]   ;;  %s17255_s10 = inlined_call_operand.hbm [shape: f32[1,1024], index: 10, kind: input, shape index: {}]   ;;  %s17256_s11 = inlined_call_operand.hbm [shape: f32[1,1024], index: 11, kind: input, shape index: {}]   ;;  %s17257_s12 = inlined_call_operand.hbm [shape: bf16[1024,1024], index: 12, kind: input, shape index: {}]   ;;  %s17258_s13 = inlined_call_operand.hbm [shape: f32[1,1024], index: 13, kind: input, shape index: {}]   ;;  %s17259_s14 = inlined_call_operand.vmem [shape: f32[128,1024], index: 14, kind: output, shape index: {}]  }
   0x1   :  { %17544 = sst [smem:[#allocation162_spill]] %s17245_s0 }
   0x2   :  { %17545 = sst [smem:[#allocation163_spill]] %s17247_s2 }
   0x3   :  { %17546 = sst [smem:[#allocation164_spill]] %s17249_s4 }
   0x4   :  { %17547 = sst [smem:[#allocation165_spill]] %s17251_s6 }
   0x5   :  { %17548 = sst [smem:[#allocation166_spill]] %s17253_s8 }
   0x6   :  { %17549 = sst [smem:[#allocation167_spill]] %s17255_s10 }
   0x7   :  { %17550 = sst [smem:[#allocation168_spill]] %s17257_s12 }
   0x8   :  { %17551 = sst [smem:[#allocation169_spill]] %s17259_s14 }
   0x9   :  { %19 = vsyncpa [#allocation4], 0 }
   0xa   :  { %20 = vsyncpa [#allocation6], 0 }
   0xb   :  { %21 = vsyncpa [#allocation9], 0 }
   0xc   :  { %22 = vsyncpa [#allocation12], 0 }
   0xd   :  { %23 = vsyncpa [#allocation15], 0 }
   0xe   :  { %24 = vsyncpa [#allocation18], 0 }
   0xf   :  { %25 = vsyncpa [#allocation21], 0 }
  0x10   :  { %27 = vsyncpa [#allocation21 + $0x1], 0  ;;  %s12262_s29 = smov 0   ;;  %s12264_s30 = smov 0  }
  0x11   :  { %s12266_s15 = smov 0   ;;  %s12268_s16 = smov 0  }
  0x12   :  { %s12270_s17 = smov 0   ;;  %s12272_s18 = smov 0  }
  0x13 LB: > { %17552 = sst [smem:[#allocation31_spill]] %s12154_s16  ;;  %s12164_s19 = smov [#allocation5]   ;;  %s12162_s18 = sphi %s12272_s18, %s33_s18   ;;  %s12158_s17 = sphi %s12270_s17, %s18543_s17   ;;  %s12154_s16 = sphi %s12268_s16, %s18542_s16   ;;  %s12150_s15 = sphi %s12266_s15, %s18541_s15   ;;  %s12146_s30 = sphi %s12264_s30, %s18540_s30   ;;  %s12142_s29 = sphi %s12262_s29, %s18539_s29  }
  0x14   : > { %s421_s20 = sshll.u32 %s12164_s19, 4  ;;  %s12293_s21 = sadd.s32 4294967295, %s12162_s18   ;;  %s422_s20 = int_to_ptr.vmem [resolvable:$true] %s421_s20 }
  0x15   : > { %p9936_p0 = scmp.ge.s32.totalorder %s12162_s18, 1  ;;  %p17261_p1 = scmp.eq.s32.totalorder %s12293_s21, 0 }
  0x16   : > { %p392_p2 = scmp.lt.s32.totalorder %s12162_s18, 3  ;;  %s12165_s23 = smov [#allocation8]  }
  0x17   : > { %s445_s24 = sshll.u32 %s12165_s23, 4  ;;  %s12166_s25 = smov [#allocation11]   ;;  %s446_s24 = int_to_ptr.vmem [resolvable:$true] %s445_s24 }
  0x18   : > { %p12298_p3 = pnand %p9936_p0, %p392_p2  ;;  %s466_s26 = sshll.u32 %s12166_s25, 4  ;;  %s12310_s26 = int_to_ptr.vmem [resolvable:$true] %s466_s26 }
  0x19   : > { %s11757_s19 = scalar_lea.vmem %s422_s20, 16  ;;  %s11764_s23 = scalar_lea.vmem %s422_s20, 32 }
  0x1a   : > { %s17553_s22 = scalar_select %p12298_p3, 1, 0 }
  0x1b   : > { %p10868_p4 = pneg %p12298_p3  ;;  %p11758_p7 = scmp.ne.s32.totalorder %s422_s20, %s11757_s19 }
  0x1c   : > { %p11765_p10 = scmp.lt.s32.totalorder %s422_s20, %s422_s20  ;;  %p11766_p11 = scmp.lt.s32.totalorder %s11764_s23, %s11757_s19 }
  0x1d   : > { %p12306_p5 = pnand %p10868_p4, %p17261_p1 }
  0x1e   : > { %p11767_p12 = por %p11766_p11, %p11765_p10 }
  0x1f   : > { %p12314_p6 = pneg %p12306_p5 }
  0x21   : > { %p11760_p8 = pnand %p11758_p7, %p12314_p6 }
  0x23   : > { %p11761_p9 = pneg %p11760_p8 }
  0x25   : > { %p11768_p13 = pnand %p11767_p12, %p11761_p9 }
  0x27   : > { %11771 = shalt.err (!%p11768_p13)
}
  0x28   : > { %s17556_s2 = sld [smem:[#allocation163_spill]]  ;;  %s11783_s0 = scalar_lea.vmem %s446_s24, 32 }
  0x29   : > { %p11784_p0 = scmp.ne.s32.totalorder %s446_s24, %s11783_s0  ;;  %p11791_p7 = scmp.lt.s32.totalorder %s446_s24, %s446_s24 }
  0x2a   : > { %p11792_p8 = scmp.lt.s32.totalorder %s11783_s0, %s11783_s0 }
  0x2b   : > { %p11786_p2 = pnand %p11784_p0, %p12314_p6 }
  0x2c   : > { %p11793_p1 = por %p11792_p8, %p11791_p7 }
  0x2d   : > { %p11787_p4 = pneg %p11786_p2 }
  0x2e   : > { %10874 = dma.hbm_to_vmem [thread:$0]  (!%p12306_p5), %s17556_s2, 16, %s422_s20, [#allocation6]  }
  0x2f   : > { %p11794_p3 = pnand %p11793_p1, %p11787_p4 }
  0x31   : > { %11797 = shalt.err (!%p11794_p3)
}
  0x32   : > { %s17557_s4 = sld [smem:[#allocation164_spill]]  ;;  %s11809_s14 = scalar_lea.vmem %s12310_s26, 8192 }
  0x33   : > { %p11810_p9 = scmp.ne.s32.totalorder %s12310_s26, %s11809_s14  ;;  %p11817_p12 = scmp.lt.s32.totalorder %s12310_s26, %s12310_s26 }
  0x34   : > { %p11818_p13 = scmp.lt.s32.totalorder %s11809_s14, %s11809_s14 }
  0x35   : > { %p11812_p10 = pnand %p11810_p9, %p12314_p6 }
  0x36   : > { %p11819_p1 = por %p11818_p13, %p11817_p12 }
  0x37   : > { %p11813_p11 = pneg %p11812_p10 }
  0x38   : > { %10880 = dma.hbm_to_vmem [thread:$0]  (!%p12306_p5), %s17557_s4, 32, %s446_s24, [#allocation9]  }
  0x39   : > { %p11820_p3 = pnand %p11819_p1, %p11813_p11 }
  0x3b   : > { %11823 = shalt.err (!%p11820_p3)
}
  0x3c   : > { %s17263_s0 = smov 256   ;;  %s17264_s20 = smov 16  }
  0x3d   : > { %s17558_s6 = sld [smem:[#allocation165_spill]]  ;;  %s12169_s19 = smov [#allocation14]  }
  0x3e   : > { %s491_s23 = sshll.u32 %s12169_s19, 4  ;;  %s12170_s14 = smov [#allocation17]   ;;  %s492_s23 = int_to_ptr.vmem [resolvable:$true] %s491_s23 }
  0x3f   : > { %s515_s2 = sshll.u32 %s12170_s14, 4  ;;  %s11835_s4 = scalar_lea.vmem %s492_s23, 64  ;;  %s516_s2 = int_to_ptr.vmem [resolvable:$true] %s515_s2 }
  0x40   : > { %p11836_p0 = scmp.ne.s32.totalorder %s492_s23, %s11835_s4  ;;  %p11843_p7 = scmp.lt.s32.totalorder %s492_s23, %s492_s23 }
  0x41   : > { %p11844_p8 = scmp.lt.s32.totalorder %s11835_s4, %s11835_s4 }
  0x42   : > { %p11838_p2 = pnand %p11836_p0, %p12314_p6 }
  0x43   : > { %10886 = dma.hbm_to_vmem [thread:$0]  (!%p12306_p5), %s17558_s6, 8192, %s12310_s26, [#allocation12], %s17263_s0, %s17263_s0, %s17264_s20  }
  0x44   : > { %p11839_p4 = pneg %p11838_p2  ;;  %p11845_p9 = por %p11844_p8, %p11843_p7 }
  0x46   : > { %p11846_p10 = pnand %p11845_p9, %p11839_p4 }
  0x48   : > { %11849 = shalt.err (!%p11846_p10)
}
  0x49   : > { %s17559_s8 = sld [smem:[#allocation166_spill]]  ;;  %s11861_s26 = scalar_lea.vmem %s516_s2, 128 }
  0x4a   : > { %p11862_p11 = scmp.ne.s32.totalorder %s516_s2, %s11861_s26  ;;  %p11869_p1 = scmp.lt.s32.totalorder %s516_s2, %s516_s2 }
  0x4b   : > { %p11870_p3 = scmp.lt.s32.totalorder %s11861_s26, %s11861_s26 }
  0x4c   : > { %p11864_p12 = pnand %p11862_p11, %p12314_p6 }
  0x4d   : > { %p11871_p0 = por %p11870_p3, %p11869_p1 }
  0x4e   : > { %p11865_p13 = pneg %p11864_p12 }
  0x4f   : > { %10892 = dma.hbm_to_vmem [thread:$0]  (!%p12306_p5), %s17559_s8, 64, %s492_s23, [#allocation15]  }
  0x50   : > { %p11872_p2 = pnand %p11871_p0, %p11865_p13 }
  0x52   : > { %11875 = shalt.err (!%p11872_p2)
}
  0x53   : > { %s17560_s10 = sld [smem:[#allocation167_spill]]  ;;  %s42_s16 = sadd.s32 1, %s12158_s17 }
  0x54   : > { %p43_p4 = scmp.ge.s32.totalorder %s42_s16, 2  ;;  %s308_s19 = sadd.s32 1, %s12150_s15 }
  0x55   : > { %p315_p7 = scmp.ne.s32.totalorder %s12150_s15, %s12146_s30  ;;  %p316_p8 = scmp.eq.s32.totalorder %s12162_s18, 0 }
  0x56   : > { %s18545_s16 = smov (%p43_p4, %s42_s16), 0  ;;  %p321_p10 = scmp.ne.s32.totalorder %s12146_s30, %s12142_s29 }
  0x57   : > { %17561 = sst [smem:[#allocation32_spill]] %s18545_s16  ;;  %p12368_p9 = por %p316_p8, %p315_p7 }
  0x58   : > { %s305_s14 = ssub.s32 %s12158_s17, %s18545_s16  ;;  %p379_p11 = scmp.eq.s32.totalorder %s12293_s21, 1 }
  0x59   : > { %10898 = dma.hbm_to_vmem [thread:$0]  (!%p12306_p5), %s17560_s10, 128, %s516_s2, [#allocation18]  }
  0x5a   : > { %p306_p12 = scmp.eq.s32.totalorder %s305_s14, 0  ;;  %p17563_p13 = scmp.eq.s32.totalorder %s12293_s21, 0 }
  0x5b   : > { %p12383_p3 = por %p379_p11, %p315_p7  ;;  %p10920_p0 = scmp.lt.s32.totalorder %s12162_s18, 2 }
  0x5c   : > { %p12379_p1 = por %p17563_p13, %p321_p10  ;;  %s537_s4 = sand.u32 1, %s12162_s18  }
  0x5d   : > { %s17565_s24 = scalar_select %p12383_p3, 1, 0 }
  0x5e   : > { %s17564_s2 = scalar_select %p12379_p1, 1, 0 }
  0x5f   : > { %s12388_s26 = scalar_select %p306_p12, %s12150_s15, %s308_s19  }
  0x60   : > { %s17266_s25 = sand.u32 1, %s12150_s15   ;;  %s10705_s29 = sshll.u32 %s12158_s17, 8 }
  0x61   : > { %s9949_s0 = sshll.u32 %s17266_s25, 11  ;;  %s17566_s12 = sld [smem:[#allocation168_spill]] }
  0x62   : > { %s541_s8 = scalar_lea.vmem [#allocation20], %s9949_s0  ;;  %p12401_p2 = pnand %p10920_p0, %p12368_p9 }
  0x63   : > { %s550_s10 = sshll.u32 %s541_s8, 4  ;;  %s12405_s19 = scalar_lea.sflag [#allocation21], %s537_s4  ;;  %s551_s10 = int_to_ptr.vmem [resolvable:$true] %s550_s10 }
  0x64   : > { %s17567_s16 = scalar_select %p12401_p2, 1, 0 }
  0x65   : > { %p17268_p4 = pneg %p12401_p2  ;;  %s11889_s25 = scalar_lea.vmem %s551_s10, 32768 }
  0x66   : > { %p11890_p7 = scmp.ne.s32.totalorder %s551_s10, %s11889_s25  ;;  %s12171_s6 = smov [#allocation20]  }
  0x67   : > { %s549_s14 = scalar_lea.hbm %s17566_s12, %s10705_s29  ;;  %s11894_s8 = sshll.u32 %s12171_s6, 4  ;;  %s11895_s8 = int_to_ptr.vmem [resolvable:$false] %s11894_s8 }
  0x68   : > { %p11892_p8 = pnand %p11890_p7, %p17268_p4  ;;  %s11896_s0 = scalar_lea.vmem %s11895_s8, 65536 }
  0x69   : > { %p11897_p9 = scmp.lt.s32.totalorder %s551_s10, %s11895_s8  ;;  %p11898_p11 = scmp.lt.s32.totalorder %s11896_s0, %s11889_s25 }
  0x6a   : > { %p11893_p10 = pneg %p11892_p8 }
  0x6b   : > { %p11899_p12 = por %p11898_p11, %p11897_p9 }
  0x6d   : > { %p11900_p13 = pnand %p11899_p12, %p11893_p10 }
  0x6f   : > { %11903 = shalt.err (!%p11900_p13)
}
  0x70   : > { %s17267_s20 = smov 512   ;;  %s17568_s23 = smov 16  }
  0x71   : > { %s17569_s4 = smov 256   ;;  %s12173_s29 = smov [#allocation3]  }
  0x72   : > { %10905 = dma.hbm_to_vmem [thread:$0]  (!%p12401_p2), %s549_s14, 32768, %s551_s10, %s12405_s19, %s17267_s20, %s17569_s4, %s17568_s23  }
  0x73   : > { %s407_s12 = sshll.u32 %s12173_s29, 4  ;;  %s408_s12 = int_to_ptr.vmem [resolvable:$true] %s407_s12 }
  0x74   : > { %s11915_s6 = scalar_lea.vmem %s408_s12, 1024  ;;  %p11923_p9 = scmp.lt.s32.totalorder %s408_s12, %s408_s12 }
  0x75   : > { %p11916_p0 = scmp.ne.s32.totalorder %s408_s12, %s11915_s6  ;;  %p11924_p10 = scmp.lt.s32.totalorder %s11915_s6, %s11915_s6 }
  0x77   : > { %p11918_p7 = pnand %p11916_p0, %p12314_p6  ;;  %p11925_p11 = por %p11924_p10, %p11923_p9 }
  0x79   : > { %p11919_p8 = pneg %p11918_p7 }
  0x7b   : > { %p11926_p12 = pnand %p11925_p11, %p11919_p8 }
  0x7d   : > { %11929 = shalt.err (!%p11926_p12)
}
  0x7e   : > { %s12174_s25 = smov 64   ;;  %s12175_s8 = smov 4  }
  0x7f   : > { %10871 = dma.hbm_to_vmem [thread:$0]  (!%p12306_p5), %s17246_s1, 1024, %s408_s12, [#allocation4], %s12174_s25, %s12174_s25, %s12175_s8  }
  0x80   : > { %s12176_s14 = smov [#allocation7]  }
  0x81   : > { %s431_s23 = sshll.u32 %s12176_s14, 4  ;;  %s432_s23 = int_to_ptr.vmem [resolvable:$true] %s431_s23 }
  0x82   : > { %s11941_s4 = scalar_lea.vmem %s432_s23, 2048  ;;  %p11949_p9 = scmp.lt.s32.totalorder %s432_s23, %s432_s23 }
  0x83   : > { %p11942_p13 = scmp.ne.s32.totalorder %s432_s23, %s11941_s4  ;;  %p11950_p8 = scmp.lt.s32.totalorder %s11941_s4, %s11941_s4 }
  0x85   : > { %p11944_p0 = pnand %p11942_p13, %p12314_p6  ;;  %p11951_p10 = por %p11950_p8, %p11949_p9 }
  0x87   : > { %p11945_p7 = pneg %p11944_p0 }
  0x89   : > { %p11952_p11 = pnand %p11951_p10, %p11945_p7 }
  0x8b   : > { %11955 = shalt.err (!%p11952_p11)
}
  0x8c   : > { %s12177_s29 = smov 128   ;;  %s12178_s6 = smov 8  }
  0x8d   : > { %10877 = dma.hbm_to_vmem [thread:$0]  (!%p12306_p5), %s17248_s3, 2048, %s432_s23, [#allocation6], %s12177_s29, %s12177_s29, %s12178_s6  }
  0x8e   : > { %s12179_s25 = smov [#allocation10]   ;;  %s12180_s10 = smov [#allocation13]  }
  0x8f   : > { %s456_s8 = sshll.u32 %s12179_s25, 4  ;;  %s480_s14 = sshll.u32 %s12180_s10, 4  ;;  %s457_s8 = int_to_ptr.vmem [resolvable:$true] %s456_s8  ;;  %s481_s14 = int_to_ptr.vmem [resolvable:$true] %s480_s14 }
  0x90   : > { %s11967_s20 = scalar_lea.vmem %s457_s8, 32  ;;  %p11975_p7 = scmp.lt.s32.totalorder %s457_s8, %s457_s8 }
  0x91   : > { %p11968_p12 = scmp.ne.s32.totalorder %s457_s8, %s11967_s20  ;;  %p11976_p9 = scmp.lt.s32.totalorder %s11967_s20, %s11967_s20 }
  0x93   : > { %p11970_p13 = pnand %p11968_p12, %p12314_p6  ;;  %p11977_p8 = por %p11976_p9, %p11975_p7 }
  0x95   : > { %p11971_p0 = pneg %p11970_p13 }
  0x97   : > { %p11978_p10 = pnand %p11977_p8, %p11971_p0 }
  0x99   : > { %11981 = shalt.err (!%p11978_p10)
}
  0x9a   : > { %10883 = dma.hbm_to_vmem [thread:$0]  (!%p12306_p5), %s17250_s5, 32, %s457_s8, [#allocation9]  }
  0x9b   : > { %s11993_s29 = scalar_lea.vmem %s481_s14, 64  ;;  %p12001_p1 = scmp.lt.s32.totalorder %s481_s14, %s481_s14 }
  0x9c   : > { %p11994_p11 = scmp.ne.s32.totalorder %s481_s14, %s11993_s29  ;;  %p12002_p12 = scmp.lt.s32.totalorder %s11993_s29, %s11993_s29 }
  0x9e   : > { %p11996_p4 = pnand %p11994_p11, %p12314_p6  ;;  %p12003_p13 = por %p12002_p12, %p12001_p1 }
  0xa0   : > { %p11997_p3 = pneg %p11996_p4 }
  0xa2   : > { %p12004_p2 = pnand %p12003_p13, %p11997_p3 }
  0xa4   : > { %12007 = shalt.err (!%p12004_p2)
}
  0xa5   : > { %10889 = dma.hbm_to_vmem [thread:$0]  (!%p12306_p5), %s17252_s7, 64, %s481_s14, [#allocation12]  }
  0xa6   : > { %s12181_s0 = smov [#allocation16]   ;;  %s12182_s25 = smov [#allocation19]  }
  0xa7   : > { %s501_s12 = sshll.u32 %s12181_s0, 4  ;;  %s526_s8 = sshll.u32 %s12182_s25, 4  ;;  %s502_s12 = int_to_ptr.vmem [resolvable:$true] %s501_s12  ;;  %s527_s8 = int_to_ptr.vmem [resolvable:$true] %s526_s8 }
  0xa8   : > { %s12019_s10 = scalar_lea.vmem %s502_s12, 32768  ;;  %p12027_p1 = scmp.lt.s32.totalorder %s502_s12, %s502_s12 }
  0xa9   : > { %p12020_p0 = scmp.ne.s32.totalorder %s502_s12, %s12019_s10  ;;  %p12028_p3 = scmp.lt.s32.totalorder %s12019_s10, %s12019_s10 }
  0xab   : > { %p12022_p4 = pnand %p12020_p0, %p12314_p6  ;;  %p12029_p2 = por %p12028_p3, %p12027_p1 }
  0xad   : > { %p12023_p7 = pneg %p12022_p4 }
  0xaf   : > { %p12030_p9 = pnand %p12029_p2, %p12023_p7 }
  0xb1   : > { %12033 = shalt.err (!%p12030_p9)
}
  0xb2   : > { %s12183_s4 = smov 32   ;;  %s17570_s23 = smov 512  }
  0xb3   : > { %10895 = dma.hbm_to_vmem [thread:$0]  (!%p12306_p5), %s17254_s9, 32768, %s502_s12, [#allocation15], %s17570_s23, %s17570_s23, %s12183_s4  }
  0xb4   : > { %s17571_s20 = sand.u32 1, %s12150_s15   ;;  %s12045_s0 = scalar_lea.vmem %s527_s8, 128 }
  0xb5   : > { %s9952_s6 = sshll.u32 %s17571_s20, 2  ;;  %p12046_p8 = scmp.ne.s32.totalorder %s527_s8, %s12045_s0 }
  0xb6   : > { %p12053_p12 = scmp.lt.s32.totalorder %s527_s8, %s527_s8  ;;  %p12054_p13 = scmp.lt.s32.totalorder %s12045_s0, %s12045_s0 }
  0xb7   : > { %p12048_p10 = pnand %p12046_p8, %p12314_p6 }
  0xb8   : > { %p12055_p0 = por %p12054_p13, %p12053_p12 }
  0xb9   : > { %p12049_p11 = pneg %p12048_p10 }
  0xbb   : > { %p12056_p4 = pnand %p12055_p0, %p12049_p11 }
  0xbd   : > { %12059 = shalt.err (!%p12056_p4)
}
  0xbe   : > { %10901 = dma.hbm_to_vmem [thread:$0]  (!%p12306_p5), %s17256_s11, 128, %s527_s8, [#allocation18]  }
  0xbf   : > { %s10706_s12 = sshll.u32 %s12158_s17, 6  ;;  %s564_s14 = scalar_lea.vmem [#allocation22], %s9952_s6 }
  0xc0   : > { %s572_s28 = scalar_lea.hbm %s17258_s13, %s10706_s12  ;;  %s574_s29 = sshll.u32 %s564_s14, 4  ;;  %s575_s29 = int_to_ptr.vmem [resolvable:$true] %s574_s29 }
  0xc1   : > { %s12073_s20 = scalar_lea.vmem %s575_s29, 64  ;;  %p17572_p7 = scmp.ne.s32.totalorder %s17567_s16, 0 }
  0xc2   : > { %p12074_p6 = scmp.ne.s32.totalorder %s575_s29, %s12073_s20  ;;  %s12184_s27 = smov [#allocation22]  }
  0xc3   : > { %p17573_p1 = pneg %p17572_p7  ;;  %s12078_s0 = sshll.u32 %s12184_s27, 4  ;;  %s12079_s0 = int_to_ptr.vmem [resolvable:$false] %s12078_s0 }
  0xc4   : > { %s12080_s25 = scalar_lea.vmem %s12079_s0, 128  ;;  %p12081_p9 = scmp.lt.s32.totalorder %s575_s29, %s12079_s0 }
  0xc5   : > { %p12076_p3 = pnand %p12074_p6, %p17573_p1  ;;  %p12082_p5 = scmp.lt.s32.totalorder %s12080_s25, %s12073_s20 }
  0xc7   : > { %p12077_p2 = pneg %p12076_p3  ;;  %p12083_p8 = por %p12082_p5, %p12081_p9 }
  0xc9   : > { %p12084_p10 = pnand %p12083_p8, %p12077_p2 }
  0xcb   : > { %12087 = shalt.err (!%p12084_p10)
}
  0xcc   : > { %10908 = dma.hbm_to_vmem [thread:$0]  (!%p17572_p7), %s572_s28, 64, %s575_s29, %s12405_s19  }
  0xcd   : > { %p17574_p11 = scmp.ne.s32.totalorder %s17553_s22, 0 }
  0xcf   : > { %583 = sbr.rel (%p17574_p11) target bundleno = 2285 (0x8ed), region = 76 }
  0xd4   : > { %p17575_p12 = scmp.eq.s32.totalorder %s12293_s21, 0 }
  0xd6   : > { %12113 = dma.done.wait (%p17575_p12), [#allocation4], 1024   ;;  %p17576_p13 = pmov %p17575_p12 }
  0xd7   : > { %p17577_p0 = pmov %p17575_p12 }
  0xd8   : > { %12115 = vsyncadd (%p17576_p13), [#allocation4], 4294966272 }
  0xd9   : > { %12117 = dma.done.wait (%p17577_p0), [#allocation6], 2064   ;;  %p17578_p4 = pmov %p17577_p0 }
  0xda   : > { %p17579_p6 = pmov %p17577_p0 }
  0xdb   : > { %12119 = vsyncadd (%p17578_p4), [#allocation6], 4294965232 }
  0xdc   : > { %12121 = dma.done.wait (%p17579_p6), [#allocation9], 64   ;;  %p17580_p7 = pmov %p17577_p0 }
  0xdd   : > { %p17581_p1 = pmov %p17577_p0 }
  0xde   : > { %12123 = vsyncadd (%p17580_p7), [#allocation9], 4294967232 }
  0xdf   : > { %12125 = dma.done.wait (%p17581_p1), [#allocation12], 8256   ;;  %p17582_p3 = pmov %p17577_p0 }
  0xe0   : > { %p17583_p2 = pmov %p17577_p0 }
  0xe1   : > { %12127 = vsyncadd (%p17582_p3), [#allocation12], 4294959040 }
  0xe2   : > { %12129 = dma.done.wait (%p17583_p2), [#allocation15], 32832   ;;  %p17584_p9 = pmov %p17577_p0 }
  0xe3   : > { %p17585_p5 = pmov %p17577_p0 }
  0xe4   : > { %12131 = vsyncadd (%p17584_p9), [#allocation15], 4294934464 }
  0xe5   : > { %12133 = dma.done.wait (%p17585_p5), [#allocation18], 256   ;;  %p17586_p8 = pmov %p17577_p0 }
  0xe6   : > { %s629_s22 = sand.u32 1, %s12293_s21   ;;  %s631_s16 = sand.u32 1, %s12146_s30  }
  0xe7   : > { %12135 = vsyncadd (%p17586_p8), [#allocation18], 4294967040  ;;  %s9967_s19 = sshll.u32 %s631_s16, 11  ;;  %s630_s8 = scalar_lea.sflag [#allocation21], %s629_s22 }
  0xe8   : > { %s12502_s6 = scalar_lea.vmem [#allocation20], %s9967_s19  ;;  %p17587_p10 = scmp.ne.s32.totalorder %s17564_s2, 0 }
  0xea   : > { %12137 = dma.done.wait (%p17587_p10), %s630_s8, 32832  }
  0xeb   : > { %12139 = vsyncadd (%p17587_p10), %s630_s8, 4294934464  ;;  %s9968_s10 = sshll.u32 %s631_s16, 2  ;;  %s9969_s12 = sshll.u32 %s631_s16, 9 }
  0xec   : > { %s12508_s4 = scalar_lea.vmem [#allocation22], %s9968_s10  ;;  %s12510_s23 = scalar_lea.vmem [#allocation23], %s9969_s12 }
  0xed   : > { %s17588_s28 = sld [smem:[#allocation31_spill]] }
  0xf3   : > { %p9970_p11 = scmp.ne.s32.totalorder %s17588_s28, 0 }
  0xf5   : > { %704 = sbr.rel (%p9970_p11) target bundleno = 1746 (0x6d2), region = 132 }
  0xfa   : > { %v11001_v0 = vld [vmem:[#allocation3 + $0x38] sm:$0xff]   ;;  %v11002_v1 = vld [vmem:[#allocation3 + $0x30] sm:$0xff]   ;;  %v11003_v2 = vld [vmem:[#allocation3 + $0x28] sm:$0xff]   ;;  %s17589_s14 = sld [smem:[#allocation162_spill]]  ;;  %v12185_v48 = vmov 0  }
  0xfb   : > { %10788 = vmatprep.subr.bf16.mxu0 %v11001_v0  ;;  %v11004_v3 = vld [vmem:[#allocation3 + $0x20] sm:$0xff]   ;;  %v11005_v7 = vld [vmem:[#allocation3 + $0x18] sm:$0xff]   ;;  %v11006_v11 = vld [vmem:[#allocation3 + $0x10] sm:$0xff]   ;;  %1049 = vmatprep.mubr.bf16.mxu1 %v12185_v48 }
  0xfc   : > { %10789 = vmatpush3.bf16.msra.mxu0 %v11001_v0  ;;  %v11009_v8 = vld [vmem:[#allocation7 + $0x74] ss:$8 sps:$4 sm:$0xff]   ;;  %v11011_v9 = vld [vmem:[#allocation7 + $0x70] ss:$8 sps:$4 sm:$0xff]   ;;  %v11012_v10 = vld [vmem:[#allocation7 + $0x64] ss:$8 sps:$4 sm:$0xff]  }
  0xfd   : > { %10790 = vmatprep.subr.bf16.mxu0 %v11002_v1  ;;  %1017 = vmatprep.subr.bf16.mxu1 %v11009_v8  ;;  %v11014_v12 = vld [vmem:[#allocation7 + $0x60] ss:$8 sps:$4 sm:$0xff]   ;;  %v11015_v13 = vld [vmem:[#allocation7 + $0x54] ss:$8 sps:$4 sm:$0xff]   ;;  %v11017_v15 = vld [vmem:[#allocation7 + $0x50] ss:$8 sps:$4 sm:$0xff]  }
  0xfe   : > { %1018 = vmatpush1.bf16.msra.mxu1 %v11011_v9  ;;  %v11007_v14 = vld [vmem:[#allocation3 + $0x8] sm:$0xff]   ;;  %v11008_v17 = vld [vmem:[#allocation3] sm:$0xff]   ;;  %v11023_v24 = vld [vmem:[#allocation7 + $0x30] ss:$8 sps:$4 sm:$0xff]  }
  0xff   : > { %1019 = vmatprep.subr.bf16.mxu1 %v11012_v10  ;;  %v11018_v16 = vld [vmem:[#allocation7 + $0x44] ss:$8 sps:$4 sm:$0xff]   ;;  %v11020_v18 = vld [vmem:[#allocation7 + $0x40] ss:$8 sps:$4 sm:$0xff]   ;;  %v11021_v19 = vld [vmem:[#allocation7 + $0x34] ss:$8 sps:$4 sm:$0xff]  }
 0x100   : > { %10791 = vmatpush3.bf16.msra.mxu0 %v11002_v1  ;;  %v705_v4 = vld [vmem:[%s17589_s14] sm:$0xff]  ;;  %v706_v5 = vld [vmem:[%s17589_s14 + $0x8] sm:$0xff]  ;;  %v707_v20 = vld [vmem:[%s17589_s14 + $0x10] sm:$0xff] }
 0x101   : > { %10792 = vmatprep.subr.bf16.mxu0 %v11003_v2  ;;  %v721_v6 = vpack.c.bf16 %v706_v5, %v705_v4  ;;  %v708_v21 = vld [vmem:[%s17589_s14 + $0x18] sm:$0xff]  ;;  %v709_v22 = vld [vmem:[%s17589_s14 + $0x20] sm:$0xff]  ;;  %v710_v23 = vld [vmem:[%s17589_s14 + $0x28] sm:$0xff] }
 0x102   : > { %1020 = vmatpush1.bf16.msra.mxu1 %v11014_v12  ;;  %v722_v25 = vpack.c.bf16 %v708_v21, %v707_v20  ;;  %v723_v26 = vpack.c.bf16 %v710_v23, %v709_v22  ;;  %v711_v27 = vld [vmem:[%s17589_s14 + $0x30] sm:$0xff]  ;;  %v712_v28 = vld [vmem:[%s17589_s14 + $0x38] sm:$0xff]  ;;  %v713_v29 = vld [vmem:[%s17589_s14 + $0x40] sm:$0xff] }
 0x103   : > { %10804 = vmatprep.mubr.bf16.mxu0 %v721_v6  ;;  %1021 = vmatprep.subr.bf16.mxu1 %v11015_v13  ;;  %v714_v30 = vld [vmem:[%s17589_s14 + $0x48] sm:$0xff]  ;;  %v724_v31 = vpack.c.bf16 %v712_v28, %v711_v27  ;;  %v715_v33 = vld [vmem:[%s17589_s14 + $0x50] sm:$0xff]  ;;  %v716_v34 = vld [vmem:[%s17589_s14 + $0x58] sm:$0xff] }
 0x104   : > { %10793 = vmatpush3.bf16.msra.mxu0 %v11003_v2  ;;  %v725_v32 = vpack.c.bf16 %v714_v30, %v713_v29  ;;  %v717_v35 = vld [vmem:[%s17589_s14 + $0x60] sm:$0xff]  ;;  %v718_v36 = vld [vmem:[%s17589_s14 + $0x68] sm:$0xff]  ;;  %v726_v37 = vpack.c.bf16 %v716_v34, %v715_v33  ;;  %v719_v39 = vld [vmem:[%s17589_s14 + $0x70] sm:$0xff] }
 0x105   : > { %10794 = vmatprep.subr.bf16.mxu0 %v11004_v3  ;;  %v727_v38 = vpack.c.bf16 %v718_v36, %v717_v35  ;;  %v720_v40 = vld [vmem:[%s17589_s14 + $0x78] sm:$0xff]  ;;  %v11024_v42 = vld [vmem:[#allocation7 + $0x24] ss:$8 sps:$4 sm:$0xff]   ;;  %v11026_v43 = vld [vmem:[#allocation7 + $0x20] ss:$8 sps:$4 sm:$0xff]  }
 0x106   : > { %1022 = vmatpush1.bf16.msra.mxu1 %v11017_v15  ;;  %v728_v41 = vpack.c.bf16 %v720_v40, %v719_v39  ;;  %v11027_v44 = vld [vmem:[#allocation7 + $0x14] ss:$8 sps:$4 sm:$0xff]   ;;  %v11029_v45 = vld [vmem:[#allocation7 + $0x10] ss:$8 sps:$4 sm:$0xff]   ;;  %v11030_v46 = vld [vmem:[#allocation7 + $0x4] ss:$8 sps:$4 sm:$0xff]  }
 0x107   : > { %1023 = vmatprep.subr.bf16.mxu1 %v11018_v16  ;;  %v11032_v47 = vld [vmem:[#allocation7] ss:$8 sps:$4 sm:$0xff]   ;;  %v9971_v51 = vld [vmem:[#allocation5] ss:$0 sm:$0xff] }
 0x108   : > { %10795 = vmatpush3.bf16.msra.mxu0 %v11004_v3 }
 0x109   : > { %10796 = vmatprep.subr.bf16.mxu0 %v11005_v7 }
 0x10a   : > { %1024 = vmatpush1.bf16.msra.mxu1 %v11020_v18 }
 0x10b   : > { %1025 = vmatprep.subr.bf16.mxu1 %v11021_v19 }
 0x10c   : > { %10797 = vmatpush3.bf16.msra.mxu0 %v11005_v7 }
 0x10d   : > { %10798 = vmatprep.subr.bf16.mxu0 %v11006_v11 }
 0x10e   : > { %1026 = vmatpush1.bf16.msra.mxu1 %v11023_v24 }
 0x10f   : > { %1027 = vmatprep.subr.bf16.mxu1 %v11024_v42  ;;  %v11035_v42 = vld [vmem:[#allocation11 + $0xec] ss:$16 sps:$4 sm:$0xff]  }
 0x110   : > { %10799 = vmatpush3.bf16.msra.mxu0 %v11006_v11 }
 0x111   : > { %10800 = vmatprep.subr.bf16.mxu0 %v11007_v14 }
 0x112   : > { %1028 = vmatpush1.bf16.msra.mxu1 %v11026_v43  ;;  %v11038_v43 = vld [vmem:[#allocation11 + $0xe4] ss:$16 sps:$4 sm:$0xff]  }
 0x113   : > { %1029 = vmatprep.subr.bf16.mxu1 %v11027_v44  ;;  %v11033_v44 = vld [vmem:[#allocation11 + $0xe8] ss:$16 sps:$4 sm:$0xff]  }
 0x114   : > { %10801 = vmatpush3.bf16.msra.mxu0 %v11007_v14 }
 0x115   : > { %10802 = vmatprep.subr.bf16.mxu0 %v11008_v17 }
 0x116   : > { %1030 = vmatpush1.bf16.msra.mxu1 %v11029_v45  ;;  %v11036_v45 = vld [vmem:[#allocation11 + $0xe0] ss:$16 sps:$4 sm:$0xff]  }
 0x117   : > { %1031 = vmatprep.subr.bf16.mxu1 %v11030_v46  ;;  %v11041_v46 = vld [vmem:[#allocation11 + $0xcc] ss:$16 sps:$4 sm:$0xff]  }
 0x118   : > { %10803 = vmatpush3.bf16.msra.mxu0 %v11008_v17 }
 0x119   : > { %1811 = vmatprep.subr.bf16.mxu0 %v11038_v43 }
 0x11a   : > { %1032 = vmatpush1.bf16.msra.mxu1 %v11032_v47  ;;  %v11044_v47 = vld [vmem:[#allocation11 + $0xc4] ss:$16 sps:$4 sm:$0xff]  }
 0x11b   : > { %10805 = vmatmul.mubr.bf16.vlgmr.msra.gmra.mxu0 %v722_v25  ;;  %1924 = vmatprep.subr.bf16.mxu1 %v11035_v42 }
 0x11c   : > { %10808 = vmatprep.mubr.bf16.mxu0 %v723_v26  ;;  %1812 = vmatpush1.bf16.msra.mxu0 %v11036_v45 }
 0x11d   : > { %1813 = vmatprep.subr.bf16.mxu0 %v11044_v47 }
 0x123   : > { %10809 = vmatmul.mubr.bf16.gmra.mxu0 %v724_v31 }
 0x124   : > { %10812 = vmatprep.mubr.bf16.mxu0 %v725_v32 }
 0x12b   : > { %10813 = vmatmul.mubr.bf16.gmra.mxu0 %v726_v37 }
 0x12c   : > { %10816 = vmatprep.mubr.bf16.mxu0 %v727_v38 }
 0x133   : > { %10817 = vmatmul.mubr.bf16.gmra.mxu0 %v728_v41 }
 0x1db   : > { %v10806_v49 = vpop.f32.mrf.mxu0 }
 0x1dc   : > { %v843_v63 = vadd.f32 %v10806_v49, %v9971_v51  ;;  %v11039_v49 = vld [vmem:[#allocation11 + $0xc8] ss:$16 sps:$4 sm:$0xff]  }
 0x1dd   : > { %v834_v50 = vpop.f32.mrf.mxu0 }
 0x1de   : > { %v835_v53 = vadd.f32 %v9971_v51, %v834_v50  ;;  %v899_v2 = vmax.f32 %v843_v63, 0.0  ;;  %v11042_v50 = vld [vmem:[#allocation11 + $0xc0] ss:$16 sps:$4 sm:$0xff]   ;;  %v11068_v63 = vld [vmem:[#allocation11 + $0x44] ss:$16 sps:$4 sm:$0xff]  }
 0x1df   : > { %v10807_v52 = vpop.f32.mrf.mxu0  ;;  %1814 = vmatpush1.bf16.msra.mxu0 %v11042_v50 }
 0x1e0   : > { %v897_v57 = vmax.f32 %v835_v53, 0.0  ;;  %v846_v60 = vadd.f32 %v10807_v52, %v9971_v51  ;;  %v11045_v52 = vld [vmem:[#allocation11 + $0xa8] ss:$16 sps:$4 sm:$0xff]   ;;  %v11048_v53 = vld [vmem:[#allocation11 + $0xa0] ss:$16 sps:$4 sm:$0xff]  }
 0x1e1   : > { %v837_v54 = vpop.f32.mrf.mxu0 }
 0x1e2   : > { %v838_v55 = vadd.f32 %v9971_v51, %v837_v54  ;;  %v900_v0 = vmax.f32 %v846_v60, 0.0  ;;  %v11053_v54 = vld [vmem:[#allocation11 + $0x8c] ss:$16 sps:$4 sm:$0xff]   ;;  %v11057_v60 = vld [vmem:[#allocation11 + $0x68] ss:$16 sps:$4 sm:$0xff]  }
 0x1e3   : > { %v10810_v56 = vpop.f32.mrf.mxu0 }
 0x1e4   : > { %v898_v58 = vmax.f32 %v838_v55, 0.0  ;;  %v914_v3 = vpack.c.bf16 %v900_v0, %v899_v2  ;;  %v859_v10 = vadd.f32 %v10810_v56, %v9971_v51  ;;  %v11056_v55 = vld [vmem:[#allocation11 + $0x84] ss:$16 sps:$4 sm:$0xff]   ;;  %v11051_v56 = vld [vmem:[#allocation11 + $0x88] ss:$16 sps:$4 sm:$0xff]  }
 0x1e5   : > { %v850_v59 = vpop.f32.mrf.mxu0  ;;  %v11063_v0 = vld [vmem:[#allocation11 + $0x48] ss:$16 sps:$4 sm:$0xff]   ;;  %v11071_v2 = vld [vmem:[#allocation11 + $0x2c] ss:$16 sps:$4 sm:$0xff]  }
 0x1e6   : > { %v913_v61 = vpack.c.bf16 %v898_v58, %v897_v57  ;;  %v851_v4 = vadd.f32 %v9971_v51, %v850_v59  ;;  %v903_v14 = vmax.f32 %v859_v10, 0.0  ;;  %v11054_v57 = vld [vmem:[#allocation11 + $0x80] ss:$16 sps:$4 sm:$0xff]   ;;  %v11059_v58 = vld [vmem:[#allocation11 + $0x6c] ss:$16 sps:$4 sm:$0xff]  }
 0x1e7   : > { %v10811_v62 = vpop.f32.mrf.mxu0  ;;  %v11062_v59 = vld [vmem:[#allocation11 + $0x64] ss:$16 sps:$4 sm:$0xff]   ;;  %v11083_v10 = vld [vmem:[#allocation11 + $0x1ec] ss:$16 sps:$4 sm:$0xff]  }
 0x1e8   : > { %1050 = vmatmul.mubr.bf16.vlgmr.msra.gmra.mxu1 %v913_v61  ;;  %v901_v7 = vmax.f32 %v851_v4, 0.0  ;;  %v862_v11 = vadd.f32 %v10811_v62, %v9971_v51  ;;  %v11060_v61 = vld [vmem:[#allocation11 + $0x60] ss:$16 sps:$4 sm:$0xff]   ;;  %v11065_v62 = vld [vmem:[#allocation11 + $0x4c] ss:$16 sps:$4 sm:$0xff]  }
 0x1e9   : > { %1059 = vmatprep.mubr.bf16.mxu1 %v12185_v48  ;;  %v853_v1 = vpop.f32.mrf.mxu0  ;;  %1925 = vmatpush1.bf16.msra.mxu1 %v11033_v44  ;;  %v11069_v4 = vld [vmem:[#allocation11 + $0x28] ss:$16 sps:$4 sm:$0xff]  }
 0x1ea   : > { %v854_v5 = vadd.f32 %v9971_v51, %v853_v1  ;;  %v904_v15 = vmax.f32 %v862_v11, 0.0  ;;  %1926 = vmatprep.subr.bf16.mxu1 %v11041_v46  ;;  %v11066_v1 = vld [vmem:[#allocation11 + $0x40] ss:$16 sps:$4 sm:$0xff]   ;;  %v11086_v11 = vld [vmem:[#allocation11 + $0x1e4] ss:$16 sps:$4 sm:$0xff]  }
 0x1eb   : > { %v10814_v6 = vpop.f32.mrf.mxu0 }
 0x1ec   : > { %v902_v8 = vmax.f32 %v854_v5, 0.0  ;;  %v916_v17 = vpack.c.bf16 %v904_v15, %v903_v14  ;;  %v875_v24 = vadd.f32 %v10814_v6, %v9971_v51  ;;  %v11072_v5 = vld [vmem:[#allocation11 + $0x20] ss:$16 sps:$4 sm:$0xff]   ;;  %v11077_v6 = vld [vmem:[#allocation11 + $0xc] ss:$16 sps:$4 sm:$0xff]  }
 0x1ed   : > { %v866_v9 = vpop.f32.mrf.mxu0  ;;  %1927 = vmatpush1.bf16.msra.mxu1 %v11039_v49  ;;  %v11089_v14 = vld [vmem:[#allocation11 + $0x1cc] ss:$16 sps:$4 sm:$0xff]   ;;  %v11092_v15 = vld [vmem:[#allocation11 + $0x1c4] ss:$16 sps:$4 sm:$0xff]  }
 0x1ee   : > { %v915_v12 = vpack.c.bf16 %v902_v8, %v901_v7  ;;  %v867_v18 = vadd.f32 %v9971_v51, %v866_v9  ;;  %v907_v28 = vmax.f32 %v875_v24, 0.0  ;;  %v11080_v7 = vld [vmem:[#allocation11 + $0x4] ss:$16 sps:$4 sm:$0xff]   ;;  %v11075_v8 = vld [vmem:[#allocation11 + $0x8] ss:$16 sps:$4 sm:$0xff]  }
 0x1ef   : > { %v10815_v13 = vpop.f32.mrf.mxu0  ;;  %v11078_v9 = vld [vmem:[#allocation11] ss:$16 sps:$4 sm:$0xff]   ;;  %v11099_v24 = vld [vmem:[#allocation11 + $0x188] ss:$16 sps:$4 sm:$0xff]  }
 0x1f0   : > { %1060 = vmatmul.mubr.bf16.gmra.mxu1 %v914_v3  ;;  %v905_v21 = vmax.f32 %v867_v18, 0.0  ;;  %v878_v25 = vadd.f32 %v10815_v13, %v9971_v51  ;;  %v11074_v3 = vld [vmem:[#allocation11 + $0x24] ss:$16 sps:$4 sm:$0xff]   ;;  %v11084_v13 = vld [vmem:[#allocation11 + $0x1e0] ss:$16 sps:$4 sm:$0xff]  }
 0x1f1   : > { %1069 = vmatprep.mubr.bf16.mxu1 %v12185_v48  ;;  %v869_v16 = vpop.f32.mrf.mxu0  ;;  %v11095_v18 = vld [vmem:[#allocation11 + $0x1ac] ss:$16 sps:$4 sm:$0xff]  }
 0x1f2   : > { %v870_v19 = vadd.f32 %v9971_v51, %v869_v16  ;;  %v908_v29 = vmax.f32 %v878_v25, 0.0  ;;  %v11087_v16 = vld [vmem:[#allocation11 + $0x1c8] ss:$16 sps:$4 sm:$0xff]   ;;  %v11102_v25 = vld [vmem:[#allocation11 + $0x180] ss:$16 sps:$4 sm:$0xff]  }
 0x1f3   : > { %v10818_v20 = vpop.f32.mrf.mxu0 }
 0x1f4   : > { %v906_v22 = vmax.f32 %v870_v19, 0.0  ;;  %v918_v31 = vpack.c.bf16 %v908_v29, %v907_v28  ;;  %v891_v36 = vadd.f32 %v10818_v20, %v9971_v51  ;;  %v11098_v19 = vld [vmem:[#allocation11 + $0x1a4] ss:$16 sps:$4 sm:$0xff]   ;;  %v11093_v20 = vld [vmem:[#allocation11 + $0x1a8] ss:$16 sps:$4 sm:$0xff]  }
 0x1f5   : > { %v882_v23 = vpop.f32.mrf.mxu0  ;;  %v11105_v28 = vld [vmem:[#allocation11 + $0x168] ss:$16 sps:$4 sm:$0xff]   ;;  %v11108_v29 = vld [vmem:[#allocation11 + $0x160] ss:$16 sps:$4 sm:$0xff]  }
 0x1f6   : > { %v917_v26 = vpack.c.bf16 %v906_v22, %v905_v21  ;;  %v883_v32 = vadd.f32 %v9971_v51, %v882_v23  ;;  %v911_v39 = vmax.f32 %v891_v36, 0.0  ;;  %v11096_v21 = vld [vmem:[#allocation11 + $0x1a0] ss:$16 sps:$4 sm:$0xff]   ;;  %v11101_v22 = vld [vmem:[#allocation11 + $0x18c] ss:$16 sps:$4 sm:$0xff]  }
 0x1f7   : > { %v10819_v27 = vpop.f32.mrf.mxu0  ;;  %v11104_v23 = vld [vmem:[#allocation11 + $0x184] ss:$16 sps:$4 sm:$0xff]   ;;  %v11117_v36 = vld [vmem:[#allocation11 + $0x128] ss:$16 sps:$4 sm:$0xff]  }
 0x1f8   : > { %1070 = vmatmul.mubr.bf16.gmra.mxu1 %v915_v12  ;;  %v909_v34 = vmax.f32 %v883_v32, 0.0  ;;  %v894_v37 = vadd.f32 %v10819_v27, %v9971_v51  ;;  %v11081_v12 = vld [vmem:[#allocation11 + $0x1e8] ss:$16 sps:$4 sm:$0xff]   ;;  %v11110_v27 = vld [vmem:[#allocation11 + $0x164] ss:$16 sps:$4 sm:$0xff]  }
 0x1f9   : > { %1079 = vmatprep.mubr.bf16.mxu1 %v12185_v48  ;;  %v885_v30 = vpop.f32.mrf.mxu0  ;;  %v11111_v32 = vld [vmem:[#allocation11 + $0x148] ss:$16 sps:$4 sm:$0xff]  }
 0x1fa   : > { %v886_v33 = vadd.f32 %v9971_v51, %v885_v30  ;;  %v912_v40 = vmax.f32 %v894_v37, 0.0  ;;  %v11050_v51 = vld [vmem:[#allocation11 + $0xa4] ss:$16 sps:$4 sm:$0xff]   ;;  %v11113_v30 = vld [vmem:[#allocation11 + $0x14c] ss:$16 sps:$4 sm:$0xff]  }
 0x1fb   : > { %1815 = vmatprep.subr.bf16.mxu0 %v11050_v51  ;;  %v11120_v37 = vld [vmem:[#allocation11 + $0x120] ss:$16 sps:$4 sm:$0xff]  }
 0x1fc   : > { %v910_v35 = vmax.f32 %v886_v33, 0.0  ;;  %v920_v41 = vpack.c.bf16 %v912_v40, %v911_v39  ;;  %1816 = vmatpush1.bf16.msra.mxu0 %v11048_v53  ;;  %v11114_v33 = vld [vmem:[#allocation11 + $0x140] ss:$16 sps:$4 sm:$0xff]   ;;  %v11128_v39 = vld [vmem:[#allocation11 + $0x104] ss:$16 sps:$4 sm:$0xff]  }
 0x1fd   : > { %1817 = vmatprep.subr.bf16.mxu0 %v11056_v55  ;;  %v11123_v40 = vld [vmem:[#allocation11 + $0x108] ss:$16 sps:$4 sm:$0xff]  }
 0x1fe   : > { %v919_v38 = vpack.c.bf16 %v910_v35, %v909_v34  ;;  %v11119_v34 = vld [vmem:[#allocation11 + $0x12c] ss:$16 sps:$4 sm:$0xff]   ;;  %v11122_v35 = vld [vmem:[#allocation11 + $0x124] ss:$16 sps:$4 sm:$0xff]  }
 0x200   : > { %1080 = vmatmul.mubr.bf16.gmra.mxu1 %v916_v17  ;;  %1818 = vmatpush1.bf16.msra.mxu0 %v11054_v57  ;;  %v11090_v17 = vld [vmem:[#allocation11 + $0x1c0] ss:$16 sps:$4 sm:$0xff]  }
 0x201   : > { %1089 = vmatprep.mubr.bf16.mxu1 %v12185_v48  ;;  %1819 = vmatprep.subr.bf16.mxu0 %v11062_v59 }
 0x204   : > { %1820 = vmatpush1.bf16.msra.mxu0 %v11060_v61 }
 0x205   : > { %1821 = vmatprep.subr.bf16.mxu0 %v11068_v63 }
 0x208   : > { %1090 = vmatmul.mubr.bf16.gmra.mxu1 %v917_v26  ;;  %1822 = vmatpush1.bf16.msra.mxu0 %v11066_v1  ;;  %v11107_v26 = vld [vmem:[#allocation11 + $0x16c] ss:$16 sps:$4 sm:$0xff]  }
 0x209   : > { %1099 = vmatprep.mubr.bf16.mxu1 %v12185_v48  ;;  %1823 = vmatprep.subr.bf16.mxu0 %v11074_v3 }
 0x20c   : > { %1824 = vmatpush1.bf16.msra.mxu0 %v11072_v5 }
 0x20d   : > { %1825 = vmatprep.subr.bf16.mxu0 %v11080_v7 }
 0x210   : > { %1100 = vmatmul.mubr.bf16.gmra.mxu1 %v918_v31  ;;  %1826 = vmatpush1.bf16.msra.mxu0 %v11078_v9  ;;  %v11116_v31 = vld [vmem:[#allocation11 + $0x144] ss:$16 sps:$4 sm:$0xff]  }
 0x211   : > { %1109 = vmatprep.mubr.bf16.mxu1 %v12185_v48  ;;  %1827 = vmatprep.subr.bf16.mxu0 %v11086_v11 }
 0x214   : > { %1828 = vmatpush2.bf16.msra.mxu0 %v11084_v13 }
 0x215   : > { %1829 = vmatprep.subr.bf16.mxu0 %v11092_v15 }
 0x218   : > { %1110 = vmatmul.mubr.bf16.gmra.mxu1 %v919_v38  ;;  %1830 = vmatpush2.bf16.msra.mxu0 %v11090_v17  ;;  %v11125_v38 = vld [vmem:[#allocation11 + $0x10c] ss:$16 sps:$4 sm:$0xff]  }
 0x219   : > { %1119 = vmatprep.mubr.bf16.mxu1 %v12185_v48  ;;  %v11047_v48 = vld [vmem:[#allocation11 + $0xac] ss:$16 sps:$4 sm:$0xff]   ;;  %1831 = vmatprep.subr.bf16.mxu0 %v11098_v19 }
 0x21a   : > { %1928 = vmatprep.subr.bf16.mxu1 %v11047_v48 }
 0x21b   : > { %1929 = vmatpush1.bf16.msra.mxu1 %v11045_v52 }
 0x21c   : > { %1930 = vmatprep.subr.bf16.mxu1 %v11053_v54  ;;  %1832 = vmatpush2.bf16.msra.mxu0 %v11096_v21 }
 0x21d   : > { %1833 = vmatprep.subr.bf16.mxu0 %v11104_v23 }
 0x21f   : > { %1931 = vmatpush1.bf16.msra.mxu1 %v11051_v56 }
 0x220   : > { %1120 = vmatmul.mubr.bf16.gmra.mxu1 %v920_v41  ;;  %1932 = vmatprep.subr.bf16.mxu1 %v11059_v58  ;;  %v11126_v41 = vld [vmem:[#allocation11 + $0x100] ss:$16 sps:$4 sm:$0xff]  }
 0x221   : > { %1834 = vmatpush2.bf16.msra.mxu0 %v11102_v25 }
 0x222   : > { %1835 = vmatprep.subr.bf16.mxu0 %v11110_v27 }
 0x223   : > { %1933 = vmatpush1.bf16.msra.mxu1 %v11057_v60 }
 0x224   : > { %1934 = vmatprep.subr.bf16.mxu1 %v11065_v62 }
 0x225   : > { %1836 = vmatpush2.bf16.msra.mxu0 %v11108_v29 }
 0x226   : > { %1837 = vmatprep.subr.bf16.mxu0 %v11116_v31 }
 0x227   : > { %1935 = vmatpush1.bf16.msra.mxu1 %v11063_v0 }
 0x228   : > { %1936 = vmatprep.subr.bf16.mxu1 %v11071_v2 }
 0x229   : > { %1838 = vmatpush2.bf16.msra.mxu0 %v11114_v33 }
 0x22a   : > { %1839 = vmatprep.subr.bf16.mxu0 %v11122_v35 }
 0x22b   : > { %1937 = vmatpush1.bf16.msra.mxu1 %v11069_v4 }
 0x22c   : > { %1938 = vmatprep.subr.bf16.mxu1 %v11077_v6 }
 0x22d   : > { %1840 = vmatpush2.bf16.msra.mxu0 %v11120_v37 }
 0x22e   : > { %1841 = vmatprep.subr.bf16.mxu0 %v11128_v39 }
 0x22f   : > { %1939 = vmatpush1.bf16.msra.mxu1 %v11075_v8 }
 0x230   : > { %1940 = vmatprep.subr.bf16.mxu1 %v11083_v10 }
 0x231   : > { %1842 = vmatpush2.bf16.msra.mxu0 %v11126_v41 }
 0x233   : > { %1941 = vmatpush2.bf16.msra.mxu1 %v11081_v12 }
 0x234   : > { %1942 = vmatprep.subr.bf16.mxu1 %v11089_v14 }
 0x237   : > { %1943 = vmatpush2.bf16.msra.mxu1 %v11087_v16 }
 0x238   : > { %1944 = vmatprep.subr.bf16.mxu1 %v11095_v18 }
 0x23b   : > { %1945 = vmatpush2.bf16.msra.mxu1 %v11093_v20 }
 0x23c   : > { %1946 = vmatprep.subr.bf16.mxu1 %v11101_v22 }
 0x23f   : > { %1947 = vmatpush2.bf16.msra.mxu1 %v11099_v24 }
 0x240   : > { %1948 = vmatprep.subr.bf16.mxu1 %v11107_v26 }
 0x243   : > { %1949 = vmatpush2.bf16.msra.mxu1 %v11105_v28 }
 0x244   : > { %1950 = vmatprep.subr.bf16.mxu1 %v11113_v30 }
 0x247   : > { %1951 = vmatpush2.bf16.msra.mxu1 %v11111_v32 }
 0x248   : > { %1952 = vmatprep.subr.bf16.mxu1 %v11119_v34 }
 0x24b   : > { %1953 = vmatpush2.bf16.msra.mxu1 %v11117_v36 }
 0x24c   : > { %1954 = vmatprep.subr.bf16.mxu1 %v11125_v38 }
 0x24f   : > { %1955 = vmatpush2.bf16.msra.mxu1 %v11123_v40 }
 0x2a8   : > { %v12569_v42 = vpop.f32.mrf.mxu1 }
 0x2a9   : > { %v1174_v61 = vmul.f32 %v12569_v42, %v12569_v42 }
 0x2aa   : > { %v12571_v43 = vpop.f32.mrf.mxu1 }
 0x2ab   : > { %v1175_v0 = vmul.f32 %v12571_v43, %v12571_v43 }
 0x2ac   : > { %v12573_v44 = vpop.f32.mrf.mxu1 }
 0x2ad   : > { %v1176_v58 = vmul.f32 %v12573_v44, %v12573_v44  ;;  %v1130_v62 = vadd.f32 %v12573_v44, %v12569_v42 }
 0x2ae   : > { %v12575_v45 = vpop.f32.mrf.mxu1 }
 0x2af   : > { %v1177_v59 = vmul.f32 %v12575_v45, %v12575_v45  ;;  %v1206_v3 = vadd.f32 %v1176_v58, %v1174_v61  ;;  %v1151_v5 = vadd.f32 %v12575_v45, %v12571_v43 }
 0x2b0   : > { %v12577_v46 = vpop.f32.mrf.mxu1 }
 0x2b1   : > { %v1178_v63 = vmul.f32 %v12577_v46, %v12577_v46  ;;  %v1131_v4 = vadd.f32 %v1130_v62, %v12577_v46  ;;  %v1227_v7 = vadd.f32 %v1177_v59, %v1175_v0 }
 0x2b2   : > { %v12579_v47 = vpop.f32.mrf.mxu1 }
 0x2b3   : > { %v1179_v1 = vmul.f32 %v12579_v47, %v12579_v47  ;;  %v1207_v10 = vadd.f32 %v1206_v3, %v1178_v63  ;;  %v1152_v11 = vadd.f32 %v1151_v5, %v12579_v47 }
 0x2b4   : > { %v12581_v49 = vpop.f32.mrf.mxu1 }
 0x2b5   : > { %v1180_v6 = vmul.f32 %v12581_v49, %v12581_v49  ;;  %v1132_v12 = vadd.f32 %v1131_v4, %v12581_v49  ;;  %v1228_v14 = vadd.f32 %v1227_v7, %v1179_v1 }
 0x2b6   : > { %v12583_v50 = vpop.f32.mrf.mxu1 }
 0x2b7   : > { %v1181_v8 = vmul.f32 %v12583_v50, %v12583_v50  ;;  %v1208_v17 = vadd.f32 %v1207_v10, %v1180_v6  ;;  %v1153_v19 = vadd.f32 %v1152_v11, %v12583_v50 }
 0x2b8   : > { %v12585_v48 = vpop.f32.mrf.mxu1 }
 0x2b9   : > { %v1182_v13 = vmul.f32 %v12585_v48, %v12585_v48  ;;  %v1133_v18 = vadd.f32 %v1132_v12, %v12585_v48  ;;  %v1229_v21 = vadd.f32 %v1228_v14, %v1181_v8 }
 0x2ba   : > { %v12587_v51 = vpop.f32.mrf.mxu1 }
 0x2bb   : > { %v1183_v15 = vmul.f32 %v12587_v51, %v12587_v51  ;;  %v1209_v24 = vadd.f32 %v1208_v17, %v1182_v13  ;;  %v1154_v25 = vadd.f32 %v1153_v19, %v12587_v51 }
 0x2bc   : > { %v12589_v52 = vpop.f32.mrf.mxu1 }
 0x2bd   : > { %v1184_v20 = vmul.f32 %v12589_v52, %v12589_v52  ;;  %v1134_v26 = vadd.f32 %v1133_v18, %v12589_v52  ;;  %v1230_v28 = vadd.f32 %v1229_v21, %v1183_v15 }
 0x2be   : > { %v12591_v53 = vpop.f32.mrf.mxu1 }
 0x2bf   : > { %v1185_v22 = vmul.f32 %v12591_v53, %v12591_v53  ;;  %v1210_v31 = vadd.f32 %v1209_v24, %v1184_v20  ;;  %v1155_v33 = vadd.f32 %v1154_v25, %v12591_v53 }
 0x2c0   : > { %v12593_v54 = vpop.f32.mrf.mxu1 }
 0x2c1   : > { %v1186_v27 = vmul.f32 %v12593_v54, %v12593_v54  ;;  %v1135_v32 = vadd.f32 %v1134_v26, %v12593_v54  ;;  %v1231_v35 = vadd.f32 %v1230_v28, %v1185_v22 }
 0x2c2   : > { %v12595_v55 = vpop.f32.mrf.mxu1 }
 0x2c3   : > { %v1187_v29 = vmul.f32 %v12595_v55, %v12595_v55  ;;  %v1211_v38 = vadd.f32 %v1210_v31, %v1186_v27  ;;  %v1156_v39 = vadd.f32 %v1155_v33, %v12595_v55 }
 0x2c4   : > { %v12597_v56 = vpop.f32.mrf.mxu1 }
 0x2c5   : > { %v1188_v34 = vmul.f32 %v12597_v56, %v12597_v56  ;;  %v1136_v40 = vadd.f32 %v1135_v32, %v12597_v56  ;;  %v1232_v58 = vadd.f32 %v1231_v35, %v1187_v29 }
 0x2c6   : > { %v12599_v57 = vpop.f32.mrf.mxu1 }
 0x2c7   : > { %v1189_v36 = vmul.f32 %v12599_v57, %v12599_v57  ;;  %v1212_v62 = vadd.f32 %v1211_v38, %v1188_v34  ;;  %v1157_v0 = vadd.f32 %v1156_v39, %v12599_v57 }
 0x2c8   : > { %v12605_v60 = vpop.f32.mrf.mxu1 }
 0x2c9   : > { %v1190_v41 = vmul.f32 %v12605_v60, %v12605_v60  ;;  %v1137_v63 = vadd.f32 %v1136_v40, %v12605_v60  ;;  %v1233_v3 = vadd.f32 %v1232_v58, %v1189_v36 }
 0x2ca   : > { %v12617_v2 = vpop.f32.mrf.mxu1 }
 0x2cb   : > { %v1191_v59 = vmul.f32 %v12617_v2, %v12617_v2  ;;  %v1213_v6 = vadd.f32 %v1212_v62, %v1190_v41  ;;  %v1158_v7 = vadd.f32 %v1157_v0, %v12617_v2 }
 0x2cc   : > { %v12626_v9 = vpop.f32.mrf.mxu1 }
 0x2cd   : > { %v1192_v1 = vmul.f32 %v12626_v9, %v12626_v9  ;;  %v1138_v8 = vadd.f32 %v1137_v63, %v12626_v9  ;;  %v1234_v11 = vadd.f32 %v1233_v3, %v1191_v59 }
 0x2ce   : > { %v12634_v16 = vpop.f32.mrf.mxu1 }
 0x2cf   : > { %v1193_v4 = vmul.f32 %v12634_v16, %v12634_v16  ;;  %v1214_v14 = vadd.f32 %v1213_v6, %v1192_v1  ;;  %v1159_v17 = vadd.f32 %v1158_v7, %v12634_v16 }
 0x2d0   : > { %v12642_v23 = vpop.f32.mrf.mxu1 }
 0x2d1   : > { %v1194_v10 = vmul.f32 %v12642_v23, %v12642_v23  ;;  %v1139_v15 = vadd.f32 %v1138_v8, %v12642_v23  ;;  %v1235_v19 = vadd.f32 %v1234_v11, %v1193_v4 }
 0x2d2   : > { %v12650_v30 = vpop.f32.mrf.mxu1 }
 0x2d3   : > { %v1195_v12 = vmul.f32 %v12650_v30, %v12650_v30  ;;  %v1215_v22 = vadd.f32 %v1214_v14, %v1194_v10  ;;  %v1160_v24 = vadd.f32 %v1159_v17, %v12650_v30 }
 0x2d4   : > { %v12658_v37 = vpop.f32.mrf.mxu1 }
 0x2d5   : > { %v1196_v18 = vmul.f32 %v12658_v37, %v12658_v37  ;;  %v1140_v25 = vadd.f32 %v1139_v15, %v12658_v37  ;;  %v1236_v27 = vadd.f32 %v1235_v19, %v1195_v12 }
 0x2d6   : > { %v12666_v61 = vpop.f32.mrf.mxu1 }
 0x2d7   : > { %v1197_v20 = vmul.f32 %v12666_v61, %v12666_v61  ;;  %v1216_v31 = vadd.f32 %v1215_v22, %v1196_v18  ;;  %v1161_v33 = vadd.f32 %v1160_v24, %v12666_v61 }
 0x2d8   : > { %v12674_v5 = vpop.f32.mrf.mxu1 }
 0x2d9   : > { %v1198_v26 = vmul.f32 %v12674_v5, %v12674_v5  ;;  %v1141_v32 = vadd.f32 %v1140_v25, %v12674_v5  ;;  %v1237_v35 = vadd.f32 %v1236_v27, %v1197_v20 }
 0x2da   : > { %v12682_v13 = vpop.f32.mrf.mxu1 }
 0x2db   : > { %v1199_v28 = vmul.f32 %v12682_v13, %v12682_v13  ;;  %v1217_v39 = vadd.f32 %v1216_v31, %v1198_v26  ;;  %v1162_v40 = vadd.f32 %v1161_v33, %v12682_v13 }
 0x2dc   : > { %v12690_v21 = vpop.f32.mrf.mxu1 }
 0x2dd   : > { %v1200_v34 = vmul.f32 %v12690_v21, %v12690_v21  ;;  %v1142_v41 = vadd.f32 %v1141_v32, %v12690_v21  ;;  %v1238_v59 = vadd.f32 %v1237_v35, %v1199_v28 }
 0x2de   : > { %v12698_v29 = vpop.f32.mrf.mxu1 }
 0x2df   : > { %v1201_v36 = vmul.f32 %v12698_v29, %v12698_v29  ;;  %v1218_v63 = vadd.f32 %v1217_v39, %v1200_v34  ;;  %v1163_v1 = vadd.f32 %v1162_v40, %v12698_v29 }
 0x2e0   : > { %v12706_v38 = vpop.f32.mrf.mxu1 }
 0x2e1   : > { %v1202_v58 = vmul.f32 %v12706_v38, %v12706_v38  ;;  %v1143_v0 = vadd.f32 %v1142_v41, %v12706_v38  ;;  %v1239_v4 = vadd.f32 %v1238_v59, %v1201_v36 }
 0x2e2   : > { %v12712_v62 = vpop.f32.mrf.mxu1 }
 0x2e3   : > { %v1203_v3 = vmul.f32 %v12712_v62, %v12712_v62  ;;  %v1219_v7 = vadd.f32 %v1218_v63, %v1202_v58  ;;  %v1164_v8 = vadd.f32 %v1163_v1, %v12712_v62 }
 0x2e4   : > { %v12718_v6 = vpop.f32.mrf.mxu1 }
 0x2e5   : > { %v1144_v10 = vadd.f32 %v1143_v0, %v12718_v6  ;;  %v1204_v11 = vmul.f32 %v12718_v6, %v12718_v6  ;;  %v1240_v12 = vadd.f32 %v1239_v4, %v1203_v3 }
 0x2e6   : > { %v12724_v14 = vpop.f32.mrf.mxu1 }
 0x2e7   : > { %v1145_v15 = vrot.slane %v1144_v10, 4  ;;  %v1220_v17 = vadd.f32 %v1219_v7, %v1204_v11  ;;  %v1165_v18 = vadd.f32 %v1164_v8, %v12724_v14  ;;  %v1205_v19 = vmul.f32 %v12724_v14, %v12724_v14 }
 0x2e9   : > { %v1146_v20 = vadd.f32 %v1145_v15, %v1144_v10  ;;  %v1221_v22 = vrot.slane %v1220_v17, 4  ;;  %v1166_v24 = vrot.slane %v1165_v18, 4  ;;  %v1241_v25 = vadd.f32 %v1240_v12, %v1205_v19 }
 0x2eb   : > { %v1147_v26 = vrot.slane %v1146_v20, 2  ;;  %v1222_v27 = vadd.f32 %v1221_v22, %v1220_v17  ;;  %v1167_v28 = vadd.f32 %v1166_v24, %v1165_v18  ;;  %v1242_v31 = vrot.slane %v1241_v25, 4 }
 0x2ec   : > { %v1262_v24 = vlaneseq }
 0x2ed   : > { %v1148_v32 = vadd.f32 %v1147_v26, %v1146_v20  ;;  %v1223_v33 = vrot.slane %v1222_v27, 2  ;;  %v1168_v34 = vrot.slane %v1167_v28, 2  ;;  %v1243_v35 = vadd.f32 %v1242_v31, %v1241_v25  ;;  %v1260_v31 = vld [vmem:[#allocation8] sm:$0x3] }
 0x2ef   : > { %v1149_v36 = vrot.slane %v1148_v32, 1  ;;  %v1224_v39 = vadd.f32 %v1223_v33, %v1222_v27  ;;  %v1169_v40 = vadd.f32 %v1168_v34, %v1167_v28  ;;  %v1244_v41 = vrot.slane %v1243_v35, 2 }
 0x2f0   : > { %v12729_v27 = vshrl.u32 %v1262_v24, 7  ;;  %v12186_v34 = vmov 1966171168  }
 0x2f1   : > { %v1150_v58 = vadd.f32 %v1149_v36, %v1148_v32  ;;  %v1225_v59 = vrot.slane %v1224_v39, 1  ;;  %v1170_v63 = vrot.slane %v1169_v40, 1  ;;  %v1245_v0 = vadd.f32 %v1244_v41, %v1243_v35 }
 0x2f2   : > { %17590 = vst [vmem:[#allocation33_spill] sm:$0xff] %v12729_v27  ;;  %v12732_v28 = vsub.s32 0, %v12729_v27  ;;  %v12735_v32 = vsub.s32 1, %v12729_v27  ;;  %v1281_v35 = vunpack.c.l.s4 %v12186_v34 }
 0x2f3   : > { %v1172_v1 = vmul.f32 0.0078125, %v1150_v58  ;;  %v1226_v3 = vadd.f32 %v1225_v59, %v1224_v39  ;;  %v1171_v4 = vadd.f32 %v1170_v63, %v1169_v40  ;;  %v1246_v7 = vrot.slane %v1245_v0, 1 }
 0x2f4   : > { %17591 = vst [vmem:[#allocation34_spill] sm:$0xff] %v12732_v28  ;;  %17592 = vst [vmem:[#allocation35_spill] sm:$0xff] %v12735_v32  ;;  %v1265_v33 = vrot.slane %v1260_v31, %v12732_v28  ;;  %v1269_v36 = vrot.slane %v1260_v31, %v12735_v32  ;;  %v1282_v41 = vunpack.c.0.s8 %v1281_v35 }
 0x2f5   : > { %v1248_v8 = vmul.f32 0.0078125, %v1226_v3  ;;  %v1250_v10 = vmul.f32 %v1172_v1, %v1172_v1  ;;  %v1173_v11 = vmul.f32 0.0078125, %v1171_v4  ;;  %v1247_v12 = vadd.f32 %v1246_v7, %v1245_v0 }
 0x2f6   : > { %v12740_v3 = vsub.s32 %v1282_v41, %v12729_v27 }
 0x2f7   : > { %v1252_v15 = vsub.f32 %v1248_v8, %v1250_v10  ;;  %v1249_v17 = vmul.f32 0.0078125, %v1247_v12  ;;  %v1251_v18 = vmul.f32 %v1173_v11, %v1173_v11  ;;  %v1274_v10 = vld [vmem:[#allocation10] sm:$0x3] }
 0x2f8   : > { %17593 = vst [vmem:[#allocation36_spill] sm:$0xff] %v12740_v3 }
 0x2f9   : > { %v1254_v19 = vmax.f32 %v1252_v15, 0.0  ;;  %v1253_v20 = vsub.f32 %v1249_v17, %v1251_v18 }
 0x2fb   : > { %v1256_v22 = vadd.f32 1e-05, %v1254_v19  ;;  %v1255_v25 = vmax.f32 %v1253_v20, 0.0 }
 0x2fd   : > { %11129 = vrsqrt.f32 %v1256_v22  ;;  %v1257_v26 = vadd.f32 1e-05, %v1255_v25 }
 0x2ff   : > { %11131 = vrsqrt.f32 %v1257_v26 }
 0x30a   : > { %v11130_v39 = vpop.eup %11129 }
 0x30b   : > { %v1272_v40 = vmul.f32 %v11130_v39, %v1265_v33 }
 0x30c   : > { %v11132_v58 = vpop.eup %11131 }
 0x30d   : > { %v1273_v59 = vmul.f32 %v11132_v58, %v1269_v36  ;;  %v1275_v63 = vmul.f32 %v1272_v40, %v1172_v1  ;;  %v12744_v8 = vrot.slane %v1272_v40, %v12732_v28 }
 0x30f   : > { %v1276_v0 = vmul.f32 %v1273_v59, %v1173_v11  ;;  %v12748_v15 = vrot.slane %v1273_v59, %v12732_v28  ;;  %v1304_v1 = vmul.f32 %v12744_v8, %v12569_v42  ;;  %v1306_v11 = vmul.f32 %v12744_v8, %v12573_v44 }
 0x310   : > { %v1310_v40 = vmul.f32 %v12744_v8, %v12581_v49 }
 0x311   : > { %v1279_v4 = vcombine.low %v1275_v63, %v1276_v0  ;;  %v1305_v20 = vmul.f32 %v12748_v15, %v12571_v43  ;;  %v1307_v22 = vmul.f32 %v12748_v15, %v12575_v45  ;;  %v1309_v24 = vmul.f32 %v12748_v15, %v12579_v47 }
 0x312   : > { %v1311_v42 = vmul.f32 %v12748_v15, %v12583_v50  ;;  %v1308_v50 = vmul.f32 %v12744_v8, %v12577_v46  ;;  %v1313_v59 = vmul.f32 %v12748_v15, %v12587_v51  ;;  %v1315_v63 = vmul.f32 %v12748_v15, %v12591_v53 }
 0x313   : > { %v1286_v7 = vrot.slane %v1279_v4, %v12740_v3  ;;  %v1312_v53 = vmul.f32 %v12744_v8, %v12585_v48  ;;  %v1330_v48 = vmul.f32 %v12744_v8, %v12690_v21 }
 0x315   : > { %v1293_v12 = vrot.slane %v1286_v7, %v12740_v3 }
 0x317   : > { %v1295_v17 = vsub.f32 %v1274_v10, %v1293_v12 }
 0x319   : > { %v12755_v18 = vrot.slane %v1295_v17, %v12732_v28  ;;  %v12758_v19 = vrot.slane %v1295_v17, %v12735_v32 }
 0x31b   : > { %v1348_v44 = vadd.f32 %v12758_v19, %v1305_v20  ;;  %v1350_v25 = vadd.f32 %v12758_v19, %v1307_v22  ;;  %v1347_v26 = vadd.f32 %v12755_v18, %v1304_v1  ;;  %v1349_v31 = vadd.f32 %v12755_v18, %v1306_v11 }
 0x31c   : > { %v1352_v33 = vadd.f32 %v12758_v19, %v1309_v24  ;;  %v1354_v43 = vadd.f32 %v12758_v19, %v1311_v42  ;;  %v1351_v0 = vadd.f32 %v12755_v18, %v1308_v50  ;;  %v1353_v4 = vadd.f32 %v12755_v18, %v1310_v40 }
 0x31d   : > { %v1380_v34 = vmax.f32 %v1348_v44, 0.0  ;;  %v1382_v45 = vmax.f32 %v1350_v25, 0.0  ;;  %v1379_v35 = vmax.f32 %v1347_v26, 0.0  ;;  %v1381_v36 = vmax.f32 %v1349_v31, 0.0 }
 0x31e   : > { %v1384_v47 = vmax.f32 %v1352_v33, 0.0  ;;  %v1386_v39 = vmax.f32 %v1354_v43, 0.0  ;;  %v1356_v46 = vadd.f32 %v12758_v19, %v1313_v59  ;;  %v1358_v10 = vadd.f32 %v12758_v19, %v1315_v63 }
 0x31f   : > { %v1412_v41 = vpack.c.bf16 %v1382_v45, %v1380_v34  ;;  %v1411_v58 = vpack.c.bf16 %v1381_v36, %v1379_v35  ;;  %v1383_v49 = vmax.f32 %v1351_v0, 0.0  ;;  %v1385_v51 = vmax.f32 %v1353_v4, 0.0 }
 0x320   : > { %v1414_v7 = vpack.c.bf16 %v1386_v39, %v1384_v47  ;;  %v1388_v12 = vmax.f32 %v1356_v46, 0.0  ;;  %v1390_v17 = vmax.f32 %v1358_v10, 0.0  ;;  %v1314_v1 = vmul.f32 %v12744_v8, %v12589_v52 }
 0x321   : > { %1843 = vmatprep.mubr.bf16.mxu0 %v1412_v41  ;;  %1956 = vmatprep.mubr.bf16.mxu1 %v1412_v41  ;;  %v1355_v11 = vadd.f32 %v12755_v18, %v1312_v53  ;;  %v1317_v22 = vmul.f32 %v12748_v15, %v12595_v55  ;;  %v1319_v24 = vmul.f32 %v12748_v15, %v12599_v57 }
 0x322   : > { %1844 = vmatmul.mubr.bf16.vlgmr.msra.gmra.mxu0 %v1411_v58  ;;  %1957 = vmatmul.mubr.bf16.vlgmr.msra.gmra.mxu1 %v1411_v58  ;;  %v1357_v20 = vadd.f32 %v12755_v18, %v1314_v1  ;;  %v1413_v42 = vpack.c.bf16 %v1385_v51, %v1383_v49  ;;  %v1328_v44 = vmul.f32 %v12744_v8, %v12674_v5 }
 0x323   : > { %1853 = vmatprep.mubr.bf16.mxu0 %v1414_v7  ;;  %1966 = vmatprep.mubr.bf16.mxu1 %v1414_v7  ;;  %v1334_v52 = vmul.f32 %v12744_v8, %v12718_v6  ;;  %v1416_v25 = vpack.c.bf16 %v1390_v17, %v1388_v12  ;;  %v1360_v26 = vadd.f32 %v12758_v19, %v1317_v22  ;;  %v1387_v21 = vmax.f32 %v1355_v11, 0.0 }
 0x324   : > { %v1362_v31 = vadd.f32 %v12758_v19, %v1319_v24  ;;  %v1371_v55 = vadd.f32 %v12755_v18, %v1328_v44  ;;  %v1373_v57 = vadd.f32 %v12755_v18, %v1330_v48  ;;  %v1332_v5 = vmul.f32 %v12744_v8, %v12706_v38 }
 0x325   : > { %v1389_v33 = vmax.f32 %v1357_v20, 0.0  ;;  %v1377_v45 = vadd.f32 %v12755_v18, %v1334_v52  ;;  %v1392_v35 = vmax.f32 %v1360_v26, 0.0  ;;  %v1316_v47 = vmul.f32 %v12744_v8, %v12593_v54 }
 0x326   : > { %v1403_v43 = vmax.f32 %v1371_v55, 0.0  ;;  %v1405_v6 = vmax.f32 %v1373_v57, 0.0  ;;  %v1375_v34 = vadd.f32 %v12755_v18, %v1332_v5  ;;  %v1394_v36 = vmax.f32 %v1362_v31, 0.0 }
 0x327   : > { %v1318_v39 = vmul.f32 %v12744_v8, %v12597_v56  ;;  %v1409_v40 = vmax.f32 %v1377_v45, 0.0  ;;  %v1321_v41 = vmul.f32 %v12748_v15, %v12617_v2  ;;  %v1323_v58 = vmul.f32 %v12748_v15, %v12634_v16 }
 0x328   : > { %v12814_v50 = vpack.c.bf16 %v1405_v6, %v1403_v43  ;;  %v1407_v38 = vmax.f32 %v1375_v34, 0.0  ;;  %v1415_v59 = vpack.c.bf16 %v1389_v33, %v1387_v21  ;;  %v1359_v63 = vadd.f32 %v12755_v18, %v1316_v47  ;;  %v2807_v47 = vld [vmem:[#allocation16 + $0x5e0] sm:$0xff] }
 0x329   : > { %v1361_v0 = vadd.f32 %v12755_v18, %v1318_v39  ;;  %v1418_v54 = vpack.c.bf16 %v1394_v36, %v1392_v35  ;;  %v1364_v56 = vadd.f32 %v12758_v19, %v1321_v41  ;;  %v1366_v7 = vadd.f32 %v12758_v19, %v1323_v58  ;;  %v2795_v41 = vld [vmem:[#allocation16 + $0x580] sm:$0xff] }
 0x32a   : > { %1854 = vmatmul.mubr.bf16.gmra.mxu0 %v1413_v42  ;;  %1967 = vmatmul.mubr.bf16.gmra.mxu1 %v1413_v42  ;;  %v12822_v4 = vpack.c.bf16 %v1409_v40, %v1407_v38  ;;  %v1391_v2 = vmax.f32 %v1359_v63, 0.0  ;;  %v1320_v49 = vmul.f32 %v12744_v8, %v12605_v60  ;;  %v1322_v51 = vmul.f32 %v12744_v8, %v12626_v9  ;;  %v2667_v40 = vld [vmem:[#allocation16 + $0x180] sm:$0xff] }
 0x32b   : > { %1863 = vmatprep.mubr.bf16.mxu0 %v1416_v25  ;;  %1976 = vmatprep.mubr.bf16.mxu1 %v1416_v25  ;;  %v1393_v46 = vmax.f32 %v1361_v0, 0.0  ;;  %v1396_v10 = vmax.f32 %v1364_v56, 0.0  ;;  %v1398_v16 = vmax.f32 %v1366_v7, 0.0  ;;  %v1325_v12 = vmul.f32 %v12748_v15, %v12650_v30  ;;  %v2663_v56 = vld [vmem:[#allocation16 + $0x160] sm:$0xff] }
 0x32c   : > { %v1327_v17 = vmul.f32 %v12748_v15, %v12666_v61  ;;  %v1363_v1 = vadd.f32 %v12755_v18, %v1320_v49  ;;  %v1365_v11 = vadd.f32 %v12755_v18, %v1322_v51  ;;  %v1324_v61 = vmul.f32 %v12744_v8, %v12642_v23  ;;  %v2787_v7 = vld [vmem:[#allocation16 + $0x540] sm:$0xff] }
 0x32d   : > { %v1417_v53 = vpack.c.bf16 %v1393_v46, %v1391_v2  ;;  %v1420_v20 = vpack.c.bf16 %v1398_v16, %v1396_v10  ;;  %v1368_v22 = vadd.f32 %v12758_v19, %v1325_v12  ;;  %v1326_v44 = vmul.f32 %v12744_v8, %v12658_v37  ;;  %v2791_v46 = vld [vmem:[#allocation16 + $0x560] sm:$0xff] }
 0x32e   : > { %v1370_v24 = vadd.f32 %v12758_v19, %v1327_v17  ;;  %v1395_v60 = vmax.f32 %v1363_v1, 0.0  ;;  %v1397_v9 = vmax.f32 %v1365_v11, 0.0  ;;  %v1329_v48 = vmul.f32 %v12748_v15, %v12682_v13  ;;  %v2651_v51 = vld [vmem:[#allocation16 + $0x100] sm:$0xff] }
 0x32f   : > { %v1400_v30 = vmax.f32 %v1368_v22, 0.0  ;;  %v1331_v52 = vmul.f32 %v12748_v15, %v12698_v29  ;;  %v1367_v26 = vadd.f32 %v12755_v18, %v1324_v61  ;;  %v1369_v31 = vadd.f32 %v12755_v18, %v1326_v44  ;;  %v2655_v12 = vld [vmem:[#allocation16 + $0x120] sm:$0xff] }
 0x330   : > { %v1402_v42 = vmax.f32 %v1370_v24, 0.0  ;;  %v1419_v25 = vpack.c.bf16 %v1397_v9, %v1395_v60  ;;  %v1372_v57 = vadd.f32 %v12758_v19, %v1329_v48  ;;  %v1335_v29 = vmul.f32 %v12748_v15, %v12724_v14  ;;  %v2679_v14 = vld [vmem:[#allocation16 + $0x1e0] sm:$0xff] }
 0x331   : > { %v1374_v5 = vadd.f32 %v12758_v19, %v1331_v52  ;;  %v1399_v23 = vmax.f32 %v1367_v26, 0.0  ;;  %v1401_v37 = vmax.f32 %v1369_v31, 0.0  ;;  %v1333_v21 = vmul.f32 %v12748_v15, %v12712_v62  ;;  %v2675_v62 = vld [vmem:[#allocation16 + $0x1c0] sm:$0xff] }
 0x332   : > { %1864 = vmatmul.mubr.bf16.gmra.mxu0 %v1415_v59  ;;  %1977 = vmatmul.mubr.bf16.gmra.mxu1 %v1415_v59  ;;  %v1422_v55 = vpack.c.bf16 %v1402_v42, %v1400_v30  ;;  %v1404_v13 = vmax.f32 %v1372_v57, 0.0  ;;  %v1378_v6 = vadd.f32 %v12758_v19, %v1335_v29  ;;  %v2803_v15 = vld [vmem:[#allocation16 + $0x5c0] sm:$0xff]  ;;  %v10117_v36 = vcombine.high %v2675_v62, %v2679_v14 }
 0x333   : > { %1873 = vmatprep.mubr.bf16.mxu0 %v1418_v54  ;;  %1986 = vmatprep.mubr.bf16.mxu1 %v1418_v54  ;;  %v1406_v8 = vmax.f32 %v1374_v5, 0.0  ;;  %v1421_v18 = vpack.c.bf16 %v1401_v37, %v1399_v23  ;;  %v1376_v43 = vadd.f32 %v12758_v19, %v1333_v21  ;;  %v10116_v19 = vcombine.low %v2675_v62, %v2679_v14  ;;  %v2799_v59 = vld [vmem:[#allocation16 + $0x5a0] sm:$0xff] }
 0x334   : > { %v1410_v45 = vmax.f32 %v1378_v6, 0.0  ;;  %v10244_v39 = vcombine.low %v2803_v15, %v2807_v47  ;;  %v10245_v38 = vcombine.high %v2803_v15, %v2807_v47  ;;  %4155 = vmatprep.subr.bf16.mxu0 %v10117_v36  ;;  %v10236_v0 = vcombine.low %v2795_v41, %v2799_v59  ;;  %v2659_v54 = vld [vmem:[#allocation16 + $0x140] sm:$0xff] }
 0x335   : > { %v1424_v33 = vpack.c.bf16 %v1406_v8, %v1404_v13  ;;  %v1408_v34 = vmax.f32 %v1376_v43, 0.0  ;;  %4156 = vmatpush1.bf16.msra.mxu0 %v10116_v19  ;;  %v10101_v2 = vcombine.high %v2659_v54, %v2663_v56  ;;  %v10100_v10 = vcombine.low %v2659_v54, %v2663_v56  ;;  %v2779_v17 = vld [vmem:[#allocation16 + $0x500] sm:$0xff] }
 0x336   : > { %4268 = vmatprep.subr.bf16.mxu1 %v10245_v38  ;;  %v10228_v16 = vcombine.low %v2787_v7, %v2791_v46  ;;  %v10229_v49 = vcombine.high %v2787_v7, %v2791_v46  ;;  %v2783_v1 = vld [vmem:[#allocation16 + $0x520] sm:$0xff]  ;;  %v10092_v11 = vcombine.low %v2651_v51, %v2655_v12 }
 0x337   : > { %v1426_v35 = vpack.c.bf16 %v1410_v45, %v1408_v34  ;;  %4269 = vmatpush1.bf16.msra.mxu1 %v10244_v39  ;;  %v10221_v22 = vcombine.high %v2779_v17, %v2783_v1  ;;  %v2643_v24 = vld [vmem:[#allocation16 + $0xc0] sm:$0xff] }
 0x338   : > { %v2647_v60 = vld [vmem:[#allocation16 + $0xe0] sm:$0xff] }
 0x339   : > { %v2771_v9 = vld [vmem:[#allocation16 + $0x4c0] sm:$0xff]  ;;  %v10085_v30 = vcombine.high %v2643_v24, %v2647_v60  ;;  %v10084_v61 = vcombine.low %v2643_v24, %v2647_v60 }
 0x33a   : > { %1874 = vmatmul.mubr.bf16.gmra.mxu0 %v1417_v53  ;;  %1987 = vmatmul.mubr.bf16.gmra.mxu1 %v1417_v53  ;;  %v10093_v53 = vcombine.high %v2651_v51, %v2655_v12  ;;  %v2775_v42 = vld [vmem:[#allocation16 + $0x4e0] sm:$0xff] }
 0x33b   : > { %1883 = vmatprep.mubr.bf16.mxu0 %v1420_v20  ;;  %1996 = vmatprep.mubr.bf16.mxu1 %v1420_v20  ;;  %v10220_v20 = vcombine.low %v2779_v17, %v2783_v1  ;;  %v10212_v44 = vcombine.low %v2771_v9, %v2775_v42  ;;  %v10213_v48 = vcombine.high %v2771_v9, %v2775_v42  ;;  %v2635_v52 = vld [vmem:[#allocation16 + $0x80] sm:$0xff] }
 0x33c   : > { %v2763_v26 = vld [vmem:[#allocation16 + $0x480] sm:$0xff] }
 0x33d   : > { %v2627_v37 = vld [vmem:[#allocation16 + $0x40] sm:$0xff] }
 0x33e   : > { %v2631_v13 = vld [vmem:[#allocation16 + $0x60] sm:$0xff] }
 0x33f   : > { %v2755_v8 = vld [vmem:[#allocation16 + $0x440] sm:$0xff]  ;;  %v10069_v29 = vcombine.high %v2627_v37, %v2631_v13 }
 0x340   : > { %v2759_v21 = vld [vmem:[#allocation16 + $0x460] sm:$0xff] }
 0x341   : > { %v10197_v43 = vcombine.high %v2755_v8, %v2759_v21  ;;  %v2619_v6 = vld [vmem:[#allocation16] sm:$0xff] }
 0x342   : > { %1884 = vmatmul.mubr.bf16.gmra.mxu0 %v1419_v25  ;;  %1997 = vmatmul.mubr.bf16.gmra.mxu1 %v1419_v25  ;;  %v2639_v25 = vld [vmem:[#allocation16 + $0xa0] sm:$0xff] }
 0x343   : > { %1893 = vmatprep.mubr.bf16.mxu0 %v1422_v55  ;;  %2006 = vmatprep.mubr.bf16.mxu1 %v1422_v55  ;;  %v10077_v31 = vcombine.high %v2635_v52, %v2639_v25  ;;  %v2767_v55 = vld [vmem:[#allocation16 + $0x4a0] sm:$0xff]  ;;  %v10076_v57 = vcombine.low %v2635_v52, %v2639_v25 }
 0x344   : > { %v10204_v5 = vcombine.low %v2763_v26, %v2767_v55  ;;  %v10205_v23 = vcombine.high %v2763_v26, %v2767_v55  ;;  %v2623_v34 = vld [vmem:[#allocation16 + $0x20] sm:$0xff] }
 0x345   : > { %v2747_v45 = vld [vmem:[#allocation16 + $0x400] sm:$0xff]  ;;  %v10060_v14 = vcombine.low %v2619_v6, %v2623_v34 }
 0x346   : > { %v2751_v62 = vld [vmem:[#allocation16 + $0x420] sm:$0xff] }
 0x347   : > { %v10188_v15 = vcombine.low %v2747_v45, %v2751_v62  ;;  %v10189_v19 = vcombine.high %v2747_v45, %v2751_v62  ;;  %v2739_v36 = vld [vmem:[#allocation16 + $0x3c0] sm:$0xff]  ;;  %v12866_v62 = vld [vmem:[#allocation16 + $0x5c8] sm:$0xff] }
 0x348   : > { %v2743_v47 = vld [vmem:[#allocation16 + $0x3e0] sm:$0xff]  ;;  %17596 = vst [vmem:[#allocation39_spill] sm:$0xff] %v12866_v62 }
 0x349   : > { %v2867_v39 = vld [vmem:[#allocation16 + $0x7c0] sm:$0xff]  ;;  %v10181_v38 = vcombine.high %v2739_v36, %v2743_v47 }
 0x34a   : > { %1894 = vmatmul.mubr.bf16.gmra.mxu0 %v1421_v18  ;;  %2007 = vmatmul.mubr.bf16.gmra.mxu1 %v1421_v18  ;;  %v10068_v18 = vcombine.low %v2627_v37, %v2631_v13  ;;  %v2863_v54 = vld [vmem:[#allocation16 + $0x7a0] sm:$0xff] }
 0x34b   : > { %1903 = vmatprep.mubr.bf16.mxu0 %v1424_v33  ;;  %2016 = vmatprep.mubr.bf16.mxu1 %v1424_v33  ;;  %v10196_v33 = vcombine.low %v2755_v8, %v2759_v21  ;;  %v2723_v46 = vld [vmem:[#allocation16 + $0x340] sm:$0xff] }
 0x34c   : > { %v2855_v51 = vld [vmem:[#allocation16 + $0x760] sm:$0xff] }
 0x34d   : > { %v2715_v1 = vld [vmem:[#allocation16 + $0x300] sm:$0xff] }
 0x34e   : > { %v2847_v24 = vld [vmem:[#allocation16 + $0x720] sm:$0xff] }
 0x34f   : > { %v2707_v42 = vld [vmem:[#allocation16 + $0x2c0] sm:$0xff] }
 0x350   : > { %v2839_v25 = vld [vmem:[#allocation16 + $0x6e0] sm:$0xff] }
 0x351   : > { %v2699_v26 = vld [vmem:[#allocation16 + $0x280] sm:$0xff] }
 0x352   : > { %1904 = vmatmul.mubr.bf16.gmra.mxu0 %v12814_v50  ;;  %2017 = vmatmul.mubr.bf16.gmra.mxu1 %v12814_v50  ;;  %v2671_v50 = vld [vmem:[#allocation16 + $0x1a0] sm:$0xff] }
 0x353   : > { %1913 = vmatprep.mubr.bf16.mxu0 %v1426_v35  ;;  %2026 = vmatprep.mubr.bf16.mxu1 %v1426_v35  ;;  %v10109_v58 = vcombine.high %v2667_v40, %v2671_v50  ;;  %v10108_v63 = vcombine.low %v2667_v40, %v2671_v50  ;;  %v10061_v35 = vcombine.high %v2619_v6, %v2623_v34  ;;  %v2871_v40 = vld [vmem:[#allocation16 + $0x7e0] sm:$0xff]  ;;  %v12862_v6 = vld [vmem:[#allocation16 + $0x1e8] sm:$0xff] }
 0x354   : > { %v10180_v50 = vcombine.low %v2739_v36, %v2743_v47  ;;  %v2831_v37 = vld [vmem:[#allocation16 + $0x6a0] sm:$0xff]  ;;  %17595 = vst [vmem:[#allocation38_spill] sm:$0xff] %v12862_v6 }
 0x355   : > { %4157 = vmatprep.subr.bf16.mxu0 %v10109_v58  ;;  %v10309_v58 = vcombine.high %v2867_v39, %v2871_v40  ;;  %v2691_v8 = vld [vmem:[#allocation16 + $0x240] sm:$0xff] }
 0x356   : > { %4158 = vmatpush1.bf16.msra.mxu0 %v10108_v63  ;;  %v2735_v63 = vld [vmem:[#allocation16 + $0x3a0] sm:$0xff] }
 0x357   : > { %4159 = vmatprep.subr.bf16.mxu0 %v10101_v2  ;;  %v2819_v21 = vld [vmem:[#allocation16 + $0x640] sm:$0xff] }
 0x358   : > { %v2683_v47 = vld [vmem:[#allocation16 + $0x200] sm:$0xff] }
 0x35a   : > { %1914 = vmatmul.mubr.bf16.gmra.mxu0 %v12822_v4  ;;  %2027 = vmatmul.mubr.bf16.gmra.mxu1 %v12822_v4  ;;  %v10237_v4 = vcombine.high %v2795_v41, %v2799_v59  ;;  %v10308_v41 = vcombine.low %v2867_v39, %v2871_v40  ;;  %v2731_v59 = vld [vmem:[#allocation16 + $0x380] sm:$0xff] }
 0x35b   : > { %4160 = vmatpush1.bf16.msra.mxu0 %v10100_v10  ;;  %v10172_v56 = vcombine.low %v2731_v59, %v2735_v63  ;;  %v2727_v10 = vld [vmem:[#allocation16 + $0x360] sm:$0xff] }
 0x35c   : > { %4270 = vmatprep.subr.bf16.mxu1 %v10237_v4  ;;  %4161 = vmatprep.subr.bf16.mxu0 %v10093_v53  ;;  %v10173_v4 = vcombine.high %v2731_v59, %v2735_v63  ;;  %v10164_v12 = vcombine.low %v2723_v46, %v2727_v10  ;;  %v2811_v40 = vld [vmem:[#allocation16 + $0x600] sm:$0xff] }
 0x35d   : > { %4271 = vmatpush1.bf16.msra.mxu1 %v10236_v0  ;;  %v2859_v0 = vld [vmem:[#allocation16 + $0x780] sm:$0xff] }
 0x35e   : > { %4272 = vmatprep.subr.bf16.mxu1 %v10229_v49  ;;  %v10300_v7 = vcombine.low %v2859_v0, %v2863_v54  ;;  %v10301_v2 = vcombine.high %v2859_v0, %v2863_v54  ;;  %v10165_v49 = vcombine.high %v2723_v46, %v2727_v10 }
 0x35f   : > { %4162 = vmatpush1.bf16.msra.mxu0 %v10092_v11  ;;  %v2719_v11 = vld [vmem:[#allocation16 + $0x320] sm:$0xff] }
 0x360   : > { %4163 = vmatprep.subr.bf16.mxu0 %v10085_v30  ;;  %v10156_v60 = vcombine.low %v2715_v1, %v2719_v11 }
 0x361   : > { %4273 = vmatpush1.bf16.msra.mxu1 %v10228_v16  ;;  %v2851_v16 = vld [vmem:[#allocation16 + $0x740] sm:$0xff] }
 0x362   : > { %4274 = vmatprep.subr.bf16.mxu1 %v10221_v22  ;;  %v10292_v17 = vcombine.low %v2851_v16, %v2855_v51  ;;  %v10293_v53 = vcombine.high %v2851_v16, %v2855_v51  ;;  %v10157_v22 = vcombine.high %v2715_v1, %v2719_v11 }
 0x363   : > { %4164 = vmatpush1.bf16.msra.mxu0 %v10084_v61  ;;  %v2711_v61 = vld [vmem:[#allocation16 + $0x2e0] sm:$0xff] }
 0x364   : > { %4165 = vmatprep.subr.bf16.mxu0 %v10077_v31  ;;  %v10149_v52 = vcombine.high %v2707_v42, %v2711_v61  ;;  %v2703_v31 = vld [vmem:[#allocation16 + $0x2a0] sm:$0xff] }
 0x365   : > { %4275 = vmatpush1.bf16.msra.mxu1 %v10220_v20  ;;  %v2843_v20 = vld [vmem:[#allocation16 + $0x700] sm:$0xff] }
 0x366   : > { %4276 = vmatprep.subr.bf16.mxu1 %v10213_v48  ;;  %v10284_v9 = vcombine.low %v2843_v20, %v2847_v24  ;;  %v10285_v30 = vcombine.high %v2843_v20, %v2847_v24  ;;  %v10148_v48 = vcombine.low %v2707_v42, %v2711_v61 }
 0x367   : > { %4166 = vmatpush1.bf16.msra.mxu0 %v10076_v57 }
 0x368   : > { %4167 = vmatprep.subr.bf16.mxu0 %v10069_v29  ;;  %v2695_v29 = vld [vmem:[#allocation16 + $0x260] sm:$0xff] }
 0x369   : > { %4277 = vmatpush1.bf16.msra.mxu1 %v10212_v44  ;;  %v2835_v44 = vld [vmem:[#allocation16 + $0x6c0] sm:$0xff]  ;;  %v10133_v45 = vcombine.high %v2691_v8, %v2695_v29  ;;  %v10132_v59 = vcombine.low %v2691_v8, %v2695_v29 }
 0x36a   : > { %4278 = vmatprep.subr.bf16.mxu1 %v10205_v23  ;;  %v10276_v55 = vcombine.low %v2835_v44, %v2839_v25  ;;  %v10277_v57 = vcombine.high %v2835_v44, %v2839_v25  ;;  %v2827_v23 = vld [vmem:[#allocation16 + $0x680] sm:$0xff] }
 0x36b   : > { %4168 = vmatpush1.bf16.msra.mxu0 %v10068_v18  ;;  %v10269_v13 = vcombine.high %v2827_v23, %v2831_v37  ;;  %v2823_v18 = vld [vmem:[#allocation16 + $0x660] sm:$0xff]  ;;  %v10268_v34 = vcombine.low %v2827_v23, %v2831_v37 }
 0x36c   : > { %4169 = vmatprep.subr.bf16.mxu0 %v10061_v35  ;;  %v10261_v36 = vcombine.high %v2819_v21, %v2823_v18  ;;  %v10260_v63 = vcombine.low %v2819_v21, %v2823_v18 }
 0x36d   : > { %4279 = vmatpush1.bf16.msra.mxu1 %v10204_v5  ;;  %v10141_v5 = vcombine.high %v2699_v26, %v2703_v31 }
 0x36e   : > { %4280 = vmatprep.subr.bf16.mxu1 %v10197_v43  ;;  %v12860_v43 = vld [vmem:[#allocation16 + $0x1c8] sm:$0xff] }
 0x36f   : > { %4170 = vmatpush1.bf16.msra.mxu0 %v10060_v14  ;;  %17594 = vst [vmem:[#allocation37_spill] sm:$0xff] %v12860_v43  ;;  %v12868_v14 = vld [vmem:[#allocation16 + $0x5e8] sm:$0xff]  ;;  %v10119_v51 = vcombine.high %v12860_v43, %v12862_v6 }
 0x370   : > { %4171 = vmatprep.subr.bf16.mxu0 %v10181_v38  ;;  %17597 = vst [vmem:[#allocation40_spill] sm:$0xff] %v12868_v14  ;;  %v2687_v38 = vld [vmem:[#allocation16 + $0x220] sm:$0xff] }
 0x371   : > { %4281 = vmatpush1.bf16.msra.mxu1 %v10196_v33  ;;  %v10140_v33 = vcombine.low %v2699_v26, %v2703_v31  ;;  %v10125_v54 = vcombine.high %v2683_v47, %v2687_v38  ;;  %v10124_v46 = vcombine.low %v2683_v47, %v2687_v38 }
 0x372   : > { %4282 = vmatprep.subr.bf16.mxu1 %v10189_v19 }
 0x373   : > { %4172 = vmatpush2.bf16.msra.mxu0 %v10180_v50  ;;  %v2815_v50 = vld [vmem:[#allocation16 + $0x620] sm:$0xff] }
 0x374   : > { %4173 = vmatprep.subr.bf16.mxu0 %v10173_v4  ;;  %v10252_v10 = vcombine.low %v2811_v40, %v2815_v50 }
 0x375   : > { %4283 = vmatpush1.bf16.msra.mxu1 %v10188_v15 }
 0x376   : > { %4284 = vmatprep.subr.bf16.mxu1 %v10309_v58 }
 0x377   : > { %4174 = vmatpush2.bf16.msra.mxu0 %v10172_v56  ;;  %v10253_v56 = vcombine.high %v2811_v40, %v2815_v50 }
 0x378   : > { %4175 = vmatprep.subr.bf16.mxu0 %v10165_v49 }
 0x379   : > { %4285 = vmatpush2.bf16.msra.mxu1 %v10308_v41 }
 0x37a   : > { %4286 = vmatprep.subr.bf16.mxu1 %v10301_v2 }
 0x37b   : > { %4176 = vmatpush2.bf16.msra.mxu0 %v10164_v12  ;;  %v10247_v12 = vcombine.high %v12866_v62, %v12868_v14 }
 0x37c   : > { %4177 = vmatprep.subr.bf16.mxu0 %v10157_v22 }
 0x37d   : > { %4287 = vmatpush2.bf16.msra.mxu1 %v10300_v7 }
 0x37e   : > { %4288 = vmatprep.subr.bf16.mxu1 %v10293_v53 }
 0x37f   : > { %4178 = vmatpush2.bf16.msra.mxu0 %v10156_v60 }
 0x380   : > { %4179 = vmatprep.subr.bf16.mxu0 %v10149_v52 }
 0x381   : > { %4289 = vmatpush2.bf16.msra.mxu1 %v10292_v17 }
 0x382   : > { %4290 = vmatprep.subr.bf16.mxu1 %v10285_v30 }
 0x383   : > { %4180 = vmatpush2.bf16.msra.mxu0 %v10148_v48 }
 0x384   : > { %4181 = vmatprep.subr.bf16.mxu0 %v10141_v5 }
 0x385   : > { %4291 = vmatpush2.bf16.msra.mxu1 %v10284_v9 }
 0x386   : > { %4292 = vmatprep.subr.bf16.mxu1 %v10277_v57 }
 0x387   : > { %4182 = vmatpush2.bf16.msra.mxu0 %v10140_v33 }
 0x388   : > { %4183 = vmatprep.subr.bf16.mxu0 %v10133_v45 }
 0x389   : > { %4293 = vmatpush2.bf16.msra.mxu1 %v10276_v55 }
 0x38a   : > { %4294 = vmatprep.subr.bf16.mxu1 %v10269_v13 }
 0x38b   : > { %4184 = vmatpush2.bf16.msra.mxu0 %v10132_v59 }
 0x38c   : > { %4185 = vmatprep.subr.bf16.mxu0 %v10125_v54 }
 0x38d   : > { %4295 = vmatpush2.bf16.msra.mxu1 %v10268_v34 }
 0x38e   : > { %4296 = vmatprep.subr.bf16.mxu1 %v10261_v36 }
 0x38f   : > { %4186 = vmatpush2.bf16.msra.mxu0 %v10124_v46 }
 0x390   : > { %4381 = vmatprep.subr.bf16.mxu0 %v10119_v51 }
 0x391   : > { %4297 = vmatpush2.bf16.msra.mxu1 %v10260_v63 }
 0x392   : > { %4298 = vmatprep.subr.bf16.mxu1 %v10253_v56 }
 0x395   : > { %4299 = vmatpush2.bf16.msra.mxu1 %v10252_v10 }
 0x396   : > { %4494 = vmatprep.subr.bf16.mxu1 %v10247_v12 }
 0x3e2   : > { %v12870_v15 = vpop.f32.mrf.mxu0  ;;  %v12872_v19 = vpop.f32.mrf.mxu1 }
 0x3e3   : > { %v2125_v44 = vmul.f32 %v12870_v15, %v12870_v15  ;;  %v2127_v48 = vmul.f32 %v12872_v19, %v12872_v19 }
 0x3e4   : > { %v12876_v41 = vpop.f32.mrf.mxu0  ;;  %v12878_v58 = vpop.f32.mrf.mxu1 }
 0x3e5   : > { %v2126_v52 = vmul.f32 %v12876_v41, %v12876_v41  ;;  %v2128_v25 = vmul.f32 %v12878_v58, %v12878_v58 }
 0x3e6   : > { %v12880_v0 = vpop.f32.mrf.mxu0  ;;  %v12882_v4 = vpop.f32.mrf.mxu1 }
 0x3e7   : > { %v2129_v9 = vmul.f32 %v12880_v0, %v12880_v0  ;;  %v2131_v30 = vmul.f32 %v12882_v4, %v12882_v4  ;;  %v2037_v5 = vadd.f32 %v12880_v0, %v12870_v15  ;;  %v2079_v23 = vadd.f32 %v12882_v4, %v12872_v19 }
 0x3e8   : > { %v12884_v7 = vpop.f32.mrf.mxu0  ;;  %v12886_v2 = vpop.f32.mrf.mxu1 }
 0x3e9   : > { %v2130_v26 = vmul.f32 %v12884_v7, %v12884_v7  ;;  %v2132_v31 = vmul.f32 %v12886_v2, %v12886_v2  ;;  %v2189_v8 = vadd.f32 %v2129_v9, %v2125_v44  ;;  %v2231_v29 = vadd.f32 %v2131_v30, %v2127_v48 }
 0x3ea   : > { %v12888_v16 = vpop.f32.mrf.mxu0  ;;  %v12890_v49 = vpop.f32.mrf.mxu1  ;;  %v2058_v21 = vadd.f32 %v12884_v7, %v12876_v41  ;;  %v2100_v47 = vadd.f32 %v12886_v2, %v12878_v58 }
 0x3eb   : > { %v2133_v37 = vmul.f32 %v12888_v16, %v12888_v16  ;;  %v2135_v13 = vmul.f32 %v12890_v49, %v12890_v49  ;;  %v2038_v45 = vadd.f32 %v2037_v5, %v12888_v16  ;;  %v2080_v36 = vadd.f32 %v2079_v23, %v12890_v49 }
 0x3ec   : > { %v12896_v17 = vpop.f32.mrf.mxu0  ;;  %v12898_v53 = vpop.f32.mrf.mxu1  ;;  %v2210_v40 = vadd.f32 %v2130_v26, %v2126_v52  ;;  %v2252_v50 = vadd.f32 %v2132_v31, %v2128_v25 }
 0x3ed   : > { %v2134_v18 = vmul.f32 %v12896_v17, %v12896_v17  ;;  %v2136_v38 = vmul.f32 %v12898_v53, %v12898_v53  ;;  %v2190_v46 = vadd.f32 %v2189_v8, %v2133_v37  ;;  %v2232_v10 = vadd.f32 %v2231_v29, %v2135_v13 }
 0x3ee   : > { %v12900_v1 = vpop.f32.mrf.mxu0  ;;  %v12902_v11 = vpop.f32.mrf.mxu1  ;;  %v2059_v51 = vadd.f32 %v2058_v21, %v12896_v17  ;;  %v2101_v12 = vadd.f32 %v2100_v47, %v12898_v53 }
 0x3ef   : > { %v2137_v59 = vmul.f32 %v12900_v1, %v12900_v1  ;;  %v2139_v63 = vmul.f32 %v12902_v11, %v12902_v11  ;;  %v2211_v9 = vadd.f32 %v2210_v40, %v2134_v18  ;;  %v2039_v30 = vadd.f32 %v2038_v45, %v12900_v1 }
 0x3f0   : > { %v12904_v20 = vpop.f32.mrf.mxu0  ;;  %v12906_v22 = vpop.f32.mrf.mxu1  ;;  %v2253_v26 = vadd.f32 %v2252_v50, %v2136_v38  ;;  %v2081_v31 = vadd.f32 %v2080_v36, %v12902_v11 }
 0x3f1   : > { %v2138_v44 = vmul.f32 %v12904_v20, %v12904_v20  ;;  %v2140_v48 = vmul.f32 %v12906_v22, %v12906_v22  ;;  %v2191_v37 = vadd.f32 %v2190_v46, %v2137_v59  ;;  %v2233_v13 = vadd.f32 %v2232_v10, %v2139_v63 }
 0x3f2   : > { %v12908_v24 = vpop.f32.mrf.mxu0  ;;  %v12910_v60 = vpop.f32.mrf.mxu1  ;;  %v2060_v8 = vadd.f32 %v2059_v51, %v12904_v20  ;;  %v2102_v47 = vadd.f32 %v2101_v12, %v12906_v22 }
 0x3f3   : > { %v2141_v5 = vmul.f32 %v12908_v24, %v12908_v24  ;;  %v2143_v23 = vmul.f32 %v12910_v60, %v12910_v60  ;;  %v2040_v45 = vadd.f32 %v2039_v30, %v12908_v24  ;;  %v2082_v36 = vadd.f32 %v2081_v31, %v12910_v60 }
 0x3f4   : > { %v12916_v42 = vpop.f32.mrf.mxu0  ;;  %v12918_v61 = vpop.f32.mrf.mxu1  ;;  %v2212_v40 = vadd.f32 %v2211_v9, %v2138_v44  ;;  %v2254_v50 = vadd.f32 %v2253_v26, %v2140_v48 }
 0x3f5   : > { %v2142_v29 = vmul.f32 %v12916_v42, %v12916_v42  ;;  %v2144_v38 = vmul.f32 %v12918_v61, %v12918_v61  ;;  %v2192_v51 = vadd.f32 %v2191_v37, %v2141_v5  ;;  %v2234_v30 = vadd.f32 %v2233_v13, %v2143_v23 }
 0x3f6   : > { %v12932_v55 = vpop.f32.mrf.mxu0  ;;  %v12934_v57 = vpop.f32.mrf.mxu1  ;;  %v2061_v31 = vadd.f32 %v2060_v8, %v12916_v42  ;;  %v2103_v12 = vadd.f32 %v2102_v47, %v12918_v61 }
 0x3f7   : > { %17598 = vst [vmem:[#allocation41_spill] sm:$0xff] %v12934_v57  ;;  %v2145_v59 = vmul.f32 %v12932_v55, %v12932_v55  ;;  %v2147_v63 = vmul.f32 %v12934_v57, %v12934_v57  ;;  %v2213_v39 = vadd.f32 %v2212_v40, %v2142_v29  ;;  %v2041_v9 = vadd.f32 %v2040_v45, %v12932_v55 }
 0x3f8   : > { %v12948_v33 = vpop.f32.mrf.mxu0  ;;  %v12950_v34 = vpop.f32.mrf.mxu1  ;;  %v2255_v14 = vadd.f32 %v2254_v50, %v2144_v38  ;;  %v2083_v5 = vadd.f32 %v2082_v36, %v12934_v57 }
 0x3f9   : > { %v2146_v44 = vmul.f32 %v12948_v33, %v12948_v33  ;;  %v2148_v48 = vmul.f32 %v12950_v34, %v12950_v34  ;;  %v2193_v13 = vadd.f32 %v2192_v51, %v2145_v59  ;;  %v2235_v8 = vadd.f32 %v2234_v30, %v2147_v63 }
 0x3fa   : > { %v12962_v54 = vpop.f32.mrf.mxu0  ;;  %v12964_v56 = vpop.f32.mrf.mxu1  ;;  %v2062_v29 = vadd.f32 %v2061_v31, %v12948_v33  ;;  %v2104_v50 = vadd.f32 %v2103_v12, %v12950_v34 }
 0x3fb   : > { %17599 = vst [vmem:[#allocation42_spill] sm:$0xff] %v12962_v54  ;;  %17600 = vst [vmem:[#allocation43_spill] sm:$0xff] %v12964_v56  ;;  %v2149_v23 = vmul.f32 %v12962_v54, %v12962_v54  ;;  %v2151_v37 = vmul.f32 %v12964_v56, %v12964_v56  ;;  %v2042_v38 = vadd.f32 %v2041_v9, %v12962_v54 }
 0x3fc   : > { %v12973_v52 = vpop.f32.mrf.mxu0  ;;  %v12975_v25 = vpop.f32.mrf.mxu1  ;;  %v2084_v36 = vadd.f32 %v2083_v5, %v12964_v56  ;;  %v2214_v59 = vadd.f32 %v2213_v39, %v2146_v44  ;;  %v2256_v63 = vadd.f32 %v2255_v14, %v2148_v48 }
 0x3fd   : > { %17601 = vst [vmem:[#allocation44_spill] sm:$0xff] %v12975_v25  ;;  %v2150_v45 = vmul.f32 %v12973_v52, %v12973_v52  ;;  %v2152_v62 = vmul.f32 %v12975_v25, %v12975_v25  ;;  %v2194_v9 = vadd.f32 %v2193_v13, %v2149_v23  ;;  %v2236_v54 = vadd.f32 %v2235_v8, %v2151_v37 }
 0x3fe   : > { %v12985_v21 = vpop.f32.mrf.mxu0  ;;  %v12987_v18 = vpop.f32.mrf.mxu1  ;;  %v2063_v5 = vadd.f32 %v2062_v29, %v12973_v52  ;;  %v2105_v12 = vadd.f32 %v2104_v50, %v12975_v25 }
 0x3ff   : > { %17602 = vst [vmem:[#allocation45_spill] sm:$0xff] %v12985_v21  ;;  %17603 = vst [vmem:[#allocation46_spill] sm:$0xff] %v12987_v18  ;;  %v2153_v51 = vmul.f32 %v12985_v21, %v12985_v21  ;;  %v2155_v30 = vmul.f32 %v12987_v18, %v12987_v18  ;;  %v2215_v56 = vadd.f32 %v2214_v59, %v2150_v45 }
 0x400   : > { %v12998_v46 = vpop.f32.mrf.mxu0  ;;  %v13000_v10 = vpop.f32.mrf.mxu1  ;;  %v2043_v39 = vadd.f32 %v2042_v38, %v12985_v21  ;;  %v2257_v57 = vadd.f32 %v2256_v63, %v2152_v62  ;;  %v2085_v23 = vadd.f32 %v2084_v36, %v12987_v18 }
 0x401   : > { %17604 = vst [vmem:[#allocation47_spill] sm:$0xff] %v13000_v10  ;;  %v2154_v14 = vmul.f32 %v12998_v46, %v12998_v46  ;;  %v2156_v44 = vmul.f32 %v13000_v10, %v13000_v10  ;;  %v2195_v8 = vadd.f32 %v2194_v9, %v2153_v51  ;;  %v2237_v29 = vadd.f32 %v2236_v54, %v2155_v30 }
 0x402   : > { %v13009_v26 = vpop.f32.mrf.mxu0  ;;  %v13011_v35 = vpop.f32.mrf.mxu1  ;;  %v2064_v45 = vadd.f32 %v2063_v5, %v12998_v46  ;;  %v2106_v63 = vadd.f32 %v2105_v12, %v13000_v10 }
 0x403   : > { %17605 = vst [vmem:[#allocation48_spill] sm:$0xff] %v13009_v26  ;;  %17606 = vst [vmem:[#allocation49_spill] sm:$0xff] %v13011_v35  ;;  %v2157_v37 = vmul.f32 %v13009_v26, %v13009_v26  ;;  %v2159_v13 = vmul.f32 %v13011_v35, %v13011_v35  ;;  %v2044_v62 = vadd.f32 %v2043_v39, %v13009_v26 }
 0x404   : > { %v13021_v47 = vpop.f32.mrf.mxu0  ;;  %v13023_v40 = vpop.f32.mrf.mxu1  ;;  %v2086_v36 = vadd.f32 %v2085_v23, %v13011_v35  ;;  %v2216_v51 = vadd.f32 %v2215_v56, %v2154_v14  ;;  %v2258_v54 = vadd.f32 %v2257_v57, %v2156_v44 }
 0x405   : > { %17607 = vst [vmem:[#allocation50_spill] sm:$0xff] %v13021_v47  ;;  %17608 = vst [vmem:[#allocation51_spill] sm:$0xff] %v13023_v40  ;;  %v2158_v38 = vmul.f32 %v13021_v47, %v13021_v47  ;;  %v2160_v18 = vmul.f32 %v13023_v40, %v13023_v40  ;;  %v2196_v39 = vadd.f32 %v2195_v8, %v2157_v37 }
 0x406   : > { %v13034_v31 = vpop.f32.mrf.mxu0  ;;  %v13036_v6 = vpop.f32.mrf.mxu1  ;;  %v2238_v26 = vadd.f32 %v2237_v29, %v2159_v13  ;;  %v2065_v23 = vadd.f32 %v2064_v45, %v13021_v47  ;;  %v2107_v12 = vadd.f32 %v2106_v63, %v13023_v40 }
 0x407   : > { %17609 = vst [vmem:[#allocation52_spill] sm:$0xff] %v13034_v31  ;;  %17610 = vst [vmem:[#allocation53_spill] sm:$0xff] %v13036_v6  ;;  %v2161_v30 = vmul.f32 %v13034_v31, %v13034_v31  ;;  %v2163_v9 = vmul.f32 %v13036_v6, %v13036_v6  ;;  %v2217_v35 = vadd.f32 %v2216_v51, %v2158_v38 }
 0x408   : > { %v13045_v48 = vpop.f32.mrf.mxu0  ;;  %v13047_v43 = vpop.f32.mrf.mxu1  ;;  %v2045_v56 = vadd.f32 %v2044_v62, %v13034_v31  ;;  %v2259_v25 = vadd.f32 %v2258_v54, %v2160_v18  ;;  %v2087_v37 = vadd.f32 %v2086_v36, %v13036_v6 }
 0x409   : > { %17611 = vst [vmem:[#allocation54_spill] sm:$0xff] %v13045_v48  ;;  %17612 = vst [vmem:[#allocation55_spill] sm:$0xff] %v13047_v43  ;;  %v2162_v57 = vmul.f32 %v13045_v48, %v13045_v48  ;;  %v2164_v14 = vmul.f32 %v13047_v43, %v13047_v43  ;;  %v2197_v29 = vadd.f32 %v2196_v39, %v2161_v30 }
 0x40a   : > { %v13057_v50 = vpop.f32.mrf.mxu0  ;;  %v13059_v59 = vpop.f32.mrf.mxu1  ;;  %v2239_v45 = vadd.f32 %v2238_v26, %v2163_v9  ;;  %v2066_v38 = vadd.f32 %v2065_v23, %v13045_v48  ;;  %v2108_v54 = vadd.f32 %v2107_v12, %v13047_v43 }
 0x40b   : > { %17613 = vst [vmem:[#allocation56_spill] sm:$0xff] %v13057_v50  ;;  %17614 = vst [vmem:[#allocation57_spill] sm:$0xff] %v13059_v59  ;;  %v2165_v13 = vmul.f32 %v13057_v50, %v13057_v50  ;;  %v2167_v8 = vmul.f32 %v13059_v59, %v13059_v59  ;;  %v2046_v18 = vadd.f32 %v2045_v56, %v13057_v50 }
 0x40c   : > { %v13070_v5 = vpop.f32.mrf.mxu0  ;;  %v13072_v21 = vpop.f32.mrf.mxu1  ;;  %v2088_v36 = vadd.f32 %v2087_v37, %v13059_v59  ;;  %v2218_v30 = vadd.f32 %v2217_v35, %v2162_v57  ;;  %v2260_v26 = vadd.f32 %v2259_v25, %v2164_v14 }
 0x40d   : > { %17615 = vst [vmem:[#allocation58_spill] sm:$0xff] %v13070_v5  ;;  %17616 = vst [vmem:[#allocation59_spill] sm:$0xff] %v13072_v21  ;;  %v2166_v62 = vmul.f32 %v13070_v5, %v13070_v5  ;;  %v2168_v6 = vmul.f32 %v13072_v21, %v13072_v21  ;;  %v2198_v56 = vadd.f32 %v2197_v29, %v2165_v13 }
 0x40e   : > { %v13081_v44 = vpop.f32.mrf.mxu0  ;;  %v13083_v10 = vpop.f32.mrf.mxu1  ;;  %v2240_v50 = vadd.f32 %v2239_v45, %v2167_v8  ;;  %v2067_v37 = vadd.f32 %v2066_v38, %v13070_v5  ;;  %v2109_v12 = vadd.f32 %v2108_v54, %v13072_v21 }
 0x40f   : > { %17617 = vst [vmem:[#allocation60_spill] sm:$0xff] %v13081_v44  ;;  %17618 = vst [vmem:[#allocation61_spill] sm:$0xff] %v13083_v10  ;;  %v2169_v9 = vmul.f32 %v13081_v44, %v13081_v44  ;;  %v2171_v39 = vmul.f32 %v13083_v10, %v13083_v10  ;;  %v2219_v59 = vadd.f32 %v2218_v30, %v2166_v62 }
 0x410   : > { %v13093_v63 = vpop.f32.mrf.mxu0  ;;  %v13095_v51 = vpop.f32.mrf.mxu1  ;;  %v2047_v35 = vadd.f32 %v2046_v18, %v13081_v44  ;;  %v2261_v40 = vadd.f32 %v2260_v26, %v2168_v6  ;;  %v2089_v13 = vadd.f32 %v2088_v36, %v13083_v10 }
 0x411   : > { %17619 = vst [vmem:[#allocation62_spill] sm:$0xff] %v13093_v63  ;;  %17620 = vst [vmem:[#allocation63_spill] sm:$0xff] %v13095_v51  ;;  %v2170_v25 = vmul.f32 %v13093_v63, %v13093_v63  ;;  %v2172_v57 = vmul.f32 %v13095_v51, %v13095_v51  ;;  %v2199_v45 = vadd.f32 %v2198_v56, %v2169_v9 }
 0x412   : > { %v13106_v23 = vpop.f32.mrf.mxu0  ;;  %v13108_v31 = vpop.f32.mrf.mxu1  ;;  %v2241_v38 = vadd.f32 %v2240_v50, %v2171_v39  ;;  %v2068_v62 = vadd.f32 %v2067_v37, %v13093_v63  ;;  %v2110_v26 = vadd.f32 %v2109_v12, %v13095_v51 }
 0x413   : > { %17621 = vst [vmem:[#allocation64_spill] sm:$0xff] %v13106_v23  ;;  %17622 = vst [vmem:[#allocation65_spill] sm:$0xff] %v13108_v31  ;;  %v2173_v8 = vmul.f32 %v13106_v23, %v13106_v23  ;;  %v2175_v29 = vmul.f32 %v13108_v31, %v13108_v31  ;;  %v2048_v6 = vadd.f32 %v2047_v35, %v13106_v23 }
 0x414   : > { %v13117_v14 = vpop.f32.mrf.mxu0  ;;  %v13119_v43 = vpop.f32.mrf.mxu1  ;;  %v2090_v36 = vadd.f32 %v2089_v13, %v13108_v31  ;;  %v2220_v9 = vadd.f32 %v2219_v59, %v2170_v25  ;;  %v2262_v50 = vadd.f32 %v2261_v40, %v2172_v57 }
 0x415   : > { %17623 = vst [vmem:[#allocation66_spill] sm:$0xff] %v13117_v14  ;;  %17624 = vst [vmem:[#allocation67_spill] sm:$0xff] %v13119_v43  ;;  %v2174_v18 = vmul.f32 %v13117_v14, %v13117_v14  ;;  %v2176_v10 = vmul.f32 %v13119_v43, %v13119_v43  ;;  %v2200_v35 = vadd.f32 %v2199_v45, %v2173_v8 }
 0x416   : > { %v13129_v54 = vpop.f32.mrf.mxu0  ;;  %v13131_v30 = vpop.f32.mrf.mxu1  ;;  %v2242_v23 = vadd.f32 %v2241_v38, %v2175_v29  ;;  %v2069_v13 = vadd.f32 %v2068_v62, %v13117_v14  ;;  %v2111_v40 = vadd.f32 %v2110_v26, %v13119_v43 }
 0x417   : > { %17625 = vst [vmem:[#allocation68_spill] sm:$0xff] %v13129_v54  ;;  %17626 = vst [vmem:[#allocation69_spill] sm:$0xff] %v13131_v30  ;;  %v2177_v39 = vmul.f32 %v13129_v54, %v13129_v54  ;;  %v2179_v56 = vmul.f32 %v13131_v30, %v13131_v30  ;;  %v2221_v31 = vadd.f32 %v2220_v9, %v2174_v18 }
 0x418   : > { %v13142_v37 = vpop.f32.mrf.mxu0  ;;  %v13144_v44 = vpop.f32.mrf.mxu1  ;;  %v2049_v59 = vadd.f32 %v2048_v6, %v13129_v54  ;;  %v2263_v21 = vadd.f32 %v2262_v50, %v2176_v10  ;;  %v2091_v8 = vadd.f32 %v2090_v36, %v13131_v30 }
 0x419   : > { %17627 = vst [vmem:[#allocation70_spill] sm:$0xff] %v13142_v37  ;;  %17628 = vst [vmem:[#allocation71_spill] sm:$0xff] %v13144_v44  ;;  %v2178_v12 = vmul.f32 %v13142_v37, %v13142_v37  ;;  %v2180_v25 = vmul.f32 %v13144_v44, %v13144_v44  ;;  %v2201_v38 = vadd.f32 %v2200_v35, %v2177_v39 }
 0x41a   : > { %v13153_v57 = vpop.f32.mrf.mxu0  ;;  %v13155_v51 = vpop.f32.mrf.mxu1  ;;  %v2243_v62 = vadd.f32 %v2242_v23, %v2179_v56  ;;  %v2070_v6 = vadd.f32 %v2069_v13, %v13142_v37  ;;  %v2112_v9 = vadd.f32 %v2111_v40, %v13144_v44 }
 0x41b   : > { %17629 = vst [vmem:[#allocation72_spill] sm:$0xff] %v13153_v57  ;;  %17630 = vst [vmem:[#allocation73_spill] sm:$0xff] %v13155_v51  ;;  %v2181_v29 = vmul.f32 %v13153_v57, %v13153_v57  ;;  %v2183_v45 = vmul.f32 %v13155_v51, %v13155_v51  ;;  %v2050_v10 = vadd.f32 %v2049_v59, %v13153_v57 }
 0x41c   : > { %v13162_v18 = vpop.f32.mrf.mxu0  ;;  %v13165_v26 = vpop.f32.mrf.mxu1  ;;  %v2092_v36 = vadd.f32 %v2091_v8, %v13155_v51  ;;  %v2222_v30 = vadd.f32 %v2221_v31, %v2178_v12  ;;  %v2264_v39 = vadd.f32 %v2263_v21, %v2180_v25 }
 0x41d   : > { %17631 = vst [vmem:[#allocation74_spill] sm:$0xff] %v13162_v18  ;;  %17632 = vst [vmem:[#allocation75_spill] sm:$0xff] %v13165_v26  ;;  %v2182_v50 = vmul.f32 %v13162_v18, %v13162_v18  ;;  %v2202_v54 = vadd.f32 %v2201_v38, %v2181_v29  ;;  %v2244_v43 = vadd.f32 %v2243_v62, %v2183_v45 }
 0x41e   : > { %v2184_v23 = vmul.f32 %v13165_v26, %v13165_v26  ;;  %v13174_v56 = vpop.f32.mrf.mxu0  ;;  %v13176_v35 = vpop.f32.mrf.mxu1  ;;  %v2071_v13 = vadd.f32 %v2070_v6, %v13162_v18  ;;  %v2113_v12 = vadd.f32 %v2112_v9, %v13165_v26 }
 0x41f   : > { %17633 = vst [vmem:[#allocation76_spill] sm:$0xff] %v13174_v56  ;;  %17634 = vst [vmem:[#allocation77_spill] sm:$0xff] %v13176_v35  ;;  %v2051_v40 = vadd.f32 %v2050_v10, %v13174_v56  ;;  %v2185_v59 = vmul.f32 %v13174_v56, %v13174_v56  ;;  %v2093_v8 = vadd.f32 %v2092_v36, %v13176_v35 }
 0x420   : > { %v2223_v31 = vadd.f32 %v2222_v30, %v2182_v50  ;;  %v2265_v29 = vadd.f32 %v2264_v39, %v2184_v23  ;;  %v2187_v21 = vmul.f32 %v13176_v35, %v13176_v35  ;;  %v13186_v25 = vpop.f32.mrf.mxu0  ;;  %v13188_v45 = vpop.f32.mrf.mxu1 }
 0x421   : > { %17635 = vst [vmem:[#allocation78_spill] sm:$0xff] %v13186_v25  ;;  %17636 = vst [vmem:[#allocation79_spill] sm:$0xff] %v13188_v45  ;;  %v2052_v38 = vrot.slane %v2051_v40, 4  ;;  %v2203_v62 = vadd.f32 %v2202_v54, %v2185_v59  ;;  %v2094_v6 = vrot.slane %v2093_v8, 4  ;;  %v2072_v10 = vadd.f32 %v2071_v13, %v13186_v25 }
 0x422   : > { %v2245_v51 = vadd.f32 %v2244_v43, %v2187_v21  ;;  %v2186_v36 = vmul.f32 %v13186_v25, %v13186_v25  ;;  %v2114_v30 = vadd.f32 %v2113_v12, %v13188_v45  ;;  %v2188_v9 = vmul.f32 %v13188_v45, %v13188_v45 }
 0x423   : > { %v2053_v50 = vadd.f32 %v2052_v38, %v2051_v40  ;;  %v2204_v23 = vrot.slane %v2203_v62, 4  ;;  %v2095_v39 = vadd.f32 %v2094_v6, %v2093_v8  ;;  %v2073_v35 = vrot.slane %v2072_v10, 4 }
 0x424   : > { %v2246_v57 = vrot.slane %v2245_v51, 4  ;;  %v2224_v56 = vadd.f32 %v2223_v31, %v2186_v36  ;;  %v2115_v26 = vrot.slane %v2114_v30, 4  ;;  %v2266_v54 = vadd.f32 %v2265_v29, %v2188_v9 }
 0x425   : > { %v2054_v59 = vrot.slane %v2053_v50, 2  ;;  %v2205_v18 = vadd.f32 %v2204_v23, %v2203_v62  ;;  %v2096_v13 = vrot.slane %v2095_v39, 2  ;;  %v2074_v43 = vadd.f32 %v2073_v35, %v2072_v10 }
 0x426   : > { %v2247_v21 = vadd.f32 %v2246_v57, %v2245_v51  ;;  %v2225_v44 = vrot.slane %v2224_v56, 4  ;;  %v2116_v25 = vadd.f32 %v2115_v26, %v2114_v30  ;;  %v2267_v37 = vrot.slane %v2266_v54, 4 }
 0x427   : > { %v2055_v12 = vadd.f32 %v2054_v59, %v2053_v50  ;;  %v2206_v14 = vrot.slane %v2205_v18, 2  ;;  %v2097_v63 = vadd.f32 %v2096_v13, %v2095_v39  ;;  %v2075_v45 = vrot.slane %v2074_v43, 2 }
 0x428   : > { %v2248_v40 = vrot.slane %v2247_v21, 2  ;;  %v2226_v38 = vadd.f32 %v2225_v44, %v2224_v56  ;;  %v2117_v8 = vrot.slane %v2116_v25, 2  ;;  %v2268_v6 = vadd.f32 %v2267_v37, %v2266_v54 }
 0x429   : > { %v2056_v5 = vrot.slane %v2055_v12, 1  ;;  %v2207_v31 = vadd.f32 %v2206_v14, %v2205_v18  ;;  %v2098_v36 = vrot.slane %v2097_v63, 1  ;;  %v2076_v29 = vadd.f32 %v2075_v45, %v2074_v43 }
 0x42a   : > { %v2249_v9 = vadd.f32 %v2248_v40, %v2247_v21  ;;  %v2227_v62 = vrot.slane %v2226_v38, 2  ;;  %v2118_v23 = vadd.f32 %v2117_v8, %v2116_v25  ;;  %v2269_v35 = vrot.slane %v2268_v6, 2 }
 0x42b   : > { %v2057_v51 = vadd.f32 %v2056_v5, %v2055_v12  ;;  %v2208_v57 = vrot.slane %v2207_v31, 1  ;;  %v2099_v26 = vadd.f32 %v2098_v36, %v2097_v63  ;;  %v2077_v10 = vrot.slane %v2076_v29, 1 }
 0x42c   : > { %v2250_v30 = vrot.slane %v2249_v9, 1  ;;  %v2228_v50 = vadd.f32 %v2227_v62, %v2226_v38  ;;  %v2119_v39 = vrot.slane %v2118_v23, 1  ;;  %v2270_v59 = vadd.f32 %v2269_v35, %v2268_v6 }
 0x42d   : > { %v13196_v13 = vmul.f32 0.0078125, %v2057_v51  ;;  %v2209_v44 = vadd.f32 %v2208_v57, %v2207_v31  ;;  %v13198_v37 = vmul.f32 0.0078125, %v2099_v26  ;;  %v2078_v14 = vadd.f32 %v2077_v10, %v2076_v29 }
 0x42e   : > { %v2251_v18 = vadd.f32 %v2250_v30, %v2249_v9  ;;  %v2229_v56 = vrot.slane %v2228_v50, 1  ;;  %v2120_v45 = vadd.f32 %v2119_v39, %v2118_v23  ;;  %v2271_v54 = vrot.slane %v2270_v59, 1 }
 0x42f   : > { %v2273_v25 = vmul.f32 0.0078125, %v2209_v44  ;;  %v2277_v5 = vmul.f32 %v13196_v13, %v13196_v13  ;;  %v2279_v63 = vmul.f32 %v13198_v37, %v13198_v37  ;;  %v13204_v43 = vmul.f32 0.0078125, %v2078_v14 }
 0x430   : > { %v2275_v21 = vmul.f32 0.0078125, %v2251_v18  ;;  %v2230_v12 = vadd.f32 %v2229_v56, %v2228_v50  ;;  %v13206_v40 = vmul.f32 0.0078125, %v2120_v45  ;;  %v2272_v38 = vadd.f32 %v2271_v54, %v2270_v59  ;;  %v2297_v59 = vld [vmem:[#allocation13] sm:$0xf]  ;;  %v13218_v18 = vld [vmem:[#allocation16 + $0x188] sm:$0xff] }
 0x431   : > { %v2281_v8 = vsub.f32 %v2273_v25, %v2277_v5  ;;  %v2278_v6 = vmul.f32 %v13204_v43, %v13204_v43  ;;  %v13213_v44 = vsub.s32 2, %v12729_v27  ;;  %v13216_v14 = vsub.s32 3, %v12729_v27  ;;  %v13221_v45 = vld [vmem:[#allocation16 + $0x1a8] sm:$0xff] }
 0x432   : > { %v2283_v31 = vsub.f32 %v2275_v21, %v2279_v63  ;;  %v2274_v36 = vmul.f32 0.0078125, %v2230_v12  ;;  %v2276_v29 = vmul.f32 0.0078125, %v2272_v38  ;;  %v2280_v9 = vmul.f32 %v13206_v40, %v13206_v40  ;;  %v13223_v54 = vld [vmem:[#allocation16 + $0x588] sm:$0xff] }
 0x433   : > { %v2285_v62 = vmax.f32 %v2281_v8, 0.0  ;;  %17637 = vst [vmem:[#allocation80_spill] sm:$0xff] %v13213_v44  ;;  %17638 = vst [vmem:[#allocation81_spill] sm:$0xff] %v13216_v14  ;;  %v2302_v56 = vrot.slane %v2297_v59, %v12732_v28  ;;  %v13225_v25 = vld [vmem:[#allocation16 + $0x5a8] sm:$0xff]  ;;  %v2310_v5 = vrot.slane %v2297_v59, %v13213_v44  ;;  %v2306_v8 = vrot.slane %v2297_v59, %v12735_v32 }
 0x434   : > { %v2287_v23 = vmax.f32 %v2283_v31, 0.0  ;;  %v2282_v35 = vsub.f32 %v2274_v36, %v2278_v6  ;;  %v2284_v51 = vsub.f32 %v2276_v29, %v2280_v9  ;;  %v13228_v63 = vld [vmem:[#allocation16 + $0x148] sm:$0xff]  ;;  %v2314_v9 = vrot.slane %v2297_v59, %v13216_v14 }
 0x435   : > { %v2289_v57 = vadd.f32 1e-05, %v2285_v62  ;;  %v13230_v21 = vld [vmem:[#allocation16 + $0x168] sm:$0xff] }
 0x436   : > { %v2291_v26 = vadd.f32 1e-05, %v2287_v23  ;;  %v2286_v10 = vmax.f32 %v2282_v35, 0.0  ;;  %v2288_v30 = vmax.f32 %v2284_v51, 0.0  ;;  %17639 = vst [vmem:[#allocation82_spill] sm:$0xff] %v13230_v21  ;;  %v13232_v12 = vld [vmem:[#allocation16 + $0x548] sm:$0xff] }
 0x437   : > { %11133 = vrsqrt.f32 %v2289_v57  ;;  %v13235_v6 = vld [vmem:[#allocation16 + $0x568] sm:$0xff] }
 0x438   : > { %11135 = vrsqrt.f32 %v2291_v26  ;;  %v2290_v50 = vadd.f32 1e-05, %v2286_v10  ;;  %v2292_v39 = vadd.f32 1e-05, %v2288_v30  ;;  %17640 = vst [vmem:[#allocation83_spill] sm:$0xff] %v13235_v6  ;;  %v13237_v31 = vld [vmem:[#allocation16 + $0x108] sm:$0xff] }
 0x439   : > { %v13239_v36 = vld [vmem:[#allocation16 + $0x128] sm:$0xff] }
 0x43a   : > { %11137 = vrsqrt.f32 %v2290_v50  ;;  %17641 = vst [vmem:[#allocation84_spill] sm:$0xff] %v13239_v36  ;;  %v13248_v51 = vld [vmem:[#allocation16 + $0x508] sm:$0xff] }
 0x43b   : > { %11139 = vrsqrt.f32 %v2292_v39  ;;  %17642 = vst [vmem:[#allocation85_spill] sm:$0xff] %v13248_v51  ;;  %v13250_v57 = vld [vmem:[#allocation16 + $0x528] sm:$0xff] }
 0x43c   : > { %17643 = vst [vmem:[#allocation86_spill] sm:$0xff] %v13250_v57  ;;  %v13252_v26 = vld [vmem:[#allocation16 + $0xc8] sm:$0xff] }
 0x43d   : > { %17644 = vst [vmem:[#allocation87_spill] sm:$0xff] %v13252_v26  ;;  %v13260_v59 = vld [vmem:[#allocation16 + $0xe8] sm:$0xff] }
 0x43e   : > { %17645 = vst [vmem:[#allocation88_spill] sm:$0xff] %v13260_v59  ;;  %v13262_v62 = vld [vmem:[#allocation16 + $0x4c8] sm:$0xff] }
 0x43f   : > { %17646 = vst [vmem:[#allocation89_spill] sm:$0xff] %v13262_v62  ;;  %v13264_v35 = vld [vmem:[#allocation16 + $0x4e8] sm:$0xff] }
 0x440   : > { %17647 = vst [vmem:[#allocation90_spill] sm:$0xff] %v13264_v35  ;;  %v13272_v30 = vld [vmem:[#allocation16 + $0x88] sm:$0xff] }
 0x441   : > { %v13274_v39 = vld [vmem:[#allocation16 + $0xa8] sm:$0xff] }
 0x442   : > { %v13292_v21 = vld [vmem:[#allocation16 + $0x48] sm:$0xff] }
 0x443   : > { %v13296_v36 = vld [vmem:[#allocation16 + $0x448] sm:$0xff] }
 0x444   : > { %v11134_v38 = vpop.eup %11133  ;;  %17649 = vst [vmem:[#allocation92_spill] sm:$0xff] %v13296_v36  ;;  %v13304_v6 = vld [vmem:[#allocation16 + $0x468] sm:$0xff] }
 0x445   : > { %v11136_v29 = vpop.eup %11135  ;;  %v2319_v10 = vmul.f32 %v11134_v38, %v2302_v56  ;;  %v13282_v56 = vld [vmem:[#allocation16 + $0x488] sm:$0xff]  ;;  %17650 = vst [vmem:[#allocation93_spill] sm:$0xff] %v13304_v6 }
 0x446   : > { %v2321_v27 = vmul.f32 %v11136_v29, %v2310_v5  ;;  %v13284_v38 = vld [vmem:[#allocation16 + $0x4a8] sm:$0xff] }
 0x447   : > { %v11138_v23 = vpop.eup %11137  ;;  %v13294_v5 = vld [vmem:[#allocation16 + $0x68] sm:$0xff]  ;;  %v2324_v29 = vmul.f32 %v2319_v10, %v13196_v13 }
 0x448   : > { %v11140_v48 = vpop.eup %11139  ;;  %v2320_v47 = vmul.f32 %v11138_v23, %v2306_v8  ;;  %17648 = vst [vmem:[#allocation91_spill] sm:$0xff] %v13294_v5  ;;  %v13306_v8 = vld [vmem:[#allocation16 + $0x8] sm:$0xff]  ;;  %v2326_v59 = vmul.f32 %v2321_v27, %v13198_v37  ;;  %v13341_v5 = vrot.slane %v2319_v10, %v12732_v28 }
 0x449   : > { %v2322_v50 = vmul.f32 %v11140_v48, %v2314_v9  ;;  %17651 = vst [vmem:[#allocation94_spill] sm:$0xff] %v13306_v8  ;;  %v13308_v23 = vld [vmem:[#allocation16 + $0x28] sm:$0xff] }
 0x44a   : > { %v2325_v57 = vmul.f32 %v2320_v47, %v13204_v43  ;;  %17652 = vst [vmem:[#allocation95_spill] sm:$0xff] %v13308_v23  ;;  %v13322_v51 = vld [vmem:[#allocation16 + $0x408] sm:$0xff]  ;;  %v13354_v6 = vrot.slane %v2320_v47, %v12732_v28  ;;  %v2374_v43 = vmul.f32 %v13341_v5, %v12870_v15  ;;  %v2378_v23 = vmul.f32 %v13341_v5, %v12880_v0 }
 0x44b   : > { %v2327_v26 = vmul.f32 %v2322_v50, %v13206_v40  ;;  %v13324_v37 = vld [vmem:[#allocation16 + $0x428] sm:$0xff]  ;;  %v2382_v15 = vmul.f32 %v13341_v5, %v12888_v16  ;;  %v2386_v16 = vmul.f32 %v13341_v5, %v12900_v1 }
 0x44c   : > { %v2332_v48 = vcombine.low %v2324_v29, %v2325_v57  ;;  %v13326_v40 = vld [vmem:[#allocation16 + $0x3c8] sm:$0xff]  ;;  %v2375_v10 = vmul.f32 %v13354_v6, %v12876_v41 }
 0x44d   : > { %v2333_v13 = vcombine.low %v2326_v59, %v2327_v26  ;;  %v13334_v35 = vld [vmem:[#allocation16 + $0x3e8] sm:$0xff]  ;;  %v13344_v26 = vrot.slane %v2321_v27, %v12732_v28  ;;  %v2323_v27 = vld [vmem:[#allocation14] sm:$0xf] }
 0x44e   : > { %v13336_v9 = vld [vmem:[#allocation16 + $0x7c8] sm:$0xff]  ;;  %v2340_v59 = vrot.slane %v2332_v48, %v12740_v3  ;;  %v13362_v48 = vrot.slane %v2322_v50, %v12732_v28  ;;  %v2379_v50 = vmul.f32 %v13354_v6, %v12884_v7 }
 0x44f   : > { %v13338_v62 = vld [vmem:[#allocation16 + $0x7e8] sm:$0xff]  ;;  %v2347_v36 = vrot.slane %v2333_v13, %v12740_v3  ;;  %v2376_v47 = vmul.f32 %v13344_v26, %v12872_v19 }
 0x450   : > { %17653 = vst [vmem:[#allocation96_spill] sm:$0xff] %v13338_v62  ;;  %v13349_v57 = vld [vmem:[#allocation16 + $0x388] sm:$0xff]  ;;  %v2377_v0 = vmul.f32 %v13362_v48, %v12878_v58  ;;  %v2381_v19 = vmul.f32 %v13362_v48, %v12886_v2  ;;  %v2385_v41 = vmul.f32 %v13362_v48, %v12898_v53  ;;  %v2389_v7 = vmul.f32 %v13362_v48, %v12906_v22 }
 0x451   : > { %17654 = vst [vmem:[#allocation97_spill] sm:$0xff] %v13349_v57  ;;  %v13351_v29 = vld [vmem:[#allocation16 + $0x3a8] sm:$0xff]  ;;  %v2348_v8 = vcombine.low %v2340_v59, %v2347_v36  ;;  %v2380_v36 = vmul.f32 %v13344_v26, %v12882_v4  ;;  %v2383_v4 = vmul.f32 %v13354_v6, %v12896_v17  ;;  %v2384_v58 = vmul.f32 %v13344_v26, %v12890_v49 }
 0x452   : > { %17655 = vst [vmem:[#allocation98_spill] sm:$0xff] %v13351_v29  ;;  %v2388_v2 = vmul.f32 %v13344_v26, %v12902_v11  ;;  %v2391_v17 = vmul.f32 %v13354_v6, %v12916_v42  ;;  %v2393_v11 = vmul.f32 %v13362_v48, %v12918_v61  ;;  %v2397_v42 = vmul.f32 %v13362_v48, %v12950_v34 }
 0x453   : > { %v2355_v59 = vrot.slane %v2348_v8, %v12740_v3  ;;  %v2387_v8 = vmul.f32 %v13354_v6, %v12904_v20  ;;  %v2395_v20 = vmul.f32 %v13354_v6, %v12948_v33  ;;  %v13431_v33 = vmul.f32 %v13341_v5, %v12908_v24 }
 0x454   : > { %v13442_v61 = vmul.f32 %v13344_v26, %v12910_v60 }
 0x455   : > { %v2357_v13 = vsub.f32 %v2323_v27, %v2355_v59  ;;  %v13435_v27 = vmul.f32 %v13341_v5, %v12932_v55 }
 0x457   : > { %v13414_v53 = vrot.slane %v2357_v13, %v12732_v28  ;;  %v13417_v22 = vrot.slane %v2357_v13, %v12735_v32  ;;  %v13420_v1 = vrot.slane %v2357_v13, %v13213_v44  ;;  %v13423_v49 = vrot.slane %v2357_v13, %v13216_v14 }
 0x459   : > { %v2460_v59 = vadd.f32 %v13417_v22, %v2375_v10  ;;  %v2464_v3 = vadd.f32 %v13417_v22, %v2379_v50  ;;  %v2462_v13 = vadd.f32 %v13423_v49, %v2377_v0  ;;  %v2466_v34 = vadd.f32 %v13423_v49, %v2381_v19  ;;  %v17656_v10 = vld [vmem:[#allocation41_spill] sm:$0xff] }
 0x45a   : > { %v2459_v14 = vadd.f32 %v13414_v53, %v2374_v43  ;;  %v2463_v24 = vadd.f32 %v13414_v53, %v2378_v23  ;;  %v2461_v44 = vadd.f32 %v13420_v1, %v2376_v47  ;;  %v13450_v50 = vmul.f32 %v13344_v26, %v17656_v10 }
 0x45b   : > { %v2524_v55 = vmax.f32 %v2460_v59, 0.0  ;;  %v2528_v32 = vmax.f32 %v2464_v3, 0.0  ;;  %v2526_v28 = vmax.f32 %v2462_v13, 0.0  ;;  %v2530_v0 = vmax.f32 %v2466_v34, 0.0 }
 0x45c   : > { %v2523_v29 = vmax.f32 %v2459_v14, 0.0  ;;  %v2527_v57 = vmax.f32 %v2463_v24, 0.0  ;;  %v2465_v60 = vadd.f32 %v13420_v1, %v2380_v36  ;;  %v2525_v19 = vmax.f32 %v2461_v44, 0.0 }
 0x45d   : > { %v13453_v62 = vpack.c.bf16 %v2528_v32, %v2524_v55  ;;  %v2468_v43 = vadd.f32 %v13417_v22, %v2383_v4  ;;  %v2472_v23 = vadd.f32 %v13417_v22, %v2387_v8  ;;  %v13457_v47 = vpack.c.bf16 %v2530_v0, %v2526_v28  ;;  %v17657_v4 = vld [vmem:[#allocation37_spill] sm:$0xff]  ;;  %v17658_v8 = vld [vmem:[#allocation38_spill] sm:$0xff] }
 0x45e   : > { %v13459_v3 = vpack.c.bf16 %v2527_v57, %v2523_v29  ;;  %v2529_v59 = vmax.f32 %v2465_v60, 0.0  ;;  %v2470_v13 = vadd.f32 %v13423_v49, %v2385_v41  ;;  %v2474_v36 = vadd.f32 %v13423_v49, %v2389_v7 }
 0x45f   : > { %4187 = vmatprep.mubr.bf16.mxu0 %v13453_v62  ;;  %v2532_v14 = vmax.f32 %v2468_v43, 0.0  ;;  %v2536_v34 = vmax.f32 %v2472_v23, 0.0  ;;  %v2467_v32 = vadd.f32 %v13414_v53, %v2382_v15  ;;  %4300 = vmatprep.mubr.bf16.mxu1 %v13457_v47  ;;  %v2471_v57 = vadd.f32 %v13414_v53, %v2386_v16  ;;  %v17662_v43 = vld [vmem:[#allocation40_spill] sm:$0xff] }
 0x460   : > { %4188 = vmatmul.mubr.bf16.vlgmr.msra.gmra.mxu0 %v13459_v3  ;;  %v13467_v44 = vpack.c.bf16 %v2529_v59, %v2525_v19  ;;  %v2534_v28 = vmax.f32 %v2470_v13, 0.0  ;;  %v2469_v29 = vadd.f32 %v13420_v1, %v2384_v58  ;;  %v17659_v41 = vcombine.low %v17657_v4, %v17658_v8  ;;  %v17661_v19 = vld [vmem:[#allocation39_spill] sm:$0xff]  ;;  %v17667_v4 = vld [vmem:[#allocation82_spill] sm:$0xff] }
 0x461   : > { %v13474_v24 = vpack.c.bf16 %v2536_v34, %v2532_v14  ;;  %v2538_v7 = vmax.f32 %v2474_v36, 0.0  ;;  %v2473_v15 = vadd.f32 %v13420_v1, %v2388_v2  ;;  %v2399_v55 = vmul.f32 %v13354_v6, %v12973_v52 }
 0x462   : > { %4382 = vmatpush1.bf16.msra.mxu0 %v17659_v41  ;;  %4301 = vmatmul.mubr.bf16.vlgmr.msra.gmra.mxu1 %v13467_v44  ;;  %v17660_v10 = vcombine.high %v13218_v18, %v13221_v45  ;;  %v2531_v16 = vmax.f32 %v2467_v32, 0.0  ;;  %v2535_v58 = vmax.f32 %v2471_v57, 0.0  ;;  %v2476_v0 = vadd.f32 %v13417_v22, %v2391_v17 }
 0x463   : > { %v2480_v60 = vadd.f32 %v13417_v22, %v2395_v20  ;;  %v17663_v23 = vcombine.low %v17661_v19, %v17662_v43  ;;  %4197 = vmatprep.mubr.bf16.mxu0 %v13474_v24  ;;  %v13489_v2 = vpack.c.bf16 %v2538_v7, %v2534_v28  ;;  %v2478_v52 = vadd.f32 %v13423_v49, %v2393_v11 }
 0x464   : > { %4383 = vmatprep.subr.bf16.mxu0 %v17660_v10  ;;  %v2482_v59 = vadd.f32 %v13423_v49, %v2397_v42  ;;  %v17664_v13 = vcombine.high %v13223_v54, %v13225_v25  ;;  %v2533_v14 = vmax.f32 %v2469_v29, 0.0  ;;  %v2537_v17 = vmax.f32 %v2473_v15, 0.0  ;;  %v17666_v42 = vld [vmem:[#allocation44_spill] sm:$0xff] }
 0x465   : > { %4495 = vmatpush1.bf16.msra.mxu1 %v17663_v23  ;;  %v2540_v34 = vmax.f32 %v2476_v0, 0.0  ;;  %v2544_v20 = vmax.f32 %v2480_v60, 0.0  ;;  %4310 = vmatprep.mubr.bf16.mxu1 %v13489_v2  ;;  %v17665_v36 = vcombine.low %v13218_v18, %v13221_v45  ;;  %v2542_v32 = vmax.f32 %v2478_v52, 0.0  ;;  %v17669_v45 = vld [vmem:[#allocation47_spill] sm:$0xff]  ;;  %v17675_v52 = vld [vmem:[#allocation84_spill] sm:$0xff] }
 0x466   : > { %4496 = vmatprep.subr.bf16.mxu1 %v17664_v13  ;;  %v2546_v28 = vmax.f32 %v2482_v59, 0.0  ;;  %v2403_v11 = vmul.f32 %v13354_v6, %v12998_v46  ;;  %v2401_v57 = vmul.f32 %v13362_v48, %v17666_v42  ;;  %v17668_v29 = vcombine.high %v13228_v63, %v17667_v4  ;;  %v17682_v42 = vld [vmem:[#allocation86_spill] sm:$0xff] }
 0x467   : > { %4384 = vmatpush1.bf16.msra.mxu0 %v17665_v36  ;;  %v13507_v8 = vpack.c.bf16 %v2535_v58, %v2531_v16  ;;  %v2475_v41 = vadd.f32 %v13414_v53, %v13431_v33  ;;  %v2479_v18 = vadd.f32 %v13414_v53, %v13435_v27  ;;  %v2405_v7 = vmul.f32 %v13362_v48, %v17669_v45  ;;  %v17671_v58 = vld [vmem:[#allocation42_spill] sm:$0xff]  ;;  %v17672_v33 = vld [vmem:[#allocation83_spill] sm:$0xff] }
 0x468   : > { %4385 = vmatprep.subr.bf16.mxu0 %v17668_v29  ;;  %v17670_v46 = vcombine.low %v13223_v54, %v13225_v25  ;;  %v13518_v15 = vpack.c.bf16 %v2544_v20, %v2540_v34  ;;  %v2484_v10 = vadd.f32 %v13417_v22, %v2399_v55  ;;  %v2488_v16 = vadd.f32 %v13417_v22, %v2403_v11  ;;  %v17679_v20 = vld [vmem:[#allocation43_spill] sm:$0xff]  ;;  %v17681_v11 = vld [vmem:[#allocation85_spill] sm:$0xff] }
 0x469   : > { %v2398_v0 = vmul.f32 %v13341_v5, %v17671_v58  ;;  %v17673_v60 = vcombine.high %v13232_v12, %v17672_v33  ;;  %4198 = vmatmul.mubr.bf16.gmra.mxu0 %v13507_v8  ;;  %v13528_v27 = vpack.c.bf16 %v2537_v17, %v2533_v14  ;;  %v2477_v54 = vadd.f32 %v13420_v1, %v13442_v61  ;;  %v17678_v17 = vld [vmem:[#allocation45_spill] sm:$0xff] }
 0x46a   : > { %4497 = vmatpush1.bf16.msra.mxu1 %v17670_v46  ;;  %v2481_v25 = vadd.f32 %v13420_v1, %v13450_v50  ;;  %v17674_v55 = vcombine.low %v13228_v63, %v17667_v4  ;;  %4207 = vmatprep.mubr.bf16.mxu0 %v13518_v15  ;;  %v13538_v19 = vpack.c.bf16 %v2546_v28, %v2542_v32  ;;  %v2539_v59 = vmax.f32 %v2475_v41, 0.0  ;;  %v17680_v32 = vld [vmem:[#allocation46_spill] sm:$0xff] }
 0x46b   : > { %4498 = vmatprep.subr.bf16.mxu1 %v17673_v60  ;;  %v2486_v43 = vadd.f32 %v13423_v49, %v2401_v57  ;;  %v2490_v23 = vadd.f32 %v13423_v49, %v2405_v7  ;;  %4311 = vmatmul.mubr.bf16.gmra.mxu1 %v13528_v27  ;;  %v17676_v61 = vcombine.high %v13237_v31, %v17675_v52  ;;  %v2543_v50 = vmax.f32 %v2479_v18, 0.0  ;;  %v17684_v41 = vld [vmem:[#allocation50_spill] sm:$0xff]  ;;  %v17688_v60 = vld [vmem:[#allocation88_spill] sm:$0xff] }
 0x46c   : > { %4386 = vmatpush1.bf16.msra.mxu0 %v17674_v55  ;;  %v2548_v13 = vmax.f32 %v2484_v10, 0.0  ;;  %v2552_v14 = vmax.f32 %v2488_v16, 0.0  ;;  %v17677_v63 = vcombine.low %v13232_v12, %v17672_v33  ;;  %4320 = vmatprep.mubr.bf16.mxu1 %v13538_v19  ;;  %v2402_v34 = vmul.f32 %v13341_v5, %v17678_v17  ;;  %v17686_v16 = vld [vmem:[#allocation54_spill] sm:$0xff]  ;;  %v17687_v33 = vld [vmem:[#allocation87_spill] sm:$0xff] }
 0x46d   : > { %4387 = vmatprep.subr.bf16.mxu0 %v17676_v61  ;;  %v2400_v36 = vmul.f32 %v13344_v26, %v17679_v20  ;;  %v2404_v28 = vmul.f32 %v13344_v26, %v17680_v32  ;;  %v17683_v57 = vcombine.high %v17681_v11, %v17682_v42  ;;  %v2541_v4 = vmax.f32 %v2477_v54, 0.0  ;;  %v17690_v55 = vld [vmem:[#allocation51_spill] sm:$0xff]  ;;  %v17696_v32 = vld [vmem:[#allocation48_spill] sm:$0xff] }
 0x46e   : > { %4499 = vmatpush1.bf16.msra.mxu1 %v17677_v63  ;;  %v2545_v29 = vmax.f32 %v2481_v25, 0.0  ;;  %v2483_v12 = vadd.f32 %v13414_v53, %v2398_v0  ;;  %v2407_v18 = vmul.f32 %v13354_v6, %v17684_v41  ;;  %v17685_v45 = vcombine.low %v13237_v31, %v17675_v52  ;;  %v17691_v31 = vld [vmem:[#allocation55_spill] sm:$0xff] }
 0x46f   : > { %4500 = vmatprep.subr.bf16.mxu1 %v17683_v57  ;;  %v2550_v7 = vmax.f32 %v2486_v43, 0.0  ;;  %v2554_v46 = vmax.f32 %v2490_v23, 0.0  ;;  %v2487_v10 = vadd.f32 %v13414_v53, %v2402_v34  ;;  %v2411_v58 = vmul.f32 %v13354_v6, %v17686_v16  ;;  %v17701_v16 = vld [vmem:[#allocation53_spill] sm:$0xff] }
 0x470   : > { %4388 = vmatpush1.bf16.msra.mxu0 %v17685_v45  ;;  %v17689_v54 = vcombine.high %v17687_v33, %v17688_v60  ;;  %v13571_v25 = vpack.c.bf16 %v2543_v50, %v2539_v59  ;;  %v13573_v0 = vpack.c.bf16 %v2552_v14, %v2548_v13  ;;  %v2409_v61 = vmul.f32 %v13362_v48, %v17690_v55  ;;  %v17693_v50 = vld [vmem:[#allocation89_spill] sm:$0xff]  ;;  %v17694_v13 = vld [vmem:[#allocation90_spill] sm:$0xff] }
 0x471   : > { %v2413_v43 = vmul.f32 %v13362_v48, %v17691_v31  ;;  %v17692_v23 = vcombine.low %v17681_v11, %v17682_v42  ;;  %v2485_v52 = vadd.f32 %v13420_v1, %v2400_v36  ;;  %v2489_v63 = vadd.f32 %v13420_v1, %v2404_v28  ;;  %v17697_v42 = vld [vmem:[#allocation52_spill] sm:$0xff] }
 0x472   : > { %4389 = vmatprep.subr.bf16.mxu0 %v17689_v54  ;;  %v2492_v17 = vadd.f32 %v13417_v22, %v2407_v18  ;;  %v2496_v59 = vadd.f32 %v13417_v22, %v2411_v58  ;;  %v17695_v14 = vcombine.high %v17693_v50, %v17694_v13  ;;  %4208 = vmatmul.mubr.bf16.gmra.mxu0 %v13571_v25  ;;  %v2547_v20 = vmax.f32 %v2483_v12, 0.0  ;;  %v17700_v12 = vld [vmem:[#allocation49_spill] sm:$0xff] }
 0x473   : > { %4501 = vmatpush1.bf16.msra.mxu1 %v17692_v23  ;;  %v13590_v34 = vpack.c.bf16 %v2545_v29, %v2541_v4  ;;  %v2406_v11 = vmul.f32 %v13341_v5, %v17696_v32  ;;  %v2410_v36 = vmul.f32 %v13341_v5, %v17697_v42  ;;  %v17698_v28 = vcombine.low %v17687_v33, %v17688_v60  ;;  %v17702_v33 = vld [vmem:[#allocation58_spill] sm:$0xff]  ;;  %v17706_v32 = vld [vmem:[#allocation59_spill] sm:$0xff] }
 0x474   : > { %4502 = vmatprep.subr.bf16.mxu1 %v17695_v14  ;;  %4217 = vmatprep.mubr.bf16.mxu0 %v13573_v0  ;;  %v13600_v57 = vpack.c.bf16 %v2554_v46, %v2550_v7  ;;  %v2551_v41 = vmax.f32 %v2487_v10, 0.0  ;;  %v2494_v18 = vadd.f32 %v13423_v49, %v2409_v61  ;;  %v2498_v4 = vadd.f32 %v13423_v49, %v2413_v43  ;;  %v17705_v23 = vld [vmem:[#allocation62_spill] sm:$0xff]  ;;  %v17708_v42 = vld [vmem:[#allocation63_spill] sm:$0xff] }
 0x475   : > { %4390 = vmatpush1.bf16.msra.mxu0 %v17698_v28  ;;  %4321 = vmatmul.mubr.bf16.gmra.mxu1 %v13590_v34  ;;  %v17699_v29 = vcombine.high %v13272_v30, %v13274_v39  ;;  %v2408_v45 = vmul.f32 %v13344_v26, %v17700_v12  ;;  %v2412_v58 = vmul.f32 %v13344_v26, %v17701_v16  ;;  %v2549_v10 = vmax.f32 %v2485_v52, 0.0  ;;  %v13629_v52 = vld [vmem:[#allocation16 + $0x7a8] sm:$0xff]  ;;  %v17709_v28 = vld [vmem:[#allocation91_spill] sm:$0xff] }
 0x476   : > { %v2415_v7 = vmul.f32 %v13354_v6, %v17702_v33  ;;  %v17703_v46 = vcombine.low %v17693_v50, %v17694_v13  ;;  %4330 = vmatprep.mubr.bf16.mxu1 %v13600_v57  ;;  %v2553_v60 = vmax.f32 %v2489_v63, 0.0  ;;  %v2556_v54 = vmax.f32 %v2492_v17, 0.0  ;;  %v13627_v13 = vld [vmem:[#allocation16 + $0x788] sm:$0xff] }
 0x477   : > { %4391 = vmatprep.subr.bf16.mxu0 %v17699_v29  ;;  %v2560_v55 = vmax.f32 %v2496_v59, 0.0  ;;  %v17704_v61 = vcombine.high %v13282_v56, %v13284_v38  ;;  %v2491_v31 = vadd.f32 %v13414_v53, %v2406_v11  ;;  %v2495_v43 = vadd.f32 %v13414_v53, %v2410_v36 }
 0x478   : > { %4503 = vmatpush1.bf16.msra.mxu1 %v17703_v46  ;;  %v2419_v14 = vmul.f32 %v13354_v6, %v17705_v23  ;;  %v2417_v50 = vmul.f32 %v13362_v48, %v17706_v32  ;;  %v17707_v63 = vcombine.low %v13272_v30, %v13274_v39  ;;  %v13634_v17 = vpack.c.bf16 %v2551_v41, %v2547_v20  ;;  %v13645_v39 = vld [vmem:[#allocation16 + $0x348] sm:$0xff]  ;;  %v17716_v32 = vld [vmem:[#allocation94_spill] sm:$0xff] }
 0x479   : > { %4504 = vmatprep.subr.bf16.mxu1 %v17704_v61  ;;  %v2558_v59 = vmax.f32 %v2494_v18, 0.0  ;;  %v2562_v11 = vmax.f32 %v2498_v4, 0.0  ;;  %v2421_v36 = vmul.f32 %v13362_v48, %v17708_v42  ;;  %v17710_v29 = vcombine.high %v13292_v21, %v17709_v28  ;;  %v13647_v20 = vld [vmem:[#allocation16 + $0x368] sm:$0xff] }
 0x47a   : > { %4392 = vmatpush1.bf16.msra.mxu0 %v17707_v63  ;;  %v2493_v12 = vadd.f32 %v13420_v1, %v2408_v45  ;;  %v2497_v16 = vadd.f32 %v13420_v1, %v2412_v58  ;;  %v2500_v33 = vadd.f32 %v13417_v22, %v2415_v7  ;;  %v2504_v30 = vadd.f32 %v13417_v22, %v2419_v14  ;;  %v17712_v7 = vld [vmem:[#allocation92_spill] sm:$0xff]  ;;  %v17713_v46 = vld [vmem:[#allocation93_spill] sm:$0xff] }
 0x47b   : > { %4393 = vmatprep.subr.bf16.mxu0 %v17710_v29  ;;  %v17711_v41 = vcombine.low %v13282_v56, %v13284_v38  ;;  %v13652_v18 = vpack.c.bf16 %v2553_v60, %v2549_v10  ;;  %v13654_v4 = vpack.c.bf16 %v2560_v55, %v2556_v54  ;;  %v10303_v58 = vcombine.high %v13627_v13, %v13629_v52  ;;  %v13666_v10 = vld [vmem:[#allocation16 + $0x748] sm:$0xff]  ;;  %v17720_v29 = vld [vmem:[#allocation56_spill] sm:$0xff] }
 0x47c   : > { %v17714_v61 = vcombine.high %v17712_v7, %v17713_v46  ;;  %4218 = vmatmul.mubr.bf16.gmra.mxu0 %v13634_v17  ;;  %v2555_v23 = vmax.f32 %v2491_v31, 0.0  ;;  %v2559_v14 = vmax.f32 %v2495_v43, 0.0  ;;  %v2502_v56 = vadd.f32 %v13423_v49, %v2417_v50  ;;  %v13668_v60 = vld [vmem:[#allocation16 + $0x768] sm:$0xff]  ;;  %v17717_v50 = vld [vmem:[#allocation95_spill] sm:$0xff]  ;;  %v17734_v31 = vld [vmem:[#allocation96_spill] sm:$0xff] }
 0x47d   : > { %4505 = vmatpush1.bf16.msra.mxu1 %v17711_v41  ;;  %v2506_v38 = vadd.f32 %v13423_v49, %v2421_v36  ;;  %v17715_v54 = vcombine.low %v13292_v21, %v17709_v28  ;;  %4227 = vmatprep.mubr.bf16.mxu0 %v13654_v4  ;;  %v13674_v55 = vpack.c.bf16 %v2562_v11, %v2558_v59  ;;  %v2557_v42 = vmax.f32 %v2493_v12, 0.0  ;;  %v17725_v11 = vld [vmem:[#allocation70_spill] sm:$0xff] }
 0x47e   : > { %4506 = vmatprep.subr.bf16.mxu1 %v17714_v61  ;;  %4331 = vmatmul.mubr.bf16.gmra.mxu1 %v13652_v18  ;;  %v17718_v63 = vcombine.high %v17716_v32, %v17717_v50  ;;  %v2561_v36 = vmax.f32 %v2497_v16, 0.0  ;;  %v2564_v21 = vmax.f32 %v2500_v33, 0.0  ;;  %v2568_v28 = vmax.f32 %v2504_v30, 0.0  ;;  %v17721_v61 = vld [vmem:[#allocation60_spill] sm:$0xff] }
 0x47f   : > { %4394 = vmatpush1.bf16.msra.mxu0 %v17715_v54  ;;  %v17719_v59 = vcombine.low %v17712_v7, %v17713_v46  ;;  %4340 = vmatprep.mubr.bf16.mxu1 %v13674_v55  ;;  %v2414_v41 = vmul.f32 %v13341_v5, %v17720_v29  ;;  %v2418_v54 = vmul.f32 %v13341_v5, %v17721_v61  ;;  %v2566_v33 = vmax.f32 %v2502_v56, 0.0  ;;  %v17724_v29 = vld [vmem:[#allocation66_spill] sm:$0xff] }
 0x480   : > { %4395 = vmatprep.subr.bf16.mxu0 %v17718_v63  ;;  %v17722_v12 = vcombine.high %v13322_v51, %v13324_v37  ;;  %v13697_v16 = vpack.c.bf16 %v2559_v14, %v2555_v23  ;;  %v2570_v30 = vmax.f32 %v2506_v38, 0.0  ;;  %v17723_v46 = vcombine.low %v17716_v32, %v17717_v50  ;;  %v17729_v32 = vld [vmem:[#allocation57_spill] sm:$0xff] }
 0x481   : > { %4507 = vmatpush1.bf16.msra.mxu1 %v17719_v59  ;;  %v2499_v63 = vadd.f32 %v13414_v53, %v2414_v41  ;;  %v2503_v59 = vadd.f32 %v13414_v53, %v2418_v54  ;;  %v2423_v61 = vmul.f32 %v13354_v6, %v17724_v29  ;;  %v2427_v23 = vmul.f32 %v13354_v6, %v17725_v11  ;;  %v17730_v41 = vld [vmem:[#allocation61_spill] sm:$0xff] }
 0x482   : > { %4508 = vmatprep.subr.bf16.mxu1 %v17722_v12  ;;  %v17726_v14 = vcombine.high %v13326_v40, %v13334_v35  ;;  %v13713_v56 = vpack.c.bf16 %v2561_v36, %v2557_v42  ;;  %v13715_v38 = vpack.c.bf16 %v2568_v28, %v2564_v21  ;;  %v2416_v50 = vmul.f32 %v13344_v26, %v17729_v32  ;;  %v13721_v12 = vld [vmem:[#allocation16 + $0x308] sm:$0xff]  ;;  %v17732_v42 = vld [vmem:[#allocation67_spill] sm:$0xff] }
 0x483   : > { %4396 = vmatpush1.bf16.msra.mxu0 %v17723_v46  ;;  %v2420_v54 = vmul.f32 %v13344_v26, %v17730_v41  ;;  %v17731_v46 = vcombine.low %v13322_v51, %v13324_v37  ;;  %v2508_v11 = vadd.f32 %v13417_v22, %v2423_v61  ;;  %v2512_v29 = vadd.f32 %v13417_v22, %v2427_v23  ;;  %v17733_v21 = vld [vmem:[#allocation71_spill] sm:$0xff]  ;;  %v13734_v32 = vld [vmem:[#allocation16 + $0x708] sm:$0xff] }
 0x484   : > { %4397 = vmatprep.subr.bf16.mxu0 %v17726_v14  ;;  %17727 = vst [vmem:[#allocation41_spill] sm:$0xff] %v13713_v56  ;;  %17728 = vst [vmem:[#allocation37_spill] sm:$0xff] %v13715_v38  ;;  %v2425_v36 = vmul.f32 %v13362_v48, %v17732_v42  ;;  %v2429_v28 = vmul.f32 %v13362_v48, %v17733_v21  ;;  %v13732_v14 = vld [vmem:[#allocation16 + $0x328] sm:$0xff]  ;;  %v17735_v51 = vcombine.high %v13336_v9, %v17734_v31 }
 0x485   : > { %4509 = vmatpush1.bf16.msra.mxu1 %v17731_v46  ;;  %v13736_v41 = vld [vmem:[#allocation16 + $0x728] sm:$0xff]  ;;  %4228 = vmatmul.mubr.bf16.gmra.mxu0 %v13697_v16  ;;  %v13742_v37 = vpack.c.bf16 %v2570_v30, %v2566_v33  ;;  %v2501_v61 = vadd.f32 %v13420_v1, %v2416_v50  ;;  %v2505_v23 = vadd.f32 %v13420_v1, %v2420_v54  ;;  %v2563_v42 = vmax.f32 %v2499_v63, 0.0  ;;  %v17739_v30 = vld [vmem:[#allocation98_spill] sm:$0xff]  ;;  %v17742_v54 = vld [vmem:[#allocation79_spill] sm:$0xff] }
 0x486   : > { %4510 = vmatprep.subr.bf16.mxu1 %v17735_v51  ;;  %v17737_v46 = vcombine.low %v13326_v40, %v13334_v35  ;;  %4237 = vmatprep.mubr.bf16.mxu0 %v13715_v38  ;;  %v2567_v21 = vmax.f32 %v2503_v59, 0.0  ;;  %v2510_v7 = vadd.f32 %v13423_v49, %v2425_v36  ;;  %v2514_v51 = vadd.f32 %v13423_v49, %v2429_v28  ;;  %v17738_v33 = vld [vmem:[#allocation97_spill] sm:$0xff]  ;;  %v17741_v63 = vld [vmem:[#allocation78_spill] sm:$0xff]  ;;  %v17745_v38 = vld [vmem:[#allocation68_spill] sm:$0xff] }
 0x487   : > { %17736 = vst [vmem:[#allocation38_spill] sm:$0xff] %v13742_v37  ;;  %4341 = vmatmul.mubr.bf16.gmra.mxu1 %v13713_v56  ;;  %v17740_v45 = vcombine.high %v17738_v33, %v17739_v30  ;;  %v10159_v35 = vcombine.high %v13721_v12, %v13732_v14  ;;  %v10287_v40 = vcombine.high %v13734_v32, %v13736_v41  ;;  %v2565_v50 = vmax.f32 %v2501_v61, 0.0  ;;  %v17744_v56 = vld [vmem:[#allocation64_spill] sm:$0xff] }
 0x488   : > { %4398 = vmatpush2.bf16.msra.mxu0 %v17737_v46  ;;  %v2435_v59 = vmul.f32 %v13354_v6, %v17741_v63  ;;  %v2437_v36 = vmul.f32 %v13362_v48, %v17742_v54  ;;  %v17743_v28 = vcombine.low %v13336_v9, %v17734_v31  ;;  %4350 = vmatprep.mubr.bf16.mxu1 %v13742_v37  ;;  %v2576_v46 = vmax.f32 %v2512_v29, 0.0 }
 0x489   : > { %4399 = vmatprep.subr.bf16.mxu0 %v17740_v45  ;;  %v2572_v45 = vmax.f32 %v2508_v11, 0.0  ;;  %v2569_v43 = vmax.f32 %v2505_v23, 0.0  ;;  %v2422_v63 = vmul.f32 %v13341_v5, %v17744_v56  ;;  %v2426_v54 = vmul.f32 %v13341_v5, %v17745_v38  ;;  %v17749_v38 = vld [vmem:[#allocation65_spill] sm:$0xff] }
 0x48a   : > { %4511 = vmatpush2.bf16.msra.mxu1 %v17743_v28  ;;  %v17746_v9 = vcombine.low %v17738_v33, %v17739_v30  ;;  %v13780_v31 = vpack.c.bf16 %v2567_v21, %v2563_v42  ;;  %v2574_v11 = vmax.f32 %v2510_v7, 0.0  ;;  %v2578_v29 = vmax.f32 %v2514_v51, 0.0  ;;  %v17747_v28 = vld [vmem:[#allocation74_spill] sm:$0xff]  ;;  %v17750_v33 = vld [vmem:[#allocation69_spill] sm:$0xff] }
 0x48b   : > { %4512 = vmatprep.subr.bf16.mxu1 %v10303_v58  ;;  %v2431_v37 = vmul.f32 %v13354_v6, %v17747_v28  ;;  %v17748_v58 = vcombine.high %v13645_v39, %v13647_v20  ;;  %v2507_v56 = vadd.f32 %v13414_v53, %v2422_v63  ;;  %v2511_v61 = vadd.f32 %v13414_v53, %v2426_v54  ;;  %v2708_v6 = vld [vmem:[#allocation16 + $0x2c8] sm:$0xff] }
 0x48c   : > { %4400 = vmatpush2.bf16.msra.mxu0 %v17746_v9  ;;  %v2424_v23 = vmul.f32 %v13344_v26, %v17749_v38  ;;  %v2428_v42 = vmul.f32 %v13344_v26, %v17750_v33  ;;  %v17751_v7 = vcombine.low %v13627_v13, %v13629_v52  ;;  %v13796_v21 = vpack.c.bf16 %v2576_v46, %v2572_v45  ;;  %v2712_v51 = vld [vmem:[#allocation16 + $0x2e8] sm:$0xff]  ;;  %v17752_v9 = vld [vmem:[#allocation75_spill] sm:$0xff] }
 0x48d   : > { %4401 = vmatprep.subr.bf16.mxu0 %v17748_v58  ;;  %v2516_v30 = vadd.f32 %v13417_v22, %v2431_v37  ;;  %v2520_v63 = vadd.f32 %v13417_v22, %v2435_v59  ;;  %v2433_v54 = vmul.f32 %v13362_v48, %v17752_v9  ;;  %v17753_v28 = vcombine.high %v13666_v10, %v13668_v60  ;;  %v2836_v13 = vld [vmem:[#allocation16 + $0x6c8] sm:$0xff] }
 0x48e   : > { %4513 = vmatpush2.bf16.msra.mxu1 %v17751_v7  ;;  %4238 = vmatmul.mubr.bf16.gmra.mxu0 %v13780_v31  ;;  %v13806_v58 = vpack.c.bf16 %v2569_v43, %v2565_v50  ;;  %v2840_v52 = vld [vmem:[#allocation16 + $0x6e8] sm:$0xff]  ;;  %v2509_v45 = vadd.f32 %v13420_v1, %v2424_v23  ;;  %v2513_v46 = vadd.f32 %v13420_v1, %v2428_v42  ;;  %v2571_v38 = vmax.f32 %v2507_v56, 0.0  ;;  %v17756_v42 = vld [vmem:[#allocation76_spill] sm:$0xff] }
 0x48f   : > { %4514 = vmatprep.subr.bf16.mxu1 %v17753_v28  ;;  %v2522_v37 = vadd.f32 %v13423_v49, %v2437_v36  ;;  %v17754_v22 = vcombine.low %v13645_v39, %v13647_v20  ;;  %4247 = vmatprep.mubr.bf16.mxu0 %v13796_v21  ;;  %v13815_v48 = vpack.c.bf16 %v2578_v29, %v2574_v11  ;;  %v2575_v23 = vmax.f32 %v2511_v61, 0.0  ;;  %v2700_v36 = vld [vmem:[#allocation16 + $0x288] sm:$0xff]  ;;  %v17757_v7 = vld [vmem:[#allocation72_spill] sm:$0xff] }
 0x490   : > { %v2518_v59 = vadd.f32 %v13423_v49, %v2433_v54  ;;  %4351 = vmatmul.mubr.bf16.gmra.mxu1 %v13806_v58  ;;  %v10286_v43 = vcombine.low %v13734_v32, %v13736_v41  ;;  %v10151_v50 = vcombine.high %v2708_v6, %v2712_v51  ;;  %v2704_v33 = vld [vmem:[#allocation16 + $0x2a8] sm:$0xff]  ;;  %v17755_v39 = vcombine.low %v13666_v10, %v13668_v60 }
 0x491   : > { %4402 = vmatpush2.bf16.msra.mxu0 %v17754_v22  ;;  %4360 = vmatprep.mubr.bf16.mxu1 %v13815_v48  ;;  %v10150_v20 = vcombine.low %v2708_v6, %v2712_v51  ;;  %v10279_v11 = vcombine.high %v2836_v13, %v2840_v52  ;;  %v2580_v49 = vmax.f32 %v2516_v30, 0.0  ;;  %v2584_v29 = vmax.f32 %v2520_v63, 0.0  ;;  %v2828_v56 = vld [vmem:[#allocation16 + $0x688] sm:$0xff] }
 0x492   : > { %4403 = vmatprep.subr.bf16.mxu0 %v10159_v35  ;;  %4515 = vmatpush2.bf16.msra.mxu1 %v17755_v39  ;;  %v2434_v35 = vmul.f32 %v13341_v5, %v17756_v42  ;;  %v2573_v32 = vmax.f32 %v2509_v45, 0.0  ;;  %v2577_v41 = vmax.f32 %v2513_v46, 0.0  ;;  %v2832_v61 = vld [vmem:[#allocation16 + $0x6a8] sm:$0xff]  ;;  %v2430_v9 = vmul.f32 %v13341_v5, %v17757_v7 }
 0x493   : > { %4516 = vmatprep.subr.bf16.mxu1 %v10287_v40  ;;  %v17758_v54 = vld [vmem:[#allocation77_spill] sm:$0xff]  ;;  %v2586_v60 = vmax.f32 %v2522_v37, 0.0  ;;  %v17759_v6 = vcombine.low %v13721_v12, %v13732_v14  ;;  %v2582_v51 = vmax.f32 %v2518_v59, 0.0  ;;  %v10143_v30 = vcombine.high %v2700_v36, %v2704_v33 }
 0x494   : > { %v2436_v10 = vmul.f32 %v13344_v26, %v17758_v54  ;;  %v13834_v63 = vpack.c.bf16 %v2575_v23, %v2571_v38  ;;  %v2515_v40 = vadd.f32 %v13414_v53, %v2430_v9  ;;  %v2519_v28 = vadd.f32 %v13414_v53, %v2434_v35  ;;  %v17760_v45 = vld [vmem:[#allocation73_spill] sm:$0xff]  ;;  %v2677_v9 = vld [vmem:[#allocation16 + $0x1d0] sm:$0xff] }
 0x495   : > { %4404 = vmatpush2.bf16.msra.mxu0 %v17759_v6  ;;  %v2432_v5 = vmul.f32 %v13344_v26, %v17760_v45  ;;  %v10278_v46 = vcombine.low %v2836_v13, %v2840_v52  ;;  %v13840_v22 = vpack.c.bf16 %v2584_v29, %v2580_v49  ;;  %v10271_v37 = vcombine.high %v2828_v56, %v2832_v61  ;;  %v2692_v39 = vld [vmem:[#allocation16 + $0x248] sm:$0xff]  ;;  %v2681_v54 = vld [vmem:[#allocation16 + $0x1f0] sm:$0xff] }
 0x496   : > { %4405 = vmatprep.subr.bf16.mxu0 %v10151_v50  ;;  %4517 = vmatpush2.bf16.msra.mxu1 %v10286_v43  ;;  %v2696_v12 = vld [vmem:[#allocation16 + $0x268] sm:$0xff]  ;;  %v13843_v14 = vpack.c.bf16 %v2577_v41, %v2573_v32  ;;  %v2521_v50 = vadd.f32 %v13420_v1, %v2436_v10  ;;  %v13848_v26 = vpack.c.bf16 %v2586_v60, %v2582_v51  ;;  %v2579_v38 = vmax.f32 %v2515_v40, 0.0  ;;  %v2805_v60 = vld [vmem:[#allocation16 + $0x5d0] sm:$0xff] }
 0x497   : > { %4518 = vmatprep.subr.bf16.mxu1 %v10279_v11  ;;  %4248 = vmatmul.mubr.bf16.gmra.mxu0 %v13834_v63  ;;  %v2517_v59 = vadd.f32 %v13420_v1, %v2432_v5  ;;  %v10142_v53 = vcombine.low %v2700_v36, %v2704_v33  ;;  %v2820_v13 = vld [vmem:[#allocation16 + $0x648] sm:$0xff]  ;;  %v10135_v43 = vcombine.high %v2692_v39, %v2696_v12  ;;  %v2583_v23 = vmax.f32 %v2519_v28, 0.0  ;;  %v2809_v6 = vld [vmem:[#allocation16 + $0x5f0] sm:$0xff] }
 0x498   : > { %4257 = vmatprep.mubr.bf16.mxu0 %v13840_v22  ;;  %v2824_v52 = vld [vmem:[#allocation16 + $0x668] sm:$0xff]  ;;  %4361 = vmatmul.mubr.bf16.gmra.mxu1 %v13843_v14  ;;  %v10270_v11 = vcombine.low %v2828_v56, %v2832_v61  ;;  %v2585_v42 = vmax.f32 %v2521_v50, 0.0  ;;  %v10134_v36 = vcombine.low %v2692_v39, %v2696_v12  ;;  %v10121_v51 = vcombine.high %v2677_v9, %v2681_v54  ;;  %v2669_v40 = vld [vmem:[#allocation16 + $0x190] sm:$0xff] }
 0x499   : > { %4406 = vmatpush2.bf16.msra.mxu0 %v10150_v20  ;;  %4370 = vmatprep.mubr.bf16.mxu1 %v13848_v26  ;;  %v2684_v49 = vld [vmem:[#allocation16 + $0x208] sm:$0xff]  ;;  %v10263_v20 = vcombine.high %v2820_v13, %v2824_v52  ;;  %v2581_v29 = vmax.f32 %v2517_v59, 0.0  ;;  %v13852_v32 = vpack.c.bf16 %v2583_v23, %v2579_v38  ;;  %v10262_v7 = vcombine.low %v2820_v13, %v2824_v52  ;;  %v2673_v28 = vld [vmem:[#allocation16 + $0x1b0] sm:$0xff] }
 0x49a   : > { %4407 = vmatprep.subr.bf16.mxu0 %v10143_v30  ;;  %4519 = vmatpush2.bf16.msra.mxu1 %v10278_v46  ;;  %v2688_v1 = vld [vmem:[#allocation16 + $0x228] sm:$0xff]  ;;  %v10249_v45 = vcombine.high %v2805_v60, %v2809_v6  ;;  %v10120_v5 = vcombine.low %v2677_v9, %v2681_v54  ;;  %v2797_v46 = vld [vmem:[#allocation16 + $0x590] sm:$0xff]  ;;  %v10113_v39 = vcombine.high %v2669_v40, %v2673_v28 }
 0x49b   : > { %4520 = vmatprep.subr.bf16.mxu1 %v10271_v37  ;;  %v2812_v33 = vld [vmem:[#allocation16 + $0x608] sm:$0xff]  ;;  %v10127_v41 = vcombine.high %v2684_v49, %v2688_v1  ;;  %v13855_v56 = vpack.c.bf16 %v2585_v42, %v2581_v29  ;;  %v10126_v10 = vcombine.low %v2684_v49, %v2688_v1  ;;  %v2801_v37 = vld [vmem:[#allocation16 + $0x5b0] sm:$0xff]  ;;  %v10248_v12 = vcombine.low %v2805_v60, %v2809_v6 }
 0x49c   : > { %v2816_v35 = vld [vmem:[#allocation16 + $0x628] sm:$0xff]  ;;  %v2661_v59 = vld [vmem:[#allocation16 + $0x150] sm:$0xff]  ;;  %v10112_v13 = vcombine.low %v2669_v40, %v2673_v28  ;;  %v10240_v23 = vcombine.low %v2797_v46, %v2801_v37 }
 0x49d   : > { %4408 = vmatpush2.bf16.msra.mxu0 %v10142_v53  ;;  %v10255_v61 = vcombine.high %v2812_v33, %v2816_v35  ;;  %v10254_v30 = vcombine.low %v2812_v33, %v2816_v35  ;;  %v2665_v50 = vld [vmem:[#allocation16 + $0x170] sm:$0xff]  ;;  %v10241_v53 = vcombine.high %v2797_v46, %v2801_v37 }
 0x49e   : > { %4409 = vmatprep.subr.bf16.mxu0 %v10135_v43  ;;  %4521 = vmatpush2.bf16.msra.mxu1 %v10270_v11  ;;  %v2789_v52 = vld [vmem:[#allocation16 + $0x550] sm:$0xff]  ;;  %v10105_v38 = vcombine.high %v2661_v59, %v2665_v50 }
 0x49f   : > { %4522 = vmatprep.subr.bf16.mxu1 %v10263_v20  ;;  %4258 = vmatmul.mubr.bf16.gmra.mxu0 %v13852_v32  ;;  %v2793_v43 = vld [vmem:[#allocation16 + $0x570] sm:$0xff]  ;;  %v10104_v20 = vcombine.low %v2661_v59, %v2665_v50 }
 0x4a0   : > { %4413 = vmatprep.mubr.bf16.mxu0 %v13453_v62  ;;  %4371 = vmatmul.mubr.bf16.gmra.mxu1 %v13855_v56  ;;  %v2653_v11 = vld [vmem:[#allocation16 + $0x110] sm:$0xff]  ;;  %v10233_v1 = vcombine.high %v2789_v52, %v2793_v43  ;;  %v10232_v33 = vcombine.low %v2789_v52, %v2793_v43 }
 0x4a1   : > { %4410 = vmatpush2.bf16.msra.mxu0 %v10134_v36  ;;  %4526 = vmatprep.mubr.bf16.mxu1 %v13457_v47  ;;  %v2657_v49 = vld [vmem:[#allocation16 + $0x130] sm:$0xff] }
 0x4a2   : > { %4411 = vmatprep.subr.bf16.mxu0 %v10127_v41  ;;  %4523 = vmatpush2.bf16.msra.mxu1 %v10262_v7  ;;  %v2781_v29 = vld [vmem:[#allocation16 + $0x510] sm:$0xff]  ;;  %v10097_v36 = vcombine.high %v2653_v11, %v2657_v49  ;;  %v10096_v9 = vcombine.low %v2653_v11, %v2657_v49 }
 0x4a3   : > { %4524 = vmatprep.subr.bf16.mxu1 %v10255_v61  ;;  %v2785_v42 = vld [vmem:[#allocation16 + $0x530] sm:$0xff] }
 0x4a4   : > { %v2645_v35 = vld [vmem:[#allocation16 + $0xd0] sm:$0xff]  ;;  %v10225_v7 = vcombine.high %v2781_v29, %v2785_v42  ;;  %v10224_v60 = vcombine.low %v2781_v29, %v2785_v42 }
 0x4a5   : > { %4412 = vmatpush2.bf16.msra.mxu0 %v10126_v10  ;;  %v2649_v41 = vld [vmem:[#allocation16 + $0xf0] sm:$0xff] }
 0x4a6   : > { %4607 = vmatprep.subr.bf16.mxu0 %v10121_v51  ;;  %4525 = vmatpush2.bf16.msra.mxu1 %v10254_v30  ;;  %v2773_v54 = vld [vmem:[#allocation16 + $0x4d0] sm:$0xff]  ;;  %v10089_v10 = vcombine.high %v2645_v35, %v2649_v41  ;;  %v10088_v40 = vcombine.low %v2645_v35, %v2649_v41 }
 0x4a7   : > { %4720 = vmatprep.subr.bf16.mxu1 %v10249_v45  ;;  %v2777_v61 = vld [vmem:[#allocation16 + $0x4f0] sm:$0xff] }
 0x4a8   : > { %4414 = vmatmul.mubr.bf16.vlgmr.msra.gmra.mxu0 %v13459_v3  ;;  %v2637_v6 = vld [vmem:[#allocation16 + $0x90] sm:$0xff]  ;;  %v10217_v30 = vcombine.high %v2773_v54, %v2777_v61  ;;  %v10216_v46 = vcombine.low %v2773_v54, %v2777_v61 }
 0x4a9   : > { %4608 = vmatpush1.bf16.msra.mxu0 %v10120_v5  ;;  %4423 = vmatprep.mubr.bf16.mxu0 %v13474_v24  ;;  %v2641_v51 = vld [vmem:[#allocation16 + $0xb0] sm:$0xff] }
 0x4aa   : > { %4527 = vmatmul.mubr.bf16.vlgmr.msra.gmra.mxu1 %v13467_v44  ;;  %4609 = vmatprep.subr.bf16.mxu0 %v10113_v39  ;;  %v2765_v28 = vld [vmem:[#allocation16 + $0x490] sm:$0xff]  ;;  %v10081_v5 = vcombine.high %v2637_v6, %v2641_v51  ;;  %v10080_v59 = vcombine.low %v2637_v6, %v2641_v51 }
 0x4ab   : > { %4721 = vmatpush1.bf16.msra.mxu1 %v10248_v12  ;;  %4536 = vmatprep.mubr.bf16.mxu1 %v13489_v2  ;;  %v2769_v45 = vld [vmem:[#allocation16 + $0x4b0] sm:$0xff] }
 0x4ac   : > { %4722 = vmatprep.subr.bf16.mxu1 %v10241_v53  ;;  %v2629_v37 = vld [vmem:[#allocation16 + $0x50] sm:$0xff]  ;;  %v10209_v12 = vcombine.high %v2765_v28, %v2769_v45  ;;  %v10208_v52 = vcombine.low %v2765_v28, %v2769_v45 }
 0x4ad   : > { %4610 = vmatpush1.bf16.msra.mxu0 %v10112_v13  ;;  %v2633_v39 = vld [vmem:[#allocation16 + $0x70] sm:$0xff] }
 0x4ae   : > { %4611 = vmatprep.subr.bf16.mxu0 %v10105_v38  ;;  %v2757_v50 = vld [vmem:[#allocation16 + $0x450] sm:$0xff]  ;;  %v10073_v13 = vcombine.high %v2629_v37, %v2633_v39  ;;  %v10072_v11 = vcombine.low %v2629_v37, %v2633_v39  ;;  %v17761_v37 = vld [vmem:[#allocation37_spill] sm:$0xff] }
 0x4af   : > { %4723 = vmatpush1.bf16.msra.mxu1 %v10240_v23  ;;  %v2761_v53 = vld [vmem:[#allocation16 + $0x470] sm:$0xff] }
 0x4b0   : > { %4724 = vmatprep.subr.bf16.mxu1 %v10233_v1  ;;  %4424 = vmatmul.mubr.bf16.gmra.mxu0 %v13507_v8  ;;  %v2621_v43 = vld [vmem:[#allocation16 + $0x10] sm:$0xff]  ;;  %v10201_v23 = vcombine.high %v2757_v50, %v2761_v53  ;;  %v10200_v29 = vcombine.low %v2757_v50, %v2761_v53  ;;  %v17762_v50 = vld [vmem:[#allocation41_spill] sm:$0xff] }
 0x4b1   : > { %4612 = vmatpush1.bf16.msra.mxu0 %v10104_v20  ;;  %4433 = vmatprep.mubr.bf16.mxu0 %v13518_v15  ;;  %v2625_v38 = vld [vmem:[#allocation16 + $0x30] sm:$0xff] }
 0x4b2   : > { %4537 = vmatmul.mubr.bf16.gmra.mxu1 %v13528_v27  ;;  %4613 = vmatprep.subr.bf16.mxu0 %v10097_v36  ;;  %v2749_v49 = vld [vmem:[#allocation16 + $0x410] sm:$0xff]  ;;  %v10065_v20 = vcombine.high %v2621_v43, %v2625_v38  ;;  %v10064_v35 = vcombine.low %v2621_v43, %v2625_v38 }
 0x4b3   : > { %4725 = vmatpush1.bf16.msra.mxu1 %v10232_v33  ;;  %4546 = vmatprep.mubr.bf16.mxu1 %v13538_v19  ;;  %v2753_v1 = vld [vmem:[#allocation16 + $0x430] sm:$0xff] }
 0x4b4   : > { %4726 = vmatprep.subr.bf16.mxu1 %v10225_v7  ;;  %v2741_v42 = vld [vmem:[#allocation16 + $0x3d0] sm:$0xff]  ;;  %v10193_v33 = vcombine.high %v2749_v49, %v2753_v1  ;;  %v10192_v54 = vcombine.low %v2749_v49, %v2753_v1 }
 0x4b5   : > { %4614 = vmatpush1.bf16.msra.mxu0 %v10096_v9  ;;  %v2745_v36 = vld [vmem:[#allocation16 + $0x3f0] sm:$0xff] }
 0x4b6   : > { %4615 = vmatprep.subr.bf16.mxu0 %v10089_v10  ;;  %v2869_v41 = vld [vmem:[#allocation16 + $0x7d0] sm:$0xff]  ;;  %v10185_v9 = vcombine.high %v2741_v42, %v2745_v36  ;;  %v10184_v6 = vcombine.low %v2741_v42, %v2745_v36 }
 0x4b7   : > { %4727 = vmatpush1.bf16.msra.mxu1 %v10224_v60  ;;  %v2873_v7 = vld [vmem:[#allocation16 + $0x7f0] sm:$0xff] }
 0x4b8   : > { %4728 = vmatprep.subr.bf16.mxu1 %v10217_v30  ;;  %4434 = vmatmul.mubr.bf16.gmra.mxu0 %v13571_v25  ;;  %v2733_v61 = vld [vmem:[#allocation16 + $0x390] sm:$0xff]  ;;  %v10313_v60 = vcombine.high %v2869_v41, %v2873_v7  ;;  %v10312_v28 = vcombine.low %v2869_v41, %v2873_v7 }
 0x4b9   : > { %4616 = vmatpush1.bf16.msra.mxu0 %v10088_v40  ;;  %4443 = vmatprep.mubr.bf16.mxu0 %v13573_v0  ;;  %v2737_v10 = vld [vmem:[#allocation16 + $0x3b0] sm:$0xff] }
 0x4ba   : > { %4547 = vmatmul.mubr.bf16.gmra.mxu1 %v13590_v34  ;;  %4617 = vmatprep.subr.bf16.mxu0 %v10081_v5  ;;  %v2861_v51 = vld [vmem:[#allocation16 + $0x790] sm:$0xff]  ;;  %v10177_v40 = vcombine.high %v2733_v61, %v2737_v10  ;;  %v10176_v39 = vcombine.low %v2733_v61, %v2737_v10 }
 0x4bb   : > { %4729 = vmatpush1.bf16.msra.mxu1 %v10216_v46  ;;  %4556 = vmatprep.mubr.bf16.mxu1 %v13600_v57  ;;  %v2865_v30 = vld [vmem:[#allocation16 + $0x7b0] sm:$0xff] }
 0x4bc   : > { %4730 = vmatprep.subr.bf16.mxu1 %v10209_v12  ;;  %v2725_v45 = vld [vmem:[#allocation16 + $0x350] sm:$0xff]  ;;  %v10305_v46 = vcombine.high %v2861_v51, %v2865_v30 }
 0x4bd   : > { %4618 = vmatpush1.bf16.msra.mxu0 %v10080_v59  ;;  %v2729_v5 = vld [vmem:[#allocation16 + $0x370] sm:$0xff] }
 0x4be   : > { %4619 = vmatprep.subr.bf16.mxu0 %v10073_v13  ;;  %v2853_v12 = vld [vmem:[#allocation16 + $0x750] sm:$0xff]  ;;  %v10169_v53 = vcombine.high %v2725_v45, %v2729_v5 }
 0x4bf   : > { %4731 = vmatpush1.bf16.msra.mxu1 %v10208_v52  ;;  %v2857_v59 = vld [vmem:[#allocation16 + $0x770] sm:$0xff]  ;;  %v10304_v52 = vcombine.low %v2861_v51, %v2865_v30 }
 0x4c0   : > { %4732 = vmatprep.subr.bf16.mxu1 %v10201_v23  ;;  %4444 = vmatmul.mubr.bf16.gmra.mxu0 %v13634_v17  ;;  %v17763_v13 = vld [vmem:[#allocation38_spill] sm:$0xff]  ;;  %v10297_v23 = vcombine.high %v2853_v12, %v2857_v59 }
 0x4c1   : > { %4620 = vmatpush1.bf16.msra.mxu0 %v10072_v11  ;;  %4453 = vmatprep.mubr.bf16.mxu0 %v13654_v4  ;;  %v2717_v43 = vld [vmem:[#allocation16 + $0x310] sm:$0xff]  ;;  %v10168_v11 = vcombine.low %v2725_v45, %v2729_v5 }
 0x4c2   : > { %4557 = vmatmul.mubr.bf16.gmra.mxu1 %v13652_v18  ;;  %4621 = vmatprep.subr.bf16.mxu0 %v10065_v20  ;;  %v2721_v38 = vld [vmem:[#allocation16 + $0x330] sm:$0xff] }
 0x4c3   : > { %4733 = vmatpush1.bf16.msra.mxu1 %v10200_v29  ;;  %4566 = vmatprep.mubr.bf16.mxu1 %v13674_v55  ;;  %v2845_v49 = vld [vmem:[#allocation16 + $0x710] sm:$0xff]  ;;  %v10161_v20 = vcombine.high %v2717_v43, %v2721_v38  ;;  %v10296_v29 = vcombine.low %v2853_v12, %v2857_v59 }
 0x4c4   : > { %4734 = vmatprep.subr.bf16.mxu1 %v10193_v33  ;;  %v2849_v1 = vld [vmem:[#allocation16 + $0x730] sm:$0xff] }
 0x4c5   : > { %4622 = vmatpush1.bf16.msra.mxu0 %v10064_v35  ;;  %v2709_v42 = vld [vmem:[#allocation16 + $0x2d0] sm:$0xff]  ;;  %v10289_v33 = vcombine.high %v2845_v49, %v2849_v1  ;;  %v10160_v35 = vcombine.low %v2717_v43, %v2721_v38 }
 0x4c6   : > { %4623 = vmatprep.subr.bf16.mxu0 %v10185_v9  ;;  %v2713_v36 = vld [vmem:[#allocation16 + $0x2f0] sm:$0xff] }
 0x4c7   : > { %4735 = vmatpush1.bf16.msra.mxu1 %v10192_v54  ;;  %v2837_v41 = vld [vmem:[#allocation16 + $0x6d0] sm:$0xff]  ;;  %v10153_v9 = vcombine.high %v2709_v42, %v2713_v36  ;;  %v10288_v54 = vcombine.low %v2845_v49, %v2849_v1 }
 0x4c8   : > { %4736 = vmatprep.subr.bf16.mxu1 %v10313_v60  ;;  %4454 = vmatmul.mubr.bf16.gmra.mxu0 %v13697_v16  ;;  %v2841_v7 = vld [vmem:[#allocation16 + $0x6f0] sm:$0xff] }
 0x4c9   : > { %4624 = vmatpush2.bf16.msra.mxu0 %v10184_v6  ;;  %4463 = vmatprep.mubr.bf16.mxu0 %v17761_v37  ;;  %v2701_v61 = vld [vmem:[#allocation16 + $0x290] sm:$0xff]  ;;  %v10281_v60 = vcombine.high %v2837_v41, %v2841_v7  ;;  %v10152_v6 = vcombine.low %v2709_v42, %v2713_v36  ;;  %v2678_v42 = vld [vmem:[#allocation16 + $0x1d8] sm:$0xff] }
 0x4ca   : > { %4567 = vmatmul.mubr.bf16.gmra.mxu1 %v17762_v50  ;;  %4625 = vmatprep.subr.bf16.mxu0 %v10177_v40  ;;  %v2705_v10 = vld [vmem:[#allocation16 + $0x2b0] sm:$0xff]  ;;  %v2682_v36 = vld [vmem:[#allocation16 + $0x1f8] sm:$0xff] }
 0x4cb   : > { %4737 = vmatpush2.bf16.msra.mxu1 %v10312_v28  ;;  %4576 = vmatprep.mubr.bf16.mxu1 %v17763_v13  ;;  %v2829_v51 = vld [vmem:[#allocation16 + $0x690] sm:$0xff]  ;;  %v10145_v40 = vcombine.high %v2701_v61, %v2705_v10  ;;  %v10280_v28 = vcombine.low %v2837_v41, %v2841_v7  ;;  %v2806_v41 = vld [vmem:[#allocation16 + $0x5d8] sm:$0xff] }
 0x4cc   : > { %4738 = vmatprep.subr.bf16.mxu1 %v10305_v46  ;;  %v2833_v30 = vld [vmem:[#allocation16 + $0x6b0] sm:$0xff]  ;;  %v2810_v7 = vld [vmem:[#allocation16 + $0x5f8] sm:$0xff] }
 0x4cd   : > { %4626 = vmatpush2.bf16.msra.mxu0 %v10176_v39  ;;  %v2693_v45 = vld [vmem:[#allocation16 + $0x250] sm:$0xff]  ;;  %v10273_v46 = vcombine.high %v2829_v51, %v2833_v30  ;;  %v10144_v39 = vcombine.low %v2701_v61, %v2705_v10  ;;  %v2670_v61 = vld [vmem:[#allocation16 + $0x198] sm:$0xff] }
 0x4ce   : > { %4627 = vmatprep.subr.bf16.mxu0 %v10169_v53  ;;  %v2697_v5 = vld [vmem:[#allocation16 + $0x270] sm:$0xff]  ;;  %v2674_v10 = vld [vmem:[#allocation16 + $0x1b8] sm:$0xff] }
 0x4cf   : > { %4739 = vmatpush2.bf16.msra.mxu1 %v10304_v52  ;;  %v2821_v12 = vld [vmem:[#allocation16 + $0x650] sm:$0xff]  ;;  %v10137_v53 = vcombine.high %v2693_v45, %v2697_v5  ;;  %v10272_v52 = vcombine.low %v2829_v51, %v2833_v30  ;;  %v2798_v51 = vld [vmem:[#allocation16 + $0x598] sm:$0xff] }
 0x4d0   : > { %4740 = vmatprep.subr.bf16.mxu1 %v10297_v23  ;;  %4464 = vmatmul.mubr.bf16.gmra.mxu0 %v13780_v31  ;;  %v2825_v59 = vld [vmem:[#allocation16 + $0x670] sm:$0xff]  ;;  %v2802_v30 = vld [vmem:[#allocation16 + $0x5b8] sm:$0xff] }
 0x4d1   : > { %4628 = vmatpush2.bf16.msra.mxu0 %v10168_v11  ;;  %4473 = vmatprep.mubr.bf16.mxu0 %v13796_v21  ;;  %v2685_v43 = vld [vmem:[#allocation16 + $0x210] sm:$0xff]  ;;  %v10265_v23 = vcombine.high %v2821_v12, %v2825_v59  ;;  %v10136_v11 = vcombine.low %v2693_v45, %v2697_v5  ;;  %v2662_v45 = vld [vmem:[#allocation16 + $0x158] sm:$0xff] }
 0x4d2   : > { %4577 = vmatmul.mubr.bf16.gmra.mxu1 %v13806_v58  ;;  %4629 = vmatprep.subr.bf16.mxu0 %v10161_v20  ;;  %v2689_v38 = vld [vmem:[#allocation16 + $0x230] sm:$0xff]  ;;  %v2666_v5 = vld [vmem:[#allocation16 + $0x178] sm:$0xff] }
 0x4d3   : > { %4741 = vmatpush2.bf16.msra.mxu1 %v10296_v29  ;;  %4586 = vmatprep.mubr.bf16.mxu1 %v13815_v48  ;;  %v2813_v49 = vld [vmem:[#allocation16 + $0x610] sm:$0xff]  ;;  %v10129_v20 = vcombine.high %v2685_v43, %v2689_v38  ;;  %v10264_v29 = vcombine.low %v2821_v12, %v2825_v59  ;;  %v2790_v12 = vld [vmem:[#allocation16 + $0x558] sm:$0xff] }
 0x4d4   : > { %4742 = vmatprep.subr.bf16.mxu1 %v10289_v33  ;;  %v2817_v1 = vld [vmem:[#allocation16 + $0x630] sm:$0xff]  ;;  %v2794_v59 = vld [vmem:[#allocation16 + $0x578] sm:$0xff] }
 0x4d5   : > { %4630 = vmatpush2.bf16.msra.mxu0 %v10160_v35  ;;  %v10257_v33 = vcombine.high %v2813_v49, %v2817_v1  ;;  %v10128_v35 = vcombine.low %v2685_v43, %v2689_v38  ;;  %v2654_v43 = vld [vmem:[#allocation16 + $0x118] sm:$0xff] }
 0x4d6   : > { %4631 = vmatprep.subr.bf16.mxu0 %v10153_v9  ;;  %v10123_v9 = vcombine.high %v2678_v42, %v2682_v36  ;;  %v2658_v38 = vld [vmem:[#allocation16 + $0x138] sm:$0xff] }
 0x4d7   : > { %4743 = vmatpush2.bf16.msra.mxu1 %v10288_v54  ;;  %v10256_v54 = vcombine.low %v2813_v49, %v2817_v1  ;;  %v2782_v49 = vld [vmem:[#allocation16 + $0x518] sm:$0xff] }
 0x4d8   : > { %4744 = vmatprep.subr.bf16.mxu1 %v10281_v60  ;;  %4474 = vmatmul.mubr.bf16.gmra.mxu0 %v13834_v63  ;;  %v10251_v60 = vcombine.high %v2806_v41, %v2810_v7  ;;  %v2786_v1 = vld [vmem:[#allocation16 + $0x538] sm:$0xff] }
 0x4d9   : > { %4632 = vmatpush2.bf16.msra.mxu0 %v10152_v6  ;;  %4483 = vmatprep.mubr.bf16.mxu0 %v13840_v22  ;;  %v10122_v6 = vcombine.low %v2678_v42, %v2682_v36  ;;  %v2646_v42 = vld [vmem:[#allocation16 + $0xd8] sm:$0xff] }
 0x4da   : > { %4587 = vmatmul.mubr.bf16.gmra.mxu1 %v13843_v14  ;;  %4633 = vmatprep.subr.bf16.mxu0 %v10145_v40  ;;  %v10115_v40 = vcombine.high %v2670_v61, %v2674_v10  ;;  %v2650_v36 = vld [vmem:[#allocation16 + $0xf8] sm:$0xff] }
 0x4db   : > { %4745 = vmatpush2.bf16.msra.mxu1 %v10280_v28  ;;  %4596 = vmatprep.mubr.bf16.mxu1 %v13848_v26  ;;  %v10250_v28 = vcombine.low %v2806_v41, %v2810_v7  ;;  %v2774_v41 = vld [vmem:[#allocation16 + $0x4d8] sm:$0xff] }
 0x4dc   : > { %4746 = vmatprep.subr.bf16.mxu1 %v10273_v46  ;;  %v10243_v46 = vcombine.high %v2798_v51, %v2802_v30  ;;  %v2778_v7 = vld [vmem:[#allocation16 + $0x4f8] sm:$0xff] }
 0x4dd   : > { %4634 = vmatpush2.bf16.msra.mxu0 %v10144_v39  ;;  %v10114_v39 = vcombine.low %v2670_v61, %v2674_v10  ;;  %v2638_v61 = vld [vmem:[#allocation16 + $0x98] sm:$0xff] }
 0x4de   : > { %4635 = vmatprep.subr.bf16.mxu0 %v10137_v53  ;;  %v10107_v53 = vcombine.high %v2662_v45, %v2666_v5  ;;  %v2642_v10 = vld [vmem:[#allocation16 + $0xb8] sm:$0xff] }
 0x4df   : > { %4747 = vmatpush2.bf16.msra.mxu1 %v10272_v52  ;;  %v10242_v52 = vcombine.low %v2798_v51, %v2802_v30  ;;  %v2766_v51 = vld [vmem:[#allocation16 + $0x498] sm:$0xff] }
 0x4e0   : > { %4748 = vmatprep.subr.bf16.mxu1 %v10265_v23  ;;  %4484 = vmatmul.mubr.bf16.gmra.mxu0 %v13852_v32  ;;  %v10235_v23 = vcombine.high %v2790_v12, %v2794_v59  ;;  %v2770_v30 = vld [vmem:[#allocation16 + $0x4b8] sm:$0xff] }
 0x4e1   : > { %4636 = vmatpush2.bf16.msra.mxu0 %v10136_v11  ;;  %4639 = vmatprep.mubr.bf16.mxu0 %v13453_v62  ;;  %v10106_v11 = vcombine.low %v2662_v45, %v2666_v5  ;;  %v2630_v45 = vld [vmem:[#allocation16 + $0x58] sm:$0xff] }
 0x4e2   : > { %4597 = vmatmul.mubr.bf16.gmra.mxu1 %v13855_v56  ;;  %4637 = vmatprep.subr.bf16.mxu0 %v10129_v20  ;;  %v10099_v20 = vcombine.high %v2654_v43, %v2658_v38  ;;  %v2634_v5 = vld [vmem:[#allocation16 + $0x78] sm:$0xff] }
 0x4e3   : > { %4749 = vmatpush2.bf16.msra.mxu1 %v10264_v29  ;;  %4752 = vmatprep.mubr.bf16.mxu1 %v13457_v47  ;;  %v10234_v29 = vcombine.low %v2790_v12, %v2794_v59  ;;  %v2758_v12 = vld [vmem:[#allocation16 + $0x458] sm:$0xff] }
 0x4e4   : > { %4750 = vmatprep.subr.bf16.mxu1 %v10257_v33  ;;  %v10227_v33 = vcombine.high %v2782_v49, %v2786_v1  ;;  %v2762_v59 = vld [vmem:[#allocation16 + $0x478] sm:$0xff] }
 0x4e5   : > { %4638 = vmatpush2.bf16.msra.mxu0 %v10128_v35  ;;  %v10098_v35 = vcombine.low %v2654_v43, %v2658_v38  ;;  %v2622_v43 = vld [vmem:[#allocation16 + $0x18] sm:$0xff] }
 0x4e6   : > { %4833 = vmatprep.subr.bf16.mxu0 %v10123_v9  ;;  %v10091_v9 = vcombine.high %v2646_v42, %v2650_v36  ;;  %v2626_v38 = vld [vmem:[#allocation16 + $0x38] sm:$0xff] }
 0x4e7   : > { %4751 = vmatpush2.bf16.msra.mxu1 %v10256_v54  ;;  %v10226_v54 = vcombine.low %v2782_v49, %v2786_v1  ;;  %v2750_v49 = vld [vmem:[#allocation16 + $0x418] sm:$0xff] }
 0x4e8   : > { %4946 = vmatprep.subr.bf16.mxu1 %v10251_v60  ;;  %4640 = vmatmul.mubr.bf16.vlgmr.msra.gmra.mxu0 %v13459_v3  ;;  %v10219_v60 = vcombine.high %v2774_v41, %v2778_v7  ;;  %v2754_v1 = vld [vmem:[#allocation16 + $0x438] sm:$0xff] }
 0x4e9   : > { %4834 = vmatpush1.bf16.msra.mxu0 %v10122_v6  ;;  %4649 = vmatprep.mubr.bf16.mxu0 %v13474_v24  ;;  %v10090_v6 = vcombine.low %v2646_v42, %v2650_v36  ;;  %v2742_v42 = vld [vmem:[#allocation16 + $0x3d8] sm:$0xff] }
 0x4ea   : > { %4753 = vmatmul.mubr.bf16.vlgmr.msra.gmra.mxu1 %v13467_v44  ;;  %4835 = vmatprep.subr.bf16.mxu0 %v10115_v40  ;;  %v10083_v40 = vcombine.high %v2638_v61, %v2642_v10  ;;  %v2746_v36 = vld [vmem:[#allocation16 + $0x3f8] sm:$0xff] }
 0x4eb   : > { %4947 = vmatpush1.bf16.msra.mxu1 %v10250_v28  ;;  %4762 = vmatprep.mubr.bf16.mxu1 %v13489_v2  ;;  %v10218_v28 = vcombine.low %v2774_v41, %v2778_v7  ;;  %v2870_v41 = vld [vmem:[#allocation16 + $0x7d8] sm:$0xff] }
 0x4ec   : > { %4948 = vmatprep.subr.bf16.mxu1 %v10243_v46  ;;  %v10211_v46 = vcombine.high %v2766_v51, %v2770_v30  ;;  %v2874_v7 = vld [vmem:[#allocation16 + $0x7f8] sm:$0xff] }
 0x4ed   : > { %4836 = vmatpush1.bf16.msra.mxu0 %v10114_v39  ;;  %v10082_v39 = vcombine.low %v2638_v61, %v2642_v10  ;;  %v2734_v61 = vld [vmem:[#allocation16 + $0x398] sm:$0xff] }
 0x4ee   : > { %4837 = vmatprep.subr.bf16.mxu0 %v10107_v53  ;;  %v10075_v53 = vcombine.high %v2630_v45, %v2634_v5  ;;  %v2738_v10 = vld [vmem:[#allocation16 + $0x3b8] sm:$0xff] }
 0x4ef   : > { %4949 = vmatpush1.bf16.msra.mxu1 %v10242_v52  ;;  %v10210_v52 = vcombine.low %v2766_v51, %v2770_v30  ;;  %v2862_v51 = vld [vmem:[#allocation16 + $0x798] sm:$0xff] }
 0x4f0   : > { %4950 = vmatprep.subr.bf16.mxu1 %v10235_v23  ;;  %4650 = vmatmul.mubr.bf16.gmra.mxu0 %v13507_v8  ;;  %v10203_v23 = vcombine.high %v2758_v12, %v2762_v59  ;;  %v2866_v30 = vld [vmem:[#allocation16 + $0x7b8] sm:$0xff] }
 0x4f1   : > { %4838 = vmatpush1.bf16.msra.mxu0 %v10106_v11  ;;  %4659 = vmatprep.mubr.bf16.mxu0 %v13518_v15  ;;  %v10074_v11 = vcombine.low %v2630_v45, %v2634_v5  ;;  %v2726_v45 = vld [vmem:[#allocation16 + $0x358] sm:$0xff] }
 0x4f2   : > { %4763 = vmatmul.mubr.bf16.gmra.mxu1 %v13528_v27  ;;  %4839 = vmatprep.subr.bf16.mxu0 %v10099_v20  ;;  %v10067_v20 = vcombine.high %v2622_v43, %v2626_v38  ;;  %v2730_v5 = vld [vmem:[#allocation16 + $0x378] sm:$0xff] }
 0x4f3   : > { %4951 = vmatpush1.bf16.msra.mxu1 %v10234_v29  ;;  %4772 = vmatprep.mubr.bf16.mxu1 %v13538_v19  ;;  %v10202_v29 = vcombine.low %v2758_v12, %v2762_v59  ;;  %v2854_v12 = vld [vmem:[#allocation16 + $0x758] sm:$0xff] }
 0x4f4   : > { %4952 = vmatprep.subr.bf16.mxu1 %v10227_v33  ;;  %v10195_v33 = vcombine.high %v2750_v49, %v2754_v1  ;;  %v2858_v59 = vld [vmem:[#allocation16 + $0x778] sm:$0xff] }
 0x4f5   : > { %4840 = vmatpush1.bf16.msra.mxu0 %v10098_v35  ;;  %v10066_v35 = vcombine.low %v2622_v43, %v2626_v38  ;;  %v2718_v43 = vld [vmem:[#allocation16 + $0x318] sm:$0xff] }
 0x4f6   : > { %4841 = vmatprep.subr.bf16.mxu0 %v10091_v9  ;;  %v10187_v9 = vcombine.high %v2742_v42, %v2746_v36  ;;  %v2722_v38 = vld [vmem:[#allocation16 + $0x338] sm:$0xff] }
 0x4f7   : > { %4953 = vmatpush1.bf16.msra.mxu1 %v10226_v54  ;;  %v10194_v54 = vcombine.low %v2750_v49, %v2754_v1  ;;  %v2846_v49 = vld [vmem:[#allocation16 + $0x718] sm:$0xff] }
 0x4f8   : > { %4954 = vmatprep.subr.bf16.mxu1 %v10219_v60  ;;  %4660 = vmatmul.mubr.bf16.gmra.mxu0 %v13571_v25  ;;  %v10315_v60 = vcombine.high %v2870_v41, %v2874_v7  ;;  %v2850_v1 = vld [vmem:[#allocation16 + $0x738] sm:$0xff] }
 0x4f9   : > { %4842 = vmatpush1.bf16.msra.mxu0 %v10090_v6  ;;  %4669 = vmatprep.mubr.bf16.mxu0 %v13573_v0  ;;  %v10186_v6 = vcombine.low %v2742_v42, %v2746_v36  ;;  %v2710_v42 = vld [vmem:[#allocation16 + $0x2d8] sm:$0xff] }
 0x4fa   : > { %4773 = vmatmul.mubr.bf16.gmra.mxu1 %v13590_v34  ;;  %4843 = vmatprep.subr.bf16.mxu0 %v10083_v40  ;;  %v10179_v40 = vcombine.high %v2734_v61, %v2738_v10  ;;  %v2714_v36 = vld [vmem:[#allocation16 + $0x2f8] sm:$0xff] }
 0x4fb   : > { %4955 = vmatpush1.bf16.msra.mxu1 %v10218_v28  ;;  %4782 = vmatprep.mubr.bf16.mxu1 %v13600_v57  ;;  %v10314_v28 = vcombine.low %v2870_v41, %v2874_v7  ;;  %v2838_v41 = vld [vmem:[#allocation16 + $0x6d8] sm:$0xff] }
 0x4fc   : > { %4956 = vmatprep.subr.bf16.mxu1 %v10211_v46  ;;  %v10307_v46 = vcombine.high %v2862_v51, %v2866_v30  ;;  %v2842_v7 = vld [vmem:[#allocation16 + $0x6f8] sm:$0xff] }
 0x4fd   : > { %4844 = vmatpush1.bf16.msra.mxu0 %v10082_v39  ;;  %v10178_v39 = vcombine.low %v2734_v61, %v2738_v10  ;;  %v2702_v61 = vld [vmem:[#allocation16 + $0x298] sm:$0xff] }
 0x4fe   : > { %4845 = vmatprep.subr.bf16.mxu0 %v10075_v53  ;;  %v10171_v53 = vcombine.high %v2726_v45, %v2730_v5  ;;  %v2706_v10 = vld [vmem:[#allocation16 + $0x2b8] sm:$0xff] }
 0x4ff   : > { %4957 = vmatpush1.bf16.msra.mxu1 %v10210_v52  ;;  %v10306_v52 = vcombine.low %v2862_v51, %v2866_v30  ;;  %v2830_v51 = vld [vmem:[#allocation16 + $0x698] sm:$0xff] }
 0x500   : > { %4958 = vmatprep.subr.bf16.mxu1 %v10203_v23  ;;  %4670 = vmatmul.mubr.bf16.gmra.mxu0 %v13634_v17  ;;  %v10299_v23 = vcombine.high %v2854_v12, %v2858_v59  ;;  %v2834_v30 = vld [vmem:[#allocation16 + $0x6b8] sm:$0xff] }
 0x501   : > { %4846 = vmatpush1.bf16.msra.mxu0 %v10074_v11  ;;  %4679 = vmatprep.mubr.bf16.mxu0 %v13654_v4  ;;  %v10170_v11 = vcombine.low %v2726_v45, %v2730_v5  ;;  %v2694_v45 = vld [vmem:[#allocation16 + $0x258] sm:$0xff] }
 0x502   : > { %4783 = vmatmul.mubr.bf16.gmra.mxu1 %v13652_v18  ;;  %4847 = vmatprep.subr.bf16.mxu0 %v10067_v20  ;;  %v10163_v20 = vcombine.high %v2718_v43, %v2722_v38  ;;  %v2698_v5 = vld [vmem:[#allocation16 + $0x278] sm:$0xff] }
 0x503   : > { %4959 = vmatpush1.bf16.msra.mxu1 %v10202_v29  ;;  %4792 = vmatprep.mubr.bf16.mxu1 %v13674_v55  ;;  %v10298_v29 = vcombine.low %v2854_v12, %v2858_v59  ;;  %v2822_v12 = vld [vmem:[#allocation16 + $0x658] sm:$0xff] }
 0x504   : > { %4960 = vmatprep.subr.bf16.mxu1 %v10195_v33  ;;  %v10291_v33 = vcombine.high %v2846_v49, %v2850_v1  ;;  %v2826_v59 = vld [vmem:[#allocation16 + $0x678] sm:$0xff] }
 0x505   : > { %4848 = vmatpush1.bf16.msra.mxu0 %v10066_v35  ;;  %v10162_v35 = vcombine.low %v2718_v43, %v2722_v38  ;;  %v2686_v43 = vld [vmem:[#allocation16 + $0x218] sm:$0xff] }
 0x506   : > { %4849 = vmatprep.subr.bf16.mxu0 %v10187_v9  ;;  %v10155_v9 = vcombine.high %v2710_v42, %v2714_v36  ;;  %v2690_v38 = vld [vmem:[#allocation16 + $0x238] sm:$0xff] }
 0x507   : > { %4961 = vmatpush1.bf16.msra.mxu1 %v10194_v54  ;;  %v10290_v54 = vcombine.low %v2846_v49, %v2850_v1  ;;  %v2814_v49 = vld [vmem:[#allocation16 + $0x618] sm:$0xff] }
 0x508   : > { %4962 = vmatprep.subr.bf16.mxu1 %v10315_v60  ;;  %4680 = vmatmul.mubr.bf16.gmra.mxu0 %v13697_v16  ;;  %v10283_v60 = vcombine.high %v2838_v41, %v2842_v7  ;;  %v2818_v1 = vld [vmem:[#allocation16 + $0x638] sm:$0xff] }
 0x509   : > { %4850 = vmatpush2.bf16.msra.mxu0 %v10186_v6  ;;  %4689 = vmatprep.mubr.bf16.mxu0 %v17761_v37  ;;  %v10154_v6 = vcombine.low %v2710_v42, %v2714_v36  ;;  %v10259_v42 = vcombine.high %v2814_v49, %v2818_v1  ;;  %v10130_v36 = vcombine.low %v2686_v43, %v2690_v38 }
 0x50a   : > { %4793 = vmatmul.mubr.bf16.gmra.mxu1 %v17762_v50  ;;  %4851 = vmatprep.subr.bf16.mxu0 %v10179_v40  ;;  %v10147_v40 = vcombine.high %v2702_v61, %v2706_v10 }
 0x50b   : > { %4963 = vmatpush2.bf16.msra.mxu1 %v10314_v28  ;;  %4802 = vmatprep.mubr.bf16.mxu1 %v17763_v13  ;;  %v10282_v28 = vcombine.low %v2838_v41, %v2842_v7 }
 0x50c   : > { %4964 = vmatprep.subr.bf16.mxu1 %v10307_v46  ;;  %v10275_v46 = vcombine.high %v2830_v51, %v2834_v30 }
 0x50d   : > { %4852 = vmatpush2.bf16.msra.mxu0 %v10178_v39  ;;  %v10146_v39 = vcombine.low %v2702_v61, %v2706_v10 }
 0x50e   : > { %4853 = vmatprep.subr.bf16.mxu0 %v10171_v53  ;;  %v10139_v53 = vcombine.high %v2694_v45, %v2698_v5 }
 0x50f   : > { %4965 = vmatpush2.bf16.msra.mxu1 %v10306_v52  ;;  %v10274_v52 = vcombine.low %v2830_v51, %v2834_v30 }
 0x510   : > { %4966 = vmatprep.subr.bf16.mxu1 %v10299_v23  ;;  %4690 = vmatmul.mubr.bf16.gmra.mxu0 %v13780_v31  ;;  %v10267_v23 = vcombine.high %v2822_v12, %v2826_v59 }
 0x511   : > { %4854 = vmatpush2.bf16.msra.mxu0 %v10170_v11  ;;  %4699 = vmatprep.mubr.bf16.mxu0 %v13796_v21  ;;  %v10138_v11 = vcombine.low %v2694_v45, %v2698_v5 }
 0x512   : > { %4803 = vmatmul.mubr.bf16.gmra.mxu1 %v13806_v58  ;;  %4855 = vmatprep.subr.bf16.mxu0 %v10163_v20  ;;  %v10131_v20 = vcombine.high %v2686_v43, %v2690_v38 }
 0x513   : > { %4967 = vmatpush2.bf16.msra.mxu1 %v10298_v29  ;;  %4812 = vmatprep.mubr.bf16.mxu1 %v13815_v48  ;;  %v10266_v29 = vcombine.low %v2822_v12, %v2826_v59 }
 0x514   : > { %4968 = vmatprep.subr.bf16.mxu1 %v10291_v33  ;;  %v10258_v33 = vcombine.low %v2814_v49, %v2818_v1 }
 0x515   : > { %4856 = vmatpush2.bf16.msra.mxu0 %v10162_v35 }
 0x516   : > { %4857 = vmatprep.subr.bf16.mxu0 %v10155_v9 }
 0x517   : > { %4969 = vmatpush2.bf16.msra.mxu1 %v10290_v54 }
 0x518   : > { %4970 = vmatprep.subr.bf16.mxu1 %v10283_v60  ;;  %4700 = vmatmul.mubr.bf16.gmra.mxu0 %v13834_v63 }
 0x519   : > { %4858 = vmatpush2.bf16.msra.mxu0 %v10154_v6  ;;  %4709 = vmatprep.mubr.bf16.mxu0 %v13840_v22 }
 0x51a   : > { %4813 = vmatmul.mubr.bf16.gmra.mxu1 %v13843_v14  ;;  %4859 = vmatprep.subr.bf16.mxu0 %v10147_v40 }
 0x51b   : > { %4971 = vmatpush2.bf16.msra.mxu1 %v10282_v28  ;;  %4822 = vmatprep.mubr.bf16.mxu1 %v13848_v26 }
 0x51c   : > { %4972 = vmatprep.subr.bf16.mxu1 %v10275_v46 }
 0x51d   : > { %4860 = vmatpush2.bf16.msra.mxu0 %v10146_v39 }
 0x51e   : > { %4861 = vmatprep.subr.bf16.mxu0 %v10139_v53 }
 0x51f   : > { %4973 = vmatpush2.bf16.msra.mxu1 %v10274_v52 }
 0x520   : > { %4974 = vmatprep.subr.bf16.mxu1 %v10267_v23  ;;  %4710 = vmatmul.mubr.bf16.gmra.mxu0 %v13852_v32  ;;  %v4189_v35 = vpop.f32.mrf.mxu0 }
 0x521   : > { %4862 = vmatpush2.bf16.msra.mxu0 %v10138_v11  ;;  %4865 = vmatprep.mubr.bf16.mxu0 %v13453_v62 }
 0x522   : > { %4823 = vmatmul.mubr.bf16.gmra.mxu1 %v13855_v56  ;;  %4863 = vmatprep.subr.bf16.mxu0 %v10131_v20  ;;  %v4302_v41 = vpop.f32.mrf.mxu1  ;;  %v4191_v62 = vpop.f32.mrf.mxu0 }
 0x523   : > { %4975 = vmatpush2.bf16.msra.mxu1 %v10266_v29  ;;  %4978 = vmatprep.mubr.bf16.mxu1 %v13457_v47  ;;  %v13927_v7 = vadd.f32 %v4302_v41, %v4189_v35 }
 0x524   : > { %4976 = vmatprep.subr.bf16.mxu1 %v10259_v42  ;;  %v4304_v9 = vpop.f32.mrf.mxu1  ;;  %v4193_v54 = vpop.f32.mrf.mxu0 }
 0x525   : > { %4864 = vmatpush2.bf16.msra.mxu0 %v10130_v36  ;;  %v13930_v47 = vadd.f32 %v4304_v9, %v4191_v62 }
 0x526   : > { %v4306_v61 = vpop.f32.mrf.mxu1  ;;  %v4195_v10 = vpop.f32.mrf.mxu0 }
 0x527   : > { %4977 = vmatpush2.bf16.msra.mxu1 %v10258_v33  ;;  %17764 = vst [vmem:[#allocation39_spill] sm:$0xff] %v13930_v47  ;;  %v13932_v60 = vadd.f32 %v4306_v61, %v4193_v54 }
 0x528   : > { %4866 = vmatmul.mubr.bf16.vlgmr.msra.gmra.mxu0 %v13459_v3  ;;  %v4308_v6 = vpop.f32.mrf.mxu1 }
 0x529   : > { %4875 = vmatprep.mubr.bf16.mxu0 %v13474_v24  ;;  %v4199_v3 = vpop.f32.mrf.mxu0  ;;  %v13935_v24 = vadd.f32 %v4308_v6, %v4195_v10  ;;  %v5243_v49 = vmul.f32 %v13932_v60, %v13932_v60  ;;  %v5059_v42 = vadd.f32 %v13932_v60, %v13927_v7 }
 0x52a   : > { %4979 = vmatmul.mubr.bf16.vlgmr.msra.gmra.mxu1 %v13467_v44 }
 0x52b   : > { %4988 = vmatprep.mubr.bf16.mxu1 %v13489_v2  ;;  %17765 = vst [vmem:[#allocation40_spill] sm:$0xff] %v13935_v24  ;;  %v4312_v44 = vpop.f32.mrf.mxu1  ;;  %v4201_v2 = vpop.f32.mrf.mxu0  ;;  %v5244_v9 = vmul.f32 %v13935_v24, %v13935_v24 }
 0x52c   : > { %v13939_v51 = vadd.f32 %v4312_v44, %v4199_v3 }
 0x52d   : > { %v4314_v30 = vpop.f32.mrf.mxu1  ;;  %v4203_v40 = vpop.f32.mrf.mxu0 }
 0x52e   : > { %v13942_v28 = vadd.f32 %v4314_v30, %v4201_v2  ;;  %v5060_v41 = vadd.f32 %v5059_v42, %v13939_v51  ;;  %v5236_v2 = vmul.f32 %v13930_v47, %v13930_v47  ;;  %v5080_v30 = vadd.f32 %v13935_v24, %v13930_v47  ;;  %v17828_v24 = vld [vmem:[#allocation80_spill] sm:$0xff] }
 0x52f   : > { %v4316_v45 = vpop.f32.mrf.mxu1  ;;  %v4205_v5 = vpop.f32.mrf.mxu0 }
 0x530   : > { %4876 = vmatmul.mubr.bf16.gmra.mxu0 %v13507_v8  ;;  %17766 = vst [vmem:[#allocation44_spill] sm:$0xff] %v13942_v28  ;;  %v13944_v46 = vadd.f32 %v4316_v45, %v4203_v40  ;;  %v5252_v40 = vmul.f32 %v13942_v28, %v13942_v28 }
 0x531   : > { %4885 = vmatprep.mubr.bf16.mxu0 %v13518_v15  ;;  %v4318_v8 = vpop.f32.mrf.mxu1 }
 0x532   : > { %4989 = vmatmul.mubr.bf16.gmra.mxu1 %v13528_v27  ;;  %v4209_v39 = vpop.f32.mrf.mxu0  ;;  %v13947_v15 = vadd.f32 %v4318_v8, %v4205_v5  ;;  %v5061_v6 = vadd.f32 %v5060_v41, %v13944_v46 }
 0x533   : > { %4998 = vmatprep.mubr.bf16.mxu1 %v13538_v19 }
 0x534   : > { %17767 = vst [vmem:[#allocation82_spill] sm:$0xff] %v13947_v15  ;;  %v4211_v19 = vpop.f32.mrf.mxu0 }
 0x535   : > { %v4322_v27 = vpop.f32.mrf.mxu1 }
 0x536   : > { %v13951_v12 = vadd.f32 %v4322_v27, %v4209_v39  ;;  %v4213_v53 = vpop.f32.mrf.mxu0  ;;  %v5384_v27 = vadd.f32 %v5244_v9, %v5236_v2 }
 0x537   : > { %v4324_v59 = vpop.f32.mrf.mxu1 }
 0x538   : > { %4886 = vmatmul.mubr.bf16.gmra.mxu0 %v13571_v25  ;;  %v13954_v52 = vadd.f32 %v4324_v59, %v4211_v19  ;;  %v4215_v38 = vpop.f32.mrf.mxu0  ;;  %v5267_v3 = vmul.f32 %v13951_v12, %v13951_v12  ;;  %v5062_v8 = vadd.f32 %v5061_v6, %v13951_v12  ;;  %v5081_v19 = vadd.f32 %v5080_v30, %v13942_v28 }
 0x539   : > { %4895 = vmatprep.mubr.bf16.mxu0 %v13573_v0  ;;  %v4326_v43 = vpop.f32.mrf.mxu1  ;;  %v5260_v59 = vmul.f32 %v13947_v15, %v13947_v15 }
 0x53a   : > { %4999 = vmatmul.mubr.bf16.gmra.mxu1 %v13590_v34  ;;  %17768 = vst [vmem:[#allocation47_spill] sm:$0xff] %v13954_v52  ;;  %v13956_v23 = vadd.f32 %v4326_v43, %v4213_v53 }
 0x53b   : > { %5008 = vmatprep.mubr.bf16.mxu1 %v13600_v57  ;;  %v4328_v25 = vpop.f32.mrf.mxu1 }
 0x53c   : > { %v4219_v11 = vpop.f32.mrf.mxu0  ;;  %v13959_v0 = vadd.f32 %v4328_v25, %v4215_v38  ;;  %v5275_v39 = vmul.f32 %v13956_v23, %v13956_v23  ;;  %v5063_v38 = vadd.f32 %v5062_v8, %v13956_v23 }
 0x53e   : > { %17769 = vst [vmem:[#allocation42_spill] sm:$0xff] %v13959_v0  ;;  %v4332_v34 = vpop.f32.mrf.mxu1  ;;  %v4221_v57 = vpop.f32.mrf.mxu0 }
 0x53f   : > { %v13965_v1 = vadd.f32 %v4332_v34, %v4219_v11  ;;  %v5385_v34 = vadd.f32 %v5384_v27, %v5252_v40 }
 0x540   : > { %4896 = vmatmul.mubr.bf16.gmra.mxu0 %v13634_v17  ;;  %v4334_v20 = vpop.f32.mrf.mxu1  ;;  %v4223_v29 = vpop.f32.mrf.mxu0  ;;  %v5235_v17 = vmul.f32 %v13927_v7, %v13927_v7 }
 0x541   : > { %4905 = vmatprep.mubr.bf16.mxu0 %v13654_v4  ;;  %v5251_v4 = vmul.f32 %v13939_v51, %v13939_v51  ;;  %v5283_v25 = vmul.f32 %v13965_v1, %v13965_v1 }
 0x542   : > { %5009 = vmatmul.mubr.bf16.gmra.mxu1 %v13652_v18  ;;  %v13974_v18 = vadd.f32 %v4334_v20, %v4221_v57  ;;  %v4336_v36 = vpop.f32.mrf.mxu1  ;;  %v4225_v33 = vpop.f32.mrf.mxu0  ;;  %v5363_v35 = vadd.f32 %v5243_v49, %v5235_v17  ;;  %v5082_v57 = vadd.f32 %v5081_v19, %v13947_v15  ;;  %v5064_v17 = vadd.f32 %v5063_v38, %v13965_v1 }
 0x543   : > { %5018 = vmatprep.mubr.bf16.mxu1 %v13674_v55  ;;  %v5259_v55 = vmul.f32 %v13944_v46, %v13944_v46  ;;  %v13979_v62 = vadd.f32 %v4336_v36, %v4223_v29  ;;  %v5386_v36 = vadd.f32 %v5385_v34, %v5260_v59 }
 0x544   : > { %17770 = vst [vmem:[#allocation83_spill] sm:$0xff] %v13974_v18  ;;  %v4338_v54 = vpop.f32.mrf.mxu1  ;;  %v5364_v10 = vadd.f32 %v5363_v35, %v5251_v4  ;;  %v5276_v35 = vmul.f32 %v13959_v0, %v13959_v0  ;;  %v5284_v2 = vmul.f32 %v13974_v18, %v13974_v18 }
 0x545   : > { %17771 = vst [vmem:[#allocation84_spill] sm:$0xff] %v13979_v62  ;;  %v4229_v61 = vpop.f32.mrf.mxu0  ;;  %v13987_v44 = vadd.f32 %v4338_v54, %v4225_v33  ;;  %v5291_v42 = vmul.f32 %v13979_v62, %v13979_v62  ;;  %v5083_v33 = vadd.f32 %v5082_v57, %v13954_v52  ;;  %v5065_v54 = vadd.f32 %v5064_v17, %v13979_v62 }
 0x546   : > { %v5365_v5 = vadd.f32 %v5364_v10, %v5259_v55 }
 0x547   : > { %17772 = vst [vmem:[#allocation45_spill] sm:$0xff] %v13987_v44  ;;  %v4231_v45 = vpop.f32.mrf.mxu0 }
 0x548   : > { %4906 = vmatmul.mubr.bf16.gmra.mxu0 %v13697_v16  ;;  %v4342_v16 = vpop.f32.mrf.mxu1 }
 0x549   : > { %4915 = vmatprep.mubr.bf16.mxu0 %v17761_v37  ;;  %v14000_v37 = vadd.f32 %v4342_v16, %v4229_v61  ;;  %v4233_v43 = vpop.f32.mrf.mxu0 }
 0x54a   : > { %5019 = vmatmul.mubr.bf16.gmra.mxu1 %v17762_v50  ;;  %v4344_v53 = vpop.f32.mrf.mxu1  ;;  %v5366_v50 = vadd.f32 %v5365_v5, %v5267_v3  ;;  %v5084_v3 = vadd.f32 %v5083_v33, %v13959_v0 }
 0x54b   : > { %17773 = vst [vmem:[#allocation43_spill] sm:$0xff] %v14000_v37  ;;  %5028 = vmatprep.mubr.bf16.mxu1 %v17763_v13  ;;  %v14009_v11 = vadd.f32 %v4344_v53, %v4231_v45  ;;  %v5268_v13 = vmul.f32 %v13954_v52, %v13954_v52  ;;  %v4235_v20 = vpop.f32.mrf.mxu0  ;;  %v5299_v61 = vmul.f32 %v14000_v37, %v14000_v37 }
 0x54c   : > { %v4346_v49 = vpop.f32.mrf.mxu1  ;;  %v5367_v29 = vadd.f32 %v5366_v50, %v5275_v39  ;;  %v5066_v16 = vadd.f32 %v5065_v54, %v14000_v37  ;;  %v5085_v8 = vadd.f32 %v5084_v3, %v13974_v18  ;;  %v5292_v39 = vmul.f32 %v13987_v44, %v13987_v44  ;;  %v14650_v37 = vld [vmem:[#allocation17] sm:$0xff] }
 0x54d   : > { %17774 = vst [vmem:[#allocation46_spill] sm:$0xff] %v14009_v11  ;;  %v14017_v4 = vadd.f32 %v4346_v49, %v4233_v43  ;;  %v5387_v6 = vadd.f32 %v5386_v36, %v5268_v13 }
 0x54e   : > { %v4348_v41 = vpop.f32.mrf.mxu1  ;;  %v4239_v55 = vpop.f32.mrf.mxu0  ;;  %v5368_v9 = vadd.f32 %v5367_v29, %v5283_v25  ;;  %v5086_v38 = vadd.f32 %v5085_v8, %v13987_v44 }
 0x54f   : > { %17775 = vst [vmem:[#allocation85_spill] sm:$0xff] %v14017_v4  ;;  %v14026_v10 = vadd.f32 %v4348_v41, %v4235_v20  ;;  %v5307_v45 = vmul.f32 %v14017_v4, %v14017_v4  ;;  %v5067_v59 = vadd.f32 %v5066_v16, %v14017_v4 }
 0x550   : > { %4916 = vmatmul.mubr.bf16.gmra.mxu0 %v13780_v31  ;;  %v4352_v30 = vpop.f32.mrf.mxu1  ;;  %v4241_v31 = vpop.f32.mrf.mxu0  ;;  %v5369_v40 = vadd.f32 %v5368_v9, %v5291_v42  ;;  %v5087_v29 = vadd.f32 %v5086_v38, %v14009_v11 }
 0x551   : > { %17776 = vst [vmem:[#allocation86_spill] sm:$0xff] %v14026_v10  ;;  %4925 = vmatprep.mubr.bf16.mxu0 %v13796_v21  ;;  %v14036_v5 = vadd.f32 %v4352_v30, %v4239_v55  ;;  %v5388_v21 = vadd.f32 %v5387_v6, %v5276_v35  ;;  %v5308_v17 = vmul.f32 %v14026_v10, %v14026_v10 }
 0x552   : > { %5029 = vmatmul.mubr.bf16.gmra.mxu1 %v13806_v58  ;;  %v4354_v27 = vpop.f32.mrf.mxu1  ;;  %v4243_v19 = vpop.f32.mrf.mxu0  ;;  %v5370_v58 = vadd.f32 %v5369_v40, %v5299_v61 }
 0x553   : > { %5038 = vmatprep.mubr.bf16.mxu1 %v13815_v48  ;;  %v5315_v53 = vmul.f32 %v14036_v5, %v14036_v5  ;;  %v14045_v43 = vadd.f32 %v4354_v27, %v4241_v31  ;;  %v5389_v50 = vadd.f32 %v5388_v21, %v5284_v2  ;;  %v5300_v48 = vmul.f32 %v14009_v11, %v14009_v11  ;;  %v17795_v11 = vld [vmem:[#allocation34_spill] sm:$0xff] }
 0x554   : > { %v4356_v25 = vpop.f32.mrf.mxu1  ;;  %v4245_v34 = vpop.f32.mrf.mxu0  ;;  %v5371_v57 = vadd.f32 %v5370_v58, %v5307_v45  ;;  %v5068_v13 = vadd.f32 %v5067_v59, %v14036_v5 }
 0x555   : > { %17777 = vst [vmem:[#allocation50_spill] sm:$0xff] %v14045_v43  ;;  %v14051_v49 = vadd.f32 %v4356_v25, %v4243_v19  ;;  %v5390_v20 = vadd.f32 %v5389_v50, %v5292_v39  ;;  %v5316_v54 = vmul.f32 %v14045_v43, %v14045_v43 }
 0x556   : > { %v4358_v42 = vpop.f32.mrf.mxu1  ;;  %v5372_v33 = vadd.f32 %v5371_v57, %v5315_v53 }
 0x557   : > { %v4249_v36 = vpop.f32.mrf.mxu0  ;;  %v5069_v35 = vadd.f32 %v5068_v13, %v14051_v49  ;;  %v5323_v41 = vmul.f32 %v14051_v49, %v14051_v49  ;;  %v14060_v55 = vadd.f32 %v4358_v42, %v4245_v34  ;;  %v5391_v9 = vadd.f32 %v5390_v20, %v5300_v48 }
 0x558   : > { %4926 = vmatmul.mubr.bf16.gmra.mxu0 %v13834_v63  ;;  %v4362_v61 = vpop.f32.mrf.mxu1  ;;  %v5088_v63 = vadd.f32 %v5087_v29, %v14026_v10 }
 0x559   : > { %17778 = vst [vmem:[#allocation54_spill] sm:$0xff] %v14060_v55  ;;  %4935 = vmatprep.mubr.bf16.mxu0 %v13840_v22  ;;  %v4251_v6 = vpop.f32.mrf.mxu0  ;;  %v5373_v3 = vadd.f32 %v5372_v33, %v5323_v41  ;;  %v14067_v2 = vadd.f32 %v4362_v61, %v4249_v36  ;;  %v5392_v30 = vadd.f32 %v5391_v9, %v5308_v17 }
 0x55a   : > { %5039 = vmatmul.mubr.bf16.gmra.mxu1 %v13843_v14  ;;  %v5324_v31 = vmul.f32 %v14060_v55, %v14060_v55  ;;  %v4364_v22 = vpop.f32.mrf.mxu1  ;;  %v5089_v16 = vadd.f32 %v5088_v63, %v14045_v43 }
 0x55b   : > { %5048 = vmatprep.mubr.bf16.mxu1 %v13848_v26  ;;  %v4253_v40 = vpop.f32.mrf.mxu0  ;;  %v5070_v45 = vadd.f32 %v5069_v35, %v14067_v2  ;;  %v5331_v14 = vmul.f32 %v14067_v2, %v14067_v2  ;;  %v14076_v21 = vadd.f32 %v4364_v22, %v4251_v6  ;;  %v5393_v8 = vadd.f32 %v5392_v30, %v5316_v54 }
 0x55c   : > { %v4366_v39 = vpop.f32.mrf.mxu1  ;;  %v5090_v26 = vadd.f32 %v5089_v16, %v14060_v55 }
 0x55d   : > { %v4255_v27 = vpop.f32.mrf.mxu0  ;;  %v5374_v19 = vadd.f32 %v5373_v3, %v5331_v14  ;;  %v5332_v58 = vmul.f32 %v14076_v21, %v14076_v21  ;;  %v14081_v59 = vadd.f32 %v4366_v39, %v4253_v40  ;;  %v5394_v53 = vadd.f32 %v5393_v8, %v5324_v31 }
 0x55e   : > { %v4368_v50 = vpop.f32.mrf.mxu1  ;;  %v5091_v48 = vadd.f32 %v5090_v26, %v14076_v21 }
 0x55f   : > { %v4259_v38 = vpop.f32.mrf.mxu0  ;;  %v5071_v25 = vadd.f32 %v5070_v45, %v14081_v59  ;;  %v5339_v34 = vmul.f32 %v14081_v59, %v14081_v59  ;;  %v14088_v57 = vadd.f32 %v4368_v50, %v4255_v27  ;;  %v5395_v13 = vadd.f32 %v5394_v53, %v5332_v58 }
 0x560   : > { %4936 = vmatmul.mubr.bf16.gmra.mxu0 %v13852_v32  ;;  %v4372_v20 = vpop.f32.mrf.mxu1 }
 0x561   : > { %v4261_v29 = vpop.f32.mrf.mxu0  ;;  %v5375_v17 = vadd.f32 %v5374_v19, %v5339_v34  ;;  %v5092_v42 = vadd.f32 %v5091_v48, %v14088_v57  ;;  %v5340_v32 = vmul.f32 %v14088_v57, %v14088_v57  ;;  %v14094_v36 = vadd.f32 %v4372_v20, %v4259_v38 }
 0x562   : > { %5049 = vmatmul.mubr.bf16.gmra.mxu1 %v13855_v56  ;;  %v4374_v33 = vpop.f32.mrf.mxu1 }
 0x563   : > { %v4263_v35 = vpop.f32.mrf.mxu0  ;;  %v5396_v41 = vadd.f32 %v5395_v13, %v5340_v32  ;;  %v5072_v9 = vadd.f32 %v5071_v25, %v14094_v36  ;;  %v5347_v54 = vmul.f32 %v14094_v36, %v14094_v36  ;;  %v14099_v61 = vadd.f32 %v4374_v33, %v4261_v29 }
 0x564   : > { %v4376_v56 = vpop.f32.mrf.mxu1 }
 0x565   : > { %v4265_v6 = vpop.f32.mrf.mxu0  ;;  %v5376_v63 = vadd.f32 %v5375_v17, %v5347_v54  ;;  %v5093_v3 = vadd.f32 %v5092_v42, %v14099_v61  ;;  %v5348_v30 = vmul.f32 %v14099_v61, %v14099_v61  ;;  %v14104_v31 = vadd.f32 %v4376_v56, %v4263_v35 }
 0x566   : > { %v4378_v22 = vpop.f32.mrf.mxu1 }
 0x567   : > { %v5397_v16 = vadd.f32 %v5396_v41, %v5348_v30  ;;  %v5073_v45 = vadd.f32 %v5072_v9, %v14104_v31  ;;  %v5355_v14 = vmul.f32 %v14104_v31, %v14104_v31  ;;  %v14109_v8 = vadd.f32 %v4378_v22, %v4265_v6 }
 0x568   : > { %v4415_v40 = vpop.f32.mrf.mxu0 }
 0x569   : > { %v5074_v26 = vrot.slane %v5073_v45, 4  ;;  %v5377_v19 = vadd.f32 %v5376_v63, %v5355_v14  ;;  %v5094_v58 = vadd.f32 %v5093_v3, %v14109_v8  ;;  %v5356_v53 = vmul.f32 %v14109_v8, %v14109_v8 }
 0x56a   : > { %v4528_v39 = vpop.f32.mrf.mxu1  ;;  %v4417_v27 = vpop.f32.mrf.mxu0 }
 0x56b   : > { %v14114_v50 = vadd.f32 %v4528_v39, %v4415_v40  ;;  %v5075_v25 = vadd.f32 %v5074_v26, %v5073_v45  ;;  %v5378_v34 = vrot.slane %v5377_v19, 4  ;;  %v5095_v13 = vrot.slane %v5094_v58, 4 }
 0x56c   : > { %v4530_v38 = vpop.f32.mrf.mxu1  ;;  %v4419_v48 = vpop.f32.mrf.mxu0  ;;  %v5398_v20 = vadd.f32 %v5397_v16, %v5356_v53 }
 0x56d   : > { %17779 = vst [vmem:[#allocation87_spill] sm:$0xff] %v14114_v50  ;;  %v14116_v29 = vadd.f32 %v4530_v38, %v4417_v27  ;;  %v5076_v32 = vrot.slane %v5075_v25, 2  ;;  %v5379_v33 = vadd.f32 %v5378_v34, %v5377_v19  ;;  %v5096_v35 = vadd.f32 %v5095_v13, %v5094_v58 }
 0x56e   : > { %v4532_v17 = vpop.f32.mrf.mxu1  ;;  %v4421_v42 = vpop.f32.mrf.mxu0  ;;  %v5399_v41 = vrot.slane %v5398_v20, 4 }
 0x56f   : > { %17780 = vst [vmem:[#allocation88_spill] sm:$0xff] %v14116_v29  ;;  %v14118_v9 = vadd.f32 %v4532_v17, %v4419_v48  ;;  %v5077_v6 = vadd.f32 %v5076_v32, %v5075_v25  ;;  %v5380_v63 = vrot.slane %v5379_v33, 2  ;;  %v5097_v3 = vrot.slane %v5096_v35, 2 }
 0x570   : > { %v4534_v54 = vpop.f32.mrf.mxu1  ;;  %v4425_v56 = vpop.f32.mrf.mxu0  ;;  %v5400_v30 = vadd.f32 %v5399_v41, %v5398_v20 }
 0x571   : > { %17781 = vst [vmem:[#allocation51_spill] sm:$0xff] %v14118_v9  ;;  %v14120_v22 = vadd.f32 %v4534_v54, %v4421_v42  ;;  %v5078_v45 = vrot.slane %v5077_v6, 1  ;;  %v5381_v14 = vadd.f32 %v5380_v63, %v5379_v33  ;;  %v5098_v39 = vadd.f32 %v5097_v3, %v5096_v35 }
 0x572   : > { %v4538_v40 = vpop.f32.mrf.mxu1  ;;  %v4427_v16 = vpop.f32.mrf.mxu0  ;;  %v5401_v27 = vrot.slane %v5400_v30, 2 }
 0x573   : > { %17782 = vst [vmem:[#allocation55_spill] sm:$0xff] %v14120_v22  ;;  %v14122_v26 = vadd.f32 %v4538_v40, %v4425_v56  ;;  %v5079_v53 = vadd.f32 %v5078_v45, %v5077_v6  ;;  %v5382_v38 = vrot.slane %v5381_v14, 1  ;;  %v5099_v48 = vrot.slane %v5098_v39, 1 }
 0x574   : > { %v4540_v19 = vpop.f32.mrf.mxu1  ;;  %v4429_v58 = vpop.f32.mrf.mxu0  ;;  %v5402_v34 = vadd.f32 %v5401_v27, %v5400_v30 }
 0x575   : > { %17783 = vst [vmem:[#allocation89_spill] sm:$0xff] %v14122_v26  ;;  %v14124_v25 = vadd.f32 %v4540_v19, %v4427_v16  ;;  %v14126_v17 = vmul.f32 0.0078125, %v5079_v53  ;;  %v5383_v42 = vadd.f32 %v5382_v38, %v5381_v14  ;;  %v5100_v32 = vadd.f32 %v5099_v48, %v5098_v39 }
 0x576   : > { %v4542_v13 = vpop.f32.mrf.mxu1  ;;  %v4431_v20 = vpop.f32.mrf.mxu0  ;;  %v5403_v41 = vrot.slane %v5402_v34, 1 }
 0x577   : > { %17784 = vst [vmem:[#allocation90_spill] sm:$0xff] %v14124_v25  ;;  %v14128_v33 = vadd.f32 %v4542_v13, %v4429_v58  ;;  %v5531_v56 = vmul.f32 0.0078125, %v5383_v42  ;;  %v5539_v6 = vmul.f32 %v14126_v17, %v14126_v17  ;;  %v14132_v63 = vmul.f32 0.0078125, %v5100_v32 }
 0x578   : > { %v4544_v35 = vpop.f32.mrf.mxu1  ;;  %v4435_v54 = vpop.f32.mrf.mxu0  ;;  %v5404_v3 = vadd.f32 %v5403_v41, %v5402_v34 }
 0x579   : > { %17785 = vst [vmem:[#allocation48_spill] sm:$0xff] %v14128_v33  ;;  %v14134_v30 = vadd.f32 %v4544_v35, %v4431_v20  ;;  %v5547_v45 = vsub.f32 %v5531_v56, %v5539_v6  ;;  %v5540_v14 = vmul.f32 %v14132_v63, %v14132_v63 }
 0x57a   : > { %v4548_v40 = vpop.f32.mrf.mxu1  ;;  %v4437_v16 = vpop.f32.mrf.mxu0  ;;  %v5532_v27 = vmul.f32 0.0078125, %v5404_v3 }
 0x57b   : > { %17786 = vst [vmem:[#allocation52_spill] sm:$0xff] %v14134_v30  ;;  %v14138_v39 = vadd.f32 %v4548_v40, %v4435_v54  ;;  %v5555_v53 = vmax.f32 %v5547_v45, 0.0 }
 0x57c   : > { %v4550_v19 = vpop.f32.mrf.mxu1  ;;  %v4439_v58 = vpop.f32.mrf.mxu0  ;;  %v5548_v38 = vsub.f32 %v5532_v27, %v5540_v14  ;;  %v5246_v14 = vmul.f32 %v14120_v22, %v14120_v22 }
 0x57d   : > { %17787 = vst [vmem:[#allocation49_spill] sm:$0xff] %v14138_v39  ;;  %v14140_v48 = vadd.f32 %v4550_v19, %v4437_v16  ;;  %v5563_v34 = vadd.f32 1e-05, %v5555_v53  ;;  %v5245_v16 = vmul.f32 %v14118_v9, %v14118_v9  ;;  %v5253_v53 = vmul.f32 %v14122_v26, %v14122_v26 }
 0x57e   : > { %v4552_v13 = vpop.f32.mrf.mxu1  ;;  %v4441_v42 = vpop.f32.mrf.mxu0  ;;  %v5556_v20 = vmax.f32 %v5548_v38, 0.0 }
 0x57f   : > { %17788 = vst [vmem:[#allocation53_spill] sm:$0xff] %v14140_v48  ;;  %v14142_v32 = vadd.f32 %v4552_v13, %v4439_v58  ;;  %11141 = vrsqrt.f32 %v5563_v34  ;;  %v5237_v58 = vmul.f32 %v14114_v50, %v14114_v50  ;;  %v5238_v34 = vmul.f32 %v14116_v29, %v14116_v29 }
 0x580   : > { %v4554_v41 = vpop.f32.mrf.mxu1  ;;  %v4445_v35 = vpop.f32.mrf.mxu0  ;;  %v5564_v56 = vadd.f32 1e-05, %v5556_v20  ;;  %v5101_v20 = vadd.f32 %v14118_v9, %v14114_v50  ;;  %v5262_v9 = vmul.f32 %v14134_v30, %v14134_v30 }
 0x581   : > { %17789 = vst [vmem:[#allocation58_spill] sm:$0xff] %v14142_v32  ;;  %v14144_v6 = vadd.f32 %v4554_v41, %v4441_v42  ;;  %v14158_v42 = vld [vmem:[#allocation17] sm:$0xff]  ;;  %v5254_v41 = vmul.f32 %v14124_v25, %v14124_v25  ;;  %v5426_v43 = vadd.f32 %v5246_v14, %v5238_v34  ;;  %v5270_v34 = vmul.f32 %v14140_v48, %v14140_v48 }
 0x582   : > { %v4558_v54 = vpop.f32.mrf.mxu1  ;;  %v4447_v3 = vpop.f32.mrf.mxu0  ;;  %11143 = vrsqrt.f32 %v5564_v56  ;;  %v5405_v56 = vadd.f32 %v5245_v16, %v5237_v58  ;;  %v5102_v10 = vadd.f32 %v5101_v20, %v14122_v26 }
 0x583   : > { %17790 = vst [vmem:[#allocation62_spill] sm:$0xff] %v14144_v6  ;;  %v14146_v40 = vadd.f32 %v4558_v54, %v4445_v35  ;;  %v5122_v54 = vadd.f32 %v14120_v22, %v14116_v29  ;;  %v5427_v44 = vadd.f32 %v5426_v43, %v5254_v41 }
 0x584   : > { %v4560_v45 = vpop.f32.mrf.mxu1  ;;  %v4449_v27 = vpop.f32.mrf.mxu0  ;;  %v5406_v16 = vadd.f32 %v5405_v56, %v5253_v53  ;;  %v5103_v14 = vadd.f32 %v5102_v10, %v14128_v33  ;;  %v17798_v10 = vld [vmem:[#allocation35_spill] sm:$0xff] }
 0x585   : > { %17791 = vst [vmem:[#allocation59_spill] sm:$0xff] %v14146_v40  ;;  %v14152_v19 = vadd.f32 %v4560_v45, %v4447_v3  ;;  %v5261_v3 = vmul.f32 %v14128_v33, %v14128_v33  ;;  %v5123_v58 = vadd.f32 %v5122_v54, %v14124_v25  ;;  %v5428_v25 = vadd.f32 %v5427_v44, %v5262_v9 }
 0x586   : > { %v4562_v38 = vpop.f32.mrf.mxu1  ;;  %v4451_v13 = vpop.f32.mrf.mxu0  ;;  %v5104_v26 = vadd.f32 %v5103_v14, %v14138_v39  ;;  %v5588_v41 = vrot.slane %v14158_v42, %v17798_v10 }
 0x587   : > { %17792 = vst [vmem:[#allocation63_spill] sm:$0xff] %v14152_v19  ;;  %v14166_v35 = vadd.f32 %v4562_v38, %v4449_v27  ;;  %v5584_v27 = vrot.slane %v14158_v42, %v17795_v11  ;;  %v5269_v38 = vmul.f32 %v14138_v39, %v14138_v39  ;;  %v5124_v54 = vadd.f32 %v5123_v58, %v14134_v30 }
 0x588   : > { %v4564_v45 = vpop.f32.mrf.mxu1  ;;  %v4455_v55 = vpop.f32.mrf.mxu0  ;;  %v5429_v9 = vadd.f32 %v5428_v25, %v5270_v34 }
 0x589   : > { %17793 = vst [vmem:[#allocation91_spill] sm:$0xff] %v14166_v35  ;;  %v14175_v50 = vadd.f32 %v4564_v45, %v4451_v13  ;;  %v5407_v13 = vadd.f32 %v5406_v16, %v5261_v3  ;;  %v5277_v45 = vmul.f32 %v14142_v32, %v14142_v32  ;;  %v5125_v44 = vadd.f32 %v5124_v54, %v14140_v48 }
 0x58a   : > { %v4568_v22 = vpop.f32.mrf.mxu1  ;;  %v4457_v29 = vpop.f32.mrf.mxu0 }
 0x58b   : > { %17794 = vst [vmem:[#allocation92_spill] sm:$0xff] %v14175_v50  ;;  %v14185_v20 = vadd.f32 %v4568_v22, %v4455_v55  ;;  %v5408_v33 = vadd.f32 %v5407_v13, %v5269_v38  ;;  %v5278_v55 = vmul.f32 %v14144_v6, %v14144_v6  ;;  %v5285_v22 = vmul.f32 %v14146_v40, %v14146_v40 }
 0x58c   : > { %v4570_v53 = vpop.f32.mrf.mxu1  ;;  %v4459_v56 = vpop.f32.mrf.mxu0  ;;  %v5293_v38 = vmul.f32 %v14166_v35, %v14166_v35 }
 0x58d   : > { %17796 = vst [vmem:[#allocation93_spill] sm:$0xff] %v14185_v20  ;;  %v14191_v18 = vadd.f32 %v4570_v53, %v4457_v29  ;;  %v11142_v43 = vpop.eup %11141  ;;  %v5105_v29 = vadd.f32 %v5104_v26, %v14142_v32  ;;  %v5409_v14 = vadd.f32 %v5408_v33, %v5277_v45  ;;  %v5286_v53 = vmul.f32 %v14152_v19, %v14152_v19 }
 0x58e   : > { %v4572_v3 = vpop.f32.mrf.mxu1  ;;  %v4461_v16 = vpop.f32.mrf.mxu0  ;;  %v5621_v0 = vmul.f32 %v11142_v43, %v5584_v27  ;;  %v5126_v26 = vadd.f32 %v5125_v44, %v14144_v6  ;;  %v5430_v25 = vadd.f32 %v5429_v9, %v5278_v55 }
 0x58f   : > { %17797 = vst [vmem:[#allocation94_spill] sm:$0xff] %v14191_v18  ;;  %v11144_v58 = vpop.eup %11143  ;;  %v14205_v13 = vadd.f32 %v4572_v3, %v4459_v56  ;;  %v5106_v33 = vadd.f32 %v5105_v29, %v14146_v40  ;;  %v5410_v34 = vadd.f32 %v5409_v14, %v5285_v22  ;;  %v5302_v14 = vmul.f32 %v14191_v18, %v14191_v18 }
 0x590   : > { %v4574_v10 = vpop.f32.mrf.mxu1  ;;  %v4465_v30 = vpop.f32.mrf.mxu0  ;;  %v14208_v39 = vmul.f32 %v5621_v0, %v14126_v17  ;;  %v14211_v27 = vrot.slane %v5621_v0, %v17795_v11  ;;  %v5622_v56 = vmul.f32 %v11144_v58, %v5588_v41  ;;  %v5127_v3 = vadd.f32 %v5126_v26, %v14152_v19 }
 0x591   : > { %17799 = vst [vmem:[#allocation95_spill] sm:$0xff] %v14205_v13  ;;  %v14215_v45 = vadd.f32 %v4574_v10, %v4461_v16  ;;  %v5431_v48 = vadd.f32 %v5430_v25, %v5286_v53  ;;  %v5107_v17 = vadd.f32 %v5106_v33, %v14166_v35  ;;  %v5411_v32 = vadd.f32 %v5410_v34, %v5293_v38 }
 0x592   : > { %v4578_v54 = vpop.f32.mrf.mxu1  ;;  %v4467_v43 = vpop.f32.mrf.mxu0  ;;  %v14221_v44 = vmul.f32 %v14211_v27, %v14036_v5  ;;  %v14225_v55 = vmul.f32 %v14211_v27, %v14051_v49  ;;  %v5294_v10 = vmul.f32 %v14175_v50, %v14175_v50  ;;  %v5301_v41 = vmul.f32 %v14185_v20, %v14185_v20 }
 0x593   : > { %17800 = vst [vmem:[#allocation56_spill] sm:$0xff] %v14215_v45  ;;  %v14233_v22 = vmul.f32 %v14211_v27, %v14067_v2  ;;  %v14237_v16 = vmul.f32 %v14211_v27, %v14081_v59  ;;  %v14241_v5 = vmul.f32 %v14211_v27, %v14094_v36  ;;  %v14245_v49 = vmul.f32 %v14211_v27, %v14104_v31 }
 0x594   : > { %v4580_v52 = vpop.f32.mrf.mxu1  ;;  %v4469_v0 = vpop.f32.mrf.mxu0  ;;  %17801 = vst [vmem:[#allocation60_spill] sm:$0xff] %v14221_v44  ;;  %17802 = vst [vmem:[#allocation66_spill] sm:$0xff] %v14225_v55  ;;  %v14248_v58 = vmul.f32 %v5622_v56, %v14132_v63  ;;  %v5128_v2 = vadd.f32 %v5127_v3, %v14175_v50  ;;  %v5309_v59 = vmul.f32 %v14205_v13, %v14205_v13 }
 0x595   : > { %17803 = vst [vmem:[#allocation70_spill] sm:$0xff] %v14233_v22  ;;  %17804 = vst [vmem:[#allocation57_spill] sm:$0xff] %v14237_v16  ;;  %v14256_v36 = vrot.slane %v5622_v56, %v17795_v11  ;;  %v14258_v53 = vadd.f32 %v4578_v54, %v4465_v30  ;;  %v14260_v31 = vadd.f32 %v4580_v52, %v4467_v43 }
 0x596   : > { %17805 = vst [vmem:[#allocation61_spill] sm:$0xff] %v14241_v5  ;;  %17806 = vst [vmem:[#allocation67_spill] sm:$0xff] %v14245_v49  ;;  %v4582_v9 = vpop.f32.mrf.mxu1  ;;  %v4471_v29 = vpop.f32.mrf.mxu0  ;;  %v5432_v33 = vadd.f32 %v5431_v48, %v5294_v10  ;;  %v5108_v34 = vadd.f32 %v5107_v17, %v14185_v20  ;;  %v5310_v3 = vmul.f32 %v14215_v45, %v14215_v45 }
 0x597   : > { %17807 = vst [vmem:[#allocation71_spill] sm:$0xff] %v14256_v36  ;;  %v14262_v38 = vadd.f32 %v4582_v9, %v4469_v0  ;;  %v5412_v49 = vadd.f32 %v5411_v32, %v5301_v41  ;;  %v5129_v56 = vadd.f32 %v5128_v2, %v14191_v18  ;;  %v14273_v0 = vmul.f32 %v14256_v36, %v14076_v21 }
 0x598   : > { %v4584_v26 = vpop.f32.mrf.mxu1  ;;  %v4475_v63 = vpop.f32.mrf.mxu0  ;;  %v5433_v52 = vadd.f32 %v5432_v33, %v5302_v14  ;;  %v5109_v43 = vadd.f32 %v5108_v34, %v14205_v13  ;;  %v14277_v48 = vmul.f32 %v14256_v36, %v14088_v57  ;;  %v14282_v41 = vmul.f32 %v14256_v36, %v14099_v61 }
 0x599   : > { %17808 = vst [vmem:[#allocation96_spill] sm:$0xff] %v14273_v0  ;;  %v5413_v17 = vadd.f32 %v5412_v49, %v5309_v59  ;;  %v5130_v10 = vadd.f32 %v5129_v56, %v14215_v45  ;;  %v14286_v2 = vmul.f32 %v14256_v36, %v14109_v8  ;;  %v5317_v57 = vmul.f32 %v14258_v53, %v14258_v53 }
 0x59a   : > { %v4588_v30 = vpop.f32.mrf.mxu1  ;;  %v4477_v54 = vpop.f32.mrf.mxu0  ;;  %17809 = vst [vmem:[#allocation97_spill] sm:$0xff] %v14277_v48  ;;  %17810 = vst [vmem:[#allocation98_spill] sm:$0xff] %v14282_v41  ;;  %v5434_v14 = vadd.f32 %v5433_v52, %v5310_v3  ;;  %v5110_v21 = vadd.f32 %v5109_v43, %v14258_v53  ;;  %v5318_v59 = vmul.f32 %v14260_v31, %v14260_v31 }
 0x59b   : > { %17811 = vst [vmem:[#allocation78_spill] sm:$0xff] %v14286_v2  ;;  %v5131_v49 = vadd.f32 %v5130_v10, %v14260_v31  ;;  %v5325_v33 = vmul.f32 %v14262_v38, %v14262_v38  ;;  %v14297_v8 = vadd.f32 %v4584_v26, %v4471_v29  ;;  %v14299_v3 = vadd.f32 %v4588_v30, %v4475_v63 }
 0x59c   : > { %v4590_v9 = vpop.f32.mrf.mxu1  ;;  %v4479_v32 = vpop.f32.mrf.mxu0  ;;  %v5111_v56 = vadd.f32 %v5110_v21, %v14262_v38  ;;  %v5414_v43 = vadd.f32 %v5413_v17, %v5317_v57  ;;  %v5435_v25 = vadd.f32 %v5434_v14, %v5318_v59 }
 0x59d   : > { %v14301_v52 = vadd.f32 %v4590_v9, %v4477_v54  ;;  %v5132_v5 = vadd.f32 %v5131_v49, %v14297_v8  ;;  %v5326_v48 = vmul.f32 %v14297_v8, %v14297_v8  ;;  %v5333_v29 = vmul.f32 %v14299_v3, %v14299_v3 }
 0x59e   : > { %v4592_v61 = vpop.f32.mrf.mxu1  ;;  %v4481_v34 = vpop.f32.mrf.mxu0  ;;  %v5112_v16 = vadd.f32 %v5111_v56, %v14299_v3  ;;  %v5415_v26 = vadd.f32 %v5414_v43, %v5325_v33 }
 0x59f   : > { %v14303_v2 = vadd.f32 %v4592_v61, %v4479_v32  ;;  %v5334_v63 = vmul.f32 %v14301_v52, %v14301_v52  ;;  %v5436_v32 = vadd.f32 %v5435_v25, %v5326_v48  ;;  %v5133_v14 = vadd.f32 %v5132_v5, %v14301_v52 }
 0x5a0   : > { %v4594_v10 = vpop.f32.mrf.mxu1  ;;  %v4485_v41 = vpop.f32.mrf.mxu0  ;;  %v5416_v49 = vadd.f32 %v5415_v26, %v5333_v29 }
 0x5a1   : > { %v5341_v30 = vmul.f32 %v14303_v2, %v14303_v2  ;;  %v14315_v54 = vadd.f32 %v4594_v10, %v4481_v34  ;;  %v5113_v21 = vadd.f32 %v5112_v16, %v14303_v2  ;;  %v5437_v56 = vadd.f32 %v5436_v32, %v5334_v63 }
 0x5a2   : > { %v4598_v17 = vpop.f32.mrf.mxu1  ;;  %v4487_v9 = vpop.f32.mrf.mxu0 }
 0x5a3   : > { %v14319_v57 = vadd.f32 %v4598_v17, %v4485_v41  ;;  %v5342_v59 = vmul.f32 %v14315_v54, %v14315_v54  ;;  %v5134_v43 = vadd.f32 %v5133_v14, %v14315_v54  ;;  %v5417_v48 = vadd.f32 %v5416_v49, %v5341_v30 }
 0x5a4   : > { %v4600_v33 = vpop.f32.mrf.mxu1  ;;  %v4489_v61 = vpop.f32.mrf.mxu0 }
 0x5a5   : > { %v5114_v34 = vadd.f32 %v5113_v21, %v14319_v57  ;;  %v5349_v25 = vmul.f32 %v14319_v57, %v14319_v57  ;;  %v14327_v5 = vadd.f32 %v4600_v33, %v4487_v9  ;;  %v5438_v10 = vadd.f32 %v5437_v56, %v5342_v59 }
 0x5a6   : > { %v4602_v16 = vpop.f32.mrf.mxu1  ;;  %v4491_v41 = vpop.f32.mrf.mxu0 }
 0x5a7   : > { %v14329_v29 = vadd.f32 %v4602_v16, %v4489_v61  ;;  %v5418_v26 = vadd.f32 %v5417_v48, %v5349_v25  ;;  %v5135_v17 = vadd.f32 %v5134_v43, %v14327_v5  ;;  %v5350_v63 = vmul.f32 %v14327_v5, %v14327_v5 }
 0x5a8   : > { %v4604_v32 = vpop.f32.mrf.mxu1  ;;  %v4641_v14 = vpop.f32.mrf.mxu0 }
 0x5a9   : > { %v5115_v21 = vadd.f32 %v5114_v34, %v14329_v29  ;;  %v5357_v30 = vmul.f32 %v14329_v29, %v14329_v29  ;;  %v14337_v9 = vadd.f32 %v4604_v32, %v4491_v41  ;;  %v5439_v49 = vadd.f32 %v5438_v10, %v5350_v63 }
 0x5aa   : > { %v4754_v33 = vpop.f32.mrf.mxu1  ;;  %v4643_v59 = vpop.f32.mrf.mxu0 }
 0x5ab   : > { %v5116_v61 = vrot.slane %v5115_v21, 4  ;;  %v5419_v56 = vadd.f32 %v5418_v26, %v5357_v30  ;;  %v5136_v25 = vadd.f32 %v5135_v17, %v14337_v9  ;;  %v5358_v43 = vmul.f32 %v14337_v9, %v14337_v9 }
 0x5ac   : > { %v14342_v48 = vadd.f32 %v4754_v33, %v4641_v14  ;;  %v4756_v16 = vpop.f32.mrf.mxu1  ;;  %v4645_v0 = vpop.f32.mrf.mxu0 }
 0x5ad   : > { %v5117_v34 = vadd.f32 %v5116_v61, %v5115_v21  ;;  %v5420_v22 = vrot.slane %v5419_v56, 4  ;;  %v5137_v55 = vrot.slane %v5136_v25, 4  ;;  %v5440_v44 = vadd.f32 %v5439_v49, %v5358_v43 }
 0x5ae   : > { %17812 = vst [vmem:[#allocation79_spill] sm:$0xff] %v14342_v48  ;;  %v14344_v41 = vadd.f32 %v4756_v16, %v4643_v59  ;;  %v4758_v10 = vpop.f32.mrf.mxu1  ;;  %v4647_v63 = vpop.f32.mrf.mxu0 }
 0x5af   : > { %v5118_v32 = vrot.slane %v5117_v34, 2  ;;  %v5421_v45 = vadd.f32 %v5420_v22, %v5419_v56  ;;  %v5138_v26 = vadd.f32 %v5137_v55, %v5136_v25  ;;  %v5441_v30 = vrot.slane %v5440_v44, 4 }
 0x5b0   : > { %17813 = vst [vmem:[#allocation64_spill] sm:$0xff] %v14344_v41  ;;  %v14346_v17 = vadd.f32 %v4758_v10, %v4645_v0  ;;  %v4760_v18 = vpop.f32.mrf.mxu1  ;;  %v4651_v50 = vpop.f32.mrf.mxu0 }
 0x5b1   : > { %v5119_v14 = vadd.f32 %v5118_v32, %v5117_v34  ;;  %v5422_v33 = vrot.slane %v5421_v45, 2  ;;  %v5139_v19 = vrot.slane %v5138_v26, 2  ;;  %v5442_v6 = vadd.f32 %v5441_v30, %v5440_v44 }
 0x5b2   : > { %17814 = vst [vmem:[#allocation68_spill] sm:$0xff] %v14346_v17  ;;  %v14348_v21 = vadd.f32 %v4760_v18, %v4647_v63  ;;  %v4764_v61 = vpop.f32.mrf.mxu1  ;;  %v4653_v49 = vpop.f32.mrf.mxu0 }
 0x5b3   : > { %v5120_v59 = vrot.slane %v5119_v14, 1  ;;  %v5423_v43 = vadd.f32 %v5422_v33, %v5421_v45  ;;  %v5140_v16 = vadd.f32 %v5139_v19, %v5138_v26  ;;  %v5443_v13 = vrot.slane %v5442_v6, 2 }
 0x5b4   : > { %17815 = vst [vmem:[#allocation74_spill] sm:$0xff] %v14348_v21  ;;  %v14350_v20 = vadd.f32 %v4764_v61, %v4651_v50  ;;  %v4766_v55 = vpop.f32.mrf.mxu1  ;;  %v4655_v22 = vpop.f32.mrf.mxu0 }
 0x5b5   : > { %v5121_v0 = vadd.f32 %v5120_v59, %v5119_v14  ;;  %v5424_v56 = vrot.slane %v5423_v43, 1  ;;  %v5141_v25 = vrot.slane %v5140_v16, 1  ;;  %v5444_v10 = vadd.f32 %v5443_v13, %v5442_v6 }
 0x5b6   : > { %17816 = vst [vmem:[#allocation65_spill] sm:$0xff] %v14350_v20  ;;  %v14352_v34 = vadd.f32 %v4766_v55, %v4653_v49  ;;  %v4768_v32 = vpop.f32.mrf.mxu1  ;;  %v4657_v44 = vpop.f32.mrf.mxu0 }
 0x5b7   : > { %v14354_v18 = vmul.f32 0.0078125, %v5121_v0  ;;  %v5425_v63 = vadd.f32 %v5424_v56, %v5423_v43  ;;  %v5142_v30 = vadd.f32 %v5141_v25, %v5140_v16  ;;  %v5445_v35 = vrot.slane %v5444_v10, 1 }
 0x5b8   : > { %17817 = vst [vmem:[#allocation69_spill] sm:$0xff] %v14352_v34  ;;  %v14356_v45 = vadd.f32 %v4768_v32, %v4655_v22  ;;  %v4770_v19 = vpop.f32.mrf.mxu1  ;;  %v4661_v50 = vpop.f32.mrf.mxu0 }
 0x5b9   : > { %v5533_v26 = vmul.f32 0.0078125, %v5425_v63  ;;  %v5541_v14 = vmul.f32 %v14354_v18, %v14354_v18  ;;  %v14360_v33 = vmul.f32 0.0078125, %v5142_v30  ;;  %v5446_v6 = vadd.f32 %v5445_v35, %v5444_v10 }
 0x5ba   : > { %17818 = vst [vmem:[#allocation75_spill] sm:$0xff] %v14356_v45  ;;  %v14362_v13 = vadd.f32 %v4770_v19, %v4657_v44  ;;  %v4774_v61 = vpop.f32.mrf.mxu1  ;;  %v4663_v49 = vpop.f32.mrf.mxu0 }
 0x5bb   : > { %v5549_v59 = vsub.f32 %v5533_v26, %v5541_v14  ;;  %v5534_v55 = vmul.f32 0.0078125, %v5446_v6  ;;  %v5542_v43 = vmul.f32 %v14360_v33, %v14360_v33  ;;  %v14366_v16 = vadd.f32 %v4774_v61, %v4661_v50 }
 0x5bc   : > { %17819 = vst [vmem:[#allocation76_spill] sm:$0xff] %v14362_v13  ;;  %v4776_v22 = vpop.f32.mrf.mxu1  ;;  %v4665_v0 = vpop.f32.mrf.mxu0 }
 0x5bd   : > { %17820 = vst [vmem:[#allocation72_spill] sm:$0xff] %v14366_v16  ;;  %v5557_v56 = vmax.f32 %v5549_v59, 0.0  ;;  %v5550_v25 = vsub.f32 %v5534_v55, %v5542_v43  ;;  %v14368_v32 = vadd.f32 %v4776_v22, %v4663_v49  ;;  %v5247_v49 = vmul.f32 %v14346_v17, %v14346_v17 }
 0x5be   : > { %v4778_v63 = vpop.f32.mrf.mxu1  ;;  %v4667_v30 = vpop.f32.mrf.mxu0  ;;  %v5248_v43 = vmul.f32 %v14348_v21, %v14348_v21 }
 0x5bf   : > { %17821 = vst [vmem:[#allocation77_spill] sm:$0xff] %v14368_v32  ;;  %v5565_v35 = vadd.f32 1e-05, %v5557_v56  ;;  %v5558_v10 = vmax.f32 %v5550_v25, 0.0  ;;  %v14370_v44 = vadd.f32 %v4778_v63, %v4665_v0  ;;  %v5239_v0 = vmul.f32 %v14342_v48, %v14342_v48 }
 0x5c0   : > { %v4780_v19 = vpop.f32.mrf.mxu1  ;;  %v4671_v26 = vpop.f32.mrf.mxu0  ;;  %v5255_v56 = vmul.f32 %v14350_v20, %v14350_v20 }
 0x5c1   : > { %17822 = vst [vmem:[#allocation73_spill] sm:$0xff] %v14370_v44  ;;  %11145 = vrsqrt.f32 %v5565_v35  ;;  %v5566_v14 = vadd.f32 1e-05, %v5558_v10  ;;  %v14372_v6 = vadd.f32 %v4780_v19, %v4667_v30  ;;  %v5240_v30 = vmul.f32 %v14344_v41, %v14344_v41 }
 0x5c2   : > { %v4784_v50 = vpop.f32.mrf.mxu1  ;;  %v4673_v61 = vpop.f32.mrf.mxu0  ;;  %v5143_v35 = vadd.f32 %v14346_v17, %v14342_v48  ;;  %v5256_v10 = vmul.f32 %v14352_v34, %v14352_v34  ;;  %v5264_v17 = vmul.f32 %v14362_v13, %v14362_v13 }
 0x5c3   : > { %17823 = vst [vmem:[#allocation37_spill] sm:$0xff] %v14372_v6  ;;  %11147 = vrsqrt.f32 %v5566_v14  ;;  %v14374_v40 = vadd.f32 %v4784_v50, %v4671_v26  ;;  %v5447_v26 = vadd.f32 %v5247_v49, %v5239_v0  ;;  %v5164_v14 = vadd.f32 %v14348_v21, %v14344_v41 }
 0x5c4   : > { %v4786_v59 = vpop.f32.mrf.mxu1  ;;  %v4675_v55 = vpop.f32.mrf.mxu0  ;;  %v5263_v50 = vmul.f32 %v14356_v45, %v14356_v45  ;;  %v5468_v15 = vadd.f32 %v5248_v43, %v5240_v30  ;;  %v5144_v28 = vadd.f32 %v5143_v35, %v14350_v20  ;;  %v5272_v30 = vmul.f32 %v14368_v32, %v14368_v32 }
 0x5c5   : > { %17824 = vst [vmem:[#allocation41_spill] sm:$0xff] %v14374_v40  ;;  %v14380_v22 = vadd.f32 %v4786_v59, %v4673_v61  ;;  %v5448_v49 = vadd.f32 %v5447_v26, %v5255_v56  ;;  %v5165_v0 = vadd.f32 %v5164_v14, %v14352_v34 }
 0x5c6   : > { %v4788_v25 = vpop.f32.mrf.mxu1  ;;  %v4677_v63 = vpop.f32.mrf.mxu0  ;;  %v5469_v36 = vadd.f32 %v5468_v15, %v5256_v10  ;;  %v5145_v43 = vadd.f32 %v5144_v28, %v14356_v45  ;;  %v17831_v28 = vld [vmem:[#allocation81_spill] sm:$0xff] }
 0x5c7   : > { %17825 = vst [vmem:[#allocation38_spill] sm:$0xff] %v14380_v22  ;;  %v14392_v19 = vadd.f32 %v4788_v25, %v4675_v55  ;;  %v5592_v55 = vrot.slane %v14158_v42, %v17828_v24  ;;  %v5271_v25 = vmul.f32 %v14366_v16, %v14366_v16  ;;  %v5166_v14 = vadd.f32 %v5165_v0, %v14362_v13 }
 0x5c8   : > { %v4790_v61 = vpop.f32.mrf.mxu1  ;;  %v4681_v59 = vpop.f32.mrf.mxu0  ;;  %v5470_v24 = vadd.f32 %v5469_v36, %v5264_v17  ;;  %v5146_v34 = vadd.f32 %v5145_v43, %v14366_v16  ;;  %v5596_v10 = vrot.slane %v14158_v42, %v17831_v28  ;;  %v5288_v42 = vmul.f32 %v14380_v22, %v14380_v22 }
 0x5c9   : > { %17826 = vst [vmem:[#allocation34_spill] sm:$0xff] %v14392_v19  ;;  %v14401_v48 = vadd.f32 %v4790_v61, %v4677_v63  ;;  %v5449_v63 = vadd.f32 %v5448_v49, %v5263_v50  ;;  %v5279_v61 = vmul.f32 %v14370_v44, %v14370_v44  ;;  %v5287_v50 = vmul.f32 %v14374_v40, %v14374_v40 }
 0x5ca   : > { %v4794_v21 = vpop.f32.mrf.mxu1  ;;  %v4683_v41 = vpop.f32.mrf.mxu0  ;;  %v5167_v36 = vadd.f32 %v5166_v14, %v14368_v32  ;;  %v5471_v17 = vadd.f32 %v5470_v24, %v5272_v30 }
 0x5cb   : > { %17827 = vst [vmem:[#allocation99_spill] sm:$0xff] %v14401_v48  ;;  %v14411_v35 = vadd.f32 %v4794_v21, %v4681_v59  ;;  %v5450_v45 = vadd.f32 %v5449_v63, %v5271_v25  ;;  %v5280_v21 = vmul.f32 %v14372_v6, %v14372_v6  ;;  %v5295_v25 = vmul.f32 %v14392_v19, %v14392_v19 }
 0x5cc   : > { %v4796_v56 = vpop.f32.mrf.mxu1  ;;  %v4685_v26 = vpop.f32.mrf.mxu0  ;;  %v5168_v24 = vadd.f32 %v5167_v36, %v14372_v6 }
 0x5cd   : > { %17829 = vst [vmem:[#allocation100_spill] sm:$0xff] %v14411_v35  ;;  %v14417_v20 = vadd.f32 %v4796_v56, %v4683_v41  ;;  %v5147_v41 = vadd.f32 %v5146_v34, %v14370_v44  ;;  %v5451_v43 = vadd.f32 %v5450_v45, %v5279_v61  ;;  %v5472_v34 = vadd.f32 %v5471_v17, %v5280_v21 }
 0x5ce   : > { %v11146_v15 = vpop.eup %11145  ;;  %v4798_v59 = vpop.f32.mrf.mxu1 }
 0x5cf   : > { %17830 = vst [vmem:[#allocation101_spill] sm:$0xff] %v14417_v20  ;;  %v4687_v49 = vpop.f32.mrf.mxu0  ;;  %v5623_v47 = vmul.f32 %v11146_v15, %v5592_v55  ;;  %v14431_v63 = vadd.f32 %v4798_v59, %v4685_v26  ;;  %v5148_v45 = vadd.f32 %v5147_v41, %v14374_v40  ;;  %v5452_v30 = vadd.f32 %v5451_v43, %v5287_v50 }
 0x5d0   : > { %v11148_v0 = vpop.eup %11147  ;;  %v4800_v56 = vpop.f32.mrf.mxu1  ;;  %v5169_v26 = vadd.f32 %v5168_v24, %v14380_v22  ;;  %v5473_v59 = vadd.f32 %v5472_v34, %v5288_v42  ;;  %v5296_v50 = vmul.f32 %v14401_v48, %v14401_v48 }
 0x5d1   : > { %17832 = vst [vmem:[#allocation102_spill] sm:$0xff] %v14431_v63  ;;  %v4691_v28 = vpop.f32.mrf.mxu0  ;;  %v5632_v13 = vmul.f32 %v5623_v47, %v14354_v18  ;;  %v14435_v55 = vrot.slane %v5623_v47, %v17795_v11  ;;  %v14439_v61 = vadd.f32 %v4800_v56, %v4687_v49  ;;  %v5624_v32 = vmul.f32 %v11148_v0, %v5596_v10 }
 0x5d2   : > { %v4804_v14 = vpop.f32.mrf.mxu1  ;;  %v5149_v44 = vadd.f32 %v5148_v45, %v14392_v19  ;;  %v5453_v18 = vadd.f32 %v5452_v30, %v5295_v25  ;;  %v5303_v10 = vmul.f32 %v14411_v35, %v14411_v35  ;;  %v5170_v42 = vadd.f32 %v5169_v26, %v14401_v48 }
 0x5d3   : > { %17833 = vst [vmem:[#allocation103_spill] sm:$0xff] %v14435_v55  ;;  %17834 = vst [vmem:[#allocation104_spill] sm:$0xff] %v14439_v61  ;;  %v4693_v15 = vpop.f32.mrf.mxu0  ;;  %v14445_v36 = vmul.f32 %v14435_v55, %v14258_v53  ;;  %v14449_v21 = vmul.f32 %v14435_v55, %v14262_v38  ;;  %v14457_v49 = vmul.f32 %v14435_v55, %v14299_v3 }
 0x5d4   : > { %v4806_v16 = vpop.f32.mrf.mxu1  ;;  %v14461_v17 = vmul.f32 %v14435_v55, %v14303_v2  ;;  %v14465_v53 = vmul.f32 %v14435_v55, %v14319_v57  ;;  %v14469_v38 = vmul.f32 %v14435_v55, %v14329_v29  ;;  %v5633_v43 = vmul.f32 %v5624_v32, %v14360_v33 }
 0x5d5   : > { %v4695_v47 = vpop.f32.mrf.mxu0  ;;  %17835 = vst [vmem:[#allocation105_spill] sm:$0xff] %v14445_v36  ;;  %17836 = vst [vmem:[#allocation106_spill] sm:$0xff] %v14449_v21  ;;  %v5304_v3 = vmul.f32 %v14417_v20, %v14417_v20  ;;  %v5311_v2 = vmul.f32 %v14431_v63, %v14431_v63  ;;  %v14478_v25 = vrot.slane %v5624_v32, %v17795_v11 }
 0x5d6   : > { %17837 = vst [vmem:[#allocation107_spill] sm:$0xff] %v14457_v49  ;;  %17838 = vst [vmem:[#allocation108_spill] sm:$0xff] %v14461_v17  ;;  %v4808_v41 = vpop.f32.mrf.mxu1  ;;  %v14480_v57 = vadd.f32 %v4804_v14, %v4691_v28  ;;  %v14482_v56 = vadd.f32 %v4806_v16, %v4693_v15  ;;  %v5647_v33 = vcombine.low %v5632_v13, %v5633_v43 }
 0x5d7   : > { %17839 = vst [vmem:[#allocation109_spill] sm:$0xff] %v14465_v53  ;;  %17840 = vst [vmem:[#allocation110_spill] sm:$0xff] %v14469_v38  ;;  %v4697_v0 = vpop.f32.mrf.mxu0  ;;  %v14484_v29 = vadd.f32 %v4808_v41, %v4695_v47  ;;  %v5474_v45 = vadd.f32 %v5473_v59, %v5296_v50  ;;  %v5150_v30 = vadd.f32 %v5149_v44, %v14411_v35  ;;  %v17842_v38 = vld [vmem:[#allocation36_spill] sm:$0xff] }
 0x5d8   : > { %17841 = vst [vmem:[#allocation111_spill] sm:$0xff] %v14478_v25  ;;  %v4810_v24 = vpop.f32.mrf.mxu1  ;;  %v5454_v26 = vadd.f32 %v5453_v18, %v5303_v10  ;;  %v17843_v53 = vcombine.low %v14208_v39, %v14248_v58  ;;  %v5171_v32 = vadd.f32 %v5170_v42, %v14417_v20  ;;  %v5312_v16 = vmul.f32 %v14439_v61, %v14439_v61 }
 0x5d9   : > { %v4701_v34 = vpop.f32.mrf.mxu0  ;;  %v14497_v15 = vrot.slane %v5647_v33, %v17842_v38  ;;  %v5475_v13 = vadd.f32 %v5474_v45, %v5304_v3  ;;  %v5151_v44 = vadd.f32 %v5150_v30, %v14431_v63  ;;  %v14502_v18 = vmul.f32 %v14478_v25, %v14260_v31 }
 0x5da   : > { %v14491_v17 = vrot.slane %v17843_v53, %v17842_v38  ;;  %v4814_v28 = vpop.f32.mrf.mxu1  ;;  %v5455_v59 = vadd.f32 %v5454_v26, %v5311_v2  ;;  %v14506_v39 = vmul.f32 %v14478_v25, %v14297_v8  ;;  %v14510_v58 = vmul.f32 %v14478_v25, %v14301_v52 }
 0x5db   : > { %v4703_v14 = vpop.f32.mrf.mxu0  ;;  %17845 = vst [vmem:[#allocation113_spill] sm:$0xff] %v14497_v15  ;;  %17846 = vst [vmem:[#allocation114_spill] sm:$0xff] %v14502_v18  ;;  %v14514_v47 = vmul.f32 %v14478_v25, %v14315_v54  ;;  %v14520_v31 = vmul.f32 %v14478_v25, %v14327_v5  ;;  %v14524_v8 = vmul.f32 %v14478_v25, %v14337_v9 }
 0x5dc   : > { %17844 = vst [vmem:[#allocation112_spill] sm:$0xff] %v14491_v17  ;;  %17847 = vst [vmem:[#allocation115_spill] sm:$0xff] %v14506_v39  ;;  %v4816_v50 = vpop.f32.mrf.mxu1  ;;  %v5172_v52 = vadd.f32 %v5171_v32, %v14439_v61  ;;  %v5476_v41 = vadd.f32 %v5475_v13, %v5312_v16  ;;  %v5152_v43 = vadd.f32 %v5151_v44, %v14480_v57 }
 0x5dd   : > { %17848 = vst [vmem:[#allocation116_spill] sm:$0xff] %v14510_v58  ;;  %17849 = vst [vmem:[#allocation117_spill] sm:$0xff] %v14514_v47  ;;  %v4705_v10 = vpop.f32.mrf.mxu0  ;;  %v5319_v54 = vmul.f32 %v14480_v57, %v14480_v57  ;;  %v5320_v42 = vmul.f32 %v14482_v56, %v14482_v56  ;;  %v5327_v33 = vmul.f32 %v14484_v29, %v14484_v29 }
 0x5de   : > { %17850 = vst [vmem:[#allocation118_spill] sm:$0xff] %v14520_v31  ;;  %17851 = vst [vmem:[#allocation119_spill] sm:$0xff] %v14524_v8  ;;  %v4818_v3 = vpop.f32.mrf.mxu1  ;;  %v5173_v5 = vadd.f32 %v5172_v52, %v14482_v56  ;;  %v14535_v9 = vadd.f32 %v4810_v24, %v4697_v0  ;;  %v14537_v45 = vadd.f32 %v4814_v28, %v4701_v34 }
 0x5df   : > { %v4707_v2 = vpop.f32.mrf.mxu0  ;;  %v5456_v30 = vadd.f32 %v5455_v59, %v5319_v54  ;;  %v5477_v26 = vadd.f32 %v5476_v41, %v5320_v42  ;;  %v5153_v32 = vadd.f32 %v5152_v43, %v14484_v29  ;;  %v14540_v16 = vadd.f32 %v4816_v50, %v4703_v14 }
 0x5e0   : > { %v4820_v13 = vpop.f32.mrf.mxu1  ;;  %v5174_v53 = vadd.f32 %v5173_v5, %v14535_v9  ;;  %v5328_v52 = vmul.f32 %v14535_v9, %v14535_v9  ;;  %v5335_v8 = vmul.f32 %v14537_v45, %v14537_v45  ;;  %v14547_v0 = vadd.f32 %v4818_v3, %v4705_v10 }
 0x5e1   : > { %v4711_v44 = vpop.f32.mrf.mxu0  ;;  %v5457_v24 = vadd.f32 %v5456_v30, %v5327_v33  ;;  %v5154_v34 = vadd.f32 %v5153_v32, %v14537_v45  ;;  %v5336_v28 = vmul.f32 %v14540_v16, %v14540_v16  ;;  %v14552_v14 = vadd.f32 %v4820_v13, %v4707_v2 }
 0x5e2   : > { %v4824_v59 = vpop.f32.mrf.mxu1  ;;  %v5478_v41 = vadd.f32 %v5477_v26, %v5328_v52  ;;  %v5175_v43 = vadd.f32 %v5174_v53, %v14540_v16  ;;  %v5343_v54 = vmul.f32 %v14547_v0, %v14547_v0 }
 0x5e3   : > { %v4713_v50 = vpop.f32.mrf.mxu0  ;;  %v14557_v42 = vadd.f32 %v4824_v59, %v4711_v44  ;;  %v5458_v10 = vadd.f32 %v5457_v24, %v5335_v8  ;;  %v5155_v3 = vadd.f32 %v5154_v34, %v14547_v0  ;;  %v5344_v5 = vmul.f32 %v14552_v14, %v14552_v14 }
 0x5e4   : > { %v4826_v33 = vpop.f32.mrf.mxu1  ;;  %v5479_v2 = vadd.f32 %v5478_v41, %v5336_v28  ;;  %v5176_v32 = vadd.f32 %v5175_v43, %v14552_v14 }
 0x5e5   : > { %v4715_v30 = vpop.f32.mrf.mxu0  ;;  %v5351_v26 = vmul.f32 %v14557_v42, %v14557_v42  ;;  %v14565_v53 = vadd.f32 %v4826_v33, %v4713_v50  ;;  %v5459_v13 = vadd.f32 %v5458_v10, %v5343_v54  ;;  %v5156_v44 = vadd.f32 %v5155_v3, %v14557_v42 }
 0x5e6   : > { %v4828_v52 = vpop.f32.mrf.mxu1  ;;  %v5480_v24 = vadd.f32 %v5479_v2, %v5344_v5 }
 0x5e7   : > { %v4717_v8 = vpop.f32.mrf.mxu0  ;;  %v5177_v34 = vadd.f32 %v5176_v32, %v14565_v53  ;;  %v5352_v59 = vmul.f32 %v14565_v53, %v14565_v53  ;;  %v14571_v31 = vadd.f32 %v4828_v52, %v4715_v30  ;;  %v5460_v28 = vadd.f32 %v5459_v13, %v5351_v26 }
 0x5e8   : > { %v4830_v41 = vpop.f32.mrf.mxu1 }
 0x5e9   : > { %v14573_v43 = vpop.f32.mrf.mxu0  ;;  %v5481_v47 = vadd.f32 %v5480_v24, %v5352_v59  ;;  %v5157_v50 = vadd.f32 %v5156_v44, %v14571_v31  ;;  %v5359_v54 = vmul.f32 %v14571_v31, %v14571_v31  ;;  %v14578_v10 = vadd.f32 %v4830_v41, %v4717_v8 }
 0x5ea   : > { %v14580_v3 = vpop.f32.mrf.mxu1 }
 0x5eb   : > { %v14582_v5 = vpop.f32.mrf.mxu0  ;;  %v5158_v33 = vrot.slane %v5157_v50, 4  ;;  %v5461_v2 = vadd.f32 %v5460_v28, %v5359_v54  ;;  %v5178_v30 = vadd.f32 %v5177_v34, %v14578_v10  ;;  %v5360_v32 = vmul.f32 %v14578_v10, %v14578_v10 }
 0x5ec   : > { %v14587_v26 = vpop.f32.mrf.mxu1 }
 0x5ed   : > { %v4871_v13 = vpop.f32.mrf.mxu0  ;;  %v5159_v44 = vadd.f32 %v5158_v33, %v5157_v50  ;;  %v5462_v52 = vrot.slane %v5461_v2, 4  ;;  %v5179_v24 = vrot.slane %v5178_v30, 4  ;;  %v5482_v59 = vadd.f32 %v5481_v47, %v5360_v32 }
 0x5ee   : > { %v4984_v8 = vpop.f32.mrf.mxu1 }
 0x5ef   : > { %v4873_v41 = vpop.f32.mrf.mxu0  ;;  %v5160_v58 = vrot.slane %v5159_v44, 2  ;;  %v5463_v49 = vadd.f32 %v5462_v52, %v5461_v2  ;;  %v5180_v39 = vadd.f32 %v5179_v24, %v5178_v30  ;;  %v5483_v21 = vrot.slane %v5482_v59, 4 }
 0x5f0   : > { %v4986_v18 = vpop.f32.mrf.mxu1  ;;  %v14597_v25 = vadd.f32 %v4984_v8, %v4871_v13 }
 0x5f1   : > { %v4877_v28 = vpop.f32.mrf.mxu0  ;;  %v5161_v54 = vadd.f32 %v5160_v58, %v5159_v44  ;;  %v5464_v34 = vrot.slane %v5463_v49, 2  ;;  %v5181_v36 = vrot.slane %v5180_v39, 2  ;;  %v5484_v61 = vadd.f32 %v5483_v21, %v5482_v59 }
 0x5f2   : > { %v4990_v20 = vpop.f32.mrf.mxu1  ;;  %17852 = vst [vmem:[#allocation120_spill] sm:$0xff] %v14597_v25  ;;  %v5249_v13 = vmul.f32 %v14597_v25, %v14597_v25 }
 0x5f3   : > { %v4879_v48 = vpop.f32.mrf.mxu0  ;;  %v5162_v22 = vrot.slane %v5161_v54, 1  ;;  %v5465_v6 = vadd.f32 %v5464_v34, %v5463_v49  ;;  %v5182_v50 = vadd.f32 %v5181_v36, %v5180_v39  ;;  %v5485_v33 = vrot.slane %v5484_v61, 2 }
 0x5f4   : > { %v4992_v63 = vpop.f32.mrf.mxu1 }
 0x5f5   : > { %v4881_v47 = vpop.f32.mrf.mxu0  ;;  %v5163_v32 = vadd.f32 %v5162_v22, %v5161_v54  ;;  %v5466_v35 = vrot.slane %v5465_v6, 1  ;;  %v5183_v19 = vrot.slane %v5182_v50, 1  ;;  %v5486_v2 = vadd.f32 %v5485_v33, %v5484_v61 }
 0x5f6   : > { %v4994_v30 = vpop.f32.mrf.mxu1  ;;  %v14613_v8 = vadd.f32 %v4992_v63, %v4879_v48  ;;  %v17860_v63 = vld [vmem:[#allocation33_spill] sm:$0xff] }
 0x5f7   : > { %v4883_v52 = vpop.f32.mrf.mxu0  ;;  %v14589_v24 = vmul.f32 0.0078125, %v5163_v32  ;;  %v5467_v58 = vadd.f32 %v5466_v35, %v5465_v6  ;;  %v5184_v44 = vadd.f32 %v5183_v19, %v5182_v50  ;;  %v5487_v40 = vrot.slane %v5486_v2, 1 }
 0x5f8   : > { %v4996_v21 = vpop.f32.mrf.mxu1  ;;  %17857 = vst [vmem:[#allocation125_spill] sm:$0xff] %v14613_v8 }
 0x5f9   : > { %v4887_v59 = vpop.f32.mrf.mxu0  ;;  %v5535_v15 = vmul.f32 0.0078125, %v5467_v58  ;;  %v5543_v36 = vmul.f32 %v14589_v24, %v14589_v24  ;;  %v14593_v49 = vmul.f32 0.0078125, %v5184_v44  ;;  %v5488_v39 = vadd.f32 %v5487_v40, %v5486_v2 }
 0x5fa   : > { %v5000_v22 = vpop.f32.mrf.mxu1  ;;  %v14599_v2 = vadd.f32 %v4986_v18, %v4873_v41 }
 0x5fb   : > { %v4889_v54 = vpop.f32.mrf.mxu0  ;;  %v5551_v34 = vsub.f32 %v5535_v15, %v5543_v36  ;;  %v5536_v61 = vmul.f32 0.0078125, %v5488_v39  ;;  %v5544_v33 = vmul.f32 %v14593_v49, %v14593_v49  ;;  %v14603_v15 = vadd.f32 %v14580_v3, %v14573_v43 }
 0x5fc   : > { %v5002_v32 = vpop.f32.mrf.mxu1  ;;  %17853 = vst [vmem:[#allocation121_spill] sm:$0xff] %v14599_v2  ;;  %v14605_v36 = vadd.f32 %v4990_v20, %v4877_v28  ;;  %v5250_v20 = vmul.f32 %v14599_v2, %v14599_v2 }
 0x5fd   : > { %v4891_v6 = vpop.f32.mrf.mxu0  ;;  %v5559_v19 = vmax.f32 %v5551_v34, 0.0  ;;  %v5552_v35 = vsub.f32 %v5536_v61, %v5544_v33  ;;  %17854 = vst [vmem:[#allocation122_spill] sm:$0xff] %v14603_v15  ;;  %v14609_v61 = vadd.f32 %v14587_v26, %v14582_v5  ;;  %v5241_v43 = vmul.f32 %v14603_v15, %v14603_v15 }
 0x5fe   : > { %v5004_v50 = vpop.f32.mrf.mxu1  ;;  %17855 = vst [vmem:[#allocation123_spill] sm:$0xff] %v14605_v36  ;;  %v5257_v3 = vmul.f32 %v14605_v36, %v14605_v36  ;;  %v14623_v5 = vadd.f32 %v4996_v21, %v4883_v52  ;;  %v14625_v26 = vadd.f32 %v5000_v22, %v4887_v59  ;;  %v14637_v21 = vadd.f32 %v5002_v32, %v4889_v54 }
 0x5ff   : > { %v4893_v17 = vpop.f32.mrf.mxu0  ;;  %v5567_v58 = vadd.f32 1e-05, %v5559_v19  ;;  %v5560_v38 = vmax.f32 %v5552_v35, 0.0  ;;  %17856 = vst [vmem:[#allocation124_spill] sm:$0xff] %v14609_v61  ;;  %v5242_v33 = vmul.f32 %v14609_v61, %v14609_v61  ;;  %v5185_v19 = vadd.f32 %v14597_v25, %v14603_v15 }
 0x600   : > { %v5006_v44 = vpop.f32.mrf.mxu1  ;;  %17858 = vst [vmem:[#allocation126_spill] sm:$0xff] %v14623_v5  ;;  %17859 = vst [vmem:[#allocation127_spill] sm:$0xff] %v14625_v26  ;;  %v5489_v35 = vadd.f32 %v5249_v13, %v5241_v43  ;;  %v14642_v4 = vadd.f32 %v5004_v50, %v4891_v6  ;;  %v5266_v13 = vmul.f32 %v14623_v5, %v14623_v5 }
 0x601   : > { %v4897_v55 = vpop.f32.mrf.mxu0  ;;  %11149 = vrsqrt.f32 %v5567_v58  ;;  %v5568_v40 = vadd.f32 1e-05, %v5560_v38  ;;  %v14615_v38 = vadd.f32 %v4994_v30, %v4881_v47  ;;  %v5258_v58 = vmul.f32 %v14613_v8, %v14613_v8  ;;  %17861 = vst [vmem:[#allocation33_spill] sm:$0xff] %v14637_v21 }
 0x602   : > { %v5010_v39 = vpop.f32.mrf.mxu1  ;;  %v5510_v30 = vadd.f32 %v5250_v20, %v5242_v33  ;;  %v5186_v47 = vadd.f32 %v5185_v19, %v14605_v36  ;;  %17862 = vst [vmem:[#allocation128_spill] sm:$0xff] %v14642_v4  ;;  %v5490_v25 = vadd.f32 %v5489_v35, %v5257_v3  ;;  %v5273_v43 = vmul.f32 %v14625_v26, %v14625_v26 }
 0x603   : > { %v4899_v34 = vpop.f32.mrf.mxu0  ;;  %11151 = vrsqrt.f32 %v5568_v40  ;;  %v5265_v52 = vmul.f32 %v14615_v38, %v14615_v38  ;;  %v5206_v40 = vadd.f32 %v14599_v2, %v14609_v61  ;;  %v14648_v15 = vadd.f32 %v5006_v44, %v4893_v17 }
 0x604   : > { %v5012_v18 = vpop.f32.mrf.mxu1  ;;  %v17863_v2 = vsub.s32 4, %v17860_v63  ;;  %v5187_v50 = vadd.f32 %v5186_v47, %v14615_v38  ;;  %v14657_v3 = vadd.f32 %v5010_v39, %v4897_v55  ;;  %v5511_v33 = vadd.f32 %v5510_v30, %v5258_v58 }
 0x605   : > { %v4901_v41 = vpop.f32.mrf.mxu0  ;;  %v5207_v6 = vadd.f32 %v5206_v40, %v14613_v8  ;;  %v5491_v19 = vadd.f32 %v5490_v25, %v5265_v52  ;;  %v5274_v17 = vmul.f32 %v14637_v21, %v14637_v21  ;;  %v14661_v44 = vadd.f32 %v5012_v18, %v4899_v34 }
 0x606   : > { %v5014_v28 = vpop.f32.mrf.mxu1  ;;  %v5600_v20 = vrot.slane %v14650_v37, %v17863_v2  ;;  %v5188_v62 = vadd.f32 %v5187_v50, %v14625_v26  ;;  %v5281_v2 = vmul.f32 %v14642_v4, %v14642_v4  ;;  %v17864_v55 = vsub.s32 5, %v17860_v63 }
 0x607   : > { %v4903_v48 = vpop.f32.mrf.mxu0  ;;  %v5208_v36 = vadd.f32 %v5207_v6, %v14623_v5  ;;  %v5512_v25 = vadd.f32 %v5511_v33, %v5266_v13  ;;  %v5492_v47 = vadd.f32 %v5491_v19, %v5273_v43  ;;  %v5282_v34 = vmul.f32 %v14648_v15, %v14648_v15 }
 0x608   : > { %v5016_v59 = vpop.f32.mrf.mxu1  ;;  %v5604_v39 = vrot.slane %v14650_v37, %v17864_v55  ;;  %v5189_v6 = vadd.f32 %v5188_v62, %v14642_v4  ;;  %v5289_v50 = vmul.f32 %v14657_v3, %v14657_v3  ;;  %v5290_v55 = vmul.f32 %v14661_v44, %v14661_v44 }
 0x609   : > { %v4907_v22 = vpop.f32.mrf.mxu0  ;;  %v5209_v52 = vadd.f32 %v5208_v36, %v14637_v21  ;;  %v5513_v8 = vadd.f32 %v5512_v25, %v5274_v17  ;;  %v14678_v13 = vadd.f32 %v5014_v28, %v4901_v41  ;;  %v14680_v43 = vadd.f32 %v5016_v59, %v4903_v48 }
 0x60a   : > { %v5020_v54 = vpop.f32.mrf.mxu1  ;;  %v5493_v62 = vadd.f32 %v5492_v47, %v5281_v2  ;;  %v5190_v17 = vadd.f32 %v5189_v6, %v14657_v3 }
 0x60b   : > { %v4909_v32 = vpop.f32.mrf.mxu0  ;;  %v5514_v21 = vadd.f32 %v5513_v8, %v5282_v34  ;;  %v14690_v48 = vadd.f32 %v5020_v54, %v4907_v22  ;;  %v5298_v2 = vmul.f32 %v14680_v43, %v14680_v43 }
 0x60c   : > { %v5022_v35 = vpop.f32.mrf.mxu1  ;;  %v5494_v28 = vadd.f32 %v5493_v62, %v5289_v50 }
 0x60d   : > { %v4911_v61 = vpop.f32.mrf.mxu0  ;;  %v14692_v59 = vadd.f32 %v5022_v35, %v4909_v32  ;;  %v5515_v26 = vadd.f32 %v5514_v21, %v5290_v55 }
 0x60e   : > { %v11150_v40 = vpop.eup %11149  ;;  %v5024_v18 = vpop.f32.mrf.mxu1 }
 0x60f   : > { %v4913_v30 = vpop.f32.mrf.mxu0  ;;  %v5625_v58 = vmul.f32 %v11150_v40, %v5600_v20  ;;  %v5210_v40 = vadd.f32 %v5209_v52, %v14648_v15  ;;  %v14707_v22 = vadd.f32 %v5024_v18, %v4911_v61  ;;  %v5305_v18 = vmul.f32 %v14690_v48, %v14690_v48 }
 0x610   : > { %v11152_v5 = vpop.eup %11151  ;;  %v5026_v33 = vpop.f32.mrf.mxu1  ;;  %v5516_v50 = vadd.f32 %v5515_v26, %v5298_v2 }
 0x611   : > { %v4917_v19 = vpop.f32.mrf.mxu0  ;;  %v14683_v20 = vmul.f32 %v5625_v58, %v14589_v24  ;;  %v14686_v36 = vrot.slane %v5625_v58, %v17795_v11  ;;  %v5626_v41 = vmul.f32 %v11152_v5, %v5604_v39  ;;  %v5211_v24 = vadd.f32 %v5210_v40, %v14661_v44 }
 0x612   : > { %v5030_v25 = vpop.f32.mrf.mxu1  ;;  %v5297_v58 = vmul.f32 %v14678_v13, %v14678_v13  ;;  %v14709_v54 = vadd.f32 %v5026_v33, %v4913_v30  ;;  %v5313_v33 = vmul.f32 %v14707_v22, %v14707_v22 }
 0x613   : > { %v4919_v4 = vpop.f32.mrf.mxu0  ;;  %v14701_v34 = vmul.f32 %v14686_v36, %v14480_v57  ;;  %v14705_v5 = vmul.f32 %v14686_v36, %v14484_v29  ;;  %v14713_v21 = vmul.f32 %v14686_v36, %v14537_v45  ;;  %v14717_v32 = vmul.f32 %v14686_v36, %v14547_v0 }
 0x614   : > { %v5032_v8 = vpop.f32.mrf.mxu1  ;;  %v14721_v57 = vmul.f32 %v14686_v36, %v14557_v42  ;;  %v14725_v29 = vmul.f32 %v14686_v36, %v14571_v31  ;;  %v14728_v39 = vmul.f32 %v5626_v41, %v14593_v49  ;;  %v5191_v45 = vadd.f32 %v5190_v17, %v14678_v13 }
 0x615   : > { %v4921_v47 = vpop.f32.mrf.mxu0  ;;  %17865 = vst [vmem:[#allocation129_spill] sm:$0xff] %v14701_v34  ;;  %17866 = vst [vmem:[#allocation130_spill] sm:$0xff] %v14705_v5  ;;  %v5306_v0 = vmul.f32 %v14692_v59, %v14692_v59  ;;  %v14736_v42 = vrot.slane %v5626_v41, %v17795_v11  ;;  %v5495_v30 = vadd.f32 %v5494_v28, %v5297_v58 }
 0x616   : > { %17867 = vst [vmem:[#allocation131_spill] sm:$0xff] %v14713_v21  ;;  %17868 = vst [vmem:[#allocation132_spill] sm:$0xff] %v14717_v32  ;;  %v5034_v61 = vpop.f32.mrf.mxu1  ;;  %v5212_v31 = vadd.f32 %v5211_v24, %v14680_v43  ;;  %v5192_v55 = vadd.f32 %v5191_v45, %v14690_v48  ;;  %v5314_v62 = vmul.f32 %v14709_v54, %v14709_v54 }
 0x617   : > { %17869 = vst [vmem:[#allocation133_spill] sm:$0xff] %v14721_v57  ;;  %17870 = vst [vmem:[#allocation134_spill] sm:$0xff] %v14725_v29  ;;  %v4923_v35 = vpop.f32.mrf.mxu0  ;;  %v14746_v40 = vadd.f32 %v5030_v25, %v4917_v19  ;;  %v14748_v17 = vadd.f32 %v5032_v8, %v4919_v4  ;;  %v14750_v41 = vadd.f32 %v5034_v61, %v4921_v47 }
 0x618   : > { %v5036_v52 = vpop.f32.mrf.mxu1  ;;  %v5496_v58 = vadd.f32 %v5495_v30, %v5305_v18  ;;  %v5213_v49 = vadd.f32 %v5212_v31, %v14692_v59  ;;  %v5517_v26 = vadd.f32 %v5516_v50, %v5306_v0  ;;  %v5193_v2 = vadd.f32 %v5192_v55, %v14707_v22 }
 0x619   : > { %v4927_v6 = vpop.f32.mrf.mxu0  ;;  %v14756_v45 = vmul.f32 %v14736_v42, %v14482_v56  ;;  %v14760_v19 = vmul.f32 %v14736_v42, %v14535_v9  ;;  %v14764_v4 = vmul.f32 %v14736_v42, %v14540_v16  ;;  %v14768_v25 = vmul.f32 %v14736_v42, %v14552_v14 }
 0x61a   : > { %v5040_v28 = vpop.f32.mrf.mxu1  ;;  %v14772_v61 = vmul.f32 %v14736_v42, %v14565_v53  ;;  %v14776_v56 = vmul.f32 %v14736_v42, %v14578_v10  ;;  %v5497_v9 = vadd.f32 %v5496_v58, %v5313_v33  ;;  %v5214_v18 = vadd.f32 %v5213_v49, %v14709_v54 }
 0x61b   : > { %v4929_v24 = vpop.f32.mrf.mxu0  ;;  %17871 = vst [vmem:[#allocation135_spill] sm:$0xff] %v14756_v45  ;;  %17872 = vst [vmem:[#allocation136_spill] sm:$0xff] %v14760_v19  ;;  %v5518_v0 = vadd.f32 %v5517_v26, %v5314_v62  ;;  %v5321_v16 = vmul.f32 %v14746_v40, %v14746_v40  ;;  %v5322_v14 = vmul.f32 %v14748_v17, %v14748_v17 }
 0x61c   : > { %17873 = vst [vmem:[#allocation137_spill] sm:$0xff] %v14764_v4  ;;  %17874 = vst [vmem:[#allocation138_spill] sm:$0xff] %v14768_v25  ;;  %v5042_v8 = vpop.f32.mrf.mxu1  ;;  %v5329_v30 = vmul.f32 %v14750_v41, %v14750_v41  ;;  %v5194_v50 = vadd.f32 %v5193_v2, %v14746_v40  ;;  %v14786_v55 = vadd.f32 %v5036_v52, %v4923_v35 }
 0x61d   : > { %v4931_v47 = vpop.f32.mrf.mxu0  ;;  %17875 = vst [vmem:[#allocation139_spill] sm:$0xff] %v14772_v61  ;;  %17876 = vst [vmem:[#allocation140_spill] sm:$0xff] %v14776_v56  ;;  %v14788_v10 = vadd.f32 %v5040_v28, %v4927_v6  ;;  %v14790_v33 = vadd.f32 %v5042_v8, %v4929_v24  ;;  %v5498_v49 = vadd.f32 %v5497_v9, %v5321_v16 }
 0x61e   : > { %v5044_v31 = vpop.f32.mrf.mxu1  ;;  %v5215_v62 = vadd.f32 %v5214_v18, %v14748_v17  ;;  %v5519_v29 = vadd.f32 %v5518_v0, %v5322_v14  ;;  %v5195_v61 = vadd.f32 %v5194_v50, %v14750_v41  ;;  %v5330_v57 = vmul.f32 %v14786_v55, %v14786_v55 }
 0x61f   : > { %v4933_v53 = vpop.f32.mrf.mxu0  ;;  %v14793_v58 = vadd.f32 %v5044_v31, %v4931_v47  ;;  %v5337_v35 = vmul.f32 %v14788_v10, %v14788_v10  ;;  %v5499_v52 = vadd.f32 %v5498_v49, %v5329_v30  ;;  %v5338_v6 = vmul.f32 %v14790_v33, %v14790_v33 }
 0x620   : > { %v5046_v26 = vpop.f32.mrf.mxu1  ;;  %v5216_v47 = vadd.f32 %v5215_v62, %v14786_v55  ;;  %v5196_v9 = vadd.f32 %v5195_v61, %v14788_v10  ;;  %v5520_v0 = vadd.f32 %v5519_v29, %v5330_v57 }
 0x621   : > { %v4937_v56 = vpop.f32.mrf.mxu0  ;;  %v5345_v28 = vmul.f32 %v14793_v58, %v14793_v58  ;;  %v14804_v24 = vadd.f32 %v5046_v26, %v4933_v53  ;;  %v5500_v16 = vadd.f32 %v5499_v52, %v5337_v35 }
 0x622   : > { %v5050_v2 = vpop.f32.mrf.mxu1  ;;  %v5217_v50 = vadd.f32 %v5216_v47, %v14790_v33  ;;  %v5197_v53 = vadd.f32 %v5196_v9, %v14793_v58  ;;  %v5521_v26 = vadd.f32 %v5520_v0, %v5338_v6 }
 0x623   : > { %v4939_v8 = vpop.f32.mrf.mxu0  ;;  %v14808_v18 = vadd.f32 %v5050_v2, %v4937_v56  ;;  %v5346_v14 = vmul.f32 %v14804_v24, %v14804_v24  ;;  %v5501_v62 = vadd.f32 %v5500_v16, %v5345_v28 }
 0x624   : > { %v5052_v30 = vpop.f32.mrf.mxu1  ;;  %v5218_v57 = vadd.f32 %v5217_v50, %v14804_v24 }
 0x625   : > { %v4941_v31 = vpop.f32.mrf.mxu0  ;;  %v5353_v49 = vmul.f32 %v14808_v18, %v14808_v18  ;;  %v14816_v25 = vadd.f32 %v5052_v30, %v4939_v8  ;;  %v5198_v29 = vadd.f32 %v5197_v53, %v14808_v18  ;;  %v5522_v52 = vadd.f32 %v5521_v26, %v5346_v14 }
 0x626   : > { %v5054_v61 = vpop.f32.mrf.mxu1 }
 0x627   : > { %v4943_v56 = vpop.f32.mrf.mxu0  ;;  %v14820_v35 = vadd.f32 %v5054_v61, %v4941_v31  ;;  %v5502_v2 = vadd.f32 %v5501_v62, %v5353_v49  ;;  %v5354_v47 = vmul.f32 %v14816_v25, %v14816_v25  ;;  %v5219_v32 = vadd.f32 %v5218_v57, %v14816_v25 }
 0x628   : > { %v5056_v9 = vpop.f32.mrf.mxu1 }
 0x629   : > { %v5199_v6 = vadd.f32 %v5198_v29, %v14820_v35  ;;  %v5361_v28 = vmul.f32 %v14820_v35, %v14820_v35  ;;  %v14828_v8 = vadd.f32 %v5056_v9, %v4943_v56  ;;  %v5523_v0 = vadd.f32 %v5522_v52, %v5354_v47 }
 0x62b   : > { %v5200_v16 = vrot.slane %v5199_v6, 4  ;;  %v5503_v30 = vadd.f32 %v5502_v2, %v5361_v28  ;;  %v5220_v31 = vadd.f32 %v5219_v32, %v14828_v8  ;;  %v5362_v14 = vmul.f32 %v14828_v8, %v14828_v8 }
 0x62d   : > { %v5201_v50 = vadd.f32 %v5200_v16, %v5199_v6  ;;  %v5504_v53 = vrot.slane %v5503_v30, 4  ;;  %v5221_v49 = vrot.slane %v5220_v31, 4  ;;  %v5524_v26 = vadd.f32 %v5523_v0, %v5362_v14 }
 0x62f   : > { %v5202_v62 = vrot.slane %v5201_v50, 2  ;;  %v5505_v61 = vadd.f32 %v5504_v53, %v5503_v30  ;;  %v5222_v57 = vadd.f32 %v5221_v49, %v5220_v31  ;;  %v5525_v29 = vrot.slane %v5524_v26, 4 }
 0x631   : > { %v5203_v4 = vadd.f32 %v5202_v62, %v5201_v50  ;;  %v5506_v21 = vrot.slane %v5505_v61, 2  ;;  %v5223_v56 = vrot.slane %v5222_v57, 2  ;;  %v5526_v9 = vadd.f32 %v5525_v29, %v5524_v26 }
 0x633   : > { %v5204_v52 = vrot.slane %v5203_v4, 1  ;;  %v5507_v47 = vadd.f32 %v5506_v21, %v5505_v61  ;;  %v5224_v2 = vadd.f32 %v5223_v56, %v5222_v57  ;;  %v5527_v28 = vrot.slane %v5526_v9, 2 }
 0x634   : > { %v14855_v56 = vmul.f32 %v14211_v27, %v13944_v46 }
 0x635   : > { %v5205_v32 = vadd.f32 %v5204_v52, %v5203_v4  ;;  %v5508_v19 = vrot.slane %v5507_v47, 1  ;;  %v5225_v5 = vrot.slane %v5224_v2, 1  ;;  %v5528_v45 = vadd.f32 %v5527_v28, %v5526_v9  ;;  %v17880_v52 = vld [vmem:[#allocation84_spill] sm:$0xff]  ;;  %v17910_v28 = vld [vmem:[#allocation51_spill] sm:$0xff] }
 0x636   : > { %v14859_v9 = vmul.f32 %v14211_v27, %v13951_v12 }
 0x637   : > { %v14833_v6 = vmul.f32 0.0078125, %v5205_v32  ;;  %v5509_v16 = vadd.f32 %v5508_v19, %v5507_v47  ;;  %v5226_v0 = vadd.f32 %v5225_v5, %v5224_v2  ;;  %v5529_v14 = vrot.slane %v5528_v45, 1  ;;  %v17882_v47 = vld [vmem:[#allocation43_spill] sm:$0xff]  ;;  %v17884_v2 = vld [vmem:[#allocation85_spill] sm:$0xff] }
 0x638   : > { %v14843_v5 = vmul.f32 %v14211_v27, %v13927_v7  ;;  %v14847_v19 = vmul.f32 %v14211_v27, %v13932_v60  ;;  %17877 = vst [vmem:[#allocation141_spill] sm:$0xff] %v14859_v9  ;;  %v14863_v7 = vmul.f32 %v14211_v27, %v13956_v23  ;;  %v14867_v60 = vmul.f32 %v14211_v27, %v13965_v1  ;;  %v17886_v32 = vld [vmem:[#allocation39_spill] sm:$0xff] }
 0x639   : > { %v5537_v30 = vmul.f32 0.0078125, %v5509_v16  ;;  %v5545_v31 = vmul.f32 %v14833_v6, %v14833_v6  ;;  %v14837_v50 = vmul.f32 0.0078125, %v5226_v0  ;;  %v5530_v53 = vadd.f32 %v5529_v14, %v5528_v45  ;;  %v17887_v16 = vld [vmem:[#allocation71_spill] sm:$0xff]  ;;  %v17888_v0 = vld [vmem:[#allocation40_spill] sm:$0xff] }
 0x63a   : > { %v14851_v45 = vmul.f32 %v14211_v27, %v13939_v51  ;;  %17878 = vst [vmem:[#allocation142_spill] sm:$0xff] %v14863_v7  ;;  %17879 = vst [vmem:[#allocation143_spill] sm:$0xff] %v14867_v60  ;;  %v14871_v51 = vmul.f32 %v14211_v27, %v17880_v52  ;;  %v14875_v46 = vmul.f32 %v14211_v27, %v17882_v47  ;;  %v17900_v52 = vld [vmem:[#allocation46_spill] sm:$0xff]  ;;  %v17929_v60 = vld [vmem:[#allocation111_spill] sm:$0xff] }
 0x63b   : > { %v5553_v49 = vsub.f32 %v5537_v30, %v5545_v31  ;;  %v5538_v21 = vmul.f32 0.0078125, %v5530_v53  ;;  %v5546_v4 = vmul.f32 %v14837_v50, %v14837_v50  ;;  %v14879_v12 = vmul.f32 %v14211_v27, %v17884_v2  ;;  %v17889_v30 = vld [vmem:[#allocation44_spill] sm:$0xff]  ;;  %v17890_v53 = vld [vmem:[#allocation82_spill] sm:$0xff] }
 0x63c   : > { %17881 = vst [vmem:[#allocation84_spill] sm:$0xff] %v14871_v51  ;;  %17883 = vst [vmem:[#allocation43_spill] sm:$0xff] %v14875_v46  ;;  %v14885_v1 = vmul.f32 %v17887_v16, %v17886_v32  ;;  %v14889_v14 = vmul.f32 %v17887_v16, %v17888_v0  ;;  %v14893_v31 = vmul.f32 %v17887_v16, %v17889_v30  ;;  %v17902_v2 = vld [vmem:[#allocation86_spill] sm:$0xff]  ;;  %v17920_v46 = vld [vmem:[#allocation59_spill] sm:$0xff] }
 0x63d   : > { %v5561_v26 = vmax.f32 %v5553_v49, 0.0  ;;  %v5554_v62 = vsub.f32 %v5538_v21, %v5546_v4  ;;  %17885 = vst [vmem:[#allocation85_spill] sm:$0xff] %v14879_v12  ;;  %v14897_v27 = vmul.f32 %v17887_v16, %v17890_v53  ;;  %v17892_v49 = vld [vmem:[#allocation47_spill] sm:$0xff]  ;;  %v17894_v4 = vld [vmem:[#allocation42_spill] sm:$0xff]  ;;  %v14917_v47 = vmul.f32 %v17887_v16, %v17900_v52  ;;  %v17916_v12 = vld [vmem:[#allocation49_spill] sm:$0xff] }
 0x63e   : > { %v14901_v21 = vmul.f32 %v17887_v16, %v17892_v49  ;;  %v14921_v32 = vmul.f32 %v17887_v16, %v17902_v2  ;;  %v17904_v0 = vld [vmem:[#allocation50_spill] sm:$0xff]  ;;  %v17911_v2 = vsub.s32 6, %v17860_v63  ;;  %v17926_v51 = vld [vmem:[#allocation95_spill] sm:$0xff] }
 0x63f   : > { %v5569_v61 = vadd.f32 1e-05, %v5561_v26  ;;  %v5562_v57 = vmax.f32 %v5554_v62, 0.0  ;;  %17891 = vst [vmem:[#allocation39_spill] sm:$0xff] %v14897_v27  ;;  %v14905_v26 = vmul.f32 %v17887_v16, %v17894_v4  ;;  %v17896_v62 = vld [vmem:[#allocation83_spill] sm:$0xff]  ;;  %17901 = vst [vmem:[#allocation47_spill] sm:$0xff] %v14917_v47  ;;  %v14925_v30 = vmul.f32 %v17887_v16, %v17904_v0 }
 0x640   : > { %17893 = vst [vmem:[#allocation71_spill] sm:$0xff] %v14901_v21  ;;  %17903 = vst [vmem:[#allocation42_spill] sm:$0xff] %v14921_v32  ;;  %v17906_v53 = vld [vmem:[#allocation54_spill] sm:$0xff]  ;;  %v5608_v34 = vrot.slane %v14650_v37, %v17911_v2  ;;  %v17912_v0 = vsub.s32 7, %v17860_v63  ;;  %v17988_v27 = vld [vmem:[#allocation128_spill] sm:$0xff] }
 0x641   : > { %v5570_v29 = vadd.f32 1e-05, %v5562_v57  ;;  %11153 = vrsqrt.f32 %v5569_v61  ;;  %17895 = vst [vmem:[#allocation40_spill] sm:$0xff] %v14905_v26  ;;  %v14909_v61 = vmul.f32 %v17887_v16, %v17896_v62  ;;  %v17898_v57 = vld [vmem:[#allocation45_spill] sm:$0xff]  ;;  %17905 = vst [vmem:[#allocation83_spill] sm:$0xff] %v14925_v30  ;;  %v14929_v49 = vmul.f32 %v17887_v16, %v17906_v53  ;;  %v17908_v62 = vld [vmem:[#allocation87_spill] sm:$0xff] }
 0x642   : > { %v5612_v30 = vrot.slane %v14650_v37, %v17912_v0  ;;  %v17918_v47 = vld [vmem:[#allocation58_spill] sm:$0xff]  ;;  %v17922_v0 = vld [vmem:[#allocation91_spill] sm:$0xff] }
 0x643   : > { %11155 = vrsqrt.f32 %v5570_v29  ;;  %17897 = vst [vmem:[#allocation44_spill] sm:$0xff] %v14909_v61  ;;  %v14913_v29 = vmul.f32 %v17887_v16, %v17898_v57  ;;  %17907 = vst [vmem:[#allocation45_spill] sm:$0xff] %v14929_v49  ;;  %v17909_v57 = vld [vmem:[#allocation103_spill] sm:$0xff]  ;;  %v17913_v16 = vld [vmem:[#allocation89_spill] sm:$0xff] }
 0x644   : > { %v14933_v23 = vmul.f32 %v17909_v57, %v17908_v62  ;;  %v14937_v52 = vmul.f32 %v17909_v57, %v17910_v28  ;;  %v14947_v53 = vmul.f32 %v17909_v57, %v17913_v16  ;;  %v17914_v49 = vld [vmem:[#allocation48_spill] sm:$0xff]  ;;  %v14955_v28 = vmul.f32 %v17909_v57, %v17916_v12 }
 0x645   : > { %17899 = vst [vmem:[#allocation82_spill] sm:$0xff] %v14913_v29  ;;  %v14951_v62 = vmul.f32 %v17909_v57, %v17914_v49  ;;  %v14959_v2 = vmul.f32 %v17909_v57, %v17918_v47  ;;  %v14963_v37 = vmul.f32 %v17909_v57, %v17920_v46  ;;  %v14967_v16 = vmul.f32 %v17909_v57, %v17922_v0  ;;  %v17924_v29 = vld [vmem:[#allocation93_spill] sm:$0xff]  ;;  %v17928_v61 = vld [vmem:[#allocation88_spill] sm:$0xff] }
 0x646   : > { %17917 = vst [vmem:[#allocation86_spill] sm:$0xff] %v14955_v28  ;;  %v14971_v49 = vmul.f32 %v17909_v57, %v17924_v29  ;;  %v14975_v12 = vmul.f32 %v17909_v57, %v17926_v51  ;;  %v14979_v47 = vmul.f32 %v17929_v60, %v17928_v61  ;;  %v17936_v57 = vld [vmem:[#allocation62_spill] sm:$0xff] }
 0x647   : > { %17915 = vst [vmem:[#allocation46_spill] sm:$0xff] %v14951_v62  ;;  %17919 = vst [vmem:[#allocation50_spill] sm:$0xff] %v14959_v2  ;;  %v17930_v2 = vld [vmem:[#allocation55_spill] sm:$0xff]  ;;  %v14999_v61 = vmul.f32 %v17929_v60, %v17936_v57  ;;  %v17946_v57 = vld [vmem:[#allocation36_spill] sm:$0xff] }
 0x648   : > { %17921 = vst [vmem:[#allocation54_spill] sm:$0xff] %v14963_v37  ;;  %17923 = vst [vmem:[#allocation87_spill] sm:$0xff] %v14967_v16  ;;  %v14983_v46 = vmul.f32 %v17929_v60, %v17930_v2  ;;  %v17931_v37 = vld [vmem:[#allocation90_spill] sm:$0xff]  ;;  %v17932_v16 = vld [vmem:[#allocation52_spill] sm:$0xff] }
 0x649   : > { %17925 = vst [vmem:[#allocation103_spill] sm:$0xff] %v14971_v49  ;;  %17927 = vst [vmem:[#allocation51_spill] sm:$0xff] %v14975_v12  ;;  %v14987_v0 = vmul.f32 %v17929_v60, %v17931_v37  ;;  %v14991_v29 = vmul.f32 %v17929_v60, %v17932_v16  ;;  %v17934_v49 = vld [vmem:[#allocation53_spill] sm:$0xff]  ;;  %v17938_v2 = vld [vmem:[#allocation63_spill] sm:$0xff] }
 0x64a   : > { %v14995_v51 = vmul.f32 %v17929_v60, %v17934_v49  ;;  %17937 = vst [vmem:[#allocation49_spill] sm:$0xff] %v14999_v61  ;;  %v15003_v7 = vmul.f32 %v17929_v60, %v17938_v2  ;;  %v17940_v37 = vld [vmem:[#allocation92_spill] sm:$0xff]  ;;  %v17942_v16 = vld [vmem:[#allocation94_spill] sm:$0xff] }
 0x64b   : > { %17933 = vst [vmem:[#allocation89_spill] sm:$0xff] %v14991_v29  ;;  %v15007_v28 = vmul.f32 %v17929_v60, %v17940_v37  ;;  %v15011_v21 = vmul.f32 %v17929_v60, %v17942_v16  ;;  %v17944_v49 = vld [vmem:[#allocation56_spill] sm:$0xff] }
 0x64c   : > { %17935 = vst [vmem:[#allocation48_spill] sm:$0xff] %v14995_v51  ;;  %17939 = vst [vmem:[#allocation58_spill] sm:$0xff] %v15003_v7  ;;  %v15015_v51 = vmul.f32 %v17929_v60, %v17944_v49  ;;  %v17947_v61 = vld [vmem:[#allocation112_spill] sm:$0xff] }
 0x64d   : > { %17941 = vst [vmem:[#allocation59_spill] sm:$0xff] %v15007_v28  ;;  %17943 = vst [vmem:[#allocation91_spill] sm:$0xff] %v15011_v21  ;;  %v17951_v7 = vld [vmem:[#allocation68_spill] sm:$0xff]  ;;  %v17952_v28 = vld [vmem:[#allocation65_spill] sm:$0xff] }
 0x64e   : > { %v11154_v4 = vpop.eup %11153  ;;  %17945 = vst [vmem:[#allocation93_spill] sm:$0xff] %v15015_v51  ;;  %v15027_v37 = vmul.f32 %v14686_v36, %v17951_v7  ;;  %v15031_v16 = vmul.f32 %v14686_v36, %v17952_v28  ;;  %v17953_v21 = vld [vmem:[#allocation75_spill] sm:$0xff]  ;;  %v17955_v49 = vld [vmem:[#allocation72_spill] sm:$0xff]  ;;  %v17961_v51 = vld [vmem:[#allocation34_spill] sm:$0xff] }
 0x64f   : > { %v5627_v12 = vmul.f32 %v11154_v4, %v5608_v34  ;;  %v17948_v34 = vld [vmem:[#allocation113_spill] sm:$0xff]  ;;  %v17950_v4 = vld [vmem:[#allocation79_spill] sm:$0xff]  ;;  %v15035_v60 = vmul.f32 %v14686_v36, %v17953_v21  ;;  %v15051_v28 = vmul.f32 %v14686_v36, %v17961_v51  ;;  %v17968_v51 = vld [vmem:[#allocation74_spill] sm:$0xff] }
 0x650   : > { %v11156_v32 = vpop.eup %11155  ;;  %v15023_v2 = vmul.f32 %v14686_v36, %v17950_v4  ;;  %v17959_v4 = vld [vmem:[#allocation41_spill] sm:$0xff] }
 0x651   : > { %v5628_v26 = vmul.f32 %v11156_v32, %v5612_v30  ;;  %v17949_v32 = vcombine.low %v17947_v61, %v17948_v34  ;;  %17954 = vst [vmem:[#allocation95_spill] sm:$0xff] %v15035_v60  ;;  %v15039_v61 = vmul.f32 %v14686_v36, %v17955_v49  ;;  %v17957_v34 = vld [vmem:[#allocation73_spill] sm:$0xff]  ;;  %v15047_v7 = vmul.f32 %v14686_v36, %v17959_v4  ;;  %v17963_v49 = vld [vmem:[#allocation100_spill] sm:$0xff] }
 0x652   : > { %17962 = vst [vmem:[#allocation90_spill] sm:$0xff] %v15051_v28  ;;  %v5636_v9 = vmul.f32 %v5627_v12, %v14833_v6  ;;  %v5724_v21 = vrot.slane %v5627_v12, %v17795_v11  ;;  %v17967_v4 = vld [vmem:[#allocation64_spill] sm:$0xff]  ;;  %v15070_v28 = vmul.f32 %v14736_v42, %v17968_v51  ;;  %v17969_v6 = vld [vmem:[#allocation69_spill] sm:$0xff] }
 0x653   : > { %v5686_v30 = vrot.slane %v17949_v32, %v17946_v57  ;;  %17956 = vst [vmem:[#allocation88_spill] sm:$0xff] %v15039_v61  ;;  %v15043_v32 = vmul.f32 %v14686_v36, %v17957_v34  ;;  %17960 = vst [vmem:[#allocation55_spill] sm:$0xff] %v15047_v7  ;;  %v5637_v60 = vmul.f32 %v5628_v26, %v14837_v50  ;;  %v17965_v34 = vld [vmem:[#allocation102_spill] sm:$0xff]  ;;  %v17970_v50 = vld [vmem:[#allocation76_spill] sm:$0xff] }
 0x654   : > { %v15058_v61 = vmul.f32 %v14686_v36, %v17963_v49  ;;  %v15066_v7 = vmul.f32 %v14736_v42, %v17967_v4  ;;  %v15074_v12 = vmul.f32 %v14736_v42, %v17969_v6  ;;  %v15078_v49 = vmul.f32 %v14736_v42, %v17970_v50  ;;  %v17975_v51 = vld [vmem:[#allocation37_spill] sm:$0xff]  ;;  %v17977_v6 = vld [vmem:[#allocation38_spill] sm:$0xff]  ;;  %v17979_v50 = vld [vmem:[#allocation99_spill] sm:$0xff] }
 0x655   : > { %17958 = vst [vmem:[#allocation111_spill] sm:$0xff] %v15043_v32  ;;  %v15062_v32 = vmul.f32 %v14686_v36, %v17965_v34  ;;  %v5649_v34 = vcombine.low %v5636_v9, %v5637_v60  ;;  %v17974_v4 = vcombine.low %v14683_v20, %v14728_v39  ;;  %v15090_v29 = vmul.f32 %v14736_v42, %v17975_v51  ;;  %v17983_v60 = vld [vmem:[#allocation104_spill] sm:$0xff]  ;;  %v17984_v39 = vld [vmem:[#allocation122_spill] sm:$0xff] }
 0x656   : > { %17964 = vst [vmem:[#allocation52_spill] sm:$0xff] %v15058_v61  ;;  %17971 = vst [vmem:[#allocation62_spill] sm:$0xff] %v15078_v49  ;;  %v17972_v61 = vld [vmem:[#allocation77_spill] sm:$0xff]  ;;  %v15094_v62 = vmul.f32 %v14736_v42, %v17977_v6  ;;  %v15098_v49 = vmul.f32 %v14736_v42, %v17979_v50  ;;  %v15106_v20 = vmul.f32 %v14736_v42, %v17983_v60  ;;  %v17986_v6 = vld [vmem:[#allocation123_spill] sm:$0xff] }
 0x657   : > { %17966 = vst [vmem:[#allocation53_spill] sm:$0xff] %v15062_v32  ;;  %v15082_v36 = vmul.f32 %v14736_v42, %v17972_v61  ;;  %v5670_v32 = vrot.slane %v17974_v4, %v17946_v57  ;;  %17976 = vst [vmem:[#allocation92_spill] sm:$0xff] %v15090_v29  ;;  %v17981_v61 = vld [vmem:[#allocation101_spill] sm:$0xff]  ;;  %v5735_v4 = vmul.f32 %v5724_v21, %v17984_v39  ;;  %v17985_v29 = vld [vmem:[#allocation120_spill] sm:$0xff] }
 0x658   : > { %17978 = vst [vmem:[#allocation94_spill] sm:$0xff] %v15094_v62  ;;  %17980 = vst [vmem:[#allocation56_spill] sm:$0xff] %v15098_v49  ;;  %v15102_v9 = vmul.f32 %v14736_v42, %v17981_v61  ;;  %v5677_v51 = vrot.slane %v5649_v34, %v17946_v57  ;;  %v15112_v62 = vmul.f32 %v5724_v21, %v17986_v6  ;;  %v17987_v61 = vld [vmem:[#allocation127_spill] sm:$0xff] }
 0x659   : > { %17973 = vst [vmem:[#allocation63_spill] sm:$0xff] %v15082_v36  ;;  %v5743_v36 = vmul.f32 %v5724_v21, %v17985_v29  ;;  %v15115_v50 = vmul.f32 %v5724_v21, %v14615_v38  ;;  %v5728_v49 = vrot.slane %v5628_v26, %v17795_v11  ;;  %v15122_v42 = vmul.f32 %v5724_v21, %v17988_v27 }
 0x65a   : > { %17982 = vst [vmem:[#allocation36_spill] sm:$0xff] %v15102_v9  ;;  %v15119_v9 = vmul.f32 %v5724_v21, %v17987_v61  ;;  %v15125_v60 = vmul.f32 %v5724_v21, %v14657_v3  ;;  %v5679_v34 = vcombine.low %v5670_v32, %v5677_v51  ;;  %v15128_v29 = vmul.f32 %v5724_v21, %v14678_v13  ;;  %v5629_v32 = vld [vmem:[#allocation19] sm:$0xff] }
 0x65b   : > { %v15131_v39 = vmul.f32 %v5724_v21, %v14690_v48  ;;  %v15134_v38 = vmul.f32 %v5724_v21, %v14707_v22  ;;  %v15137_v26 = vmul.f32 %v5724_v21, %v14746_v40  ;;  %v15140_v6 = vmul.f32 %v5724_v21, %v14750_v41  ;;  %v17994_v40 = vld [vmem:[#allocation124_spill] sm:$0xff]  ;;  %v17995_v61 = vld [vmem:[#allocation121_spill] sm:$0xff] }
 0x65c   : > { %v15143_v27 = vmul.f32 %v5724_v21, %v14788_v10  ;;  %v15146_v3 = vmul.f32 %v5724_v21, %v14793_v58  ;;  %v5693_v13 = vrot.slane %v5679_v34, %v17946_v57  ;;  %v15150_v48 = vmul.f32 %v5724_v21, %v14808_v18  ;;  %v17998_v58 = vld [vmem:[#allocation33_spill] sm:$0xff] }
 0x65d   : > { %17989 = vst [vmem:[#allocation112_spill] sm:$0xff] %v15134_v38  ;;  %17990 = vst [vmem:[#allocation113_spill] sm:$0xff] %v15137_v26  ;;  %v15153_v22 = vmul.f32 %v5724_v21, %v14820_v35  ;;  %v5736_v51 = vmul.f32 %v5728_v49, %v17994_v40  ;;  %v5744_v41 = vmul.f32 %v5728_v49, %v17995_v61  ;;  %v17996_v26 = vld [vmem:[#allocation125_spill] sm:$0xff]  ;;  %v18005_v61 = vsub.s32 7, %v17860_v63 }
 0x65e   : > { %17991 = vst [vmem:[#allocation79_spill] sm:$0xff] %v15140_v6  ;;  %17992 = vst [vmem:[#allocation68_spill] sm:$0xff] %v15143_v27  ;;  %v5694_v6 = vcombine.low %v5686_v30, %v5693_v13  ;;  %v5752_v10 = vmul.f32 %v5728_v49, %v17996_v26  ;;  %v17997_v27 = vld [vmem:[#allocation126_spill] sm:$0xff]  ;;  %v15161_v57 = vmul.f32 %v5728_v49, %v14648_v15 }
 0x65f   : > { %17993 = vst [vmem:[#allocation65_spill] sm:$0xff] %v15146_v3  ;;  %v5760_v38 = vmul.f32 %v5728_v49, %v17997_v27  ;;  %v5768_v3 = vmul.f32 %v5728_v49, %v17998_v58  ;;  %v15164_v18 = vmul.f32 %v5728_v49, %v14661_v44  ;;  %v15167_v35 = vmul.f32 %v5728_v49, %v14680_v43 }
 0x660   : > { %v15170_v21 = vmul.f32 %v5728_v49, %v14692_v59  ;;  %v5696_v34 = vsub.f32 %v5629_v32, %v5694_v6  ;;  %v15173_v30 = vmul.f32 %v5728_v49, %v14709_v54  ;;  %v15176_v26 = vmul.f32 %v5728_v49, %v14748_v17  ;;  %v17999_v17 = vld [vmem:[#allocation35_spill] sm:$0xff] }
 0x661   : > { %v15179_v27 = vmul.f32 %v5728_v49, %v14786_v55  ;;  %v15182_v15 = vmul.f32 %v5728_v49, %v14790_v33  ;;  %v15185_v44 = vmul.f32 %v5728_v49, %v14804_v24  ;;  %v15188_v43 = vmul.f32 %v5728_v49, %v14816_v25  ;;  %v18000_v55 = vld [vmem:[#allocation80_spill] sm:$0xff]  ;;  %v18001_v33 = vld [vmem:[#allocation81_spill] sm:$0xff] }
 0x662   : > { %v15191_v59 = vmul.f32 %v5728_v49, %v14828_v8  ;;  %v15194_v54 = vrot.slane %v5696_v34, %v17795_v11  ;;  %v15197_v6 = vrot.slane %v5696_v34, %v17999_v17  ;;  %v15200_v13 = vrot.slane %v5696_v34, %v18000_v55 }
 0x663   : > { %v15203_v32 = vrot.slane %v5696_v34, %v18001_v33  ;;  %v18002_v24 = vsub.s32 4, %v17860_v63  ;;  %v18003_v25 = vsub.s32 5, %v17860_v63  ;;  %v18004_v11 = vsub.s32 6, %v17860_v63 }
 0x664   : > { %v15219_v58 = vrot.slane %v5696_v34, %v18005_v61  ;;  %v15223_v17 = vadd.f32 %v15194_v54, %v14843_v5  ;;  %v15227_v55 = vadd.f32 %v15197_v6, %v14885_v1  ;;  %v15231_v33 = vadd.f32 %v15200_v13, %v14933_v23 }
 0x665   : > { %v15207_v40 = vrot.slane %v5696_v34, %v18002_v24  ;;  %v15211_v8 = vrot.slane %v5696_v34, %v18003_v25  ;;  %v15215_v49 = vrot.slane %v5696_v34, %v18004_v11  ;;  %v15235_v24 = vadd.f32 %v15203_v32, %v14979_v47 }
 0x666   : > { %v15249_v1 = vadd.f32 %v15219_v58, %v5736_v51  ;;  %v15253_v23 = vadd.f32 %v15194_v54, %v14847_v19  ;;  %v15257_v47 = vadd.f32 %v15197_v6, %v14889_v14  ;;  %v15279_v14 = vadd.f32 %v15219_v58, %v5744_v41 }
 0x667   : > { %v15239_v63 = vadd.f32 %v15207_v40, %v15023_v2  ;;  %v15243_v5 = vadd.f32 %v15211_v8, %v15066_v7  ;;  %v15246_v34 = vadd.f32 %v15215_v49, %v5735_v4  ;;  %v15261_v2 = vadd.f32 %v15200_v13, %v14937_v52 }
 0x668   : > { %v15265_v7 = vadd.f32 %v15203_v32, %v14983_v46  ;;  %v15269_v4 = vadd.f32 %v15207_v40, %v15027_v37  ;;  %v15273_v19 = vadd.f32 %v15211_v8, %v15070_v28  ;;  %v15276_v51 = vadd.f32 %v15215_v49, %v5743_v36 }
 0x669   : > { %v15283_v52 = vadd.f32 %v15194_v54, %v14851_v45  ;;  %v15287_v46 = vadd.f32 %v15197_v6, %v14893_v31  ;;  %v15291_v37 = vadd.f32 %v15200_v13, %v14947_v53  ;;  %v15295_v28 = vadd.f32 %v15203_v32, %v14987_v0  ;;  %v18013_v0 = vld [vmem:[#allocation39_spill] sm:$0xff] }
 0x66a   : > { %v15299_v36 = vadd.f32 %v15207_v40, %v15031_v16  ;;  %v15303_v45 = vadd.f32 %v15211_v8, %v15074_v12  ;;  %v15307_v31 = vadd.f32 %v15215_v49, %v15112_v62  ;;  %v15310_v41 = vadd.f32 %v15219_v58, %v5752_v10  ;;  %v18015_v16 = vld [vmem:[#allocation46_spill] sm:$0xff]  ;;  %v18017_v12 = vld [vmem:[#allocation89_spill] sm:$0xff]  ;;  %v18019_v62 = vld [vmem:[#allocation95_spill] sm:$0xff] }
 0x66b   : > { %18006 = vst [vmem:[#allocation75_spill] sm:$0xff] %v15283_v52  ;;  %18007 = vst [vmem:[#allocation72_spill] sm:$0xff] %v15287_v46  ;;  %v15314_v53 = vadd.f32 %v15194_v54, %v14855_v56  ;;  %v15318_v25 = vadd.f32 %v15197_v6, %v18013_v0  ;;  %v15322_v11 = vadd.f32 %v15200_v13, %v18015_v16  ;;  %v18024_v16 = vld [vmem:[#allocation141_spill] sm:$0xff] }
 0x66c   : > { %18008 = vst [vmem:[#allocation73_spill] sm:$0xff] %v15291_v37  ;;  %18009 = vst [vmem:[#allocation41_spill] sm:$0xff] %v15299_v36  ;;  %v15326_v61 = vadd.f32 %v15203_v32, %v18017_v12  ;;  %v15330_v10 = vadd.f32 %v15207_v40, %v18019_v62  ;;  %v15338_v0 = vadd.f32 %v15215_v49, %v15115_v50  ;;  %v18026_v12 = vld [vmem:[#allocation71_spill] sm:$0xff]  ;;  %v18028_v62 = vld [vmem:[#allocation86_spill] sm:$0xff] }
 0x66d   : > { %18010 = vst [vmem:[#allocation34_spill] sm:$0xff] %v15307_v31  ;;  %18011 = vst [vmem:[#allocation100_spill] sm:$0xff] %v15310_v41  ;;  %v18021_v41 = vld [vmem:[#allocation62_spill] sm:$0xff]  ;;  %v18032_v50 = vld [vmem:[#allocation88_spill] sm:$0xff] }
 0x66e   : > { %18012 = vst [vmem:[#allocation102_spill] sm:$0xff] %v15314_v53  ;;  %18014 = vst [vmem:[#allocation64_spill] sm:$0xff] %v15318_v25  ;;  %v15334_v56 = vadd.f32 %v15211_v8, %v18021_v41  ;;  %v15341_v25 = vadd.f32 %v15219_v58, %v5760_v38  ;;  %v18030_v41 = vld [vmem:[#allocation48_spill] sm:$0xff]  ;;  %v15361_v38 = vadd.f32 %v15207_v40, %v18032_v50  ;;  %v18041_v50 = vld [vmem:[#allocation50_spill] sm:$0xff] }
 0x66f   : > { %18016 = vst [vmem:[#allocation74_spill] sm:$0xff] %v15322_v11  ;;  %18018 = vst [vmem:[#allocation69_spill] sm:$0xff] %v15326_v61  ;;  %v15345_v11 = vadd.f32 %v15194_v54, %v18024_v16  ;;  %v15349_v61 = vadd.f32 %v15197_v6, %v18026_v12  ;;  %v15369_v12 = vadd.f32 %v15215_v49, %v15119_v9  ;;  %v18045_v9 = vld [vmem:[#allocation111_spill] sm:$0xff] }
 0x670   : > { %18020 = vst [vmem:[#allocation76_spill] sm:$0xff] %v15330_v10  ;;  %18022 = vst [vmem:[#allocation77_spill] sm:$0xff] %v15334_v56  ;;  %v15353_v10 = vadd.f32 %v15200_v13, %v18028_v62  ;;  %v15357_v56 = vadd.f32 %v15203_v32, %v18030_v41  ;;  %v18037_v62 = vld [vmem:[#allocation142_spill] sm:$0xff]  ;;  %v18039_v41 = vld [vmem:[#allocation40_spill] sm:$0xff] }
 0x671   : > { %18023 = vst [vmem:[#allocation37_spill] sm:$0xff] %v15341_v25  ;;  %18025 = vst [vmem:[#allocation38_spill] sm:$0xff] %v15345_v11  ;;  %v18034_v25 = vld [vmem:[#allocation63_spill] sm:$0xff] }
 0x672   : > { %18027 = vst [vmem:[#allocation99_spill] sm:$0xff] %v15349_v61  ;;  %18029 = vst [vmem:[#allocation101_spill] sm:$0xff] %v15353_v10  ;;  %v15365_v16 = vadd.f32 %v15211_v8, %v18034_v25  ;;  %v15372_v61 = vadd.f32 %v15219_v58, %v5768_v3  ;;  %v15376_v10 = vadd.f32 %v15194_v54, %v18037_v62  ;;  %v18043_v25 = vld [vmem:[#allocation49_spill] sm:$0xff] }
 0x673   : > { %18031 = vst [vmem:[#allocation104_spill] sm:$0xff] %v15357_v56  ;;  %18033 = vst [vmem:[#allocation122_spill] sm:$0xff] %v15361_v38  ;;  %v15380_v56 = vadd.f32 %v15197_v6, %v18039_v41  ;;  %v15384_v38 = vadd.f32 %v15200_v13, %v18041_v50  ;;  %v15392_v3 = vadd.f32 %v15207_v40, %v18045_v9 }
 0x674   : > { %18035 = vst [vmem:[#allocation120_spill] sm:$0xff] %v15365_v16  ;;  %18036 = vst [vmem:[#allocation123_spill] sm:$0xff] %v15372_v61  ;;  %v15388_v16 = vadd.f32 %v15203_v32, %v18043_v25  ;;  %v18047_v61 = vld [vmem:[#allocation92_spill] sm:$0xff]  ;;  %v15400_v41 = vadd.f32 %v15215_v49, %v15122_v42  ;;  %v15404_v50 = vadd.f32 %v15219_v58, %v15161_v57 }
 0x675   : > { %18038 = vst [vmem:[#allocation127_spill] sm:$0xff] %v15376_v10  ;;  %18040 = vst [vmem:[#allocation128_spill] sm:$0xff] %v15380_v56  ;;  %v15396_v62 = vadd.f32 %v15211_v8, %v18047_v61 }
 0x676   : > { %18042 = vst [vmem:[#allocation124_spill] sm:$0xff] %v15384_v38  ;;  %18044 = vst [vmem:[#allocation121_spill] sm:$0xff] %v15388_v16  ;;  %v18051_v38 = vld [vmem:[#allocation143_spill] sm:$0xff]  ;;  %v18053_v16 = vld [vmem:[#allocation44_spill] sm:$0xff] }
 0x677   : > { %18046 = vst [vmem:[#allocation125_spill] sm:$0xff] %v15392_v3  ;;  %18048 = vst [vmem:[#allocation126_spill] sm:$0xff] %v15396_v62  ;;  %v15408_v25 = vadd.f32 %v15194_v54, %v18051_v38  ;;  %v15412_v9 = vadd.f32 %v15197_v6, %v18053_v16  ;;  %v18055_v3 = vld [vmem:[#allocation54_spill] sm:$0xff]  ;;  %v15432_v16 = vadd.f32 %v15215_v49, %v15125_v60  ;;  %v18189_v52 = vld [vmem:[#allocation69_spill] sm:$0xff] }
 0x678   : > { %18049 = vst [vmem:[#allocation33_spill] sm:$0xff] %v15400_v41  ;;  %18050 = vst [vmem:[#allocation35_spill] sm:$0xff] %v15404_v50  ;;  %v15416_v61 = vadd.f32 %v15200_v13, %v18055_v3  ;;  %v18057_v62 = vld [vmem:[#allocation58_spill] sm:$0xff]  ;;  %v18059_v41 = vld [vmem:[#allocation55_spill] sm:$0xff]  ;;  %v15436_v3 = vadd.f32 %v15219_v58, %v15164_v18 }
 0x679   : > { %18052 = vst [vmem:[#allocation80_spill] sm:$0xff] %v15408_v25  ;;  %18054 = vst [vmem:[#allocation81_spill] sm:$0xff] %v15412_v9  ;;  %v15420_v42 = vadd.f32 %v15203_v32, %v18057_v62  ;;  %v15424_v57 = vadd.f32 %v15207_v40, %v18059_v41  ;;  %v18061_v50 = vld [vmem:[#allocation94_spill] sm:$0xff]  ;;  %v18191_v37 = vld [vmem:[#allocation77_spill] sm:$0xff] }
 0x67a   : > { %18056 = vst [vmem:[#allocation39_spill] sm:$0xff] %v15416_v61  ;;  %v15428_v38 = vadd.f32 %v15211_v8, %v18061_v50  ;;  %18063 = vst [vmem:[#allocation62_spill] sm:$0xff] %v15432_v16  ;;  %v18065_v61 = vld [vmem:[#allocation84_spill] sm:$0xff]  ;;  %v18073_v16 = vld [vmem:[#allocation90_spill] sm:$0xff] }
 0x67b   : > { %18058 = vst [vmem:[#allocation46_spill] sm:$0xff] %v15420_v42  ;;  %18060 = vst [vmem:[#allocation89_spill] sm:$0xff] %v15424_v57  ;;  %v15440_v62 = vadd.f32 %v15194_v54, %v18065_v61  ;;  %v18067_v42 = vld [vmem:[#allocation82_spill] sm:$0xff]  ;;  %v18069_v57 = vld [vmem:[#allocation87_spill] sm:$0xff]  ;;  %v15456_v18 = vadd.f32 %v15207_v40, %v18073_v16 }
 0x67c   : > { %18062 = vst [vmem:[#allocation95_spill] sm:$0xff] %v15428_v38  ;;  %18064 = vst [vmem:[#allocation141_spill] sm:$0xff] %v15436_v3  ;;  %v15444_v41 = vadd.f32 %v15197_v6, %v18067_v42  ;;  %v15448_v50 = vadd.f32 %v15200_v13, %v18069_v57  ;;  %v18071_v38 = vld [vmem:[#allocation59_spill] sm:$0xff]  ;;  %v18075_v3 = vld [vmem:[#allocation56_spill] sm:$0xff]  ;;  %v15464_v42 = vadd.f32 %v15215_v49, %v15128_v29 }
 0x67d   : > { %18066 = vst [vmem:[#allocation71_spill] sm:$0xff] %v15440_v62  ;;  %v15452_v60 = vadd.f32 %v15203_v32, %v18071_v38  ;;  %18074 = vst [vmem:[#allocation63_spill] sm:$0xff] %v15456_v18  ;;  %v15460_v61 = vadd.f32 %v15211_v8, %v18075_v3  ;;  %v15468_v57 = vadd.f32 %v15219_v58, %v15167_v35  ;;  %v18083_v18 = vld [vmem:[#allocation103_spill] sm:$0xff] }
 0x67e   : > { %18068 = vst [vmem:[#allocation86_spill] sm:$0xff] %v15444_v41  ;;  %18070 = vst [vmem:[#allocation48_spill] sm:$0xff] %v15448_v50  ;;  %v18079_v50 = vld [vmem:[#allocation43_spill] sm:$0xff]  ;;  %v15480_v3 = vadd.f32 %v15200_v13, %v18083_v18  ;;  %v15500_v18 = vadd.f32 %v15219_v58, %v15170_v21 }
 0x67f   : > { %18072 = vst [vmem:[#allocation88_spill] sm:$0xff] %v15452_v60  ;;  %18076 = vst [vmem:[#allocation142_spill] sm:$0xff] %v15460_v61  ;;  %v15472_v38 = vadd.f32 %v15194_v54, %v18079_v50  ;;  %v18081_v60 = vld [vmem:[#allocation47_spill] sm:$0xff]  ;;  %v18203_v53 = vld [vmem:[#allocation33_spill] sm:$0xff] }
 0x680   : > { %18077 = vst [vmem:[#allocation40_spill] sm:$0xff] %v15464_v42  ;;  %18078 = vst [vmem:[#allocation50_spill] sm:$0xff] %v15468_v57  ;;  %v15476_v16 = vadd.f32 %v15197_v6, %v18081_v60  ;;  %v18085_v61 = vld [vmem:[#allocation91_spill] sm:$0xff]  ;;  %v18087_v42 = vld [vmem:[#allocation52_spill] sm:$0xff]  ;;  %v15496_v60 = vadd.f32 %v15215_v49, %v15131_v39 }
 0x681   : > { %18080 = vst [vmem:[#allocation49_spill] sm:$0xff] %v15472_v38  ;;  %18084 = vst [vmem:[#allocation92_spill] sm:$0xff] %v15480_v3  ;;  %v15484_v29 = vadd.f32 %v15203_v32, %v18085_v61  ;;  %v15488_v35 = vadd.f32 %v15207_v40, %v18087_v42  ;;  %v18089_v57 = vld [vmem:[#allocation36_spill] sm:$0xff]  ;;  %v18093_v3 = vld [vmem:[#allocation85_spill] sm:$0xff] }
 0x682   : > { %18082 = vst [vmem:[#allocation111_spill] sm:$0xff] %v15476_v16  ;;  %v15492_v50 = vadd.f32 %v15211_v8, %v18089_v57  ;;  %18091 = vst [vmem:[#allocation58_spill] sm:$0xff] %v15496_v60  ;;  %v15504_v61 = vadd.f32 %v15194_v54, %v18093_v3  ;;  %v18101_v60 = vld [vmem:[#allocation53_spill] sm:$0xff]  ;;  %v15524_v3 = vadd.f32 %v15211_v8, %v15106_v20  ;;  %v18209_v11 = vld [vmem:[#allocation62_spill] sm:$0xff] }
 0x683   : > { %18086 = vst [vmem:[#allocation143_spill] sm:$0xff] %v15484_v29  ;;  %18088 = vst [vmem:[#allocation44_spill] sm:$0xff] %v15488_v35  ;;  %v18095_v29 = vld [vmem:[#allocation42_spill] sm:$0xff]  ;;  %v18097_v35 = vld [vmem:[#allocation51_spill] sm:$0xff]  ;;  %v15520_v21 = vadd.f32 %v15207_v40, %v18101_v60 }
 0x684   : > { %18090 = vst [vmem:[#allocation54_spill] sm:$0xff] %v15492_v50  ;;  %18092 = vst [vmem:[#allocation55_spill] sm:$0xff] %v15500_v18  ;;  %v15508_v42 = vadd.f32 %v15197_v6, %v18095_v29  ;;  %v15512_v57 = vadd.f32 %v15200_v13, %v18097_v35  ;;  %v18099_v50 = vld [vmem:[#allocation93_spill] sm:$0xff]  ;;  %v15532_v35 = vadd.f32 %v15219_v58, %v15173_v30  ;;  %v18208_v36 = vld [vmem:[#allocation95_spill] sm:$0xff] }
 0x685   : > { %18094 = vst [vmem:[#allocation94_spill] sm:$0xff] %v15504_v61  ;;  %v15516_v39 = vadd.f32 %v15203_v32, %v18099_v50  ;;  %18102 = vst [vmem:[#allocation59_spill] sm:$0xff] %v15520_v21  ;;  %v18104_v61 = vld [vmem:[#allocation112_spill] sm:$0xff]  ;;  %v18111_v21 = vld [vmem:[#allocation105_spill] sm:$0xff] }
 0x686   : > { %18096 = vst [vmem:[#allocation84_spill] sm:$0xff] %v15508_v42  ;;  %18098 = vst [vmem:[#allocation82_spill] sm:$0xff] %v15512_v57  ;;  %v15528_v29 = vadd.f32 %v15215_v49, %v18104_v61  ;;  %v18107_v57 = vld [vmem:[#allocation60_spill] sm:$0xff]  ;;  %v15544_v20 = vadd.f32 %v15200_v13, %v18111_v21  ;;  %v15564_v21 = vadd.f32 %v15219_v58, %v15176_v26  ;;  %v18213_v9 = vld [vmem:[#allocation63_spill] sm:$0xff] }
 0x687   : > { %18100 = vst [vmem:[#allocation87_spill] sm:$0xff] %v15516_v39  ;;  %18103 = vst [vmem:[#allocation90_spill] sm:$0xff] %v15524_v3  ;;  %v15536_v50 = vadd.f32 %v15194_v54, %v18107_v57  ;;  %v18109_v39 = vld [vmem:[#allocation83_spill] sm:$0xff]  ;;  %v18113_v3 = vld [vmem:[#allocation114_spill] sm:$0xff] }
 0x688   : > { %18105 = vst [vmem:[#allocation56_spill] sm:$0xff] %v15528_v29  ;;  %18106 = vst [vmem:[#allocation43_spill] sm:$0xff] %v15532_v35  ;;  %v15540_v60 = vadd.f32 %v15197_v6, %v18109_v39  ;;  %v15548_v61 = vadd.f32 %v15203_v32, %v18113_v3  ;;  %v18115_v29 = vld [vmem:[#allocation129_spill] sm:$0xff]  ;;  %v18117_v35 = vld [vmem:[#allocation135_spill] sm:$0xff] }
 0x689   : > { %18108 = vst [vmem:[#allocation47_spill] sm:$0xff] %v15536_v50  ;;  %18112 = vst [vmem:[#allocation91_spill] sm:$0xff] %v15544_v20  ;;  %v15552_v30 = vadd.f32 %v15207_v40, %v18115_v29  ;;  %v15556_v57 = vadd.f32 %v15211_v8, %v18117_v35  ;;  %v18119_v50 = vld [vmem:[#allocation113_spill] sm:$0xff]  ;;  %v18122_v20 = vld [vmem:[#allocation66_spill] sm:$0xff] }
 0x68a   : > { %18110 = vst [vmem:[#allocation103_spill] sm:$0xff] %v15540_v60  ;;  %18114 = vst [vmem:[#allocation52_spill] sm:$0xff] %v15548_v61  ;;  %v15560_v39 = vadd.f32 %v15215_v49, %v18119_v50  ;;  %v15568_v3 = vadd.f32 %v15194_v54, %v18122_v20  ;;  %v18124_v61 = vld [vmem:[#allocation45_spill] sm:$0xff]  ;;  %v18215_v10 = vld [vmem:[#allocation40_spill] sm:$0xff] }
 0x68b   : > { %18116 = vst [vmem:[#allocation36_spill] sm:$0xff] %v15552_v30  ;;  %18118 = vst [vmem:[#allocation85_spill] sm:$0xff] %v15556_v57  ;;  %v15572_v29 = vadd.f32 %v15197_v6, %v18124_v61  ;;  %v18126_v30 = vld [vmem:[#allocation106_spill] sm:$0xff]  ;;  %v18128_v57 = vld [vmem:[#allocation115_spill] sm:$0xff] }
 0x68c   : > { %18120 = vst [vmem:[#allocation42_spill] sm:$0xff] %v15560_v39  ;;  %18121 = vst [vmem:[#allocation51_spill] sm:$0xff] %v15564_v21  ;;  %v15576_v35 = vadd.f32 %v15200_v13, %v18126_v30  ;;  %v15580_v50 = vadd.f32 %v15203_v32, %v18128_v57  ;;  %v18130_v39 = vld [vmem:[#allocation130_spill] sm:$0xff]  ;;  %v18132_v21 = vld [vmem:[#allocation136_spill] sm:$0xff]  ;;  %v15596_v30 = vadd.f32 %v15219_v58, %v15179_v27 }
 0x68d   : > { %18123 = vst [vmem:[#allocation93_spill] sm:$0xff] %v15568_v3  ;;  %18125 = vst [vmem:[#allocation53_spill] sm:$0xff] %v15572_v29  ;;  %v15584_v26 = vadd.f32 %v15207_v40, %v18130_v39  ;;  %v15588_v20 = vadd.f32 %v15211_v8, %v18132_v21  ;;  %v18134_v3 = vld [vmem:[#allocation79_spill] sm:$0xff]  ;;  %v18221_v25 = vld [vmem:[#allocation58_spill] sm:$0xff] }
 0x68e   : > { %18127 = vst [vmem:[#allocation112_spill] sm:$0xff] %v15576_v35  ;;  %18129 = vst [vmem:[#allocation60_spill] sm:$0xff] %v15580_v50  ;;  %v15592_v61 = vadd.f32 %v15215_v49, %v18134_v3  ;;  %v18137_v35 = vld [vmem:[#allocation70_spill] sm:$0xff]  ;;  %v18139_v50 = vld [vmem:[#allocation96_spill] sm:$0xff] }
 0x68f   : > { %18131 = vst [vmem:[#allocation83_spill] sm:$0xff] %v15584_v26  ;;  %18133 = vst [vmem:[#allocation105_spill] sm:$0xff] %v15588_v20  ;;  %v15600_v57 = vadd.f32 %v15194_v54, %v18137_v35  ;;  %v15604_v39 = vadd.f32 %v15197_v6, %v18139_v50  ;;  %v18141_v26 = vld [vmem:[#allocation107_spill] sm:$0xff]  ;;  %v18143_v20 = vld [vmem:[#allocation116_spill] sm:$0xff] }
 0x690   : > { %18135 = vst [vmem:[#allocation114_spill] sm:$0xff] %v15592_v61  ;;  %18136 = vst [vmem:[#allocation129_spill] sm:$0xff] %v15596_v30  ;;  %v15608_v21 = vadd.f32 %v15200_v13, %v18141_v26  ;;  %v15612_v3 = vadd.f32 %v15203_v32, %v18143_v20  ;;  %v18145_v61 = vld [vmem:[#allocation131_spill] sm:$0xff]  ;;  %v18147_v30 = vld [vmem:[#allocation137_spill] sm:$0xff]  ;;  %v15628_v26 = vadd.f32 %v15219_v58, %v15182_v15 }
 0x691   : > { %18138 = vst [vmem:[#allocation135_spill] sm:$0xff] %v15600_v57  ;;  %18140 = vst [vmem:[#allocation113_spill] sm:$0xff] %v15604_v39  ;;  %v15616_v27 = vadd.f32 %v15207_v40, %v18145_v61  ;;  %v15620_v35 = vadd.f32 %v15211_v8, %v18147_v30  ;;  %v18149_v57 = vld [vmem:[#allocation68_spill] sm:$0xff] }
 0x692   : > { %18142 = vst [vmem:[#allocation66_spill] sm:$0xff] %v15608_v21  ;;  %18144 = vst [vmem:[#allocation45_spill] sm:$0xff] %v15612_v3  ;;  %v15624_v50 = vadd.f32 %v15215_v49, %v18149_v57  ;;  %v18152_v21 = vld [vmem:[#allocation57_spill] sm:$0xff]  ;;  %v18227_v62 = vld [vmem:[#allocation56_spill] sm:$0xff] }
 0x693   : > { %18146 = vst [vmem:[#allocation106_spill] sm:$0xff] %v15616_v27  ;;  %18148 = vst [vmem:[#allocation115_spill] sm:$0xff] %v15620_v35  ;;  %v15632_v20 = vadd.f32 %v15194_v54, %v18152_v21  ;;  %v18154_v3 = vld [vmem:[#allocation97_spill] sm:$0xff]  ;;  %v18156_v27 = vld [vmem:[#allocation108_spill] sm:$0xff] }
 0x694   : > { %18150 = vst [vmem:[#allocation130_spill] sm:$0xff] %v15624_v50  ;;  %18151 = vst [vmem:[#allocation136_spill] sm:$0xff] %v15628_v26  ;;  %v15636_v61 = vadd.f32 %v15197_v6, %v18154_v3  ;;  %v15640_v30 = vadd.f32 %v15200_v13, %v18156_v27  ;;  %v18158_v35 = vld [vmem:[#allocation117_spill] sm:$0xff]  ;;  %v18160_v50 = vld [vmem:[#allocation132_spill] sm:$0xff]  ;;  %v15660_v27 = vadd.f32 %v15219_v58, %v15185_v44 }
 0x695   : > { %18153 = vst [vmem:[#allocation79_spill] sm:$0xff] %v15632_v20  ;;  %v15644_v57 = vadd.f32 %v15203_v32, %v18158_v35  ;;  %v15648_v15 = vadd.f32 %v15207_v40, %v18160_v50  ;;  %v18162_v26 = vld [vmem:[#allocation138_spill] sm:$0xff]  ;;  %v18164_v20 = vld [vmem:[#allocation65_spill] sm:$0xff] }
 0x696   : > { %18155 = vst [vmem:[#allocation70_spill] sm:$0xff] %v15636_v61  ;;  %18157 = vst [vmem:[#allocation96_spill] sm:$0xff] %v15640_v30  ;;  %v15652_v21 = vadd.f32 %v15211_v8, %v18162_v26  ;;  %v15656_v3 = vadd.f32 %v15215_v49, %v18164_v20  ;;  %v18167_v30 = vld [vmem:[#allocation61_spill] sm:$0xff]  ;;  %v18234_v38 = vld [vmem:[#allocation42_spill] sm:$0xff] }
 0x697   : > { %18159 = vst [vmem:[#allocation107_spill] sm:$0xff] %v15644_v57  ;;  %18161 = vst [vmem:[#allocation116_spill] sm:$0xff] %v15648_v15  ;;  %v15664_v35 = vadd.f32 %v15194_v54, %v18167_v30  ;;  %v18168_v57 = vld [vmem:[#allocation98_spill] sm:$0xff]  ;;  %v18169_v15 = vld [vmem:[#allocation109_spill] sm:$0xff] }
 0x698   : > { %18163 = vst [vmem:[#allocation131_spill] sm:$0xff] %v15652_v21  ;;  %18165 = vst [vmem:[#allocation137_spill] sm:$0xff] %v15656_v3  ;;  %v15668_v50 = vadd.f32 %v15197_v6, %v18168_v57  ;;  %v15672_v26 = vadd.f32 %v15200_v13, %v18169_v15  ;;  %v18171_v21 = vld [vmem:[#allocation118_spill] sm:$0xff]  ;;  %v18173_v3 = vld [vmem:[#allocation133_spill] sm:$0xff]  ;;  %v15688_v57 = vadd.f32 %v15215_v49, %v15150_v48 }
 0x699   : > { %18166 = vst [vmem:[#allocation68_spill] sm:$0xff] %v15660_v27  ;;  %v15676_v20 = vadd.f32 %v15203_v32, %v18171_v21  ;;  %v15680_v44 = vadd.f32 %v15207_v40, %v18173_v3  ;;  %v18175_v27 = vld [vmem:[#allocation139_spill] sm:$0xff]  ;;  %v15692_v15 = vadd.f32 %v15219_v58, %v15188_v43  ;;  %v18241_v46 = vld [vmem:[#allocation114_spill] sm:$0xff] }
 0x69a   : > { %18170 = vst [vmem:[#allocation57_spill] sm:$0xff] %v15672_v26  ;;  %v15684_v30 = vadd.f32 %v15211_v8, %v18175_v27  ;;  %18177 = vst [vmem:[#allocation132_spill] sm:$0xff] %v15688_v57  ;;  %v18179_v26 = vld [vmem:[#allocation67_spill] sm:$0xff]  ;;  %v18183_v57 = vld [vmem:[#allocation134_spill] sm:$0xff] }
 0x69b   : > { %18172 = vst [vmem:[#allocation97_spill] sm:$0xff] %v15676_v20  ;;  %18174 = vst [vmem:[#allocation108_spill] sm:$0xff] %v15680_v44  ;;  %v15696_v21 = vadd.f32 %v15194_v54, %v18179_v26  ;;  %v18180_v20 = vld [vmem:[#allocation78_spill] sm:$0xff]  ;;  %v15712_v43 = vadd.f32 %v15207_v40, %v18183_v57  ;;  %v18197_v26 = vld [vmem:[#allocation120_spill] sm:$0xff]  ;;  %v18266_v57 = vmax.f32 %v15235_v24, 0.0  ;;  %v18267_v40 = vmax.f32 %v15239_v63, 0.0 }
 0x69c   : > { %18176 = vst [vmem:[#allocation117_spill] sm:$0xff] %v15684_v30  ;;  %18178 = vst [vmem:[#allocation138_spill] sm:$0xff] %v15692_v15  ;;  %v15700_v3 = vadd.f32 %v15197_v6, %v18180_v20  ;;  %v18181_v44 = vld [vmem:[#allocation110_spill] sm:$0xff]  ;;  %v18182_v30 = vld [vmem:[#allocation119_spill] sm:$0xff]  ;;  %v15720_v6 = vadd.f32 %v15215_v49, %v15153_v22  ;;  %v18263_v49 = vmax.f32 %v15223_v17, 0.0  ;;  %v18271_v17 = vmax.f32 %v15253_v23, 0.0 }
 0x69d   : > { %v15704_v27 = vadd.f32 %v15200_v13, %v18181_v44  ;;  %v15708_v48 = vadd.f32 %v15203_v32, %v18182_v30  ;;  %18184 = vst [vmem:[#allocation65_spill] sm:$0xff] %v15712_v43  ;;  %v18185_v15 = vld [vmem:[#allocation140_spill] sm:$0xff]  ;;  %v15724_v13 = vadd.f32 %v15219_v58, %v15191_v59  ;;  %v18202_v20 = vld [vmem:[#allocation126_spill] sm:$0xff]  ;;  %v18247_v41 = vld [vmem:[#allocation115_spill] sm:$0xff]  ;;  %v18264_v59 = vmax.f32 %v15227_v55, 0.0 }
 0x69e   : > { %v15716_v54 = vadd.f32 %v15211_v8, %v18185_v15  ;;  %v18248_v32 = vld [vmem:[#allocation130_spill] sm:$0xff]  ;;  %v18265_v58 = vmax.f32 %v15231_v33, 0.0  ;;  %v18268_v44 = vmax.f32 %v15243_v5, 0.0  ;;  %v18269_v8 = vmax.f32 %v15246_v34, 0.0 }
 0x69f   : > { %v18254_v16 = vld [vmem:[#allocation131_spill] sm:$0xff]  ;;  %v18255_v31 = vld [vmem:[#allocation137_spill] sm:$0xff]  ;;  %v10707_v39 = vpack.c.bf16 %v18264_v59, %v18263_v49  ;;  %v18270_v30 = vmax.f32 %v15249_v1, 0.0  ;;  %v18272_v55 = vmax.f32 %v15257_v47, 0.0  ;;  %v18273_v33 = vmax.f32 %v15261_v2, 0.0 }
 0x6a0   : > { %v18256_v29 = vld [vmem:[#allocation68_spill] sm:$0xff]  ;;  %v10708_v15 = vpack.c.bf16 %v18266_v57, %v18265_v58  ;;  %v10709_v43 = vpack.c.bf16 %v18268_v44, %v18267_v40  ;;  %v18274_v24 = vmax.f32 %v15265_v7, 0.0  ;;  %v18275_v63 = vmax.f32 %v15269_v4, 0.0  ;;  %v18283_v57 = vld [vmem:[#allocation73_spill] sm:$0xff] }
 0x6a1   : > { %v18257_v60 = vld [vmem:[#allocation57_spill] sm:$0xff]  ;;  %v18261_v56 = vld [vmem:[#allocation132_spill] sm:$0xff]  ;;  %v10710_v22 = vpack.c.bf16 %v18270_v30, %v18269_v8  ;;  %v10711_v49 = vpack.c.bf16 %v18272_v55, %v18271_v17  ;;  %v18276_v5 = vmax.f32 %v15273_v19, 0.0  ;;  %v18277_v34 = vmax.f32 %v15276_v51, 0.0  ;;  %v18279_v8 = vld [vmem:[#allocation75_spill] sm:$0xff]  ;;  %6538 = vst [vmem:[#allocation2 + $0xb0] sm:$0xff] %v10707_v39 }
 0x6a2   : > { %v18258_v18 = vld [vmem:[#allocation97_spill] sm:$0xff]  ;;  %v18259_v61 = vld [vmem:[#allocation108_spill] sm:$0xff]  ;;  %v10712_v59 = vpack.c.bf16 %v18274_v24, %v18273_v33  ;;  %v18278_v1 = vmax.f32 %v15279_v14, 0.0  ;;  %v18280_v23 = vmax.f32 %v18279_v8, 0.0  ;;  %v18284_v2 = vmax.f32 %v18283_v57, 0.0  ;;  %v18289_v24 = vld [vmem:[#allocation34_spill] sm:$0xff] }
 0x6a3   : > { %v18260_v42 = vld [vmem:[#allocation117_spill] sm:$0xff]  ;;  %v10713_v40 = vpack.c.bf16 %v18276_v5, %v18275_v63  ;;  %v18281_v30 = vld [vmem:[#allocation72_spill] sm:$0xff]  ;;  %v18285_v7 = vmax.f32 %v15295_v28, 0.0  ;;  %v18288_v19 = vmax.f32 %v15303_v45, 0.0  ;;  %v18290_v51 = vmax.f32 %v18289_v24, 0.0  ;;  %6539 = vst [vmem:[#allocation2 + $0x1b0] sm:$0xff] %v10708_v15 }
 0x6a4   : > { %v10714_v44 = vpack.c.bf16 %v18278_v1, %v18277_v34  ;;  %v18282_v47 = vmax.f32 %v18281_v30, 0.0  ;;  %v18286_v55 = vld [vmem:[#allocation41_spill] sm:$0xff]  ;;  %v18291_v63 = vld [vmem:[#allocation100_spill] sm:$0xff]  ;;  %6540 = vst [vmem:[#allocation2 + $0xd8] sm:$0xff] %v10709_v43  ;;  %6541 = vst [vmem:[#allocation2 + $0x18] sm:$0xff] %v10710_v22  ;;  %v18299_v57 = vmax.f32 %v18189_v52, 0.0 }
 0x6a5   : > { %v10716_v17 = vpack.c.bf16 %v18285_v7, %v18284_v2  ;;  %v18287_v4 = vmax.f32 %v18286_v55, 0.0  ;;  %v18292_v14 = vmax.f32 %v18291_v63, 0.0  ;;  %v18293_v34 = vld [vmem:[#allocation102_spill] sm:$0xff]  ;;  %v18295_v8 = vld [vmem:[#allocation64_spill] sm:$0xff]  ;;  %v18302_v55 = vmax.f32 %v18191_v37, 0.0  ;;  %v18304_v15 = vld [vmem:[#allocation37_spill] sm:$0xff] }
 0x6a6   : > { %v10715_v58 = vpack.c.bf16 %v18282_v47, %v18280_v23  ;;  %v18294_v1 = vmax.f32 %v18293_v34, 0.0  ;;  %v18296_v23 = vmax.f32 %v18295_v8, 0.0  ;;  %v18297_v30 = vld [vmem:[#allocation74_spill] sm:$0xff]  ;;  %v18300_v2 = vld [vmem:[#allocation76_spill] sm:$0xff]  ;;  %v18303_v39 = vmax.f32 %v15338_v0, 0.0  ;;  %6542 = vst [vmem:[#allocation2 + $0x50] sm:$0xff] %v10711_v49 }
 0x6a7   : > { %v10717_v33 = vpack.c.bf16 %v18288_v19, %v18287_v4  ;;  %v10718_v5 = vpack.c.bf16 %v18292_v14, %v18290_v51  ;;  %v18298_v47 = vmax.f32 %v18297_v30, 0.0  ;;  %v18301_v7 = vmax.f32 %v18300_v2, 0.0  ;;  %6543 = vst [vmem:[#allocation2 + $0x168] sm:$0xff] %v10712_v59  ;;  %6544 = vst [vmem:[#allocation2 + $0x130] sm:$0xff] %v10713_v40  ;;  %v18306_v19 = vld [vmem:[#allocation38_spill] sm:$0xff]  ;;  %v18308_v51 = vld [vmem:[#allocation99_spill] sm:$0xff] }
 0x6a8   : > { %v10719_v28 = vpack.c.bf16 %v18296_v23, %v18294_v1  ;;  %v18305_v43 = vmax.f32 %v18304_v15, 0.0  ;;  %6545 = vst [vmem:[#allocation2 + $0x48] sm:$0xff] %v10714_v44  ;;  %v18307_v24 = vmax.f32 %v18306_v19, 0.0  ;;  %v18309_v63 = vmax.f32 %v18308_v51, 0.0  ;;  %v18310_v14 = vld [vmem:[#allocation101_spill] sm:$0xff]  ;;  %v18312_v1 = vld [vmem:[#allocation104_spill] sm:$0xff] }
 0x6a9   : > { %v10720_v45 = vpack.c.bf16 %v18299_v57, %v18298_v47  ;;  %v10721_v4 = vpack.c.bf16 %v18302_v55, %v18301_v7  ;;  %v18311_v34 = vmax.f32 %v18310_v14, 0.0  ;;  %v18313_v8 = vmax.f32 %v18312_v1, 0.0  ;;  %v18314_v23 = vld [vmem:[#allocation122_spill] sm:$0xff]  ;;  %v18318_v59 = vld [vmem:[#allocation123_spill] sm:$0xff]  ;;  %6546 = vst [vmem:[#allocation2 + $0x180] sm:$0xff] %v10715_v58  ;;  %6547 = vst [vmem:[#allocation2 + $0x110] sm:$0xff] %v10716_v17 }
 0x6aa   : > { %v10722_v22 = vpack.c.bf16 %v18305_v43, %v18303_v39  ;;  %v10723_v52 = vpack.c.bf16 %v18309_v63, %v18307_v24  ;;  %v18315_v30 = vmax.f32 %v18314_v23, 0.0  ;;  %v18316_v0 = vmax.f32 %v18197_v26, 0.0  ;;  %6548 = vst [vmem:[#allocation2 + $0x118] sm:$0xff] %v10717_v33  ;;  %6549 = vst [vmem:[#allocation2 + $0x98] sm:$0xff] %v10718_v5  ;;  %v18320_v57 = vld [vmem:[#allocation127_spill] sm:$0xff]  ;;  %v18322_v7 = vld [vmem:[#allocation128_spill] sm:$0xff] }
 0x6ab   : > { %v10724_v37 = vpack.c.bf16 %v18313_v8, %v18311_v34  ;;  %v18317_v49 = vmax.f32 %v15369_v12, 0.0  ;;  %v18319_v40 = vmax.f32 %v18318_v59, 0.0  ;;  %v18321_v2 = vmax.f32 %v18320_v57, 0.0  ;;  %v18324_v15 = vld [vmem:[#allocation124_spill] sm:$0xff]  ;;  %v18326_v19 = vld [vmem:[#allocation121_spill] sm:$0xff]  ;;  %v18332_v17 = vld [vmem:[#allocation35_spill] sm:$0xff] }
 0x6ac   : > { %v10725_v47 = vpack.c.bf16 %v18316_v0, %v18315_v30  ;;  %v18323_v55 = vmax.f32 %v18322_v7, 0.0  ;;  %v18325_v43 = vmax.f32 %v18324_v15, 0.0  ;;  %v18327_v24 = vmax.f32 %v18326_v19, 0.0  ;;  %v18328_v51 = vld [vmem:[#allocation125_spill] sm:$0xff]  ;;  %6550 = vst [vmem:[#allocation2 + $0x120] sm:$0xff] %v10719_v28  ;;  %6551 = vst [vmem:[#allocation2 + $0x150] sm:$0xff] %v10720_v45 }
 0x6ad   : > { %v10726_v44 = vpack.c.bf16 %v18319_v40, %v18317_v49  ;;  %v18329_v63 = vmax.f32 %v18328_v51, 0.0  ;;  %v18330_v12 = vmax.f32 %v18202_v20, 0.0  ;;  %v18331_v58 = vmax.f32 %v18203_v53, 0.0  ;;  %6552 = vst [vmem:[#allocation2 + $0x108] sm:$0xff] %v10721_v4  ;;  %6553 = vst [vmem:[#allocation2 + $0x60] sm:$0xff] %v10722_v22  ;;  %v18334_v34 = vld [vmem:[#allocation80_spill] sm:$0xff] }
 0x6ae   : > { %v10727_v39 = vpack.c.bf16 %v18323_v55, %v18321_v2  ;;  %v10728_v26 = vpack.c.bf16 %v18327_v24, %v18325_v43  ;;  %v18333_v33 = vmax.f32 %v18332_v17, 0.0  ;;  %v18335_v1 = vmax.f32 %v18334_v34, 0.0  ;;  %v18336_v8 = vld [vmem:[#allocation81_spill] sm:$0xff]  ;;  %v18338_v0 = vld [vmem:[#allocation39_spill] sm:$0xff]  ;;  %v18340_v59 = vld [vmem:[#allocation46_spill] sm:$0xff]  ;;  %6554 = vst [vmem:[#allocation2 + $0xe0] sm:$0xff] %v10723_v52 }
 0x6af   : > { %v10729_v14 = vpack.c.bf16 %v18330_v12, %v18329_v63  ;;  %v18337_v23 = vmax.f32 %v18336_v8, 0.0  ;;  %v18339_v49 = vmax.f32 %v18338_v0, 0.0  ;;  %v18341_v40 = vmax.f32 %v18340_v59, 0.0  ;;  %v18342_v57 = vld [vmem:[#allocation89_spill] sm:$0xff]  ;;  %6555 = vst [vmem:[#allocation2 + $0x188] sm:$0xff] %v10724_v37  ;;  %6556 = vst [vmem:[#allocation2 + $0x138] sm:$0xff] %v10725_v47 }
 0x6b0   : > { %v10730_v5 = vpack.c.bf16 %v18333_v33, %v18331_v58  ;;  %v18343_v2 = vmax.f32 %v18342_v57, 0.0  ;;  %v18344_v53 = vmax.f32 %v18208_v36, 0.0  ;;  %v18345_v28 = vmax.f32 %v18209_v11, 0.0  ;;  %v18346_v45 = vld [vmem:[#allocation141_spill] sm:$0xff]  ;;  %6557 = vst [vmem:[#allocation2 + $0x140] sm:$0xff] %v10726_v44  ;;  %v18348_v55 = vld [vmem:[#allocation71_spill] sm:$0xff] }
 0x6b1   : > { %v10731_v30 = vpack.c.bf16 %v18337_v23, %v18335_v1  ;;  %v10732_v20 = vpack.c.bf16 %v18341_v40, %v18339_v49  ;;  %v18347_v4 = vmax.f32 %v18346_v45, 0.0  ;;  %v18349_v15 = vmax.f32 %v18348_v55, 0.0  ;;  %v18350_v43 = vld [vmem:[#allocation86_spill] sm:$0xff]  ;;  %v18352_v51 = vld [vmem:[#allocation48_spill] sm:$0xff]  ;;  %6558 = vst [vmem:[#allocation2 + $0x80] sm:$0xff] %v10727_v39  ;;  %6559 = vst [vmem:[#allocation2 + $0x1a8] sm:$0xff] %v10728_v26 }
 0x6b2   : > { %v10733_v7 = vpack.c.bf16 %v18344_v53, %v18343_v2  ;;  %v18351_v19 = vmax.f32 %v18350_v43, 0.0  ;;  %v18353_v63 = vmax.f32 %v18352_v51, 0.0  ;;  %v18354_v12 = vld [vmem:[#allocation88_spill] sm:$0xff]  ;;  %v18356_v17 = vmax.f32 %v18213_v9, 0.0  ;;  %v18357_v11 = vld [vmem:[#allocation142_spill] sm:$0xff]  ;;  %6560 = vst [vmem:[#allocation2 + $0x1b8] sm:$0xff] %v10729_v14 }
 0x6b3   : > { %v10734_v22 = vpack.c.bf16 %v18347_v4, %v18345_v28  ;;  %v18355_v58 = vmax.f32 %v18354_v12, 0.0  ;;  %v18358_v33 = vmax.f32 %v18357_v11, 0.0  ;;  %v18359_v52 = vmax.f32 %v18215_v10, 0.0  ;;  %v18360_v37 = vld [vmem:[#allocation50_spill] sm:$0xff]  ;;  %6561 = vst [vmem:[#allocation2 + $0x28] sm:$0xff] %v10730_v5  ;;  %v18362_v1 = vld [vmem:[#allocation49_spill] sm:$0xff] }
 0x6b4   : > { %v10735_v24 = vpack.c.bf16 %v18351_v19, %v18349_v15  ;;  %v18361_v47 = vmax.f32 %v18360_v37, 0.0  ;;  %v18363_v8 = vmax.f32 %v18362_v1, 0.0  ;;  %v18364_v23 = vld [vmem:[#allocation111_spill] sm:$0xff]  ;;  %v18366_v59 = vld [vmem:[#allocation92_spill] sm:$0xff]  ;;  %v18372_v10 = vld [vmem:[#allocation54_spill] sm:$0xff]  ;;  %v18374_v39 = vmax.f32 %v18221_v25, 0.0 }
 0x6b5   : > { %v10736_v36 = vpack.c.bf16 %v18355_v58, %v18353_v63  ;;  %v10737_v34 = vpack.c.bf16 %v18358_v33, %v18356_v17  ;;  %v18365_v0 = vmax.f32 %v18364_v23, 0.0  ;;  %v18367_v40 = vmax.f32 %v18366_v59, 0.0  ;;  %v18368_v9 = vld [vmem:[#allocation143_spill] sm:$0xff]  ;;  %v18370_v53 = vld [vmem:[#allocation44_spill] sm:$0xff]  ;;  %6562 = vst [vmem:[#allocation2 + $0x1e8] sm:$0xff] %v10731_v30  ;;  %6563 = vst [vmem:[#allocation2 + $0xf8] sm:$0xff] %v10732_v20 }
 0x6b6   : > { %v10738_v44 = vpack.c.bf16 %v18361_v47, %v18359_v52  ;;  %v18369_v57 = vmax.f32 %v18368_v9, 0.0  ;;  %v18371_v28 = vmax.f32 %v18370_v53, 0.0  ;;  %v18373_v45 = vmax.f32 %v18372_v10, 0.0  ;;  %v18375_v26 = vld [vmem:[#allocation55_spill] sm:$0xff]  ;;  %6564 = vst [vmem:[#allocation2 + $0x160] sm:$0xff] %v10733_v7  ;;  %6565 = vst [vmem:[#allocation2 + $0x30] sm:$0xff] %v10734_v22 }
 0x6b7   : > { %v10739_v49 = vpack.c.bf16 %v18365_v0, %v18363_v8  ;;  %v18376_v14 = vmax.f32 %v18375_v26, 0.0  ;;  %v18377_v55 = vld [vmem:[#allocation94_spill] sm:$0xff]  ;;  %v18379_v43 = vld [vmem:[#allocation84_spill] sm:$0xff]  ;;  %v18383_v58 = vld [vmem:[#allocation87_spill] sm:$0xff]  ;;  %v18389_v30 = vmax.f32 %v18227_v62, 0.0  ;;  %6566 = vst [vmem:[#allocation2 + $0x1e0] sm:$0xff] %v10735_v24 }
 0x6b8   : > { %v10740_v2 = vpack.c.bf16 %v18369_v57, %v18367_v40  ;;  %v10741_v4 = vpack.c.bf16 %v18373_v45, %v18371_v28  ;;  %v18378_v15 = vmax.f32 %v18377_v55, 0.0  ;;  %v18380_v19 = vmax.f32 %v18379_v43, 0.0  ;;  %v18381_v63 = vld [vmem:[#allocation82_spill] sm:$0xff]  ;;  %v18385_v33 = vld [vmem:[#allocation59_spill] sm:$0xff]  ;;  %6567 = vst [vmem:[#allocation2] sm:$0xff] %v10736_v36  ;;  %6568 = vst [vmem:[#allocation2 + $0xf0] sm:$0xff] %v10737_v34 }
 0x6b9   : > { %v10742_v5 = vpack.c.bf16 %v18376_v14, %v18374_v39  ;;  %v18382_v12 = vmax.f32 %v18381_v63, 0.0  ;;  %v18384_v17 = vmax.f32 %v18383_v58, 0.0  ;;  %v18386_v52 = vmax.f32 %v18385_v33, 0.0  ;;  %v18387_v25 = vld [vmem:[#allocation90_spill] sm:$0xff]  ;;  %v18390_v20 = vld [vmem:[#allocation43_spill] sm:$0xff]  ;;  %6569 = vst [vmem:[#allocation2 + $0x8] sm:$0xff] %v10738_v44 }
 0x6ba   : > { %v10743_v51 = vpack.c.bf16 %v18380_v19, %v18378_v15  ;;  %v18388_v37 = vmax.f32 %v18387_v25, 0.0  ;;  %v18391_v7 = vmax.f32 %v18390_v20, 0.0  ;;  %v18392_v1 = vld [vmem:[#allocation47_spill] sm:$0xff]  ;;  %v18398_v57 = vld [vmem:[#allocation52_spill] sm:$0xff]  ;;  %v18402_v62 = vld [vmem:[#allocation85_spill] sm:$0xff]  ;;  %v18404_v24 = vmax.f32 %v18234_v38, 0.0 }
 0x6bb   : > { %v10744_v11 = vpack.c.bf16 %v18384_v17, %v18382_v12  ;;  %v18393_v8 = vmax.f32 %v18392_v1, 0.0  ;;  %v18394_v23 = vld [vmem:[#allocation103_spill] sm:$0xff]  ;;  %v18399_v53 = vmax.f32 %v18398_v57, 0.0  ;;  %v18400_v10 = vld [vmem:[#allocation36_spill] sm:$0xff]  ;;  %v18403_v39 = vmax.f32 %v18402_v62, 0.0  ;;  %6570 = vst [vmem:[#allocation2 + $0x148] sm:$0xff] %v10739_v49 }
 0x6bc   : > { %v10745_v47 = vpack.c.bf16 %v18388_v37, %v18386_v52  ;;  %v10746_v22 = vpack.c.bf16 %v18391_v7, %v18389_v30  ;;  %v18395_v0 = vmax.f32 %v18394_v23, 0.0  ;;  %v18396_v40 = vld [vmem:[#allocation91_spill] sm:$0xff]  ;;  %v18401_v45 = vmax.f32 %v18400_v10, 0.0  ;;  %6571 = vst [vmem:[#allocation2 + $0x1d0] sm:$0xff] %v10740_v2  ;;  %6572 = vst [vmem:[#allocation2 + $0x100] sm:$0xff] %v10741_v4  ;;  %v18407_v14 = vld [vmem:[#allocation93_spill] sm:$0xff] }
 0x6bd   : > { %v18397_v9 = vmax.f32 %v18396_v40, 0.0  ;;  %v18405_v36 = vld [vmem:[#allocation51_spill] sm:$0xff]  ;;  %6573 = vst [vmem:[#allocation2 + $0xc8] sm:$0xff] %v10742_v5  ;;  %v18408_v55 = vmax.f32 %v18407_v14, 0.0  ;;  %v18409_v15 = vld [vmem:[#allocation53_spill] sm:$0xff]  ;;  %v18411_v63 = vld [vmem:[#allocation112_spill] sm:$0xff] }
 0x6be   : > { %v10747_v59 = vpack.c.bf16 %v18395_v0, %v18393_v8  ;;  %v10749_v26 = vpack.c.bf16 %v18403_v39, %v18401_v45  ;;  %v18406_v34 = vmax.f32 %v18405_v36, 0.0  ;;  %v18410_v43 = vmax.f32 %v18409_v15, 0.0  ;;  %v18413_v58 = vld [vmem:[#allocation60_spill] sm:$0xff]  ;;  %v18415_v52 = vld [vmem:[#allocation83_spill] sm:$0xff]  ;;  %v18417_v38 = vld [vmem:[#allocation105_spill] sm:$0xff]  ;;  %6574 = vst [vmem:[#allocation2 + $0x40] sm:$0xff] %v10743_v51 }
 0x6bf   : > { %v10748_v28 = vpack.c.bf16 %v18399_v53, %v18397_v9  ;;  %v18412_v12 = vmax.f32 %v18411_v63, 0.0  ;;  %v18414_v17 = vmax.f32 %v18413_v58, 0.0  ;;  %v18416_v25 = vmax.f32 %v18415_v52, 0.0  ;;  %v18420_v2 = vld [vmem:[#allocation129_spill] sm:$0xff]  ;;  %6575 = vst [vmem:[#allocation2 + $0x1f8] sm:$0xff] %v10744_v11  ;;  %6576 = vst [vmem:[#allocation2 + $0x20] sm:$0xff] %v10745_v47 }
 0x6c0   : > { %v10750_v44 = vpack.c.bf16 %v18406_v34, %v18404_v24  ;;  %v10751_v19 = vpack.c.bf16 %v18410_v43, %v18408_v55  ;;  %v18418_v37 = vmax.f32 %v18417_v38, 0.0  ;;  %v18419_v49 = vmax.f32 %v18241_v46, 0.0  ;;  %6577 = vst [vmem:[#allocation2 + $0x128] sm:$0xff] %v10746_v22  ;;  %v18422_v20 = vld [vmem:[#allocation135_spill] sm:$0xff]  ;;  %v18424_v1 = vld [vmem:[#allocation113_spill] sm:$0xff]  ;;  %v18426_v0 = vld [vmem:[#allocation66_spill] sm:$0xff] }
 0x6c1   : > { %v10752_v33 = vpack.c.bf16 %v18414_v17, %v18412_v12  ;;  %v18421_v4 = vmax.f32 %v18420_v2, 0.0  ;;  %v18423_v7 = vmax.f32 %v18422_v20, 0.0  ;;  %v18425_v8 = vmax.f32 %v18424_v1, 0.0  ;;  %v18428_v9 = vld [vmem:[#allocation45_spill] sm:$0xff]  ;;  %v18430_v10 = vld [vmem:[#allocation106_spill] sm:$0xff]  ;;  %v18434_v11 = vld [vmem:[#allocation136_spill] sm:$0xff] }
 0x6c2   : > { %v10753_v30 = vpack.c.bf16 %v18418_v37, %v18416_v25  ;;  %v18427_v40 = vmax.f32 %v18426_v0, 0.0  ;;  %v18429_v57 = vmax.f32 %v18428_v9, 0.0  ;;  %v18431_v45 = vmax.f32 %v18430_v10, 0.0  ;;  %6578 = vst [vmem:[#allocation2 + $0x1a0] sm:$0xff] %v10747_v59  ;;  %6579 = vst [vmem:[#allocation2 + $0x1f0] sm:$0xff] %v10748_v28  ;;  %v18436_v39 = vld [vmem:[#allocation79_spill] sm:$0xff] }
 0x6c3   : > { %v10754_v5 = vpack.c.bf16 %v18421_v4, %v18419_v49  ;;  %v10755_v23 = vpack.c.bf16 %v18425_v8, %v18423_v7  ;;  %v18432_v46 = vmax.f32 %v18247_v41, 0.0  ;;  %v18433_v51 = vmax.f32 %v18248_v32, 0.0  ;;  %6580 = vst [vmem:[#allocation2 + $0xe8] sm:$0xff] %v10749_v26  ;;  %6581 = vst [vmem:[#allocation2 + $0x78] sm:$0xff] %v10750_v44  ;;  %v18438_v36 = vld [vmem:[#allocation70_spill] sm:$0xff]  ;;  %v18440_v55 = vld [vmem:[#allocation96_spill] sm:$0xff] }
 0x6c4   : > { %v10756_v53 = vpack.c.bf16 %v18429_v57, %v18427_v40  ;;  %v18435_v47 = vmax.f32 %v18434_v11, 0.0  ;;  %v18437_v24 = vmax.f32 %v18436_v39, 0.0  ;;  %v18439_v34 = vmax.f32 %v18438_v36, 0.0  ;;  %v18442_v43 = vld [vmem:[#allocation107_spill] sm:$0xff]  ;;  %v18444_v12 = vld [vmem:[#allocation116_spill] sm:$0xff]  ;;  %6582 = vst [vmem:[#allocation2 + $0x70] sm:$0xff] %v10751_v19 }
 0x6c5   : > { %v10757_v62 = vpack.c.bf16 %v18432_v46, %v18431_v45  ;;  %v18441_v15 = vmax.f32 %v18440_v55, 0.0  ;;  %v18443_v63 = vmax.f32 %v18442_v43, 0.0  ;;  %v18445_v58 = vmax.f32 %v18444_v12, 0.0  ;;  %6583 = vst [vmem:[#allocation2 + $0x90] sm:$0xff] %v10752_v33  ;;  %6584 = vst [vmem:[#allocation2 + $0x1d8] sm:$0xff] %v10753_v30  ;;  %v18456_v33 = vld [vmem:[#allocation138_spill] sm:$0xff] }
 0x6c6   : > { %v10758_v22 = vpack.c.bf16 %v18435_v47, %v18433_v51  ;;  %v10759_v14 = vpack.c.bf16 %v18439_v34, %v18437_v24  ;;  %v18446_v32 = vmax.f32 %v18254_v16, 0.0  ;;  %v18447_v59 = vmax.f32 %v18255_v31, 0.0  ;;  %6585 = vst [vmem:[#allocation2 + $0xd0] sm:$0xff] %v10754_v5  ;;  %6586 = vst [vmem:[#allocation2 + $0xb8] sm:$0xff] %v10755_v23  ;;  %v18462_v4 = vld [vmem:[#allocation65_spill] sm:$0xff] }
 0x6c7   : > { %v10760_v41 = vpack.c.bf16 %v18443_v63, %v18441_v15  ;;  %v18448_v28 = vmax.f32 %v18256_v29, 0.0  ;;  %v18449_v44 = vmax.f32 %v15664_v35, 0.0  ;;  %v18450_v52 = vmax.f32 %v15668_v50, 0.0  ;;  %6587 = vst [vmem:[#allocation2 + $0x88] sm:$0xff] %v10756_v53  ;;  %6588 = vst [vmem:[#allocation2 + $0xa8] sm:$0xff] %v10757_v62 }
 0x6c8   : > { %v10761_v17 = vpack.c.bf16 %v18446_v32, %v18445_v58  ;;  %v18451_v38 = vmax.f32 %v18257_v60, 0.0  ;;  %v18452_v37 = vmax.f32 %v18258_v18, 0.0  ;;  %v18453_v49 = vmax.f32 %v18259_v61, 0.0  ;;  %6589 = vst [vmem:[#allocation2 + $0x1c8] sm:$0xff] %v10758_v22  ;;  %6590 = vst [vmem:[#allocation2 + $0x170] sm:$0xff] %v10759_v14 }
 0x6c9   : > { %v10762_v26 = vpack.c.bf16 %v18448_v28, %v18447_v59  ;;  %v10763_v25 = vpack.c.bf16 %v18450_v52, %v18449_v44  ;;  %v18454_v31 = vmax.f32 %v18260_v42, 0.0  ;;  %v18455_v19 = vmax.f32 %v18261_v56, 0.0  ;;  %6591 = vst [vmem:[#allocation2 + $0x178] sm:$0xff] %v10760_v41 }
 0x6ca   : > { %v10764_v16 = vpack.c.bf16 %v18452_v37, %v18451_v38  ;;  %v18457_v30 = vmax.f32 %v18456_v33, 0.0  ;;  %v18458_v35 = vmax.f32 %v15696_v21, 0.0  ;;  %v18459_v60 = vmax.f32 %v15700_v3, 0.0  ;;  %6592 = vst [vmem:[#allocation2 + $0x68] sm:$0xff] %v10761_v17 }
 0x6cb   : > { %v10765_v29 = vpack.c.bf16 %v18454_v31, %v18453_v49  ;;  %v18460_v50 = vmax.f32 %v15704_v27, 0.0  ;;  %v18461_v61 = vmax.f32 %v15708_v48, 0.0  ;;  %v18463_v5 = vmax.f32 %v18462_v4, 0.0  ;;  %6593 = vst [vmem:[#allocation2 + $0x190] sm:$0xff] %v10762_v26  ;;  %6594 = vst [vmem:[#allocation2 + $0x198] sm:$0xff] %v10763_v25 }
 0x6cc   : > { %v10766_v2 = vpack.c.bf16 %v18457_v30, %v18455_v19  ;;  %v10767_v18 = vpack.c.bf16 %v18459_v60, %v18458_v35  ;;  %v18464_v56 = vmax.f32 %v15716_v54, 0.0  ;;  %v18465_v7 = vmax.f32 %v15720_v6, 0.0  ;;  %6595 = vst [vmem:[#allocation2 + $0x38] sm:$0xff] %v10764_v16 }
 0x6cd   : > { %v10768_v42 = vpack.c.bf16 %v18461_v61, %v18460_v50  ;;  %v18466_v1 = vmax.f32 %v15724_v13, 0.0  ;;  %6596 = vst [vmem:[#allocation2 + $0xc0] sm:$0xff] %v10765_v29 }
 0x6ce   : > { %v10769_v20 = vpack.c.bf16 %v18464_v56, %v18463_v5  ;;  %6597 = vst [vmem:[#allocation2 + $0x1c0] sm:$0xff] %v10766_v2  ;;  %6598 = vst [vmem:[#allocation2 + $0x158] sm:$0xff] %v10767_v18 }
 0x6cf   : > { %v10770_v8 = vpack.c.bf16 %v18466_v1, %v18465_v7  ;;  %6599 = vst [vmem:[#allocation2 + $0x10] sm:$0xff] %v10768_v42 }
 0x6d0   : > { %6600 = vst [vmem:[#allocation2 + $0x58] sm:$0xff] %v10769_v20 }
 0x6d1   : > { %6601 = vst [vmem:[#allocation2 + $0xa0] sm:$0xff] %v10770_v8 }
 0x6d2 PF: > { %v11158_v21 = vld [vmem:[%s12502_s6 + $0xe4] ss:$16 sps:$4 sm:$0xff]   ;;  %v11162_v27 = vld [vmem:[%s12502_s6 + $0xe0] ss:$16 sps:$4 sm:$0xff]   ;;  %p18535_p12 = scmp.ne.s32.totalorder %s17565_s24, 0 }
 0x6d3   : > { %v11160_v3 = vld [vmem:[%s12502_s6 + $0x2e4] ss:$16 sps:$4 sm:$0xff]   ;;  %8544 = vmatprep.subr.bf16.mxu0 %v11158_v21  ;;  %v11163_v48 = vld [vmem:[%s12502_s6 + $0x2e0] ss:$16 sps:$4 sm:$0xff]   ;;  %s18537_s25 = sld [smem:[#allocation169_spill]] (%p18535_p12) }
 0x6d4   : > { %8657 = vmatprep.subr.bf16.mxu1 %v11160_v3  ;;  %v11164_v54 = vld [vmem:[%s12502_s6 + $0xc4] ss:$16 sps:$4 sm:$0xff]   ;;  %8545 = vmatpush1.bf16.msra.mxu0 %v11162_v27  ;;  %v11168_v13 = vld [vmem:[%s12502_s6 + $0xc0] ss:$16 sps:$4 sm:$0xff]  }
 0x6d5   : > { %8658 = vmatpush1.bf16.msra.mxu1 %v11163_v48  ;;  %v11166_v6 = vld [vmem:[%s12502_s6 + $0x2c4] ss:$16 sps:$4 sm:$0xff]   ;;  %8546 = vmatprep.subr.bf16.mxu0 %v11164_v54  ;;  %v11169_v23 = vld [vmem:[%s12502_s6 + $0x2c0] ss:$16 sps:$4 sm:$0xff]  }
 0x6d6   : > { %8659 = vmatprep.subr.bf16.mxu1 %v11166_v6  ;;  %v11170_v0 = vld [vmem:[%s12502_s6 + $0xa4] ss:$16 sps:$4 sm:$0xff]   ;;  %v11174_v9 = vld [vmem:[%s12502_s6 + $0xa0] ss:$16 sps:$4 sm:$0xff]  }
 0x6d7   : > { %v11172_v40 = vld [vmem:[%s12502_s6 + $0x2a4] ss:$16 sps:$4 sm:$0xff]   ;;  %v11175_v57 = vld [vmem:[%s12502_s6 + $0x2a0] ss:$16 sps:$4 sm:$0xff]  }
 0x6d8   : > { %8547 = vmatpush1.bf16.msra.mxu0 %v11168_v13  ;;  %v11176_v53 = vld [vmem:[%s12502_s6 + $0x84] ss:$16 sps:$4 sm:$0xff]   ;;  %v11180_v45 = vld [vmem:[%s12502_s6 + $0x80] ss:$16 sps:$4 sm:$0xff]  }
 0x6d9   : > { %8660 = vmatpush1.bf16.msra.mxu1 %v11169_v23  ;;  %8548 = vmatprep.subr.bf16.mxu0 %v11170_v0  ;;  %v11178_v10 = vld [vmem:[%s12502_s6 + $0x284] ss:$16 sps:$4 sm:$0xff]   ;;  %v11181_v46 = vld [vmem:[%s12502_s6 + $0x280] ss:$16 sps:$4 sm:$0xff]  }
 0x6da   : > { %8661 = vmatprep.subr.bf16.mxu1 %v11172_v40  ;;  %v11182_v62 = vld [vmem:[%s12502_s6 + $0x64] ss:$16 sps:$4 sm:$0xff]   ;;  %v11186_v11 = vld [vmem:[%s12502_s6 + $0x60] ss:$16 sps:$4 sm:$0xff]  }
 0x6db   : > { %v11184_v51 = vld [vmem:[%s12502_s6 + $0x264] ss:$16 sps:$4 sm:$0xff]   ;;  %v11187_v47 = vld [vmem:[%s12502_s6 + $0x260] ss:$16 sps:$4 sm:$0xff]  }
 0x6dc   : > { %8549 = vmatpush1.bf16.msra.mxu0 %v11174_v9  ;;  %v11188_v22 = vld [vmem:[%s12502_s6 + $0x44] ss:$16 sps:$4 sm:$0xff]   ;;  %v11192_v24 = vld [vmem:[%s12502_s6 + $0x40] ss:$16 sps:$4 sm:$0xff]  }
 0x6dd   : > { %8662 = vmatpush1.bf16.msra.mxu1 %v11175_v57  ;;  %8550 = vmatprep.subr.bf16.mxu0 %v11176_v53  ;;  %v11190_v39 = vld [vmem:[%s12502_s6 + $0x244] ss:$16 sps:$4 sm:$0xff]   ;;  %v11193_v36 = vld [vmem:[%s12502_s6 + $0x240] ss:$16 sps:$4 sm:$0xff]  }
 0x6de   : > { %8663 = vmatprep.subr.bf16.mxu1 %v11178_v10  ;;  %v11194_v34 = vld [vmem:[%s12502_s6 + $0x24] ss:$16 sps:$4 sm:$0xff]   ;;  %v11198_v55 = vld [vmem:[%s12502_s6 + $0x20] ss:$16 sps:$4 sm:$0xff]  }
 0x6df   : > { %v11196_v14 = vld [vmem:[%s12502_s6 + $0x224] ss:$16 sps:$4 sm:$0xff]   ;;  %v11199_v15 = vld [vmem:[%s12502_s6 + $0x220] ss:$16 sps:$4 sm:$0xff]  }
 0x6e0   : > { %8551 = vmatpush1.bf16.msra.mxu0 %v11180_v45  ;;  %v11200_v43 = vld [vmem:[%s12502_s6 + $0x4] ss:$16 sps:$4 sm:$0xff]   ;;  %v11204_v41 = vld [vmem:[%s12502_s6] ss:$16 sps:$4 sm:$0xff]  }
 0x6e1   : > { %8664 = vmatpush1.bf16.msra.mxu1 %v11181_v46  ;;  %8552 = vmatprep.subr.bf16.mxu0 %v11182_v62  ;;  %v11202_v63 = vld [vmem:[%s12502_s6 + $0x204] ss:$16 sps:$4 sm:$0xff]   ;;  %v11205_v12 = vld [vmem:[%s12502_s6 + $0x200] ss:$16 sps:$4 sm:$0xff]  }
 0x6e2   : > { %8665 = vmatprep.subr.bf16.mxu1 %v11184_v51  ;;  %v11206_v58 = vld [vmem:[%s12502_s6 + $0x1e4] ss:$16 sps:$4 sm:$0xff]   ;;  %v11210_v17 = vld [vmem:[%s12502_s6 + $0x1e0] ss:$16 sps:$4 sm:$0xff]  }
 0x6e3   : > { %v11208_v32 = vld [vmem:[%s12502_s6 + $0x3e4] ss:$16 sps:$4 sm:$0xff]   ;;  %v11211_v59 = vld [vmem:[%s12502_s6 + $0x3e0] ss:$16 sps:$4 sm:$0xff]  }
 0x6e4   : > { %8553 = vmatpush1.bf16.msra.mxu0 %v11186_v11  ;;  %v11212_v28 = vld [vmem:[%s12502_s6 + $0x1c4] ss:$16 sps:$4 sm:$0xff]   ;;  %v11216_v44 = vld [vmem:[%s12502_s6 + $0x1c0] ss:$16 sps:$4 sm:$0xff]  }
 0x6e5   : > { %8666 = vmatpush1.bf16.msra.mxu1 %v11187_v47  ;;  %8554 = vmatprep.subr.bf16.mxu0 %v11188_v22  ;;  %v11214_v26 = vld [vmem:[%s12502_s6 + $0x3c4] ss:$16 sps:$4 sm:$0xff]   ;;  %v11217_v52 = vld [vmem:[%s12502_s6 + $0x3c0] ss:$16 sps:$4 sm:$0xff]  }
 0x6e6   : > { %8667 = vmatprep.subr.bf16.mxu1 %v11190_v39  ;;  %v11218_v25 = vld [vmem:[%s12502_s6 + $0x1a4] ss:$16 sps:$4 sm:$0xff]   ;;  %v11222_v37 = vld [vmem:[%s12502_s6 + $0x1a0] ss:$16 sps:$4 sm:$0xff]  }
 0x6e7   : > { %v11220_v38 = vld [vmem:[%s12502_s6 + $0x3a4] ss:$16 sps:$4 sm:$0xff]   ;;  %v11223_v16 = vld [vmem:[%s12502_s6 + $0x3a0] ss:$16 sps:$4 sm:$0xff]  }
 0x6e8   : > { %8555 = vmatpush1.bf16.msra.mxu0 %v11192_v24  ;;  %v11224_v49 = vld [vmem:[%s12502_s6 + $0x184] ss:$16 sps:$4 sm:$0xff]   ;;  %v11228_v29 = vld [vmem:[%s12502_s6 + $0x180] ss:$16 sps:$4 sm:$0xff]  }
 0x6e9   : > { %8668 = vmatpush1.bf16.msra.mxu1 %v11193_v36  ;;  %8556 = vmatprep.subr.bf16.mxu0 %v11194_v34  ;;  %v11226_v31 = vld [vmem:[%s12502_s6 + $0x384] ss:$16 sps:$4 sm:$0xff]   ;;  %v11229_v30 = vld [vmem:[%s12502_s6 + $0x380] ss:$16 sps:$4 sm:$0xff]  }
 0x6ea   : > { %8669 = vmatprep.subr.bf16.mxu1 %v11196_v14  ;;  %v6602_v19 = vld [vmem:[#allocation2 + $0xb0] sm:$0xff]  ;;  %v6610_v23 = vld [vmem:[#allocation2 + $0x180] sm:$0xff]  ;;  %v6619_v14 = vld [vmem:[#allocation2 + $0x188] sm:$0xff] }
 0x6eb   : > { %v6606_v33 = vld [vmem:[#allocation2 + $0x50] sm:$0xff]  ;;  %v6614_v0 = vld [vmem:[#allocation2 + $0x120] sm:$0xff] }
 0x6ec   : > { %8557 = vmatpush1.bf16.msra.mxu0 %v11198_v55  ;;  %v16158_v2 = vcombine.high %v6602_v19, %v6606_v33  ;;  %v11256_v35 = vld [vmem:[#allocation2 + $0x1b4] ss:$-72 sps:$4 sm:$0xff]   ;;  %v11254_v13 = vld [vmem:[#allocation2 + $0x1b0] ss:$-72 sps:$4 sm:$0xff]   ;;  %v16180_v57 = vcombine.low %v6602_v19, %v6606_v33  ;;  %v16186_v51 = vcombine.high %v6610_v23, %v6614_v0  ;;  %v6618_v24 = vld [vmem:[#allocation2 + $0xe0] sm:$0xff]  ;;  %v16197_v55 = vcombine.low %v6610_v23, %v6614_v0 }
 0x6ed   : > { %8670 = vmatpush1.bf16.msra.mxu1 %v11199_v15  ;;  %8558 = vmatprep.subr.bf16.mxu0 %v11200_v43  ;;  %v11230_v60 = vld [vmem:[%s12502_s6 + $0x164] ss:$16 sps:$4 sm:$0xff]   ;;  %v11234_v50 = vld [vmem:[%s12502_s6 + $0x160] ss:$16 sps:$4 sm:$0xff]  }
 0x6ee   : > { %8671 = vmatprep.subr.bf16.mxu1 %v11202_v63  ;;  %v11232_v18 = vld [vmem:[%s12502_s6 + $0x364] ss:$16 sps:$4 sm:$0xff]   ;;  %8576 = vmatprep.mubr.bf16.mxu0 %v16158_v2  ;;  %v11235_v61 = vld [vmem:[%s12502_s6 + $0x360] ss:$16 sps:$4 sm:$0xff]  }
 0x6ef   : > { %8689 = vmatprep.mubr.bf16.mxu1 %v11256_v35  ;;  %v11236_v42 = vld [vmem:[%s12502_s6 + $0x144] ss:$16 sps:$4 sm:$0xff]   ;;  %v11240_v5 = vld [vmem:[%s12502_s6 + $0x140] ss:$16 sps:$4 sm:$0xff]  }
 0x6f0   : > { %8559 = vmatpush1.bf16.msra.mxu0 %v11204_v41  ;;  %v11238_v4 = vld [vmem:[%s12502_s6 + $0x344] ss:$16 sps:$4 sm:$0xff]   ;;  %v11241_v56 = vld [vmem:[%s12502_s6 + $0x340] ss:$16 sps:$4 sm:$0xff]  }
 0x6f1   : > { %8672 = vmatpush1.bf16.msra.mxu1 %v11205_v12  ;;  %8560 = vmatprep.subr.bf16.mxu0 %v11206_v58  ;;  %v11242_v20 = vld [vmem:[%s12502_s6 + $0x124] ss:$16 sps:$4 sm:$0xff]   ;;  %v11246_v1 = vld [vmem:[%s12502_s6 + $0x120] ss:$16 sps:$4 sm:$0xff]  }
 0x6f2   : > { %8673 = vmatprep.subr.bf16.mxu1 %v11208_v32  ;;  %v11244_v7 = vld [vmem:[%s12502_s6 + $0x324] ss:$16 sps:$4 sm:$0xff]   ;;  %v11247_v8 = vld [vmem:[%s12502_s6 + $0x320] ss:$16 sps:$4 sm:$0xff]  }
 0x6f3   : > { %v11248_v21 = vld [vmem:[%s12502_s6 + $0x104] ss:$16 sps:$4 sm:$0xff]   ;;  %v11252_v27 = vld [vmem:[%s12502_s6 + $0x100] ss:$16 sps:$4 sm:$0xff]  }
 0x6f4   : > { %8561 = vmatpush2.bf16.msra.mxu0 %v11210_v17  ;;  %v11250_v3 = vld [vmem:[%s12502_s6 + $0x304] ss:$16 sps:$4 sm:$0xff]   ;;  %v11253_v48 = vld [vmem:[%s12502_s6 + $0x300] ss:$16 sps:$4 sm:$0xff]  }
 0x6f5   : > { %8674 = vmatpush2.bf16.msra.mxu1 %v11211_v59  ;;  %8562 = vmatprep.subr.bf16.mxu0 %v11212_v28  ;;  %v11259_v54 = vld [vmem:[%s12502_s6 + $0x4e4] ss:$16 sps:$4 sm:$0xff]   ;;  %v11257_v40 = vld [vmem:[%s12502_s6 + $0x4e0] ss:$16 sps:$4 sm:$0xff]  }
 0x6f6   : > { %8675 = vmatprep.subr.bf16.mxu1 %v11214_v26  ;;  %v11262_v6 = vld [vmem:[%s12502_s6 + $0x6e4] ss:$16 sps:$4 sm:$0xff]   ;;  %v11260_v10 = vld [vmem:[%s12502_s6 + $0x6e0] ss:$16 sps:$4 sm:$0xff]  }
 0x6f7   : > { %v6611_v9 = vld [vmem:[#allocation2 + $0x110] sm:$0xff]  ;;  %v6622_v36 = vld [vmem:[#allocation2 + $0x80] sm:$0xff]  ;;  %v6623_v43 = vld [vmem:[#allocation2 + $0x1a8] sm:$0xff] }
 0x6f8   : > { %8563 = vmatpush2.bf16.msra.mxu0 %v11216_v44  ;;  %v6615_v53 = vld [vmem:[#allocation2 + $0x150] sm:$0xff]  ;;  %v16204_v58 = vcombine.high %v6618_v24, %v6622_v36  ;;  %v16206_v32 = vcombine.high %v6619_v14, %v6623_v43  ;;  %v16216_v44 = vcombine.low %v6618_v24, %v6622_v36  ;;  %v11297_v35 = vld [vmem:[#allocation2 + $0x1e8] ss:$-8 sps:$4 sm:$0xff]   ;;  %v11346_v36 = vld [vmem:[#allocation2 + $0x8c] ss:$240 sps:$4 sm:$0xff]  }
 0x6f9   : > { %8676 = vmatpush2.bf16.msra.mxu1 %v11217_v52  ;;  %8564 = vmatprep.subr.bf16.mxu0 %v11218_v25  ;;  %v11265_v45 = vld [vmem:[%s12502_s6 + $0x4c4] ss:$16 sps:$4 sm:$0xff]   ;;  %v11263_v62 = vld [vmem:[%s12502_s6 + $0x4c0] ss:$16 sps:$4 sm:$0xff]   ;;  %v16188_v11 = vcombine.high %v6611_v9, %v6615_v53  ;;  %v16199_v15 = vcombine.low %v6611_v9, %v6615_v53  ;;  %v16218_v52 = vcombine.low %v6619_v14, %v6623_v43 }
 0x6fa   : > { %8677 = vmatprep.subr.bf16.mxu1 %v11220_v38  ;;  %v11268_v46 = vld [vmem:[%s12502_s6 + $0x6c4] ss:$16 sps:$4 sm:$0xff]   ;;  %v11266_v47 = vld [vmem:[%s12502_s6 + $0x6c0] ss:$16 sps:$4 sm:$0xff]  }
 0x6fb   : > { %v11271_v22 = vld [vmem:[%s12502_s6 + $0x4a4] ss:$16 sps:$4 sm:$0xff]   ;;  %v11269_v34 = vld [vmem:[%s12502_s6 + $0x4a0] ss:$16 sps:$4 sm:$0xff]  }
 0x6fc   : > { %8565 = vmatpush2.bf16.msra.mxu0 %v11222_v37  ;;  %v11274_v39 = vld [vmem:[%s12502_s6 + $0x6a4] ss:$16 sps:$4 sm:$0xff]   ;;  %v11272_v63 = vld [vmem:[%s12502_s6 + $0x6a0] ss:$16 sps:$4 sm:$0xff]  }
 0x6fd   : > { %8678 = vmatpush2.bf16.msra.mxu1 %v11223_v16  ;;  %8566 = vmatprep.subr.bf16.mxu0 %v11224_v49  ;;  %v11277_v41 = vld [vmem:[%s12502_s6 + $0x484] ss:$16 sps:$4 sm:$0xff]   ;;  %v11275_v17 = vld [vmem:[%s12502_s6 + $0x480] ss:$16 sps:$4 sm:$0xff]  }
 0x6fe   : > { %8679 = vmatprep.subr.bf16.mxu1 %v11226_v31  ;;  %v11280_v12 = vld [vmem:[%s12502_s6 + $0x684] ss:$16 sps:$4 sm:$0xff]   ;;  %v11278_v59 = vld [vmem:[%s12502_s6 + $0x680] ss:$16 sps:$4 sm:$0xff]  }
 0x6ff   : > { %v11283_v28 = vld [vmem:[%s12502_s6 + $0x464] ss:$16 sps:$4 sm:$0xff]   ;;  %v11281_v25 = vld [vmem:[%s12502_s6 + $0x460] ss:$16 sps:$4 sm:$0xff]  }
 0x700   : > { %8567 = vmatpush2.bf16.msra.mxu0 %v11228_v29  ;;  %v11286_v26 = vld [vmem:[%s12502_s6 + $0x664] ss:$16 sps:$4 sm:$0xff]   ;;  %v11284_v38 = vld [vmem:[%s12502_s6 + $0x660] ss:$16 sps:$4 sm:$0xff]  }
 0x701   : > { %8680 = vmatpush2.bf16.msra.mxu1 %v11229_v30  ;;  %8568 = vmatprep.subr.bf16.mxu0 %v11230_v60  ;;  %v11289_v37 = vld [vmem:[%s12502_s6 + $0x444] ss:$16 sps:$4 sm:$0xff]   ;;  %v11287_v29 = vld [vmem:[%s12502_s6 + $0x440] ss:$16 sps:$4 sm:$0xff]  }
 0x702   : > { %8681 = vmatprep.subr.bf16.mxu1 %v11232_v18  ;;  %v11292_v16 = vld [vmem:[%s12502_s6 + $0x644] ss:$16 sps:$4 sm:$0xff]   ;;  %v11290_v19 = vld [vmem:[%s12502_s6 + $0x640] ss:$16 sps:$4 sm:$0xff]  }
 0x703   : > { %v11293_v49 = vld [vmem:[#allocation2 + $0x1ec] ss:$-8 sps:$4 sm:$0xff]   ;;  %v11298_v60 = vld [vmem:[#allocation2 + $0xf8] ss:$-248 sps:$4 sm:$0xff]   ;;  %v11344_v24 = vld [vmem:[#allocation2 + $0xbc] ss:$184 sps:$4 sm:$0xff]  }
 0x704   : > { %8569 = vmatpush2.bf16.msra.mxu0 %v11234_v50  ;;  %v11295_v31 = vld [vmem:[#allocation2 + $0xfc] ss:$-248 sps:$4 sm:$0xff]   ;;  %v11348_v43 = vld [vmem:[#allocation2 + $0xb8] ss:$184 sps:$4 sm:$0xff]  }
 0x705   : > { %8682 = vmatpush2.bf16.msra.mxu1 %v11235_v61  ;;  %8570 = vmatprep.subr.bf16.mxu0 %v11236_v42  ;;  %v11301_v33 = vld [vmem:[%s12502_s6 + $0x424] ss:$16 sps:$4 sm:$0xff]   ;;  %v11299_v18 = vld [vmem:[%s12502_s6 + $0x420] ss:$16 sps:$4 sm:$0xff]  }
 0x706   : > { %8683 = vmatprep.subr.bf16.mxu1 %v11238_v4  ;;  %v11304_v30 = vld [vmem:[%s12502_s6 + $0x624] ss:$16 sps:$4 sm:$0xff]   ;;  %v11302_v50 = vld [vmem:[%s12502_s6 + $0x620] ss:$16 sps:$4 sm:$0xff]  }
 0x707   : > { %v11307_v61 = vld [vmem:[%s12502_s6 + $0x404] ss:$16 sps:$4 sm:$0xff]   ;;  %v11326_v9 = vld [vmem:[%s12502_s6 + $0x7c0] ss:$16 sps:$4 sm:$0xff]  }
 0x708   : > { %8571 = vmatpush2.bf16.msra.mxu0 %v11240_v5  ;;  %v11310_v42 = vld [vmem:[%s12502_s6 + $0x604] ss:$16 sps:$4 sm:$0xff]   ;;  %v11341_v14 = vld [vmem:[%s12502_s6 + $0x780] ss:$16 sps:$4 sm:$0xff]  }
 0x709   : > { %8684 = vmatpush2.bf16.msra.mxu1 %v11241_v56  ;;  %8572 = vmatprep.subr.bf16.mxu0 %v11242_v20  ;;  %v11311_v4 = vld [vmem:[#allocation2 + $0x14c] ss:$-264 sps:$4 sm:$0xff]   ;;  %v11313_v5 = vld [vmem:[#allocation2 + $0x1d4] ss:$40 sps:$4 sm:$0xff]  }
 0x70a   : > { %8685 = vmatprep.subr.bf16.mxu1 %v11244_v7  ;;  %v11305_v56 = vld [vmem:[%s12502_s6 + $0x400] ss:$16 sps:$4 sm:$0xff]   ;;  %v11319_v7 = vld [vmem:[%s12502_s6 + $0x5e4] ss:$16 sps:$4 sm:$0xff]  }
 0x70b   : > { %v11308_v20 = vld [vmem:[%s12502_s6 + $0x600] ss:$16 sps:$4 sm:$0xff]   ;;  %v11329_v23 = vld [vmem:[#allocation2 + $0x1a4] ss:$-304 sps:$4 sm:$0xff]  }
 0x70c   : > { %8573 = vmatpush2.bf16.msra.mxu0 %v11246_v1  ;;  %v11322_v1 = vld [vmem:[%s12502_s6 + $0x7e4] ss:$16 sps:$4 sm:$0xff]  }
 0x70d   : > { %8686 = vmatpush2.bf16.msra.mxu1 %v11247_v8  ;;  %8574 = vmatprep.subr.bf16.mxu0 %v11248_v21  ;;  %v11315_v8 = vld [vmem:[#allocation2 + $0x148] ss:$-264 sps:$4 sm:$0xff]   ;;  %v11316_v21 = vld [vmem:[#allocation2 + $0x1d0] ss:$40 sps:$4 sm:$0xff]  }
 0x70e   : > { %8687 = vmatprep.subr.bf16.mxu1 %v11250_v3  ;;  %v6643_v3 = vld [vmem:[#allocation2 + $0x1f0] sm:$0xff] }
 0x70f   : > { %v11334_v53 = vld [vmem:[%s12502_s6 + $0x5a4] ss:$16 sps:$4 sm:$0xff]  }
 0x710   : > { %8575 = vmatpush2.bf16.msra.mxu0 %v11252_v27  ;;  %v6647_v27 = vld [vmem:[#allocation2 + $0x90] sm:$0xff] }
 0x711   : > { %8688 = vmatpush2.bf16.msra.mxu1 %v11253_v48  ;;  %8770 = vmatprep.subr.bf16.mxu0 %v11259_v54  ;;  %v11317_v48 = vld [vmem:[%s12502_s6 + $0x5e0] ss:$16 sps:$4 sm:$0xff]   ;;  %v16242_v0 = vcombine.high %v6643_v3, %v6647_v27 }
 0x712   : > { %8883 = vmatprep.subr.bf16.mxu1 %v11262_v6  ;;  %v11320_v54 = vld [vmem:[%s12502_s6 + $0x7e0] ss:$16 sps:$4 sm:$0xff]   ;;  %v11325_v6 = vld [vmem:[%s12502_s6 + $0x5c4] ss:$16 sps:$4 sm:$0xff]  }
 0x713   : > { %8577 = vmatmul.mubr.bf16.vlgmr.msra.gmra.mxu0 %v16180_v57 }
 0x714   : > { %8690 = vmatmul.mubr.bf16.vlgmr.msra.gmra.mxu1 %v11254_v13  ;;  %8771 = vmatpush1.bf16.msra.mxu0 %v11257_v40  ;;  %v11328_v13 = vld [vmem:[%s12502_s6 + $0x7c4] ss:$16 sps:$4 sm:$0xff]   ;;  %v11323_v40 = vld [vmem:[%s12502_s6 + $0x5c0] ss:$16 sps:$4 sm:$0xff]  }
 0x715   : > { %8884 = vmatpush1.bf16.msra.mxu1 %v11260_v10  ;;  %8772 = vmatprep.subr.bf16.mxu0 %v11265_v45  ;;  %v11337_v10 = vld [vmem:[%s12502_s6 + $0x7a4] ss:$16 sps:$4 sm:$0xff]  }
 0x716   : > { %8885 = vmatprep.subr.bf16.mxu1 %v11268_v46  ;;  %8586 = vmatprep.mubr.bf16.mxu0 %v16186_v51  ;;  %v11331_v45 = vld [vmem:[#allocation2 + $0x1a0] ss:$-304 sps:$4 sm:$0xff]   ;;  %v16249_v46 = vcombine.low %v6643_v3, %v6647_v27  ;;  %v11391_v3 = vld [vmem:[%s12502_s6 + $0xcc] ss:$16 sps:$4 sm:$0xff]  }
 0x717   : > { %8699 = vmatprep.mubr.bf16.mxu1 %v16188_v11  ;;  %v11394_v27 = vld [vmem:[%s12502_s6 + $0x2cc] ss:$16 sps:$4 sm:$0xff]  }
 0x718   : > { %8773 = vmatpush1.bf16.msra.mxu0 %v11263_v62  ;;  %v11332_v62 = vld [vmem:[%s12502_s6 + $0x5a0] ss:$16 sps:$4 sm:$0xff]  }
 0x719   : > { %8886 = vmatpush1.bf16.msra.mxu1 %v11266_v47  ;;  %8774 = vmatprep.subr.bf16.mxu0 %v11271_v22  ;;  %v11335_v47 = vld [vmem:[%s12502_s6 + $0x7a0] ss:$16 sps:$4 sm:$0xff]   ;;  %v11340_v22 = vld [vmem:[%s12502_s6 + $0x584] ss:$16 sps:$4 sm:$0xff]  }
 0x71a   : > { %8887 = vmatprep.subr.bf16.mxu1 %v11274_v39  ;;  %v11343_v39 = vld [vmem:[%s12502_s6 + $0x784] ss:$16 sps:$4 sm:$0xff]  }
 0x71b   : > { %8587 = vmatmul.mubr.bf16.gmra.mxu0 %v16197_v55 }
 0x71c   : > { %8700 = vmatmul.mubr.bf16.gmra.mxu1 %v16199_v15  ;;  %8775 = vmatpush1.bf16.msra.mxu0 %v11269_v34  ;;  %v11338_v34 = vld [vmem:[%s12502_s6 + $0x580] ss:$16 sps:$4 sm:$0xff]  }
 0x71d   : > { %8888 = vmatpush1.bf16.msra.mxu1 %v11272_v63  ;;  %8776 = vmatprep.subr.bf16.mxu0 %v11277_v41  ;;  %v11349_v63 = vld [vmem:[#allocation2 + $0x88] ss:$240 sps:$4 sm:$0xff]   ;;  %v11352_v41 = vld [vmem:[%s12502_s6 + $0x564] ss:$16 sps:$4 sm:$0xff]  }
 0x71e   : > { %8889 = vmatprep.subr.bf16.mxu1 %v11280_v12  ;;  %8596 = vmatprep.mubr.bf16.mxu0 %v16204_v58  ;;  %v11355_v12 = vld [vmem:[%s12502_s6 + $0x764] ss:$16 sps:$4 sm:$0xff]  }
 0x71f   : > { %8709 = vmatprep.mubr.bf16.mxu1 %v16206_v32 }
 0x720   : > { %8777 = vmatpush1.bf16.msra.mxu0 %v11275_v17  ;;  %v6658_v17 = vld [vmem:[#allocation2 + $0x198] sm:$0xff] }
 0x721   : > { %8890 = vmatpush1.bf16.msra.mxu1 %v11278_v59  ;;  %8778 = vmatprep.subr.bf16.mxu0 %v11283_v28  ;;  %v6662_v59 = vld [vmem:[#allocation2 + $0x158] sm:$0xff] }
 0x722   : > { %8891 = vmatprep.subr.bf16.mxu1 %v11286_v26  ;;  %v11350_v28 = vld [vmem:[%s12502_s6 + $0x560] ss:$16 sps:$4 sm:$0xff]  }
 0x723   : > { %8597 = vmatmul.mubr.bf16.gmra.mxu0 %v16216_v44  ;;  %v11353_v26 = vld [vmem:[%s12502_s6 + $0x760] ss:$16 sps:$4 sm:$0xff]  }
 0x724   : > { %8710 = vmatmul.mubr.bf16.gmra.mxu1 %v16218_v52  ;;  %8779 = vmatpush1.bf16.msra.mxu0 %v11281_v25  ;;  %v11358_v25 = vld [vmem:[%s12502_s6 + $0x544] ss:$16 sps:$4 sm:$0xff]  }
 0x725   : > { %8892 = vmatpush1.bf16.msra.mxu1 %v11284_v38  ;;  %8780 = vmatprep.subr.bf16.mxu0 %v11289_v37  ;;  %v11361_v38 = vld [vmem:[%s12502_s6 + $0x744] ss:$16 sps:$4 sm:$0xff]   ;;  %v16264_v37 = vcombine.high %v6658_v17, %v6662_v59 }
 0x726   : > { %8893 = vmatprep.subr.bf16.mxu1 %v11292_v16  ;;  %8606 = vmatprep.mubr.bf16.mxu0 %v11293_v49  ;;  %v16266_v16 = vld [vmem:[#allocation2 + $0x3c] ss:$-40 sps:$4 sm:$0xff]  }
 0x727   : > { %8719 = vmatprep.mubr.bf16.mxu1 %v11295_v31  ;;  %v11356_v49 = vld [vmem:[%s12502_s6 + $0x540] ss:$16 sps:$4 sm:$0xff]  }
 0x728   : > { %8781 = vmatpush1.bf16.msra.mxu0 %v11287_v29  ;;  %v11359_v31 = vld [vmem:[%s12502_s6 + $0x740] ss:$16 sps:$4 sm:$0xff]   ;;  %v11367_v29 = vld [vmem:[%s12502_s6 + $0x524] ss:$16 sps:$4 sm:$0xff]  }
 0x729   : > { %8894 = vmatpush1.bf16.msra.mxu1 %v11290_v19  ;;  %8782 = vmatprep.subr.bf16.mxu0 %v11301_v33  ;;  %v11370_v19 = vld [vmem:[%s12502_s6 + $0x724] ss:$16 sps:$4 sm:$0xff]  }
 0x72a   : > { %8895 = vmatprep.subr.bf16.mxu1 %v11304_v30  ;;  %v16274_v33 = vld [vmem:[#allocation2 + $0x38] ss:$-40 sps:$4 sm:$0xff]   ;;  %v16276_v30 = vcombine.low %v6658_v17, %v6662_v59 }
 0x72b   : > { %8607 = vmatmul.mubr.bf16.gmra.mxu0 %v11297_v35  ;;  %v11365_v35 = vld [vmem:[%s12502_s6 + $0x520] ss:$16 sps:$4 sm:$0xff]   ;;  %v11416_v17 = vld [vmem:[%s12502_s6 + $0x68] ss:$16 sps:$4 sm:$0xff]  }
 0x72c   : > { %8720 = vmatmul.mubr.bf16.gmra.mxu1 %v11298_v60  ;;  %8783 = vmatpush1.bf16.msra.mxu0 %v11299_v18  ;;  %v11368_v60 = vld [vmem:[%s12502_s6 + $0x720] ss:$16 sps:$4 sm:$0xff]   ;;  %v11373_v18 = vld [vmem:[%s12502_s6 + $0x504] ss:$16 sps:$4 sm:$0xff]   ;;  %v11419_v59 = vld [vmem:[%s12502_s6 + $0x268] ss:$16 sps:$4 sm:$0xff]  }
 0x72d   : > { %8896 = vmatpush1.bf16.msra.mxu1 %v11302_v50  ;;  %8784 = vmatprep.subr.bf16.mxu0 %v11307_v61  ;;  %v11376_v50 = vld [vmem:[%s12502_s6 + $0x704] ss:$16 sps:$4 sm:$0xff]  }
 0x72e   : > { %8897 = vmatprep.subr.bf16.mxu1 %v11310_v42  ;;  %8616 = vmatprep.mubr.bf16.mxu0 %v11311_v4  ;;  %v16282_v61 = vld [vmem:[#allocation2 + $0xdc] ss:$88 sps:$4 sm:$0xff]  }
 0x72f   : > { %8729 = vmatprep.mubr.bf16.mxu1 %v11313_v5  ;;  %v16284_v42 = vld [vmem:[#allocation2 + $0x1c] ss:$48 sps:$4 sm:$0xff]  }
 0x730   : > { %8785 = vmatpush1.bf16.msra.mxu0 %v11305_v56  ;;  %v11371_v4 = vld [vmem:[%s12502_s6 + $0x500] ss:$16 sps:$4 sm:$0xff]   ;;  %v11385_v56 = vld [vmem:[%s12502_s6 + $0xec] ss:$16 sps:$4 sm:$0xff]  }
 0x731   : > { %8898 = vmatpush1.bf16.msra.mxu1 %v11308_v20  ;;  %8786 = vmatprep.subr.bf16.mxu0 %v11319_v7  ;;  %v11374_v5 = vld [vmem:[%s12502_s6 + $0x700] ss:$16 sps:$4 sm:$0xff]   ;;  %v11388_v20 = vld [vmem:[%s12502_s6 + $0x2ec] ss:$16 sps:$4 sm:$0xff]  }
 0x732   : > { %8899 = vmatprep.subr.bf16.mxu1 %v11322_v1  ;;  %v16292_v7 = vld [vmem:[#allocation2 + $0xd8] ss:$88 sps:$4 sm:$0xff]  }
 0x733   : > { %8617 = vmatmul.mubr.bf16.gmra.mxu0 %v11315_v8  ;;  %v16296_v1 = vld [vmem:[#allocation2 + $0x18] ss:$48 sps:$4 sm:$0xff]  }
 0x734   : > { %8730 = vmatmul.mubr.bf16.gmra.mxu1 %v11316_v21  ;;  %8787 = vmatpush2.bf16.msra.mxu0 %v11317_v48  ;;  %v11383_v8 = vld [vmem:[%s12502_s6 + $0xe8] ss:$16 sps:$4 sm:$0xff]   ;;  %v16302_v48 = vld [vmem:[#allocation2 + $0x11c] ss:$-16 sps:$4 sm:$0xff]  }
 0x735   : > { %8900 = vmatpush2.bf16.msra.mxu1 %v11320_v54  ;;  %8788 = vmatprep.subr.bf16.mxu0 %v11325_v6  ;;  %v11386_v21 = vld [vmem:[%s12502_s6 + $0x2e8] ss:$16 sps:$4 sm:$0xff]  }
 0x736   : > { %8901 = vmatprep.subr.bf16.mxu1 %v11328_v13  ;;  %8626 = vmatprep.mubr.bf16.mxu0 %v11329_v23  ;;  %v16304_v54 = vld [vmem:[#allocation2 + $0x9c] ss:$-56 sps:$4 sm:$0xff]   ;;  %v16310_v23 = vld [vmem:[#allocation2 + $0x118] ss:$-16 sps:$4 sm:$0xff]  }
 0x737   : > { %8739 = vmatprep.mubr.bf16.mxu1 %v16242_v0  ;;  %v11389_v6 = vld [vmem:[%s12502_s6 + $0xc8] ss:$16 sps:$4 sm:$0xff]  }
 0x738   : > { %8789 = vmatpush2.bf16.msra.mxu0 %v11323_v40  ;;  %v11392_v13 = vld [vmem:[%s12502_s6 + $0x2c8] ss:$16 sps:$4 sm:$0xff]  }
 0x739   : > { %8902 = vmatpush2.bf16.msra.mxu1 %v11326_v9  ;;  %8790 = vmatprep.subr.bf16.mxu0 %v11334_v53  ;;  %v16312_v40 = vld [vmem:[#allocation2 + $0x98] ss:$-56 sps:$4 sm:$0xff]  }
 0x73a   : > { %8903 = vmatprep.subr.bf16.mxu1 %v11337_v10  ;;  %v11403_v9 = vld [vmem:[%s12502_s6 + $0xac] ss:$16 sps:$4 sm:$0xff]   ;;  %v11401_v10 = vld [vmem:[%s12502_s6 + $0xa8] ss:$16 sps:$4 sm:$0xff]  }
 0x73b   : > { %8627 = vmatmul.mubr.bf16.gmra.mxu0 %v11331_v45  ;;  %v11406_v53 = vld [vmem:[%s12502_s6 + $0x2ac] ss:$16 sps:$4 sm:$0xff]   ;;  %v11404_v45 = vld [vmem:[%s12502_s6 + $0x2a8] ss:$16 sps:$4 sm:$0xff]  }
 0x73c   : > { %8740 = vmatmul.mubr.bf16.gmra.mxu1 %v16249_v46  ;;  %8791 = vmatpush2.bf16.msra.mxu0 %v11332_v62  ;;  %v6620_v62 = vld [vmem:[#allocation2 + $0x138] sm:$0xff] }
 0x73d   : > { %8904 = vmatpush2.bf16.msra.mxu1 %v11335_v47  ;;  %8792 = vmatprep.subr.bf16.mxu0 %v11340_v22  ;;  %v6624_v47 = vld [vmem:[#allocation2 + $0x1b8] sm:$0xff] }
 0x73e   : > { %8905 = vmatprep.subr.bf16.mxu1 %v11343_v39  ;;  %8636 = vmatprep.mubr.bf16.mxu0 %v11344_v24  ;;  %v11409_v22 = vld [vmem:[%s12502_s6 + $0x8c] ss:$16 sps:$4 sm:$0xff]   ;;  %v16322_v24 = vcombine.high %v6620_v62, %v6624_v47 }
 0x73f   : > { %8749 = vmatprep.mubr.bf16.mxu1 %v11346_v36  ;;  %v11412_v39 = vld [vmem:[%s12502_s6 + $0x28c] ss:$16 sps:$4 sm:$0xff]  }
 0x740   : > { %8793 = vmatpush2.bf16.msra.mxu0 %v11338_v34  ;;  %v16324_v36 = vld [vmem:[#allocation2 + $0x144] ss:$-280 sps:$4 sm:$0xff]  }
 0x741   : > { %8906 = vmatpush2.bf16.msra.mxu1 %v11341_v14  ;;  %8794 = vmatprep.subr.bf16.mxu0 %v11352_v41  ;;  %v11407_v34 = vld [vmem:[%s12502_s6 + $0x88] ss:$16 sps:$4 sm:$0xff]  }
 0x742   : > { %8907 = vmatprep.subr.bf16.mxu1 %v11355_v12  ;;  %v11410_v14 = vld [vmem:[%s12502_s6 + $0x288] ss:$16 sps:$4 sm:$0xff]   ;;  %v16336_v12 = vcombine.low %v6620_v62, %v6624_v47 }
 0x743   : > { %8637 = vmatmul.mubr.bf16.gmra.mxu0 %v11348_v43  ;;  %v11418_v43 = vld [vmem:[%s12502_s6 + $0x6c] ss:$16 sps:$4 sm:$0xff]   ;;  %v11446_v62 = vld [vmem:[%s12502_s6 + $0x1e8] ss:$16 sps:$4 sm:$0xff]  }
 0x744   : > { %8750 = vmatmul.mubr.bf16.gmra.mxu1 %v11349_v63  ;;  %8795 = vmatpush2.bf16.msra.mxu0 %v11350_v28  ;;  %v11421_v63 = vld [vmem:[%s12502_s6 + $0x26c] ss:$16 sps:$4 sm:$0xff]   ;;  %v11449_v47 = vld [vmem:[%s12502_s6 + $0x3e8] ss:$16 sps:$4 sm:$0xff]  }
 0x745   : > { %8908 = vmatpush2.bf16.msra.mxu1 %v11353_v26  ;;  %8796 = vmatprep.subr.bf16.mxu0 %v11358_v25  ;;  %v16334_v41 = vld [vmem:[#allocation2 + $0x140] ss:$-280 sps:$4 sm:$0xff]   ;;  %v16342_v25 = vld [vmem:[#allocation2 + $0x164] ss:$-112 sps:$4 sm:$0xff]  }
 0x746   : > { %8909 = vmatprep.subr.bf16.mxu1 %v11361_v38  ;;  %8646 = vmatprep.mubr.bf16.mxu0 %v16264_v37  ;;  %v11424_v28 = vld [vmem:[%s12502_s6 + $0x4c] ss:$16 sps:$4 sm:$0xff]  }
 0x747   : > { %8759 = vmatprep.mubr.bf16.mxu1 %v16266_v16  ;;  %v11427_v26 = vld [vmem:[%s12502_s6 + $0x24c] ss:$16 sps:$4 sm:$0xff]  }
 0x748   : > { %8797 = vmatpush2.bf16.msra.mxu0 %v11356_v49  ;;  %v16344_v38 = vld [vmem:[#allocation2 + $0x34] ss:$-40 sps:$4 sm:$0xff]  }
 0x749   : > { %8910 = vmatpush2.bf16.msra.mxu1 %v11359_v31  ;;  %8798 = vmatprep.subr.bf16.mxu0 %v11367_v29  ;;  %v11422_v49 = vld [vmem:[%s12502_s6 + $0x48] ss:$16 sps:$4 sm:$0xff]   ;;  %v11436_v29 = vld [vmem:[%s12502_s6 + $0x2c] ss:$16 sps:$4 sm:$0xff]  }
 0x74a   : > { %8911 = vmatprep.subr.bf16.mxu1 %v11370_v19  ;;  %v11425_v31 = vld [vmem:[%s12502_s6 + $0x248] ss:$16 sps:$4 sm:$0xff]   ;;  %v11439_v19 = vld [vmem:[%s12502_s6 + $0x22c] ss:$16 sps:$4 sm:$0xff]  }
 0x74b   : > { %8647 = vmatmul.mubr.bf16.gmra.mxu0 %v16276_v30 }
 0x74c   : > { %8760 = vmatmul.mubr.bf16.gmra.mxu1 %v16274_v33  ;;  %8799 = vmatpush2.bf16.msra.mxu0 %v11365_v35  ;;  %v16352_v35 = vld [vmem:[#allocation2 + $0x160] ss:$-112 sps:$4 sm:$0xff]  }
 0x74d   : > { %8912 = vmatpush2.bf16.msra.mxu1 %v11368_v60  ;;  %8800 = vmatprep.subr.bf16.mxu0 %v11373_v18  ;;  %v16354_v60 = vld [vmem:[#allocation2 + $0x30] ss:$-40 sps:$4 sm:$0xff]   ;;  %v6636_v18 = vld [vmem:[#allocation2 + $0x100] sm:$0xff] }
 0x74e   : > { %8913 = vmatprep.subr.bf16.mxu1 %v11376_v50  ;;  %8802 = vmatprep.mubr.bf16.mxu0 %v16282_v61  ;;  %v6640_v50 = vld [vmem:[#allocation2 + $0x20] sm:$0xff] }
 0x74f   : > { %8915 = vmatprep.mubr.bf16.mxu1 %v16284_v42 }
 0x750   : > { %8801 = vmatpush2.bf16.msra.mxu0 %v11371_v4  ;;  %v6637_v4 = vld [vmem:[#allocation2 + $0xc8] sm:$0xff] }
 0x751   : > { %8914 = vmatpush2.bf16.msra.mxu1 %v11374_v5  ;;  %8996 = vmatprep.subr.bf16.mxu0 %v11385_v56  ;;  %v6641_v5 = vld [vmem:[#allocation2 + $0x128] sm:$0xff] }
 0x752   : > { %9109 = vmatprep.subr.bf16.mxu1 %v11388_v20  ;;  %v11434_v56 = vld [vmem:[%s12502_s6 + $0x28] ss:$16 sps:$4 sm:$0xff]  }
 0x753   : > { %8803 = vmatmul.mubr.bf16.vlgmr.msra.gmra.mxu0 %v16292_v7  ;;  %v11437_v20 = vld [vmem:[%s12502_s6 + $0x228] ss:$16 sps:$4 sm:$0xff]  }
 0x754   : > { %8916 = vmatmul.mubr.bf16.vlgmr.msra.gmra.mxu1 %v16296_v1  ;;  %8997 = vmatpush1.bf16.msra.mxu0 %v11383_v8  ;;  %v11442_v8 = vld [vmem:[%s12502_s6 + $0xc] ss:$16 sps:$4 sm:$0xff]  }
 0x755   : > { %9110 = vmatpush1.bf16.msra.mxu1 %v11386_v21  ;;  %8998 = vmatprep.subr.bf16.mxu0 %v11391_v3  ;;  %v11445_v21 = vld [vmem:[%s12502_s6 + $0x20c] ss:$16 sps:$4 sm:$0xff]   ;;  %v16362_v3 = vcombine.high %v6636_v18, %v6640_v50 }
 0x756   : > { %9111 = vmatprep.subr.bf16.mxu1 %v11394_v27  ;;  %8812 = vmatprep.mubr.bf16.mxu0 %v16302_v48  ;;  %v16364_v27 = vcombine.high %v6637_v4, %v6641_v5 }
 0x757   : > { %8925 = vmatprep.mubr.bf16.mxu1 %v16304_v54 }
 0x758   : > { %8999 = vmatpush1.bf16.msra.mxu0 %v11389_v6  ;;  %v11440_v6 = vld [vmem:[%s12502_s6 + $0x8] ss:$16 sps:$4 sm:$0xff]  }
 0x759   : > { %9112 = vmatpush1.bf16.msra.mxu1 %v11392_v13  ;;  %9000 = vmatprep.subr.bf16.mxu0 %v11403_v9  ;;  %v11443_v13 = vld [vmem:[%s12502_s6 + $0x208] ss:$16 sps:$4 sm:$0xff]   ;;  %v11448_v9 = vld [vmem:[%s12502_s6 + $0x1ec] ss:$16 sps:$4 sm:$0xff]  }
 0x75a   : > { %9113 = vmatprep.subr.bf16.mxu1 %v11406_v53  ;;  %v11451_v53 = vld [vmem:[%s12502_s6 + $0x3ec] ss:$16 sps:$4 sm:$0xff]  }
 0x75b   : > { %8813 = vmatmul.mubr.bf16.gmra.mxu0 %v16310_v23 }
 0x75c   : > { %8926 = vmatmul.mubr.bf16.gmra.mxu1 %v16312_v40  ;;  %9001 = vmatpush1.bf16.msra.mxu0 %v11401_v10  ;;  %v16374_v10 = vcombine.low %v6636_v18, %v6640_v50  ;;  %v11472_v18 = vld [vmem:[%s12502_s6 + $0x18c] ss:$16 sps:$4 sm:$0xff]  }
 0x75d   : > { %9114 = vmatpush1.bf16.msra.mxu1 %v11404_v45  ;;  %9002 = vmatprep.subr.bf16.mxu0 %v11409_v22  ;;  %v16376_v45 = vcombine.low %v6637_v4, %v6641_v5  ;;  %v11454_v22 = vld [vmem:[%s12502_s6 + $0x1cc] ss:$16 sps:$4 sm:$0xff]  }
 0x75e   : > { %9115 = vmatprep.subr.bf16.mxu1 %v11412_v39  ;;  %8822 = vmatprep.mubr.bf16.mxu0 %v16322_v24  ;;  %v11457_v39 = vld [vmem:[%s12502_s6 + $0x3cc] ss:$16 sps:$4 sm:$0xff]  }
 0x75f   : > { %8935 = vmatprep.mubr.bf16.mxu1 %v16324_v36  ;;  %v11475_v50 = vld [vmem:[%s12502_s6 + $0x38c] ss:$16 sps:$4 sm:$0xff]  }
 0x760   : > { %9003 = vmatpush1.bf16.msra.mxu0 %v11407_v34  ;;  %v16382_v34 = vld [vmem:[#allocation2 + $0xec] ss:$240 sps:$4 sm:$0xff]  }
 0x761   : > { %9116 = vmatpush1.bf16.msra.mxu1 %v11410_v14  ;;  %9004 = vmatprep.subr.bf16.mxu0 %v11418_v43  ;;  %v16384_v14 = vld [vmem:[#allocation2 + $0x7c] ss:$88 sps:$4 sm:$0xff]  }
 0x762   : > { %9117 = vmatprep.subr.bf16.mxu1 %v11421_v63  ;;  %v11452_v43 = vld [vmem:[%s12502_s6 + $0x1c8] ss:$16 sps:$4 sm:$0xff]  }
 0x763   : > { %8823 = vmatmul.mubr.bf16.gmra.mxu0 %v16336_v12  ;;  %v11455_v63 = vld [vmem:[%s12502_s6 + $0x3c8] ss:$16 sps:$4 sm:$0xff]  }
 0x764   : > { %8936 = vmatmul.mubr.bf16.gmra.mxu1 %v16334_v41  ;;  %9005 = vmatpush1.bf16.msra.mxu0 %v11416_v17  ;;  %v11466_v17 = vld [vmem:[%s12502_s6 + $0x1ac] ss:$16 sps:$4 sm:$0xff]  }
 0x765   : > { %9118 = vmatpush1.bf16.msra.mxu1 %v11419_v59  ;;  %9006 = vmatprep.subr.bf16.mxu0 %v11424_v28  ;;  %v16391_v59 = vld [vmem:[#allocation2 + $0xe8] ss:$240 sps:$4 sm:$0xff]   ;;  %v16404_v5 = vld [vmem:[#allocation2 + $0x1cc] ss:$-56 sps:$4 sm:$0xff]  }
 0x766   : > { %9119 = vmatprep.subr.bf16.mxu1 %v11427_v26  ;;  %8832 = vmatprep.mubr.bf16.mxu0 %v16342_v25  ;;  %v16393_v28 = vld [vmem:[#allocation2 + $0x78] ss:$88 sps:$4 sm:$0xff]  }
 0x767   : > { %8945 = vmatprep.mubr.bf16.mxu1 %v16344_v38  ;;  %v11469_v26 = vld [vmem:[%s12502_s6 + $0x3ac] ss:$16 sps:$4 sm:$0xff]  }
 0x768   : > { %9007 = vmatpush1.bf16.msra.mxu0 %v11422_v49  ;;  %v11464_v49 = vld [vmem:[%s12502_s6 + $0x1a8] ss:$16 sps:$4 sm:$0xff]  }
 0x769   : > { %9120 = vmatpush1.bf16.msra.mxu1 %v11425_v31  ;;  %9008 = vmatprep.subr.bf16.mxu0 %v11436_v29  ;;  %v11467_v31 = vld [vmem:[%s12502_s6 + $0x3a8] ss:$16 sps:$4 sm:$0xff]  }
 0x76a   : > { %9121 = vmatprep.subr.bf16.mxu1 %v11439_v19  ;;  %v6652_v29 = vld [vmem:[#allocation2 + $0xa8] sm:$0xff] }
 0x76b   : > { %8833 = vmatmul.mubr.bf16.gmra.mxu0 %v16352_v35  ;;  %v6656_v19 = vld [vmem:[#allocation2 + $0x68] sm:$0xff] }
 0x76c   : > { %8946 = vmatmul.mubr.bf16.gmra.mxu1 %v16354_v60  ;;  %9009 = vmatpush1.bf16.msra.mxu0 %v11434_v56  ;;  %v16402_v4 = vcombine.high %v6652_v29, %v6656_v19  ;;  %v11470_v56 = vld [vmem:[%s12502_s6 + $0x188] ss:$16 sps:$4 sm:$0xff]  }
 0x76d   : > { %9122 = vmatpush1.bf16.msra.mxu1 %v11437_v20  ;;  %9010 = vmatprep.subr.bf16.mxu0 %v11442_v8  ;;  %v11473_v20 = vld [vmem:[%s12502_s6 + $0x388] ss:$16 sps:$4 sm:$0xff]   ;;  %v11481_v8 = vld [vmem:[%s12502_s6 + $0x16c] ss:$16 sps:$4 sm:$0xff]  }
 0x76e   : > { %9123 = vmatprep.subr.bf16.mxu1 %v11445_v21  ;;  %8842 = vmatprep.mubr.bf16.mxu0 %v16362_v3  ;;  %v16411_v21 = vld [vmem:[#allocation2 + $0x1c8] ss:$-56 sps:$4 sm:$0xff]  }
 0x76f   : > { %8955 = vmatprep.mubr.bf16.mxu1 %v16364_v27 }
 0x770   : > { %9011 = vmatpush1.bf16.msra.mxu0 %v11440_v6  ;;  %v11484_v6 = vld [vmem:[%s12502_s6 + $0x36c] ss:$16 sps:$4 sm:$0xff]  }
 0x771   : > { %9124 = vmatpush1.bf16.msra.mxu1 %v11443_v13  ;;  %9012 = vmatprep.subr.bf16.mxu0 %v11448_v9  ;;  %v11479_v13 = vld [vmem:[%s12502_s6 + $0x168] ss:$16 sps:$4 sm:$0xff]  }
 0x772   : > { %9125 = vmatprep.subr.bf16.mxu1 %v11451_v53  ;;  %v11482_v9 = vld [vmem:[%s12502_s6 + $0x368] ss:$16 sps:$4 sm:$0xff]   ;;  %v16418_v53 = vcombine.low %v6652_v29, %v6656_v19 }
 0x773   : > { %8843 = vmatmul.mubr.bf16.gmra.mxu0 %v16374_v10  ;;  %v16434_v29 = vld [vmem:[#allocation2 + $0xc0] ss:$-104 sps:$4 sm:$0xff]  }
 0x774   : > { %8956 = vmatmul.mubr.bf16.gmra.mxu1 %v16376_v45  ;;  %9013 = vmatpush2.bf16.msra.mxu0 %v11446_v62  ;;  %v6661_v62 = vld [vmem:[#allocation2 + $0x1c0] sm:$0xff] }
 0x775   : > { %9126 = vmatpush2.bf16.msra.mxu1 %v11449_v47  ;;  %9014 = vmatprep.subr.bf16.mxu0 %v11454_v22  ;;  %v6665_v47 = vld [vmem:[#allocation2 + $0xa0] sm:$0xff]  ;;  %v11487_v22 = vld [vmem:[%s12502_s6 + $0x14c] ss:$16 sps:$4 sm:$0xff]  }
 0x776   : > { %9127 = vmatprep.subr.bf16.mxu1 %v11457_v39  ;;  %8852 = vmatprep.mubr.bf16.mxu0 %v16382_v34  ;;  %v11490_v39 = vld [vmem:[%s12502_s6 + $0x34c] ss:$16 sps:$4 sm:$0xff]   ;;  %v16436_v19 = vcombine.low %v6661_v62, %v6665_v47 }
 0x777   : > { %8965 = vmatprep.mubr.bf16.mxu1 %v16384_v14 }
 0x778   : > { %9015 = vmatpush2.bf16.msra.mxu0 %v11452_v43  ;;  %v16422_v43 = vld [vmem:[#allocation2 + $0xc4] ss:$-104 sps:$4 sm:$0xff]  }
 0x779   : > { %9128 = vmatpush2.bf16.msra.mxu1 %v11455_v63  ;;  %9016 = vmatprep.subr.bf16.mxu0 %v11466_v17  ;;  %v16424_v63 = vcombine.high %v6661_v62, %v6665_v47  ;;  %v11485_v17 = vld [vmem:[%s12502_s6 + $0x148] ss:$16 sps:$4 sm:$0xff]  }
 0x77a   : > { %9129 = vmatprep.subr.bf16.mxu1 %v11469_v26  ;;  %v11488_v26 = vld [vmem:[%s12502_s6 + $0x348] ss:$16 sps:$4 sm:$0xff]  }
 0x77b   : > { %8853 = vmatmul.mubr.bf16.gmra.mxu0 %v16391_v59  ;;  %v11730_v62 = vld [vmem:[#allocation2 + $0x1b4] ss:$-72 sps:$4 sm:$0xff]  }
 0x77c   : > { %8966 = vmatmul.mubr.bf16.gmra.mxu1 %v16393_v28  ;;  %9017 = vmatpush2.bf16.msra.mxu0 %v11464_v49  ;;  %v11496_v49 = vld [vmem:[%s12502_s6 + $0x12c] ss:$16 sps:$4 sm:$0xff]   ;;  %v11506_v47 = vld [vmem:[%s12502_s6 + $0x4e8] ss:$16 sps:$4 sm:$0xff]  }
 0x77d   : > { %9130 = vmatpush2.bf16.msra.mxu1 %v11467_v31  ;;  %9018 = vmatprep.subr.bf16.mxu0 %v11472_v18  ;;  %v11499_v31 = vld [vmem:[%s12502_s6 + $0x32c] ss:$16 sps:$4 sm:$0xff]   ;;  %v11494_v18 = vld [vmem:[%s12502_s6 + $0x128] ss:$16 sps:$4 sm:$0xff]  }
 0x77e   : > { %9131 = vmatprep.subr.bf16.mxu1 %v11475_v50  ;;  %8862 = vmatprep.mubr.bf16.mxu0 %v16402_v4  ;;  %v11497_v50 = vld [vmem:[%s12502_s6 + $0x328] ss:$16 sps:$4 sm:$0xff]  }
 0x77f   : > { %8975 = vmatprep.mubr.bf16.mxu1 %v16404_v5 }
 0x780   : > { %9019 = vmatpush2.bf16.msra.mxu0 %v11470_v56  ;;  %v11502_v56 = vld [vmem:[%s12502_s6 + $0x10c] ss:$16 sps:$4 sm:$0xff]  }
 0x781   : > { %9132 = vmatpush2.bf16.msra.mxu1 %v11473_v20  ;;  %9020 = vmatprep.subr.bf16.mxu0 %v11481_v8  ;;  %v11505_v20 = vld [vmem:[%s12502_s6 + $0x30c] ss:$16 sps:$4 sm:$0xff]   ;;  %v11500_v8 = vld [vmem:[%s12502_s6 + $0x108] ss:$16 sps:$4 sm:$0xff]  }
 0x782   : > { %9133 = vmatprep.subr.bf16.mxu1 %v11484_v6  ;;  %v11503_v6 = vld [vmem:[%s12502_s6 + $0x308] ss:$16 sps:$4 sm:$0xff]  }
 0x783   : > { %8863 = vmatmul.mubr.bf16.gmra.mxu0 %v16418_v53 }
 0x784   : > { %8976 = vmatmul.mubr.bf16.gmra.mxu1 %v16411_v21  ;;  %9021 = vmatpush2.bf16.msra.mxu0 %v11479_v13  ;;  %v11508_v13 = vld [vmem:[%s12502_s6 + $0x4ec] ss:$16 sps:$4 sm:$0xff]  }
 0x785   : > { %9134 = vmatpush2.bf16.msra.mxu1 %v11482_v9  ;;  %9022 = vmatprep.subr.bf16.mxu0 %v11487_v22  ;;  %v11511_v9 = vld [vmem:[%s12502_s6 + $0x6ec] ss:$16 sps:$4 sm:$0xff]   ;;  %v11509_v22 = vld [vmem:[%s12502_s6 + $0x6e8] ss:$16 sps:$4 sm:$0xff]  }
 0x786   : > { %9135 = vmatprep.subr.bf16.mxu1 %v11490_v39  ;;  %8872 = vmatprep.mubr.bf16.mxu0 %v16422_v43  ;;  %v11514_v39 = vld [vmem:[%s12502_s6 + $0x4cc] ss:$16 sps:$4 sm:$0xff]  }
 0x787   : > { %8985 = vmatprep.mubr.bf16.mxu1 %v16424_v63 }
 0x788   : > { %9023 = vmatpush2.bf16.msra.mxu0 %v11485_v17  ;;  %v11517_v17 = vld [vmem:[%s12502_s6 + $0x6cc] ss:$16 sps:$4 sm:$0xff]  }
 0x789   : > { %9136 = vmatpush2.bf16.msra.mxu1 %v11488_v26  ;;  %9024 = vmatprep.subr.bf16.mxu0 %v11496_v49  ;;  %v11731_v26 = vld [vmem:[#allocation2 + $0x1b0] ss:$-72 sps:$4 sm:$0xff]  }
 0x78a   : > { %9137 = vmatprep.subr.bf16.mxu1 %v11499_v31  ;;  %v11515_v49 = vld [vmem:[%s12502_s6 + $0x6c8] ss:$16 sps:$4 sm:$0xff]   ;;  %v11520_v31 = vld [vmem:[%s12502_s6 + $0x4ac] ss:$16 sps:$4 sm:$0xff]  }
 0x78b   : > { %8873 = vmatmul.mubr.bf16.gmra.mxu0 %v16434_v29 }
 0x78c   : > { %8986 = vmatmul.mubr.bf16.gmra.mxu1 %v16436_v19  ;;  %9025 = vmatpush2.bf16.msra.mxu0 %v11494_v18  ;;  %v11523_v18 = vld [vmem:[%s12502_s6 + $0x6ac] ss:$16 sps:$4 sm:$0xff]  }
 0x78d   : > { %9138 = vmatpush2.bf16.msra.mxu1 %v11497_v50  ;;  %9026 = vmatprep.subr.bf16.mxu0 %v11502_v56  ;;  %v11518_v50 = vld [vmem:[%s12502_s6 + $0x4a8] ss:$16 sps:$4 sm:$0xff]   ;;  %v11526_v56 = vld [vmem:[%s12502_s6 + $0x48c] ss:$16 sps:$4 sm:$0xff]  }
 0x78e   : > { %9139 = vmatprep.subr.bf16.mxu1 %v11505_v20  ;;  %9028 = vmatprep.mubr.bf16.mxu0 %v16158_v2  ;;  %v11512_v2 = vld [vmem:[%s12502_s6 + $0x4c8] ss:$16 sps:$4 sm:$0xff]   ;;  %v11529_v20 = vld [vmem:[%s12502_s6 + $0x68c] ss:$16 sps:$4 sm:$0xff]  }
 0x78f   : > { %9141 = vmatprep.mubr.bf16.mxu1 %v11730_v62  ;;  %v11544_v62 = vld [vmem:[%s12502_s6 + $0x42c] ss:$16 sps:$4 sm:$0xff]  }
 0x790   : > { %9027 = vmatpush2.bf16.msra.mxu0 %v11500_v8  ;;  %v11524_v8 = vld [vmem:[%s12502_s6 + $0x488] ss:$16 sps:$4 sm:$0xff]  }
 0x791   : > { %9140 = vmatpush2.bf16.msra.mxu1 %v11503_v6  ;;  %9222 = vmatprep.subr.bf16.mxu0 %v11508_v13  ;;  %v11535_v6 = vld [vmem:[%s12502_s6 + $0x66c] ss:$16 sps:$4 sm:$0xff]  }
 0x792   : > { %9335 = vmatprep.subr.bf16.mxu1 %v11511_v9  ;;  %v11538_v13 = vld [vmem:[%s12502_s6 + $0x44c] ss:$16 sps:$4 sm:$0xff]  }
 0x793   : > { %9029 = vmatmul.mubr.bf16.vlgmr.msra.gmra.mxu0 %v16180_v57  ;;  %v11521_v57 = vld [vmem:[%s12502_s6 + $0x6a8] ss:$16 sps:$4 sm:$0xff]   ;;  %v11541_v9 = vld [vmem:[%s12502_s6 + $0x64c] ss:$16 sps:$4 sm:$0xff]  }
 0x794   : > { %9142 = vmatmul.mubr.bf16.vlgmr.msra.gmra.mxu1 %v11731_v26  ;;  %9223 = vmatpush1.bf16.msra.mxu0 %v11506_v47  ;;  %v11547_v47 = vld [vmem:[%s12502_s6 + $0x62c] ss:$16 sps:$4 sm:$0xff]  }
 0x795   : > { %9336 = vmatpush1.bf16.msra.mxu1 %v11509_v22  ;;  %9224 = vmatprep.subr.bf16.mxu0 %v11514_v39  ;;  %v11732_v22 = vld [vmem:[#allocation2 + $0x1ec] ss:$-8 sps:$4 sm:$0xff]  }
 0x796   : > { %9337 = vmatprep.subr.bf16.mxu1 %v11517_v17  ;;  %9038 = vmatprep.mubr.bf16.mxu0 %v16186_v51  ;;  %v11527_v51 = vld [vmem:[%s12502_s6 + $0x688] ss:$16 sps:$4 sm:$0xff]   ;;  %v11550_v17 = vld [vmem:[%s12502_s6 + $0x40c] ss:$16 sps:$4 sm:$0xff]  }
 0x797   : > { %9151 = vmatprep.mubr.bf16.mxu1 %v16188_v11  ;;  %v11532_v11 = vld [vmem:[%s12502_s6 + $0x46c] ss:$16 sps:$4 sm:$0xff]  }
 0x798   : > { %9225 = vmatpush1.bf16.msra.mxu0 %v11512_v2  ;;  %v11733_v39 = vld [vmem:[#allocation2 + $0xfc] ss:$-248 sps:$4 sm:$0xff]   ;;  %v11734_v2 = vld [vmem:[#allocation2 + $0x1e8] ss:$-8 sps:$4 sm:$0xff]  }
 0x799   : > { %9338 = vmatpush1.bf16.msra.mxu1 %v11515_v49  ;;  %9226 = vmatprep.subr.bf16.mxu0 %v11520_v31  ;;  %v11553_v26 = vld [vmem:[%s12502_s6 + $0x60c] ss:$16 sps:$4 sm:$0xff]   ;;  %v11548_v31 = vld [vmem:[%s12502_s6 + $0x408] ss:$16 sps:$4 sm:$0xff]  }
 0x79a   : > { %9339 = vmatprep.subr.bf16.mxu1 %v11523_v18  ;;  %v11735_v49 = vld [vmem:[#allocation2 + $0xf8] ss:$-248 sps:$4 sm:$0xff]  }
 0x79b   : > { %9039 = vmatmul.mubr.bf16.gmra.mxu0 %v16197_v55  ;;  %v11530_v55 = vld [vmem:[%s12502_s6 + $0x468] ss:$16 sps:$4 sm:$0xff]  }
 0x79c   : > { %9152 = vmatmul.mubr.bf16.gmra.mxu1 %v16199_v15  ;;  %9227 = vmatpush1.bf16.msra.mxu0 %v11518_v50  ;;  %v11533_v15 = vld [vmem:[%s12502_s6 + $0x668] ss:$16 sps:$4 sm:$0xff]   ;;  %v11556_v50 = vld [vmem:[%s12502_s6 + $0x5ec] ss:$16 sps:$4 sm:$0xff]  }
 0x79d   : > { %9340 = vmatpush1.bf16.msra.mxu1 %v11521_v57  ;;  %9228 = vmatprep.subr.bf16.mxu0 %v11526_v56  ;;  %v11551_v18 = vld [vmem:[%s12502_s6 + $0x608] ss:$16 sps:$4 sm:$0xff]   ;;  %v11559_v57 = vld [vmem:[%s12502_s6 + $0x7ec] ss:$16 sps:$4 sm:$0xff]  }
 0x79e   : > { %9341 = vmatprep.subr.bf16.mxu1 %v11529_v20  ;;  %9048 = vmatprep.mubr.bf16.mxu0 %v16204_v58  ;;  %v11536_v58 = vld [vmem:[%s12502_s6 + $0x448] ss:$16 sps:$4 sm:$0xff]  }
 0x79f   : > { %9161 = vmatprep.mubr.bf16.mxu1 %v16206_v32  ;;  %v11539_v32 = vld [vmem:[%s12502_s6 + $0x648] ss:$16 sps:$4 sm:$0xff]  }
 0x7a0   : > { %9229 = vmatpush1.bf16.msra.mxu0 %v11524_v8  ;;  %v11736_v56 = vld [vmem:[#allocation2 + $0x14c] ss:$-264 sps:$4 sm:$0xff]   ;;  %v11737_v20 = vld [vmem:[#allocation2 + $0x1d4] ss:$40 sps:$4 sm:$0xff]  }
 0x7a1   : > { %9342 = vmatpush1.bf16.msra.mxu1 %v11527_v51  ;;  %9230 = vmatprep.subr.bf16.mxu0 %v11532_v11  ;;  %v11554_v8 = vld [vmem:[%s12502_s6 + $0x5e8] ss:$16 sps:$4 sm:$0xff]   ;;  %v11562_v11 = vld [vmem:[%s12502_s6 + $0x5cc] ss:$16 sps:$4 sm:$0xff]  }
 0x7a2   : > { %9343 = vmatprep.subr.bf16.mxu1 %v11535_v6  ;;  %v11557_v51 = vld [vmem:[%s12502_s6 + $0x7e8] ss:$16 sps:$4 sm:$0xff]   ;;  %v11565_v6 = vld [vmem:[%s12502_s6 + $0x7cc] ss:$16 sps:$4 sm:$0xff]  }
 0x7a3   : > { %9049 = vmatmul.mubr.bf16.gmra.mxu0 %v16216_v44  ;;  %v11542_v44 = vld [vmem:[%s12502_s6 + $0x428] ss:$16 sps:$4 sm:$0xff]  }
 0x7a4   : > { %9162 = vmatmul.mubr.bf16.gmra.mxu1 %v16218_v52  ;;  %9231 = vmatpush1.bf16.msra.mxu0 %v11530_v55  ;;  %v11545_v52 = vld [vmem:[%s12502_s6 + $0x628] ss:$16 sps:$4 sm:$0xff]  }
 0x7a5   : > { %9344 = vmatpush1.bf16.msra.mxu1 %v11533_v15  ;;  %9232 = vmatprep.subr.bf16.mxu0 %v11538_v13  ;;  %v11738_v55 = vld [vmem:[#allocation2 + $0x148] ss:$-264 sps:$4 sm:$0xff]   ;;  %v11739_v15 = vld [vmem:[#allocation2 + $0x1d0] ss:$40 sps:$4 sm:$0xff]  }
 0x7a6   : > { %9345 = vmatprep.subr.bf16.mxu1 %v11541_v9  ;;  %9058 = vmatprep.mubr.bf16.mxu0 %v11732_v22  ;;  %v11560_v13 = vld [vmem:[%s12502_s6 + $0x5c8] ss:$16 sps:$4 sm:$0xff]  }
 0x7a7   : > { %9171 = vmatprep.mubr.bf16.mxu1 %v11733_v39  ;;  %v11563_v9 = vld [vmem:[%s12502_s6 + $0x7c8] ss:$16 sps:$4 sm:$0xff]   ;;  %v11574_v39 = vld [vmem:[%s12502_s6 + $0x58c] ss:$16 sps:$4 sm:$0xff]  }
 0x7a8   : > { %9233 = vmatpush1.bf16.msra.mxu0 %v11536_v58  ;;  %v11568_v58 = vld [vmem:[%s12502_s6 + $0x5ac] ss:$16 sps:$4 sm:$0xff]   ;;  %v11569_v22 = vld [vmem:[%s12502_s6 + $0x7a8] ss:$16 sps:$4 sm:$0xff]  }
 0x7a9   : > { %9346 = vmatpush1.bf16.msra.mxu1 %v11539_v32  ;;  %9234 = vmatprep.subr.bf16.mxu0 %v11544_v62  ;;  %v11571_v32 = vld [vmem:[%s12502_s6 + $0x7ac] ss:$16 sps:$4 sm:$0xff]   ;;  %v11740_v62 = vld [vmem:[#allocation2 + $0x1a4] ss:$-304 sps:$4 sm:$0xff]  }
 0x7aa   : > { %9347 = vmatprep.subr.bf16.mxu1 %v11547_v47  ;;  %v11566_v47 = vld [vmem:[%s12502_s6 + $0x5a8] ss:$16 sps:$4 sm:$0xff]  }
 0x7ab   : > { %9059 = vmatmul.mubr.bf16.gmra.mxu0 %v11734_v2  ;;  %v11583_v2 = vld [vmem:[%s12502_s6 + $0x76c] ss:$16 sps:$4 sm:$0xff]  }
 0x7ac   : > { %9172 = vmatmul.mubr.bf16.gmra.mxu1 %v11735_v49  ;;  %9235 = vmatpush1.bf16.msra.mxu0 %v11542_v44  ;;  %v11577_v44 = vld [vmem:[%s12502_s6 + $0x78c] ss:$16 sps:$4 sm:$0xff]  }
 0x7ad   : > { %9348 = vmatpush1.bf16.msra.mxu1 %v11545_v52  ;;  %9236 = vmatprep.subr.bf16.mxu0 %v11550_v17  ;;  %v11741_v52 = vld [vmem:[#allocation2 + $0x1a0] ss:$-304 sps:$4 sm:$0xff]   ;;  %v11572_v17 = vld [vmem:[%s12502_s6 + $0x588] ss:$16 sps:$4 sm:$0xff]  }
 0x7ae   : > { %9349 = vmatprep.subr.bf16.mxu1 %v11553_v26  ;;  %9068 = vmatprep.mubr.bf16.mxu0 %v11736_v56  ;;  %v11580_v26 = vld [vmem:[%s12502_s6 + $0x56c] ss:$16 sps:$4 sm:$0xff]  }
 0x7af   : > { %9181 = vmatprep.mubr.bf16.mxu1 %v11737_v20  ;;  %v11742_v49 = vld [vmem:[#allocation2 + $0xbc] ss:$184 sps:$4 sm:$0xff]   ;;  %v11744_v56 = vld [vmem:[#allocation2 + $0xb8] ss:$184 sps:$4 sm:$0xff]  }
 0x7b0   : > { %9237 = vmatpush1.bf16.msra.mxu0 %v11548_v31  ;;  %v11743_v31 = vld [vmem:[#allocation2 + $0x8c] ss:$240 sps:$4 sm:$0xff]   ;;  %v11745_v20 = vld [vmem:[#allocation2 + $0x88] ss:$240 sps:$4 sm:$0xff]  }
 0x7b1   : > { %9350 = vmatpush1.bf16.msra.mxu1 %v11551_v18  ;;  %9238 = vmatprep.subr.bf16.mxu0 %v11556_v50  ;;  %v11581_v18 = vld [vmem:[%s12502_s6 + $0x768] ss:$16 sps:$4 sm:$0xff]   ;;  %v11586_v50 = vld [vmem:[%s12502_s6 + $0x54c] ss:$16 sps:$4 sm:$0xff]  }
 0x7b2   : > { %9351 = vmatprep.subr.bf16.mxu1 %v11559_v57  ;;  %v11589_v57 = vld [vmem:[%s12502_s6 + $0x74c] ss:$16 sps:$4 sm:$0xff]  }
 0x7b3   : > { %9069 = vmatmul.mubr.bf16.gmra.mxu0 %v11738_v55  ;;  %v11590_v55 = vld [vmem:[%s12502_s6 + $0x528] ss:$16 sps:$4 sm:$0xff]  }
 0x7b4   : > { %9182 = vmatmul.mubr.bf16.gmra.mxu1 %v11739_v15  ;;  %9239 = vmatpush2.bf16.msra.mxu0 %v11554_v8  ;;  %v11584_v8 = vld [vmem:[%s12502_s6 + $0x548] ss:$16 sps:$4 sm:$0xff]  }
 0x7b5   : > { %9352 = vmatpush2.bf16.msra.mxu1 %v11557_v51  ;;  %9240 = vmatprep.subr.bf16.mxu0 %v11562_v11  ;;  %v11587_v51 = vld [vmem:[%s12502_s6 + $0x748] ss:$16 sps:$4 sm:$0xff]   ;;  %v11592_v11 = vld [vmem:[%s12502_s6 + $0x52c] ss:$16 sps:$4 sm:$0xff]  }
 0x7b6   : > { %9353 = vmatprep.subr.bf16.mxu1 %v11565_v6  ;;  %9078 = vmatprep.mubr.bf16.mxu0 %v11740_v62  ;;  %v11595_v6 = vld [vmem:[%s12502_s6 + $0x72c] ss:$16 sps:$4 sm:$0xff]   ;;  %v11593_v15 = vld [vmem:[%s12502_s6 + $0x728] ss:$16 sps:$4 sm:$0xff]  }
 0x7b7   : > { %9191 = vmatprep.mubr.bf16.mxu1 %v16242_v0  ;;  %v11575_v0 = vld [vmem:[%s12502_s6 + $0x788] ss:$16 sps:$4 sm:$0xff]  }
 0x7b8   : > { %9241 = vmatpush2.bf16.msra.mxu0 %v11560_v13  ;;  %v11598_v13 = vld [vmem:[%s12502_s6 + $0x50c] ss:$16 sps:$4 sm:$0xff]  }
 0x7b9   : > { %9354 = vmatpush2.bf16.msra.mxu1 %v11563_v9  ;;  %9242 = vmatprep.subr.bf16.mxu0 %v11568_v58  ;;  %v11601_v9 = vld [vmem:[%s12502_s6 + $0x70c] ss:$16 sps:$4 sm:$0xff]   ;;  %v11596_v58 = vld [vmem:[%s12502_s6 + $0x508] ss:$16 sps:$4 sm:$0xff]  }
 0x7ba   : > { %9355 = vmatprep.subr.bf16.mxu1 %v11571_v32  ;;  %v11599_v32 = vld [vmem:[%s12502_s6 + $0x708] ss:$16 sps:$4 sm:$0xff]  }
 0x7bb   : > { %9079 = vmatmul.mubr.bf16.gmra.mxu0 %v11741_v52 }
 0x7bc   : > { %9192 = vmatmul.mubr.bf16.gmra.mxu1 %v16249_v46  ;;  %9243 = vmatpush2.bf16.msra.mxu0 %v11566_v47  ;;  %v11578_v46 = vld [vmem:[%s12502_s6 + $0x568] ss:$16 sps:$4 sm:$0xff]   ;;  %s18536_s6 = sld [smem:[#allocation31_spill]] (%p18535_p12) }
 0x7bd   : > { %9356 = vmatpush2.bf16.msra.mxu1 %v11569_v22  ;;  %9244 = vmatprep.subr.bf16.mxu0 %v11574_v39 }
 0x7be   : > { %9357 = vmatprep.subr.bf16.mxu1 %v11577_v44  ;;  %9088 = vmatprep.mubr.bf16.mxu0 %v11742_v49 }
 0x7bf   : > { %9201 = vmatprep.mubr.bf16.mxu1 %v11743_v31 }
 0x7c0   : > { %9245 = vmatpush2.bf16.msra.mxu0 %v11572_v17 }
 0x7c1   : > { %9358 = vmatpush2.bf16.msra.mxu1 %v11575_v0  ;;  %9246 = vmatprep.subr.bf16.mxu0 %v11580_v26 }
 0x7c2   : > { %9359 = vmatprep.subr.bf16.mxu1 %v11583_v2 }
 0x7c3   : > { %9089 = vmatmul.mubr.bf16.gmra.mxu0 %v11744_v56 }
 0x7c4   : > { %9202 = vmatmul.mubr.bf16.gmra.mxu1 %v11745_v20  ;;  %9247 = vmatpush2.bf16.msra.mxu0 %v11578_v46 }
 0x7c5   : > { %9360 = vmatpush2.bf16.msra.mxu1 %v11581_v18  ;;  %9248 = vmatprep.subr.bf16.mxu0 %v11586_v50 }
 0x7c6   : > { %9361 = vmatprep.subr.bf16.mxu1 %v11589_v57  ;;  %9098 = vmatprep.mubr.bf16.mxu0 %v16264_v37 }
 0x7c7   : > { %9211 = vmatprep.mubr.bf16.mxu1 %v16266_v16 }
 0x7c8   : > { %9249 = vmatpush2.bf16.msra.mxu0 %v11584_v8 }
 0x7c9   : > { %9362 = vmatpush2.bf16.msra.mxu1 %v11587_v51  ;;  %9250 = vmatprep.subr.bf16.mxu0 %v11592_v11 }
 0x7ca   : > { %9363 = vmatprep.subr.bf16.mxu1 %v11595_v6 }
 0x7cb   : > { %9099 = vmatmul.mubr.bf16.gmra.mxu0 %v16276_v30 }
 0x7cc   : > { %9212 = vmatmul.mubr.bf16.gmra.mxu1 %v16274_v33  ;;  %9251 = vmatpush2.bf16.msra.mxu0 %v11590_v55 }
 0x7cd   : > { %9364 = vmatpush2.bf16.msra.mxu1 %v11593_v15  ;;  %9252 = vmatprep.subr.bf16.mxu0 %v11598_v13 }
 0x7ce   : > { %9365 = vmatprep.subr.bf16.mxu1 %v11601_v9  ;;  %9254 = vmatprep.mubr.bf16.mxu0 %v16282_v61  ;;  %v16664_v9 = vld [vmem:[%s12508_s4] sm:$0xf]  ;;  %s10771_s4 = sshll.u32 (%p18535_p12), %s18536_s6, 5 }
 0x7cf   : > { %9367 = vmatprep.mubr.bf16.mxu1 %v16284_v42  ;;  %18472 = vst [vmem:[#allocation149_spill] sm:$0xff] %v16664_v9  ;;  %s17100_s22 = scalar_lea.vmem (%p18535_p12), %s18537_s25, %s10771_s4 }
 0x7d0   : > { %9253 = vmatpush2.bf16.msra.mxu0 %v11596_v58 }
 0x7d1   : > { %9366 = vmatpush2.bf16.msra.mxu1 %v11599_v32 }
 0x7d3   : > { %v16528_v37 = vpop.f32.mrf.mxu0  ;;  %9255 = vmatmul.mubr.bf16.vlgmr.msra.gmra.mxu0 %v16292_v7 }
 0x7d4   : > { %v16530_v16 = vpop.f32.mrf.mxu1  ;;  %9368 = vmatmul.mubr.bf16.vlgmr.msra.gmra.mxu1 %v16296_v1  ;;  %9264 = vmatprep.mubr.bf16.mxu0 %v16302_v48 }
 0x7d5   : > { %9377 = vmatprep.mubr.bf16.mxu1 %v16304_v54  ;;  %v16536_v33 = vpop.f32.mrf.mxu0 }
 0x7d6   : > { %v16538_v30 = vpop.f32.mrf.mxu1 }
 0x7d7   : > { %v16540_v61 = vpop.f32.mrf.mxu0 }
 0x7d8   : > { %v16542_v42 = vpop.f32.mrf.mxu1 }
 0x7d9   : > { %v16544_v62 = vpop.f32.mrf.mxu0 }
 0x7da   : > { %v16546_v47 = vpop.f32.mrf.mxu1 }
 0x7db   : > { %v16548_v22 = vpop.f32.mrf.mxu0  ;;  %9265 = vmatmul.mubr.bf16.gmra.mxu0 %v16310_v23 }
 0x7dc   : > { %v16550_v7 = vpop.f32.mrf.mxu1  ;;  %9378 = vmatmul.mubr.bf16.gmra.mxu1 %v16312_v40  ;;  %9274 = vmatprep.mubr.bf16.mxu0 %v16322_v24 }
 0x7dd   : > { %9387 = vmatprep.mubr.bf16.mxu1 %v16324_v36  ;;  %v16556_v1 = vpop.f32.mrf.mxu0 }
 0x7de   : > { %v16558_v48 = vpop.f32.mrf.mxu1 }
 0x7df   : > { %v16560_v54 = vpop.f32.mrf.mxu0 }
 0x7e0   : > { %v16562_v39 = vpop.f32.mrf.mxu1 }
 0x7e1   : > { %v16564_v44 = vpop.f32.mrf.mxu0 }
 0x7e2   : > { %v16566_v52 = vpop.f32.mrf.mxu1 }
 0x7e3   : > { %v16568_v17 = vpop.f32.mrf.mxu0  ;;  %9275 = vmatmul.mubr.bf16.gmra.mxu0 %v16336_v12 }
 0x7e4   : > { %v16570_v23 = vpop.f32.mrf.mxu1  ;;  %9388 = vmatmul.mubr.bf16.gmra.mxu1 %v16334_v41  ;;  %9284 = vmatprep.mubr.bf16.mxu0 %v16342_v25 }
 0x7e5   : > { %9397 = vmatprep.mubr.bf16.mxu1 %v16344_v38  ;;  %v16576_v40 = vpop.f32.mrf.mxu0 }
 0x7e6   : > { %v16578_v24 = vpop.f32.mrf.mxu1 }
 0x7e7   : > { %v16580_v36 = vpop.f32.mrf.mxu0 }
 0x7e8   : > { %v16582_v0 = vpop.f32.mrf.mxu1 }
 0x7e9   : > { %v16584_v26 = vpop.f32.mrf.mxu0 }
 0x7ea   : > { %v16586_v2 = vpop.f32.mrf.mxu1 }
 0x7eb   : > { %v16588_v49 = vpop.f32.mrf.mxu0  ;;  %9285 = vmatmul.mubr.bf16.gmra.mxu0 %v16352_v35 }
 0x7ec   : > { %v16590_v12 = vpop.f32.mrf.mxu1  ;;  %9398 = vmatmul.mubr.bf16.gmra.mxu1 %v16354_v60  ;;  %9294 = vmatprep.mubr.bf16.mxu0 %v16362_v3 }
 0x7ed   : > { %9407 = vmatprep.mubr.bf16.mxu1 %v16364_v27  ;;  %v16596_v41 = vpop.f32.mrf.mxu0 }
 0x7ee   : > { %v16598_v25 = vpop.f32.mrf.mxu1 }
 0x7ef   : > { %v16600_v38 = vpop.f32.mrf.mxu0 }
 0x7f0   : > { %v16602_v31 = vpop.f32.mrf.mxu1 }
 0x7f1   : > { %v16604_v46 = vpop.f32.mrf.mxu0 }
 0x7f2   : > { %v16606_v18 = vpop.f32.mrf.mxu1 }
 0x7f3   : > { %v16608_v50 = vpop.f32.mrf.mxu0  ;;  %9295 = vmatmul.mubr.bf16.gmra.mxu0 %v16374_v10 }
 0x7f4   : > { %v16610_v35 = vpop.f32.mrf.mxu1  ;;  %9408 = vmatmul.mubr.bf16.gmra.mxu1 %v16376_v45  ;;  %9304 = vmatprep.mubr.bf16.mxu0 %v16382_v34 }
 0x7f5   : > { %9417 = vmatprep.mubr.bf16.mxu1 %v16384_v14  ;;  %v16616_v60 = vpop.f32.mrf.mxu0  ;;  %v6924_v14 = vlaneseq }
 0x7f6   : > { %v16618_v3 = vpop.f32.mrf.mxu1 }
 0x7f7   : > { %v16620_v27 = vpop.f32.mrf.mxu0 }
 0x7f8   : > { %v16622_v57 = vpop.f32.mrf.mxu1 }
 0x7f9   : > { %v16624_v56 = vpop.f32.mrf.mxu0 }
 0x7fa   : > { %v16626_v20 = vpop.f32.mrf.mxu1 }
 0x7fb   : > { %v16628_v8 = vpop.f32.mrf.mxu0  ;;  %9305 = vmatmul.mubr.bf16.gmra.mxu0 %v16391_v59  ;;  %v16648_v59 = vshrl.u32 %v6924_v14, 7 }
 0x7fc   : > { %v16630_v10 = vpop.f32.mrf.mxu1  ;;  %9418 = vmatmul.mubr.bf16.gmra.mxu1 %v16393_v28  ;;  %9314 = vmatprep.mubr.bf16.mxu0 %v16402_v4 }
 0x7fd   : > { %9427 = vmatprep.mubr.bf16.mxu1 %v16404_v5  ;;  %v16636_v45 = vpop.f32.mrf.mxu0  ;;  %18468 = vst [vmem:[#allocation145_spill] sm:$0xff] %v16648_v59  ;;  %v6926_v13 = vsub.s32 0, %v16648_v59 }
 0x7fe   : > { %v16638_v34 = vpop.f32.mrf.mxu1 }
 0x7ff   : > { %v16640_v51 = vpop.f32.mrf.mxu0 }
 0x800   : > { %v16642_v11 = vpop.f32.mrf.mxu1 }
 0x801   : > { %v16644_v6 = vpop.f32.mrf.mxu0 }
 0x802   : > { %v16646_v55 = vpop.f32.mrf.mxu1 }
 0x803   : > { %18467 = vst [vmem:[#allocation144_spill] sm:$0xff] %v16646_v55  ;;  %v16650_v28 = vpop.f32.mrf.mxu0  ;;  %9315 = vmatmul.mubr.bf16.gmra.mxu0 %v16418_v53  ;;  %v6930_v53 = vsub.s32 1, %v16648_v59 }
 0x804   : > { %v16652_v4 = vpop.f32.mrf.mxu1  ;;  %9428 = vmatmul.mubr.bf16.gmra.mxu1 %v16411_v21  ;;  %9324 = vmatprep.mubr.bf16.mxu0 %v16422_v43  ;;  %v16676_v43 = vrot.slane %v16664_v9, %v6926_v13 }
 0x805   : > { %18469 = vst [vmem:[#allocation146_spill] sm:$0xff] %v16652_v4  ;;  %9437 = vmatprep.mubr.bf16.mxu1 %v16424_v63  ;;  %v16658_v5 = vpop.f32.mrf.mxu0 }
 0x806   : > { %18470 = vst [vmem:[#allocation147_spill] sm:$0xff] %v16658_v5  ;;  %v16660_v15 = vpop.f32.mrf.mxu1  ;;  %v8593_v5 = vadd.f32 %v16560_v54, %v16676_v43 }
 0x807   : > { %18471 = vst [vmem:[#allocation148_spill] sm:$0xff] %v16660_v15  ;;  %v16666_v58 = vpop.f32.mrf.mxu0 }
 0x808   : > { %18473 = vst [vmem:[#allocation150_spill] sm:$0xff] %v16666_v58  ;;  %v16668_v32 = vpop.f32.mrf.mxu1  ;;  %v16685_v58 = vrot.slane %v16664_v9, %v6930_v53  ;;  %v8583_v9 = vadd.f32 %v16540_v61, %v16676_v43  ;;  %v8706_v54 = vadd.f32 %v16562_v39, %v8593_v5  ;;  %v8603_v39 = vadd.f32 %v16580_v36, %v16676_v43 }
 0x809   : > { %18474 = vst [vmem:[#allocation151_spill] sm:$0xff] %v16668_v32  ;;  %v16671_v14 = vpop.f32.mrf.mxu0 }
 0x80a   : > { %18475 = vst [vmem:[#allocation152_spill] sm:$0xff] %v16671_v14  ;;  %v16673_v21 = vpop.f32.mrf.mxu1  ;;  %v8591_v61 = vadd.f32 %v16556_v1, %v16685_v58 }
 0x80b   : > { %18476 = vst [vmem:[#allocation153_spill] sm:$0xff] %v16673_v21  ;;  %v16678_v63 = vpop.f32.mrf.mxu0  ;;  %9325 = vmatmul.mubr.bf16.gmra.mxu0 %v16434_v29  ;;  %v8579_v21 = vadd.f32 %v16528_v37, %v16676_v43 }
 0x80c   : > { %18477 = vst [vmem:[#allocation154_spill] sm:$0xff] %v16678_v63  ;;  %v16680_v15 = vpop.f32.mrf.mxu1  ;;  %9438 = vmatmul.mubr.bf16.gmra.mxu1 %v16436_v19 }
 0x80d   : > { %18478 = vst [vmem:[#allocation155_spill] sm:$0xff] %v16680_v15  ;;  %v16687_v32 = vpop.f32.mrf.mxu0  ;;  %v8581_v15 = vadd.f32 %v16536_v33, %v16685_v58  ;;  %v8692_v53 = vadd.f32 %v16530_v16, %v8579_v21  ;;  %v8589_v33 = vadd.f32 %v16548_v22, %v16676_v43 }
 0x80e   : > { %18479 = vst [vmem:[#allocation156_spill] sm:$0xff] %v16687_v32  ;;  %v16689_v59 = vpop.f32.mrf.mxu1 }
 0x80f   : > { %18480 = vst [vmem:[#allocation157_spill] sm:$0xff] %v16689_v59  ;;  %v16693_v13 = vpop.f32.mrf.mxu0  ;;  %v8694_v37 = vadd.f32 %v16538_v30, %v8581_v15 }
 0x810   : > { %18481 = vst [vmem:[#allocation158_spill] sm:$0xff] %v16693_v13  ;;  %v16695_v14 = vpop.f32.mrf.mxu1  ;;  %v8585_v13 = vadd.f32 %v16544_v62, %v16685_v58 }
 0x811   : > { %18482 = vst [vmem:[#allocation159_spill] sm:$0xff] %v16695_v14  ;;  %v16699_v29 = vpop.f32.mrf.mxu0 }
 0x812   : > { %18483 = vst [vmem:[#allocation160_spill] sm:$0xff] %v16699_v29  ;;  %v16701_v19 = vpop.f32.mrf.mxu1  ;;  %v8698_v30 = vadd.f32 %v16546_v47, %v8585_v13  ;;  %v8595_v47 = vadd.f32 %v16564_v44, %v16685_v58 }
 0x813   : > { %18484 = vst [vmem:[#allocation161_spill] sm:$0xff] %v16701_v19  ;;  %v8804_v59 = vpop.f32.mrf.mxu0  ;;  %v8696_v19 = vadd.f32 %v16542_v42, %v8583_v9 }
 0x814   : > { %v8917_v32 = vpop.f32.mrf.mxu1  ;;  %v8805_v14 = vadd.f32 %v8804_v59, %v8692_v53  ;;  %v8702_v59 = vadd.f32 %v16550_v7, %v8589_v33  ;;  %v8599_v7 = vadd.f32 %v16568_v17, %v16676_v43  ;;  %v8708_v44 = vadd.f32 %v16566_v52, %v8595_v47 }
 0x815   : > { %v8806_v63 = vpop.f32.mrf.mxu0  ;;  %v8605_v52 = vadd.f32 %v16584_v26, %v16685_v58  ;;  %v8611_v26 = vadd.f32 %v16596_v41, %v16685_v58 }
 0x816   : > { %v8919_v29 = vpop.f32.mrf.mxu1  ;;  %v8918_v4 = vadd.f32 %v8917_v32, %v8805_v14  ;;  %v8807_v16 = vadd.f32 %v8806_v63, %v8694_v37  ;;  %v8704_v32 = vadd.f32 %v16558_v48, %v8591_v61  ;;  %v8601_v48 = vadd.f32 %v16576_v40, %v16685_v58 }
 0x817   : > { %v8808_v21 = vpop.f32.mrf.mxu0 }
 0x818   : > { %v8921_v55 = vpop.f32.mrf.mxu1  ;;  %11602 = vtanh.f32 %v8918_v4  ;;  %v8920_v15 = vadd.f32 %v8919_v29, %v8807_v16  ;;  %v8809_v62 = vadd.f32 %v8808_v21, %v8696_v19  ;;  %v8712_v21 = vadd.f32 %v16570_v23, %v8599_v7 }
 0x819   : > { %v8810_v53 = vpop.f32.mrf.mxu0  ;;  %v8714_v40 = vadd.f32 %v16578_v24, %v8601_v48 }
 0x81a   : > { %v8923_v22 = vpop.f32.mrf.mxu1  ;;  %11604 = vtanh.f32 %v8920_v15  ;;  %v8922_v42 = vadd.f32 %v8921_v55, %v8809_v62  ;;  %v8811_v9 = vadd.f32 %v8810_v53, %v8698_v30 }
 0x81b   : > { %v8814_v1 = vpop.f32.mrf.mxu0 }
 0x81c   : > { %v8927_v14 = vpop.f32.mrf.mxu1  ;;  %11606 = vtanh.f32 %v8922_v42  ;;  %v8924_v4 = vadd.f32 %v8923_v22, %v8811_v9  ;;  %v8815_v63 = vadd.f32 %v8814_v1, %v8702_v59  ;;  %v8609_v42 = vadd.f32 %v16588_v49, %v16676_v43 }
 0x81d   : > { %v8816_v13 = vpop.f32.mrf.mxu0 }
 0x81e   : > { %v8929_v29 = vpop.f32.mrf.mxu1  ;;  %11608 = vtanh.f32 %v8924_v4  ;;  %v8928_v55 = vadd.f32 %v8927_v14, %v8815_v63  ;;  %v8817_v19 = vadd.f32 %v8816_v13, %v8704_v32  ;;  %v8716_v32 = vadd.f32 %v16582_v0, %v8603_v39 }
 0x81f   : > { %v8818_v37 = vpop.f32.mrf.mxu0  ;;  %v8718_v63 = vadd.f32 %v16586_v2, %v8605_v52  ;;  %v8722_v0 = vadd.f32 %v16590_v12, %v8609_v42  ;;  %v8724_v2 = vadd.f32 %v16598_v25, %v8611_v26 }
 0x820   : > { %v8931_v33 = vpop.f32.mrf.mxu1  ;;  %11610 = vtanh.f32 %v8928_v55  ;;  %v8930_v16 = vadd.f32 %v8929_v29, %v8817_v19  ;;  %v8819_v61 = vadd.f32 %v8818_v37, %v8706_v54  ;;  %v8613_v55 = vadd.f32 %v16600_v38, %v16676_v43 }
 0x821   : > { %v8820_v17 = vpop.f32.mrf.mxu0  ;;  %v8619_v38 = vadd.f32 %v16608_v50, %v16676_v43 }
 0x822   : > { %v8933_v30 = vpop.f32.mrf.mxu1  ;;  %11612 = vtanh.f32 %v8930_v16  ;;  %v8932_v5 = vadd.f32 %v8931_v33, %v8819_v61  ;;  %v8821_v15 = vadd.f32 %v8820_v17, %v8708_v44  ;;  %v8615_v44 = vadd.f32 %v16604_v46, %v16685_v58 }
 0x823   : > { %v8824_v62 = vpop.f32.mrf.mxu0  ;;  %v8621_v46 = vadd.f32 %v16616_v60, %v16685_v58 }
 0x824   : > { %v8937_v59 = vpop.f32.mrf.mxu1  ;;  %11614 = vtanh.f32 %v8932_v5  ;;  %v8934_v53 = vadd.f32 %v8933_v30, %v8821_v15  ;;  %v8825_v23 = vadd.f32 %v8824_v62, %v8712_v21  ;;  %v8726_v30 = vadd.f32 %v16602_v31, %v8613_v55 }
 0x825   : > { %v11603_v22 = vpop.eup %11602  ;;  %v8826_v36 = vpop.f32.mrf.mxu0  ;;  %v8728_v62 = vadd.f32 %v16606_v18, %v8615_v44  ;;  %v8732_v31 = vadd.f32 %v16610_v35, %v8619_v38  ;;  %v8734_v18 = vadd.f32 %v16618_v3, %v8621_v46  ;;  %v8635_v44 = vadd.f32 %v16644_v6, %v16685_v58  ;;  %v18485_v6 = vld [vmem:[#allocation147_spill] sm:$0xff]  ;;  %v18486_v46 = vld [vmem:[#allocation144_spill] sm:$0xff] }
 0x826   : > { %v8939_v9 = vpop.f32.mrf.mxu1  ;;  %9512 = vst [vmem:[%s12510_s23] sm:$0xff] %v11603_v22  ;;  %11616 = vtanh.f32 %v8934_v53  ;;  %v8938_v24 = vadd.f32 %v8937_v59, %v8825_v23  ;;  %v8827_v1 = vadd.f32 %v8826_v36, %v8714_v40  ;;  %v8623_v22 = vadd.f32 %v16620_v27, %v16676_v43 }
 0x827   : > { %v11605_v14 = vpop.eup %11604  ;;  %v8828_v47 = vpop.f32.mrf.mxu0  ;;  %v8629_v27 = vadd.f32 %v16628_v8, %v16676_v43 }
 0x828   : > { %v8941_v4 = vpop.f32.mrf.mxu1  ;;  %9513 = vst [vmem:[%s12510_s23 + $0x8] sm:$0xff] %v11605_v14  ;;  %11618 = vtanh.f32 %v8938_v24  ;;  %v8940_v49 = vadd.f32 %v8939_v9, %v8827_v1  ;;  %v8829_v7 = vadd.f32 %v8828_v47, %v8716_v32  ;;  %v8625_v24 = vadd.f32 %v16624_v56, %v16685_v58 }
 0x829   : > { %v11607_v13 = vpop.eup %11606  ;;  %v8830_v29 = vpop.f32.mrf.mxu0  ;;  %v8631_v56 = vadd.f32 %v16636_v45, %v16685_v58 }
 0x82a   : > { %v8943_v54 = vpop.f32.mrf.mxu1  ;;  %9516 = vst [vmem:[%s12510_s23 + $0x20] sm:$0xff] %v11607_v13  ;;  %11620 = vtanh.f32 %v8940_v49  ;;  %v8942_v41 = vadd.f32 %v8941_v4, %v8829_v7  ;;  %v8831_v19 = vadd.f32 %v8830_v29, %v8718_v63  ;;  %v8736_v4 = vadd.f32 %v16622_v57, %v8623_v22 }
 0x82b   : > { %v11609_v48 = vpop.eup %11608  ;;  %v8834_v37 = vpop.f32.mrf.mxu0  ;;  %v8742_v57 = vadd.f32 %v16630_v10, %v8629_v27  ;;  %v18491_v27 = vld [vmem:[#allocation154_spill] sm:$0xff] }
 0x82c   : > { %v8947_v33 = vpop.f32.mrf.mxu1  ;;  %9517 = vst [vmem:[%s12510_s23 + $0x28] sm:$0xff] %v11609_v48  ;;  %11622 = vtanh.f32 %v8942_v41  ;;  %v8944_v12 = vadd.f32 %v8943_v54, %v8831_v19  ;;  %v8835_v16 = vadd.f32 %v8834_v37, %v8722_v0  ;;  %v8738_v0 = vadd.f32 %v16626_v20, %v8625_v24 }
 0x82d   : > { %v11611_v61 = vpop.eup %11610  ;;  %v8836_v21 = vpop.f32.mrf.mxu0  ;;  %v8633_v19 = vadd.f32 %v16640_v51, %v16676_v43  ;;  %v8744_v20 = vadd.f32 %v16638_v34, %v8631_v56  ;;  %v8639_v51 = vadd.f32 %v16650_v28, %v16676_v43 }
 0x82e   : > { %v8949_v17 = vpop.f32.mrf.mxu1  ;;  %9520 = vst [vmem:[%s12510_s23 + $0x40] sm:$0xff] %v11611_v61  ;;  %11624 = vtanh.f32 %v8944_v12  ;;  %v8948_v25 = vadd.f32 %v8947_v33, %v8835_v16  ;;  %v8837_v39 = vadd.f32 %v8836_v21, %v8724_v2 }
 0x82f   : > { %v11613_v5 = vpop.eup %11612  ;;  %v8838_v15 = vpop.f32.mrf.mxu0  ;;  %v8746_v21 = vadd.f32 %v16642_v11, %v8633_v19  ;;  %v18487_v11 = vld [vmem:[#allocation146_spill] sm:$0xff] }
 0x830   : > { %v8951_v40 = vpop.f32.mrf.mxu1  ;;  %9521 = vst [vmem:[%s12510_s23 + $0x48] sm:$0xff] %v11613_v5  ;;  %11626 = vtanh.f32 %v8948_v25  ;;  %v8950_v50 = vadd.f32 %v8949_v17, %v8837_v39  ;;  %v8839_v59 = vadd.f32 %v8838_v15, %v8726_v30  ;;  %v8641_v25 = vadd.f32 %v18485_v6, %v16685_v58 }
 0x831   : > { %v11615_v52 = vpop.eup %11614  ;;  %v8840_v53 = vpop.f32.mrf.mxu0  ;;  %v8748_v15 = vadd.f32 %v18486_v46, %v8635_v44 }
 0x832   : > { %v8953_v23 = vpop.f32.mrf.mxu1  ;;  %9524 = vst [vmem:[%s12510_s23 + $0x60] sm:$0xff] %v11615_v52  ;;  %11628 = vtanh.f32 %v8950_v50  ;;  %v8952_v60 = vadd.f32 %v8951_v40, %v8839_v59  ;;  %v8841_v42 = vadd.f32 %v8840_v53, %v8728_v62  ;;  %v8752_v50 = vadd.f32 %v18487_v11, %v8639_v51  ;;  %v18500_v11 = vld [vmem:[#allocation161_spill] sm:$0xff] }
 0x833   : > { %v11617_v36 = vpop.eup %11616  ;;  %v8844_v9 = vpop.f32.mrf.mxu0 }
 0x834   : > { %v8957_v32 = vpop.f32.mrf.mxu1  ;;  %9525 = vst [vmem:[%s12510_s23 + $0x68] sm:$0xff] %v11617_v36  ;;  %11630 = vtanh.f32 %v8952_v60  ;;  %v8954_v35 = vadd.f32 %v8953_v23, %v8841_v42  ;;  %v8845_v1 = vadd.f32 %v8844_v9, %v8732_v31  ;;  %v18488_v31 = vld [vmem:[#allocation150_spill] sm:$0xff]  ;;  %v18489_v42 = vld [vmem:[#allocation148_spill] sm:$0xff] }
 0x835   : > { %v11619_v14 = vpop.eup %11618  ;;  %v8846_v26 = vpop.f32.mrf.mxu0  ;;  %v8643_v53 = vadd.f32 %v18488_v31, %v16676_v43  ;;  %v8754_v36 = vadd.f32 %v18489_v42, %v8641_v25 }
 0x836   : > { %v8959_v47 = vpop.f32.mrf.mxu1  ;;  %9528 = vst [vmem:[%s12510_s23 + $0x80] sm:$0xff] %v11619_v14  ;;  %11632 = vtanh.f32 %v8954_v35  ;;  %v8958_v3 = vadd.f32 %v8957_v32, %v8845_v1  ;;  %v8847_v63 = vadd.f32 %v8846_v26, %v8734_v18  ;;  %v18490_v32 = vld [vmem:[#allocation152_spill] sm:$0xff]  ;;  %v8649_v26 = vadd.f32 %v18491_v27, %v16676_v43 }
 0x837   : > { %v11621_v49 = vpop.eup %11620  ;;  %v8848_v7 = vpop.f32.mrf.mxu0  ;;  %v8645_v24 = vadd.f32 %v18490_v32, %v16685_v58 }
 0x838   : > { %v8961_v13 = vpop.f32.mrf.mxu1  ;;  %9529 = vst [vmem:[%s12510_s23 + $0x88] sm:$0xff] %v11621_v49  ;;  %11634 = vtanh.f32 %v8958_v3  ;;  %v8960_v8 = vadd.f32 %v8959_v47, %v8847_v63  ;;  %v8849_v29 = vadd.f32 %v8848_v7, %v8736_v4  ;;  %v18492_v3 = vld [vmem:[#allocation151_spill] sm:$0xff] }
 0x839   : > { %v11623_v54 = vpop.eup %11622  ;;  %v8850_v55 = vpop.f32.mrf.mxu0  ;;  %v8756_v63 = vadd.f32 %v18492_v3, %v8643_v53 }
 0x83a   : > { %v8963_v41 = vpop.f32.mrf.mxu1  ;;  %9532 = vst [vmem:[%s12510_s23 + $0xa0] sm:$0xff] %v11623_v54  ;;  %11636 = vtanh.f32 %v8960_v8  ;;  %v8962_v45 = vadd.f32 %v8961_v13, %v8849_v29  ;;  %v8851_v48 = vadd.f32 %v8850_v55, %v8738_v0  ;;  %v18493_v13 = vld [vmem:[#allocation156_spill] sm:$0xff]  ;;  %v18494_v54 = vld [vmem:[#allocation153_spill] sm:$0xff] }
 0x83b   : > { %v11625_v2 = vpop.eup %11624  ;;  %v8854_v37 = vpop.f32.mrf.mxu0  ;;  %v8651_v0 = vadd.f32 %v18493_v13, %v16685_v58 }
 0x83c   : > { %v8967_v33 = vpop.f32.mrf.mxu1  ;;  %9533 = vst [vmem:[%s12510_s23 + $0xa8] sm:$0xff] %v11625_v2  ;;  %11638 = vtanh.f32 %v8962_v45  ;;  %v8964_v10 = vadd.f32 %v8963_v41, %v8851_v48  ;;  %v8855_v12 = vadd.f32 %v8854_v37, %v8742_v57  ;;  %v8758_v57 = vadd.f32 %v18494_v54, %v8645_v24  ;;  %v18495_v45 = vld [vmem:[#allocation155_spill] sm:$0xff]  ;;  %v18496_v37 = vld [vmem:[#allocation158_spill] sm:$0xff] }
 0x83d   : > { %v11627_v16 = vpop.eup %11626  ;;  %v8856_v61 = vpop.f32.mrf.mxu0  ;;  %v8762_v48 = vadd.f32 %v18495_v45, %v8649_v26 }
 0x83e   : > { %v8969_v38 = vpop.f32.mrf.mxu1  ;;  %9536 = vst [vmem:[%s12510_s23 + $0xc0] sm:$0xff] %v11627_v16  ;;  %11640 = vtanh.f32 %v8964_v10  ;;  %v8968_v34 = vadd.f32 %v8967_v33, %v8855_v12  ;;  %v8857_v17 = vadd.f32 %v8856_v61, %v8744_v20  ;;  %v8653_v33 = vadd.f32 %v18496_v37, %v16676_v43  ;;  %v18497_v16 = vld [vmem:[#allocation157_spill] sm:$0xff] }
 0x83f   : > { %v11629_v30 = vpop.eup %11628  ;;  %v8858_v39 = vpop.f32.mrf.mxu0  ;;  %v8764_v51 = vadd.f32 %v18497_v16, %v8651_v0 }
 0x840   : > { %v8971_v5 = vpop.f32.mrf.mxu1  ;;  %9537 = vst [vmem:[%s12510_s23 + $0xc8] sm:$0xff] %v11629_v30  ;;  %11642 = vtanh.f32 %v8968_v34  ;;  %v8970_v28 = vadd.f32 %v8969_v38, %v8857_v17  ;;  %v8859_v40 = vadd.f32 %v8858_v39, %v8746_v21  ;;  %v18498_v21 = vld [vmem:[#allocation160_spill] sm:$0xff]  ;;  %v18499_v39 = vld [vmem:[#allocation159_spill] sm:$0xff] }
 0x841   : > { %v11631_v62 = vpop.eup %11630  ;;  %v8860_v59 = vpop.f32.mrf.mxu0  ;;  %v8655_v34 = vadd.f32 %v18498_v21, %v16685_v58 }
 0x842   : > { %v8973_v52 = vpop.f32.mrf.mxu1  ;;  %9540 = vst [vmem:[%s12510_s23 + $0xe0] sm:$0xff] %v11631_v62  ;;  %11644 = vtanh.f32 %v8970_v28  ;;  %v8972_v23 = vadd.f32 %v8971_v5, %v8859_v40  ;;  %v8861_v22 = vadd.f32 %v8860_v59, %v8748_v15  ;;  %v8766_v5 = vadd.f32 %v18499_v39, %v8653_v33 }
 0x843   : > { %v11633_v60 = vpop.eup %11632  ;;  %v8864_v18 = vpop.f32.mrf.mxu0  ;;  %v8768_v58 = vadd.f32 %v18500_v11, %v8655_v34 }
 0x844   : > { %v8977_v9 = vpop.f32.mrf.mxu1  ;;  %9541 = vst [vmem:[%s12510_s23 + $0xe8] sm:$0xff] %v11633_v60  ;;  %11646 = vtanh.f32 %v8972_v23  ;;  %v8974_v35 = vadd.f32 %v8973_v52, %v8861_v22  ;;  %v8865_v1 = vadd.f32 %v8864_v18, %v8752_v50 }
 0x845   : > { %v11635_v14 = vpop.eup %11634  ;;  %v8866_v47 = vpop.f32.mrf.mxu0 }
 0x846   : > { %v8979_v4 = vpop.f32.mrf.mxu1  ;;  %9544 = vst [vmem:[%s12510_s23 + $0x100] sm:$0xff] %v11635_v14  ;;  %11648 = vtanh.f32 %v8974_v35  ;;  %v8978_v49 = vadd.f32 %v8977_v9, %v8865_v1  ;;  %v8867_v56 = vadd.f32 %v8866_v47, %v8754_v36 }
 0x847   : > { %v11637_v7 = vpop.eup %11636  ;;  %v8868_v8 = vpop.f32.mrf.mxu0 }
 0x848   : > { %v8981_v29 = vpop.f32.mrf.mxu1  ;;  %9545 = vst [vmem:[%s12510_s23 + $0x108] sm:$0xff] %v11637_v7  ;;  %11650 = vtanh.f32 %v8978_v49  ;;  %v8980_v55 = vadd.f32 %v8979_v4, %v8867_v56  ;;  %v8869_v41 = vadd.f32 %v8868_v8, %v8756_v63 }
 0x849   : > { %v11639_v19 = vpop.eup %11638  ;;  %v8870_v2 = vpop.f32.mrf.mxu0 }
 0x84a   : > { %v8983_v20 = vpop.f32.mrf.mxu1  ;;  %9548 = vst [vmem:[%s12510_s23 + $0x120] sm:$0xff] %v11639_v19  ;;  %11652 = vtanh.f32 %v8980_v55  ;;  %v8982_v44 = vadd.f32 %v8981_v29, %v8869_v41  ;;  %v8871_v10 = vadd.f32 %v8870_v2, %v8758_v57 }
 0x84b   : > { %v11641_v12 = vpop.eup %11640  ;;  %v8874_v61 = vpop.f32.mrf.mxu0 }
 0x84c   : > { %v8987_v38 = vpop.f32.mrf.mxu1  ;;  %9549 = vst [vmem:[%s12510_s23 + $0x128] sm:$0xff] %v11641_v12  ;;  %11654 = vtanh.f32 %v8982_v44  ;;  %v8984_v17 = vadd.f32 %v8983_v20, %v8871_v10  ;;  %v8875_v30 = vadd.f32 %v8874_v61, %v8762_v48 }
 0x84d   : > { %v11643_v6 = vpop.eup %11642  ;;  %v8876_v43 = vpop.f32.mrf.mxu0 }
 0x84e   : > { %v8989_v25 = vpop.f32.mrf.mxu1  ;;  %9552 = vst [vmem:[%s12510_s23 + $0x140] sm:$0xff] %v11643_v6  ;;  %11656 = vtanh.f32 %v8984_v17  ;;  %v8988_v46 = vadd.f32 %v8987_v38, %v8875_v30  ;;  %v8877_v15 = vadd.f32 %v8876_v43, %v8764_v51 }
 0x84f   : > { %v11645_v28 = vpop.eup %11644  ;;  %v8878_v40 = vpop.f32.mrf.mxu0 }
 0x850   : > { %v8991_v62 = vpop.f32.mrf.mxu1  ;;  %9553 = vst [vmem:[%s12510_s23 + $0x148] sm:$0xff] %v11645_v28  ;;  %11658 = vtanh.f32 %v8988_v46  ;;  %v8990_v50 = vadd.f32 %v8989_v25, %v8877_v15  ;;  %v8879_v59 = vadd.f32 %v8878_v40, %v8766_v5 }
 0x851   : > { %v11647_v52 = vpop.eup %11646  ;;  %v8880_v31 = vpop.f32.mrf.mxu0 }
 0x852   : > { %v8993_v53 = vpop.f32.mrf.mxu1  ;;  %9556 = vst [vmem:[%s12510_s23 + $0x160] sm:$0xff] %v11647_v52  ;;  %11660 = vtanh.f32 %v8990_v50  ;;  %v8992_v23 = vadd.f32 %v8991_v62, %v8879_v59  ;;  %v8881_v22 = vadd.f32 %v8880_v31, %v8768_v58 }
 0x853   : > { %v11649_v60 = vpop.eup %11648  ;;  %v16818_v42 = vpop.f32.mrf.mxu0 }
 0x854   : > { %v16820_v36 = vpop.f32.mrf.mxu1  ;;  %9557 = vst [vmem:[%s12510_s23 + $0x168] sm:$0xff] %v11649_v60  ;;  %11662 = vtanh.f32 %v8992_v23  ;;  %v8994_v18 = vadd.f32 %v8993_v53, %v8881_v22  ;;  %v18505_v23 = vld [vmem:[#allocation145_spill] sm:$0xff] }
 0x855   : > { %v11651_v9 = vpop.eup %11650  ;;  %v16823_v32 = vpop.f32.mrf.mxu0  ;;  %v6934_v22 = vsub.s32 2, %v18505_v23 }
 0x856   : > { %v16825_v24 = vpop.f32.mrf.mxu1  ;;  %9560 = vst [vmem:[%s12510_s23 + $0x180] sm:$0xff] %v11651_v9  ;;  %11664 = vtanh.f32 %v8994_v18  ;;  %v6938_v9 = vsub.s32 3, %v18505_v23 }
 0x857   : > { %v11653_v35 = vpop.eup %11652  ;;  %v16828_v1 = vpop.f32.mrf.mxu0 }
 0x858   : > { %v16830_v14 = vpop.f32.mrf.mxu1  ;;  %9561 = vst [vmem:[%s12510_s23 + $0x188] sm:$0xff] %v11653_v35 }
 0x859   : > { %v11655_v27 = vpop.eup %11654  ;;  %v16833_v26 = vpop.f32.mrf.mxu0 }
 0x85a   : > { %v16835_v47 = vpop.f32.mrf.mxu1  ;;  %9564 = vst [vmem:[%s12510_s23 + $0x1a0] sm:$0xff] %v11655_v27 }
 0x85b   : > { %v11657_v4 = vpop.eup %11656  ;;  %v16838_v3 = vpop.f32.mrf.mxu0 }
 0x85c   : > { %v16840_v63 = vpop.f32.mrf.mxu1  ;;  %9565 = vst [vmem:[%s12510_s23 + $0x1a8] sm:$0xff] %v11657_v4  ;;  %v18510_v4 = vld [vmem:[#allocation149_spill] sm:$0xff] }
 0x85d   : > { %v11659_v49 = vpop.eup %11658  ;;  %v16843_v56 = vpop.f32.mrf.mxu0 }
 0x85e   : > { %v16845_v7 = vpop.f32.mrf.mxu1  ;;  %9568 = vst [vmem:[%s12510_s23 + $0x1c0] sm:$0xff] %v11659_v49  ;;  %v16942_v49 = vrot.slane %v18510_v4, %v6934_v22 }
 0x85f   : > { %v11661_v13 = vpop.eup %11660  ;;  %v16848_v0 = vpop.f32.mrf.mxu0 }
 0x860   : > { %v16850_v8 = vpop.f32.mrf.mxu1  ;;  %9569 = vst [vmem:[%s12510_s23 + $0x1c8] sm:$0xff] %v11661_v13  ;;  %v9031_v23 = vadd.f32 %v16818_v42, %v16942_v49 }
 0x861   : > { %v11663_v29 = vpop.eup %11662  ;;  %v16853_v54 = vpop.f32.mrf.mxu0 }
 0x862   : > { %v16855_v57 = vpop.f32.mrf.mxu1  ;;  %9572 = vst [vmem:[%s12510_s23 + $0x1e0] sm:$0xff] %v11663_v29 }
 0x863   : > { %v11665_v55 = vpop.eup %11664  ;;  %v16858_v41 = vpop.f32.mrf.mxu0 }
 0x864   : > { %v16860_v19 = vpop.f32.mrf.mxu1  ;;  %9573 = vst [vmem:[%s12510_s23 + $0x1e8] sm:$0xff] %v11665_v55  ;;  %v16949_v55 = vrot.slane %v18510_v4, %v6938_v9  ;;  %v9144_v9 = vadd.f32 %v16820_v36, %v9031_v23  ;;  %v9035_v4 = vadd.f32 %v16828_v1, %v16942_v49 }
 0x865   : > { %v16863_v45 = vpop.f32.mrf.mxu0 }
 0x866   : > { %v16865_v48 = vpop.f32.mrf.mxu1  ;;  %v9033_v22 = vadd.f32 %v16823_v32, %v16949_v55  ;;  %v9041_v32 = vadd.f32 %v16838_v3, %v16942_v49  ;;  %v9043_v1 = vadd.f32 %v16843_v56, %v16949_v55 }
 0x867   : > { %v16867_v2 = vpop.f32.mrf.mxu0 }
 0x868   : > { %v16869_v20 = vpop.f32.mrf.mxu1  ;;  %v9146_v42 = vadd.f32 %v16825_v24, %v9033_v22 }
 0x869   : > { %v16871_v37 = vpop.f32.mrf.mxu0 }
 0x86a   : > { %v16873_v33 = vpop.f32.mrf.mxu1 }
 0x86b   : > { %v16875_v44 = vpop.f32.mrf.mxu0 }
 0x86c   : > { %v16877_v10 = vpop.f32.mrf.mxu1 }
 0x86d   : > { %v16879_v12 = vpop.f32.mrf.mxu0 }
 0x86e   : > { %v16881_v16 = vpop.f32.mrf.mxu1 }
 0x86f   : > { %v16883_v51 = vpop.f32.mrf.mxu0 }
 0x870   : > { %v16885_v61 = vpop.f32.mrf.mxu1 }
 0x871   : > { %v16887_v38 = vpop.f32.mrf.mxu0 }
 0x872   : > { %v16889_v21 = vpop.f32.mrf.mxu1 }
 0x873   : > { %v16891_v34 = vpop.f32.mrf.mxu0 }
 0x874   : > { %v16893_v17 = vpop.f32.mrf.mxu1 }
 0x875   : > { %v16895_v30 = vpop.f32.mrf.mxu0 }
 0x876   : > { %v16897_v6 = vpop.f32.mrf.mxu1 }
 0x877   : > { %v16899_v43 = vpop.f32.mrf.mxu0 }
 0x878   : > { %v16901_v25 = vpop.f32.mrf.mxu1 }
 0x879   : > { %v16903_v39 = vpop.f32.mrf.mxu0 }
 0x87a   : > { %v16905_v5 = vpop.f32.mrf.mxu1 }
 0x87b   : > { %v16907_v46 = vpop.f32.mrf.mxu0 }
 0x87c   : > { %v16909_v15 = vpop.f32.mrf.mxu1 }
 0x87d   : > { %v16911_v28 = vpop.f32.mrf.mxu0 }
 0x87e   : > { %v16913_v40 = vpop.f32.mrf.mxu1 }
 0x87f   : > { %v16915_v62 = vpop.f32.mrf.mxu0 }
 0x880   : > { %v16917_v11 = vpop.f32.mrf.mxu1 }
 0x881   : > { %v16919_v58 = vpop.f32.mrf.mxu0 }
 0x882   : > { %v16921_v50 = vpop.f32.mrf.mxu1 }
 0x883   : > { %18501 = vst [vmem:[#allocation147_spill] sm:$0xff] %v16921_v50  ;;  %v16923_v59 = vpop.f32.mrf.mxu0 }
 0x884   : > { %v16925_v52 = vpop.f32.mrf.mxu1 }
 0x885   : > { %18502 = vst [vmem:[#allocation144_spill] sm:$0xff] %v16925_v52  ;;  %v16927_v31 = vpop.f32.mrf.mxu0 }
 0x886   : > { %18503 = vst [vmem:[#allocation146_spill] sm:$0xff] %v16927_v31  ;;  %v16929_v53 = vpop.f32.mrf.mxu1  ;;  %v9045_v31 = vadd.f32 %v16848_v0, %v16942_v49 }
 0x887   : > { %18504 = vst [vmem:[#allocation150_spill] sm:$0xff] %v16929_v53  ;;  %v16932_v60 = vpop.f32.mrf.mxu0 }
 0x888   : > { %18506 = vst [vmem:[#allocation148_spill] sm:$0xff] %v16932_v60  ;;  %v16934_v18 = vpop.f32.mrf.mxu1  ;;  %v9158_v0 = vadd.f32 %v16850_v8, %v9045_v31  ;;  %v9055_v8 = vadd.f32 %v16867_v2, %v16942_v49 }
 0x889   : > { %18507 = vst [vmem:[#allocation152_spill] sm:$0xff] %v16934_v18  ;;  %v16937_v35 = vpop.f32.mrf.mxu0 }
 0x88a   : > { %18508 = vst [vmem:[#allocation154_spill] sm:$0xff] %v16937_v35  ;;  %v16939_v27 = vpop.f32.mrf.mxu1 }
 0x88b   : > { %18509 = vst [vmem:[#allocation151_spill] sm:$0xff] %v16939_v27  ;;  %v16944_v13 = vpop.f32.mrf.mxu0 }
 0x88c   : > { %18511 = vst [vmem:[#allocation156_spill] sm:$0xff] %v16944_v13  ;;  %v16946_v29 = vpop.f32.mrf.mxu1 }
 0x88d   : > { %18512 = vst [vmem:[#allocation153_spill] sm:$0xff] %v16946_v29  ;;  %v16951_v53 = vpop.f32.mrf.mxu0 }
 0x88e   : > { %18513 = vst [vmem:[#allocation155_spill] sm:$0xff] %v16951_v53  ;;  %v16953_v60 = vpop.f32.mrf.mxu1 }
 0x88f   : > { %18514 = vst [vmem:[#allocation158_spill] sm:$0xff] %v16953_v60  ;;  %v16957_v18 = vpop.f32.mrf.mxu0 }
 0x890   : > { %18515 = vst [vmem:[#allocation157_spill] sm:$0xff] %v16957_v18  ;;  %v16959_v27 = vpop.f32.mrf.mxu1  ;;  %v9037_v18 = vadd.f32 %v16833_v26, %v16949_v55 }
 0x891   : > { %18516 = vst [vmem:[#allocation160_spill] sm:$0xff] %v16959_v27  ;;  %v16963_v13 = vpop.f32.mrf.mxu0 }
 0x892   : > { %18517 = vst [vmem:[#allocation159_spill] sm:$0xff] %v16963_v13  ;;  %v16965_v29 = vpop.f32.mrf.mxu1  ;;  %v9150_v24 = vadd.f32 %v16835_v47, %v9037_v18  ;;  %v9047_v47 = vadd.f32 %v16853_v54, %v16949_v55 }
 0x893   : > { %18518 = vst [vmem:[#allocation161_spill] sm:$0xff] %v16965_v29  ;;  %v9256_v60 = vpop.f32.mrf.mxu0  ;;  %v9148_v29 = vadd.f32 %v16830_v14, %v9035_v4 }
 0x894   : > { %v9369_v53 = vpop.f32.mrf.mxu1  ;;  %v9257_v27 = vadd.f32 %v9256_v60, %v9144_v9  ;;  %v9154_v60 = vadd.f32 %v16840_v63, %v9041_v32  ;;  %v9051_v63 = vadd.f32 %v16858_v41, %v16942_v49  ;;  %v9160_v54 = vadd.f32 %v16855_v57, %v9047_v47 }
 0x895   : > { %v9258_v35 = vpop.f32.mrf.mxu0  ;;  %v9057_v57 = vadd.f32 %v16871_v37, %v16949_v55  ;;  %v9063_v37 = vadd.f32 %v16879_v12, %v16949_v55 }
 0x896   : > { %v9371_v13 = vpop.f32.mrf.mxu1  ;;  %v9370_v52 = vadd.f32 %v9369_v53, %v9257_v27  ;;  %v9259_v36 = vadd.f32 %v9258_v35, %v9146_v42  ;;  %v9156_v35 = vadd.f32 %v16845_v7, %v9043_v1  ;;  %v9053_v7 = vadd.f32 %v16863_v45, %v16949_v55 }
 0x897   : > { %v9260_v23 = vpop.f32.mrf.mxu0 }
 0x898   : > { %v9373_v50 = vpop.f32.mrf.mxu1  ;;  %11666 = vtanh.f32 %v9370_v52  ;;  %v9372_v22 = vadd.f32 %v9371_v13, %v9259_v36  ;;  %v9261_v26 = vadd.f32 %v9260_v23, %v9148_v29  ;;  %v9164_v23 = vadd.f32 %v16860_v19, %v9051_v63 }
 0x899   : > { %v9262_v9 = vpop.f32.mrf.mxu0  ;;  %v9166_v45 = vadd.f32 %v16865_v48, %v9053_v7 }
 0x89a   : > { %v9375_v3 = vpop.f32.mrf.mxu1  ;;  %11668 = vtanh.f32 %v9372_v22  ;;  %v9374_v14 = vadd.f32 %v9373_v50, %v9261_v26  ;;  %v9263_v53 = vadd.f32 %v9262_v9, %v9150_v24 }
 0x89b   : > { %v9266_v56 = vpop.f32.mrf.mxu0 }
 0x89c   : > { %v9379_v27 = vpop.f32.mrf.mxu1  ;;  %11670 = vtanh.f32 %v9374_v14  ;;  %v9376_v52 = vadd.f32 %v9375_v3, %v9263_v53  ;;  %v9267_v18 = vadd.f32 %v9266_v56, %v9154_v60  ;;  %v9061_v14 = vadd.f32 %v16875_v44, %v16942_v49 }
 0x89d   : > { %v9268_v13 = vpop.f32.mrf.mxu0 }
 0x89e   : > { %v9381_v29 = vpop.f32.mrf.mxu1  ;;  %11672 = vtanh.f32 %v9376_v52  ;;  %v9380_v50 = vadd.f32 %v9379_v27, %v9267_v18  ;;  %v9269_v4 = vadd.f32 %v9268_v13, %v9156_v35  ;;  %v9168_v35 = vadd.f32 %v16869_v20, %v9055_v8 }
 0x89f   : > { %v9270_v42 = vpop.f32.mrf.mxu0  ;;  %v9170_v18 = vadd.f32 %v16873_v33, %v9057_v57  ;;  %v9174_v20 = vadd.f32 %v16877_v10, %v9061_v14  ;;  %v9176_v33 = vadd.f32 %v16881_v16, %v9063_v37 }
 0x8a0   : > { %v9383_v32 = vpop.f32.mrf.mxu1  ;;  %11674 = vtanh.f32 %v9380_v50  ;;  %v9382_v36 = vadd.f32 %v9381_v29, %v9269_v4  ;;  %v9271_v1 = vadd.f32 %v9270_v42, %v9158_v0  ;;  %v9065_v50 = vadd.f32 %v16883_v51, %v16942_v49 }
 0x8a1   : > { %v9272_v41 = vpop.f32.mrf.mxu0  ;;  %v9071_v51 = vadd.f32 %v16891_v34, %v16942_v49 }
 0x8a2   : > { %v9385_v24 = vpop.f32.mrf.mxu1  ;;  %11676 = vtanh.f32 %v9382_v36  ;;  %v9384_v31 = vadd.f32 %v9383_v32, %v9271_v1  ;;  %v9273_v22 = vadd.f32 %v9272_v41, %v9160_v54  ;;  %v9067_v54 = vadd.f32 %v16887_v38, %v16949_v55 }
 0x8a3   : > { %v9276_v26 = vpop.f32.mrf.mxu0  ;;  %v9073_v38 = vadd.f32 %v16895_v30, %v16949_v55 }
 0x8a4   : > { %v9389_v60 = vpop.f32.mrf.mxu1  ;;  %11678 = vtanh.f32 %v9384_v31  ;;  %v9386_v9 = vadd.f32 %v9385_v24, %v9273_v22  ;;  %v9277_v19 = vadd.f32 %v9276_v26, %v9164_v23  ;;  %v9178_v24 = vadd.f32 %v16885_v61, %v9065_v50 }
 0x8a5   : > { %v11667_v3 = vpop.eup %11666  ;;  %v9278_v2 = vpop.f32.mrf.mxu0  ;;  %v9180_v26 = vadd.f32 %v16889_v21, %v9067_v54  ;;  %v9184_v61 = vadd.f32 %v16893_v17, %v9071_v51  ;;  %v9186_v21 = vadd.f32 %v16897_v6, %v9073_v38  ;;  %v9087_v54 = vadd.f32 %v16919_v58, %v16949_v55  ;;  %v18519_v58 = vld [vmem:[#allocation146_spill] sm:$0xff]  ;;  %v18520_v38 = vld [vmem:[#allocation147_spill] sm:$0xff] }
 0x8a6   : > { %v9391_v53 = vpop.f32.mrf.mxu1  ;;  %9514 = vst [vmem:[%s12510_s23 + $0x10] sm:$0xff] %v11667_v3  ;;  %11680 = vtanh.f32 %v9386_v9  ;;  %v9390_v48 = vadd.f32 %v9389_v60, %v9277_v19  ;;  %v9279_v56 = vadd.f32 %v9278_v2, %v9166_v45  ;;  %v9075_v3 = vadd.f32 %v16899_v43, %v16942_v49 }
 0x8a7   : > { %v11669_v27 = vpop.eup %11668  ;;  %v9280_v47 = vpop.f32.mrf.mxu0  ;;  %v9081_v43 = vadd.f32 %v16907_v46, %v16942_v49 }
 0x8a8   : > { %v9393_v52 = vpop.f32.mrf.mxu1  ;;  %9515 = vst [vmem:[%s12510_s23 + $0x18] sm:$0xff] %v11669_v27  ;;  %11682 = vtanh.f32 %v9390_v48  ;;  %v9392_v44 = vadd.f32 %v9391_v53, %v9279_v56  ;;  %v9281_v63 = vadd.f32 %v9280_v47, %v9168_v35  ;;  %v9077_v48 = vadd.f32 %v16903_v39, %v16949_v55 }
 0x8a9   : > { %v11671_v13 = vpop.eup %11670  ;;  %v9282_v29 = vpop.f32.mrf.mxu0  ;;  %v9083_v39 = vadd.f32 %v16911_v28, %v16949_v55 }
 0x8aa   : > { %v9395_v0 = vpop.f32.mrf.mxu1  ;;  %9518 = vst [vmem:[%s12510_s23 + $0x30] sm:$0xff] %v11671_v13  ;;  %11684 = vtanh.f32 %v9392_v44  ;;  %v9394_v12 = vadd.f32 %v9393_v52, %v9281_v63  ;;  %v9283_v4 = vadd.f32 %v9282_v29, %v9170_v18  ;;  %v9188_v52 = vadd.f32 %v16901_v25, %v9075_v3 }
 0x8ab   : > { %v11673_v7 = vpop.eup %11672  ;;  %v9286_v42 = vpop.f32.mrf.mxu0  ;;  %v9194_v25 = vadd.f32 %v16909_v15, %v9081_v43  ;;  %v18525_v43 = vld [vmem:[#allocation156_spill] sm:$0xff] }
 0x8ac   : > { %v9399_v32 = vpop.f32.mrf.mxu1  ;;  %9519 = vst [vmem:[%s12510_s23 + $0x38] sm:$0xff] %v11673_v7  ;;  %11686 = vtanh.f32 %v9394_v12  ;;  %v9396_v10 = vadd.f32 %v9395_v0, %v9283_v4  ;;  %v9287_v36 = vadd.f32 %v9286_v42, %v9174_v20  ;;  %v9190_v20 = vadd.f32 %v16905_v5, %v9077_v48 }
 0x8ad   : > { %v11675_v1 = vpop.eup %11674  ;;  %v9288_v23 = vpop.f32.mrf.mxu0  ;;  %v9085_v4 = vadd.f32 %v16915_v62, %v16942_v49  ;;  %v9196_v5 = vadd.f32 %v16913_v40, %v9083_v39  ;;  %v9091_v62 = vadd.f32 %v16923_v59, %v16942_v49 }
 0x8ae   : > { %v9401_v41 = vpop.f32.mrf.mxu1  ;;  %9522 = vst [vmem:[%s12510_s23 + $0x50] sm:$0xff] %v11675_v1  ;;  %11688 = vtanh.f32 %v9396_v10  ;;  %v9400_v16 = vadd.f32 %v9399_v32, %v9287_v36  ;;  %v9289_v8 = vadd.f32 %v9288_v23, %v9176_v33 }
 0x8af   : > { %v11677_v31 = vpop.eup %11676  ;;  %v9290_v22 = vpop.f32.mrf.mxu0  ;;  %v9198_v23 = vadd.f32 %v16917_v11, %v9085_v4  ;;  %v18521_v11 = vld [vmem:[#allocation144_spill] sm:$0xff] }
 0x8b0   : > { %v9403_v45 = vpop.f32.mrf.mxu1  ;;  %9523 = vst [vmem:[%s12510_s23 + $0x58] sm:$0xff] %v11677_v31  ;;  %11690 = vtanh.f32 %v9400_v16  ;;  %v9402_v34 = vadd.f32 %v9401_v41, %v9289_v8  ;;  %v9291_v60 = vadd.f32 %v9290_v22, %v9178_v24  ;;  %v9093_v16 = vadd.f32 %v18519_v58, %v16949_v55 }
 0x8b1   : > { %v11679_v57 = vpop.eup %11678  ;;  %v9292_v9 = vpop.f32.mrf.mxu0  ;;  %v9200_v22 = vadd.f32 %v18520_v38, %v9087_v54 }
 0x8b2   : > { %v9405_v19 = vpop.f32.mrf.mxu1  ;;  %9526 = vst [vmem:[%s12510_s23 + $0x70] sm:$0xff] %v11679_v57  ;;  %11692 = vtanh.f32 %v9402_v34  ;;  %v9404_v30 = vadd.f32 %v9403_v45, %v9291_v60  ;;  %v9293_v14 = vadd.f32 %v9292_v9, %v9180_v26  ;;  %v9204_v34 = vadd.f32 %v18521_v11, %v9091_v62 }
 0x8b3   : > { %v11681_v2 = vpop.eup %11680  ;;  %v9296_v53 = vpop.f32.mrf.mxu0 }
 0x8b4   : > { %v9409_v35 = vpop.f32.mrf.mxu1  ;;  %9527 = vst [vmem:[%s12510_s23 + $0x78] sm:$0xff] %v11681_v2  ;;  %11694 = vtanh.f32 %v9404_v30  ;;  %v9406_v17 = vadd.f32 %v9405_v19, %v9293_v14  ;;  %v9297_v56 = vadd.f32 %v9296_v53, %v9184_v61  ;;  %v18522_v61 = vld [vmem:[#allocation148_spill] sm:$0xff]  ;;  %v18523_v14 = vld [vmem:[#allocation150_spill] sm:$0xff] }
 0x8b5   : > { %v11683_v27 = vpop.eup %11682  ;;  %v9298_v37 = vpop.f32.mrf.mxu0  ;;  %v9095_v9 = vadd.f32 %v18522_v61, %v16942_v49  ;;  %v9206_v2 = vadd.f32 %v18523_v14, %v9093_v16 }
 0x8b6   : > { %v9411_v47 = vpop.f32.mrf.mxu1  ;;  %9530 = vst [vmem:[%s12510_s23 + $0x90] sm:$0xff] %v11683_v27  ;;  %11696 = vtanh.f32 %v9406_v17  ;;  %v9410_v6 = vadd.f32 %v9409_v35, %v9297_v56  ;;  %v9299_v18 = vadd.f32 %v9298_v37, %v9186_v21  ;;  %v18524_v35 = vld [vmem:[#allocation154_spill] sm:$0xff]  ;;  %v9101_v37 = vadd.f32 %v18525_v43, %v16942_v49  ;;  %v9600_v43 = vld [vmem:[%s12510_s23] sm:$0xff] (%p18535_p12) }
 0x8b7   : > { %v11685_v44 = vpop.eup %11684  ;;  %v9300_v63 = vpop.f32.mrf.mxu0  ;;  %v9097_v48 = vadd.f32 %v18524_v35, %v16949_v55  ;;  %9601 = vst [vmem:[%s17100_s22] sm:$0xff] (%p18535_p12), %v9600_v43 }
 0x8b8   : > { %v9413_v13 = vpop.f32.mrf.mxu1  ;;  %9531 = vst [vmem:[%s12510_s23 + $0x98] sm:$0xff] %v11685_v44  ;;  %11698 = vtanh.f32 %v9410_v6  ;;  %v9412_v46 = vadd.f32 %v9411_v47, %v9299_v18  ;;  %v9301_v29 = vadd.f32 %v9300_v63, %v9188_v52  ;;  %v18526_v6 = vld [vmem:[#allocation152_spill] sm:$0xff] }
 0x8b9   : > { %v11687_v0 = vpop.eup %11686  ;;  %v9302_v50 = vpop.f32.mrf.mxu0  ;;  %v9208_v18 = vadd.f32 %v18526_v6, %v9095_v9  ;;  %v9608_v6 = vld [vmem:[%s12510_s23 + $0x20] sm:$0xff] (%p18535_p12) }
 0x8ba   : > { %v9415_v12 = vpop.f32.mrf.mxu1  ;;  %9534 = vst [vmem:[%s12510_s23 + $0xb0] sm:$0xff] %v11687_v0  ;;  %11700 = vtanh.f32 %v9412_v46  ;;  %v9414_v28 = vadd.f32 %v9413_v13, %v9301_v29  ;;  %v9303_v7 = vadd.f32 %v9302_v50, %v9190_v20  ;;  %v18527_v13 = vld [vmem:[#allocation155_spill] sm:$0xff]  ;;  %9609 = vst [vmem:[%s17100_s22 + $0x40] sm:$0xff] (%p18535_p12), %v9608_v6 }
 0x8bb   : > { %v11689_v33 = vpop.eup %11688  ;;  %v9306_v42 = vpop.f32.mrf.mxu0  ;;  %v9103_v20 = vadd.f32 %v18527_v13, %v16949_v55  ;;  %v18528_v0 = vld [vmem:[#allocation151_spill] sm:$0xff]  ;;  %v9618_v13 = vld [vmem:[%s12510_s23 + $0x48] sm:$0xff] (%p18535_p12) }
 0x8bc   : > { %v9419_v32 = vpop.f32.mrf.mxu1  ;;  %9535 = vst [vmem:[%s12510_s23 + $0xb8] sm:$0xff] %v11689_v33  ;;  %11702 = vtanh.f32 %v9414_v28  ;;  %v9416_v15 = vadd.f32 %v9415_v12, %v9303_v7  ;;  %v9307_v10 = vadd.f32 %v9306_v42, %v9194_v25  ;;  %v9210_v25 = vadd.f32 %v18528_v0, %v9097_v48  ;;  %v18529_v28 = vld [vmem:[#allocation153_spill] sm:$0xff]  ;;  %9619 = vst [vmem:[%s17100_s22 + $0x88] sm:$0xff] (%p18535_p12), %v9618_v13 }
 0x8bd   : > { %v11691_v36 = vpop.eup %11690  ;;  %v9308_v1 = vpop.f32.mrf.mxu0  ;;  %v9214_v7 = vadd.f32 %v18529_v28, %v9101_v37  ;;  %v18530_v42 = vld [vmem:[#allocation157_spill] sm:$0xff]  ;;  %v9636_v28 = vld [vmem:[%s12510_s23 + $0x90] sm:$0xff] (%p18535_p12) }
 0x8be   : > { %v9421_v51 = vpop.f32.mrf.mxu1  ;;  %9538 = vst [vmem:[%s12510_s23 + $0xd0] sm:$0xff] %v11691_v36  ;;  %11704 = vtanh.f32 %v9416_v15  ;;  %v9420_v40 = vadd.f32 %v9419_v32, %v9307_v10  ;;  %v9309_v41 = vadd.f32 %v9308_v1, %v9196_v5  ;;  %v9105_v32 = vadd.f32 %v18530_v42, %v16942_v49  ;;  %v18531_v36 = vld [vmem:[#allocation158_spill] sm:$0xff]  ;;  %v9602_v37 = vld [vmem:[%s12510_s23 + $0x8] sm:$0xff] (%p18535_p12)  ;;  %9637 = vst [vmem:[%s17100_s22 + $0x110] sm:$0xff] (%p18535_p12), %v9636_v28 }
 0x8bf   : > { %v11693_v24 = vpop.eup %11692  ;;  %v9310_v8 = vpop.f32.mrf.mxu0  ;;  %v9216_v62 = vadd.f32 %v18531_v36, %v9103_v20  ;;  %9603 = vst [vmem:[%s17100_s22 + $0x8] sm:$0xff] (%p18535_p12), %v9602_v37  ;;  %v9620_v20 = vld [vmem:[%s12510_s23 + $0x50] sm:$0xff] (%p18535_p12)  ;;  %v9626_v0 = vld [vmem:[%s12510_s23 + $0x68] sm:$0xff] (%p18535_p12) }
 0x8c0   : > { %v9423_v31 = vpop.f32.mrf.mxu1  ;;  %9539 = vst [vmem:[%s12510_s23 + $0xd8] sm:$0xff] %v11693_v24  ;;  %11706 = vtanh.f32 %v9420_v40  ;;  %v9422_v59 = vadd.f32 %v9421_v51, %v9309_v41  ;;  %v9311_v45 = vadd.f32 %v9310_v8, %v9198_v23  ;;  %v18532_v23 = vld [vmem:[#allocation159_spill] sm:$0xff]  ;;  %v18533_v8 = vld [vmem:[#allocation160_spill] sm:$0xff]  ;;  %9621 = vst [vmem:[%s17100_s22 + $0x90] sm:$0xff] (%p18535_p12), %v9620_v20 }
 0x8c1   : > { %v11695_v26 = vpop.eup %11694  ;;  %v9312_v60 = vpop.f32.mrf.mxu0  ;;  %v9107_v40 = vadd.f32 %v18532_v23, %v16949_v55  ;;  %v18534_v55 = vld [vmem:[#allocation161_spill] sm:$0xff]  ;;  %9627 = vst [vmem:[%s17100_s22 + $0xc8] sm:$0xff] (%p18535_p12), %v9626_v0  ;;  %v9644_v42 = vld [vmem:[%s12510_s23 + $0xb0] sm:$0xff] (%p18535_p12) }
 0x8c2   : > { %v9425_v57 = vpop.f32.mrf.mxu1  ;;  %9542 = vst [vmem:[%s12510_s23 + $0xf0] sm:$0xff] %v11695_v26  ;;  %11708 = vtanh.f32 %v9422_v59  ;;  %v9424_v19 = vadd.f32 %v9423_v31, %v9311_v45  ;;  %v9313_v3 = vadd.f32 %v9312_v60, %v9200_v22  ;;  %v9218_v31 = vadd.f32 %v18533_v8, %v9105_v32  ;;  %9645 = vst [vmem:[%s17100_s22 + $0x150] sm:$0xff] (%p18535_p12), %v9644_v42 }
 0x8c3   : > { %v11697_v30 = vpop.eup %11696  ;;  %v9316_v21 = vpop.f32.mrf.mxu0  ;;  %v9220_v11 = vadd.f32 %v18534_v55, %v9107_v40  ;;  %v9646_v32 = vld [vmem:[%s12510_s23 + $0xb8] sm:$0xff] (%p18535_p12)  ;;  %v9664_v40 = vld [vmem:[%s12510_s23 + $0x100] sm:$0xff] (%p18535_p12)  ;;  %v9690_v55 = vld [vmem:[%s12510_s23 + $0x168] sm:$0xff] (%p18535_p12) }
 0x8c4   : > { %v9429_v53 = vpop.f32.mrf.mxu1  ;;  %9543 = vst [vmem:[%s12510_s23 + $0xf8] sm:$0xff] %v11697_v30  ;;  %11710 = vtanh.f32 %v9424_v19  ;;  %v9426_v17 = vadd.f32 %v9425_v57, %v9313_v3  ;;  %v9317_v56 = vadd.f32 %v9316_v21, %v9204_v34  ;;  %9647 = vst [vmem:[%s17100_s22 + $0x158] sm:$0xff] (%p18535_p12), %v9646_v32 }
 0x8c5   : > { %v11699_v27 = vpop.eup %11698  ;;  %v9318_v47 = vpop.f32.mrf.mxu0  ;;  %9665 = vst [vmem:[%s17100_s22 + $0x200] sm:$0xff] (%p18535_p12), %v9664_v40  ;;  %9691 = vst [vmem:[%s17100_s22 + $0x2c8] sm:$0xff] (%p18535_p12), %v9690_v55 }
 0x8c6   : > { %v9431_v52 = vpop.f32.mrf.mxu1  ;;  %9546 = vst [vmem:[%s12510_s23 + $0x110] sm:$0xff] %v11699_v27  ;;  %11712 = vtanh.f32 %v9426_v17  ;;  %v9430_v44 = vadd.f32 %v9429_v53, %v9317_v56  ;;  %v9319_v39 = vadd.f32 %v9318_v47, %v9206_v2  ;;  %v9604_v47 = vld [vmem:[%s12510_s23 + $0x10] sm:$0xff] (%p18535_p12) }
 0x8c7   : > { %v11701_v63 = vpop.eup %11700  ;;  %v9320_v46 = vpop.f32.mrf.mxu0  ;;  %9605 = vst [vmem:[%s17100_s22 + $0x10] sm:$0xff] (%p18535_p12), %v9604_v47  ;;  %v9654_v36 = vld [vmem:[%s12510_s23 + $0xd8] sm:$0xff] (%p18535_p12) }
 0x8c8   : > { %v9433_v29 = vpop.f32.mrf.mxu1  ;;  %9547 = vst [vmem:[%s12510_s23 + $0x118] sm:$0xff] %v11701_v63  ;;  %11714 = vtanh.f32 %v9430_v44  ;;  %v9432_v50 = vadd.f32 %v9431_v52, %v9319_v39  ;;  %v9321_v12 = vadd.f32 %v9320_v46, %v9208_v18  ;;  %v9606_v52 = vld [vmem:[%s12510_s23 + $0x18] sm:$0xff] (%p18535_p12)  ;;  %v9610_v18 = vld [vmem:[%s12510_s23 + $0x28] sm:$0xff] (%p18535_p12)  ;;  %v9612_v44 = vld [vmem:[%s12510_s23 + $0x30] sm:$0xff] (%p18535_p12) }
 0x8c9   : > { %v11703_v4 = vpop.eup %11702  ;;  %v9322_v33 = vpop.f32.mrf.mxu0  ;;  %9607 = vst [vmem:[%s17100_s22 + $0x18] sm:$0xff] (%p18535_p12), %v9606_v52  ;;  %9611 = vst [vmem:[%s17100_s22 + $0x48] sm:$0xff] (%p18535_p12), %v9610_v18  ;;  %v9614_v39 = vld [vmem:[%s12510_s23 + $0x38] sm:$0xff] (%p18535_p12)  ;;  %v9616_v63 = vld [vmem:[%s12510_s23 + $0x40] sm:$0xff] (%p18535_p12) }
 0x8ca   : > { %v9435_v5 = vpop.f32.mrf.mxu1  ;;  %9550 = vst [vmem:[%s12510_s23 + $0x130] sm:$0xff] %v11703_v4  ;;  %11716 = vtanh.f32 %v9432_v50  ;;  %v9434_v54 = vadd.f32 %v9433_v29, %v9321_v12  ;;  %v9323_v15 = vadd.f32 %v9322_v33, %v9210_v25  ;;  %9613 = vst [vmem:[%s17100_s22 + $0x50] sm:$0xff] (%p18535_p12), %v9612_v44  ;;  %v9622_v46 = vld [vmem:[%s12510_s23 + $0x58] sm:$0xff] (%p18535_p12)  ;;  %v9624_v29 = vld [vmem:[%s12510_s23 + $0x60] sm:$0xff] (%p18535_p12) }
 0x8cb   : > { %v11705_v10 = vpop.eup %11704  ;;  %v9326_v1 = vpop.f32.mrf.mxu0  ;;  %9615 = vst [vmem:[%s17100_s22 + $0x58] sm:$0xff] (%p18535_p12), %v9614_v39  ;;  %9617 = vst [vmem:[%s17100_s22 + $0x80] sm:$0xff] (%p18535_p12), %v9616_v63  ;;  %v9628_v25 = vld [vmem:[%s12510_s23 + $0x70] sm:$0xff] (%p18535_p12)  ;;  %v9630_v50 = vld [vmem:[%s12510_s23 + $0x78] sm:$0xff] (%p18535_p12) }
 0x8cc   : > { %v9439_v51 = vpop.f32.mrf.mxu1  ;;  %9551 = vst [vmem:[%s12510_s23 + $0x138] sm:$0xff] %v11705_v10  ;;  %11718 = vtanh.f32 %v9434_v54  ;;  %v9436_v41 = vadd.f32 %v9435_v5, %v9323_v15  ;;  %v9327_v24 = vadd.f32 %v9326_v1, %v9214_v7  ;;  %9623 = vst [vmem:[%s17100_s22 + $0x98] sm:$0xff] (%p18535_p12), %v9622_v46  ;;  %v9632_v12 = vld [vmem:[%s12510_s23 + $0x80] sm:$0xff] (%p18535_p12)  ;;  %v9634_v4 = vld [vmem:[%s12510_s23 + $0x88] sm:$0xff] (%p18535_p12) }
 0x8cd   : > { %v11707_v58 = vpop.eup %11706  ;;  %v9328_v49 = vpop.f32.mrf.mxu0  ;;  %9625 = vst [vmem:[%s17100_s22 + $0xc0] sm:$0xff] (%p18535_p12), %v9624_v29  ;;  %9629 = vst [vmem:[%s17100_s22 + $0xd0] sm:$0xff] (%p18535_p12), %v9628_v25  ;;  %v9638_v7 = vld [vmem:[%s12510_s23 + $0x98] sm:$0xff] (%p18535_p12)  ;;  %v9640_v33 = vld [vmem:[%s12510_s23 + $0xa0] sm:$0xff] (%p18535_p12) }
 0x8ce   : > { %v9441_v16 = vpop.f32.mrf.mxu1  ;;  %9554 = vst [vmem:[%s12510_s23 + $0x150] sm:$0xff] %v11707_v58  ;;  %11720 = vtanh.f32 %v9436_v41  ;;  %v9440_v38 = vadd.f32 %v9439_v51, %v9327_v24  ;;  %v9329_v22 = vadd.f32 %v9328_v49, %v9216_v62  ;;  %9631 = vst [vmem:[%s17100_s22 + $0xd8] sm:$0xff] (%p18535_p12), %v9630_v50  ;;  %v9642_v5 = vld [vmem:[%s12510_s23 + $0xa8] sm:$0xff] (%p18535_p12)  ;;  %v9648_v54 = vld [vmem:[%s12510_s23 + $0xc0] sm:$0xff] (%p18535_p12) }
 0x8cf   : > { %v11709_v59 = vpop.eup %11708  ;;  %v9330_v45 = vpop.f32.mrf.mxu0  ;;  %9633 = vst [vmem:[%s17100_s22 + $0x100] sm:$0xff] (%p18535_p12), %v9632_v12  ;;  %9635 = vst [vmem:[%s17100_s22 + $0x108] sm:$0xff] (%p18535_p12), %v9634_v4  ;;  %v9650_v15 = vld [vmem:[%s12510_s23 + $0xc8] sm:$0xff] (%p18535_p12)  ;;  %v9652_v10 = vld [vmem:[%s12510_s23 + $0xd0] sm:$0xff] (%p18535_p12) }
 0x8d0   : > { %v9443_v26 = vpop.f32.mrf.mxu1  ;;  %9555 = vst [vmem:[%s12510_s23 + $0x158] sm:$0xff] %v11709_v59  ;;  %11722 = vtanh.f32 %v9440_v38  ;;  %v9442_v34 = vadd.f32 %v9441_v16, %v9329_v22  ;;  %v9331_v60 = vadd.f32 %v9330_v45, %v9218_v31  ;;  %9639 = vst [vmem:[%s17100_s22 + $0x118] sm:$0xff] (%p18535_p12), %v9638_v7  ;;  %v9656_v62 = vld [vmem:[%s12510_s23 + $0xe0] sm:$0xff] (%p18535_p12)  ;;  %v9658_v1 = vld [vmem:[%s12510_s23 + $0xe8] sm:$0xff] (%p18535_p12) }
 0x8d1   : > { %v11711_v57 = vpop.eup %11710  ;;  %v9332_v61 = vpop.f32.mrf.mxu0  ;;  %9641 = vst [vmem:[%s17100_s22 + $0x140] sm:$0xff] (%p18535_p12), %v9640_v33  ;;  %9643 = vst [vmem:[%s17100_s22 + $0x148] sm:$0xff] (%p18535_p12), %v9642_v5  ;;  %v9660_v51 = vld [vmem:[%s12510_s23 + $0xf0] sm:$0xff] (%p18535_p12)  ;;  %v9662_v23 = vld [vmem:[%s12510_s23 + $0xf8] sm:$0xff] (%p18535_p12) }
 0x8d2   : > { %9558 = vst [vmem:[%s12510_s23 + $0x170] sm:$0xff] %v11711_v57  ;;  %11724 = vtanh.f32 %v9442_v34  ;;  %v9444_v9 = vadd.f32 %v9443_v26, %v9331_v60  ;;  %v9333_v19 = vadd.f32 %v9332_v61, %v9220_v11  ;;  %v9445_v30 = vpop.f32.mrf.mxu1  ;;  %9649 = vst [vmem:[%s17100_s22 + $0x180] sm:$0xff] (%p18535_p12), %v9648_v54  ;;  %v9666_v41 = vld [vmem:[%s12510_s23 + $0x108] sm:$0xff] (%p18535_p12)  ;;  %v9668_v24 = vld [vmem:[%s12510_s23 + $0x110] sm:$0xff] (%p18535_p12) }
 0x8d3   : > { %v11713_v3 = vpop.eup %11712  ;;  %9651 = vst [vmem:[%s17100_s22 + $0x188] sm:$0xff] (%p18535_p12), %v9650_v15  ;;  %9653 = vst [vmem:[%s17100_s22 + $0x190] sm:$0xff] (%p18535_p12), %v9652_v10  ;;  %v9670_v58 = vld [vmem:[%s12510_s23 + $0x118] sm:$0xff] (%p18535_p12)  ;;  %v9672_v49 = vld [vmem:[%s12510_s23 + $0x120] sm:$0xff] (%p18535_p12) }
 0x8d4   : > { %9559 = vst [vmem:[%s12510_s23 + $0x178] sm:$0xff] %v11713_v3  ;;  %11726 = vtanh.f32 %v9444_v9  ;;  %v9446_v14 = vadd.f32 %v9445_v30, %v9333_v19  ;;  %9655 = vst [vmem:[%s17100_s22 + $0x198] sm:$0xff] (%p18535_p12), %v9654_v36  ;;  %v9674_v16 = vld [vmem:[%s12510_s23 + $0x128] sm:$0xff] (%p18535_p12)  ;;  %v9676_v8 = vld [vmem:[%s12510_s23 + $0x130] sm:$0xff] (%p18535_p12) }
 0x8d5   : > { %v11715_v2 = vpop.eup %11714  ;;  %9657 = vst [vmem:[%s17100_s22 + $0x1c0] sm:$0xff] (%p18535_p12), %v9656_v62  ;;  %9659 = vst [vmem:[%s17100_s22 + $0x1c8] sm:$0xff] (%p18535_p12), %v9658_v1  ;;  %v9678_v31 = vld [vmem:[%s12510_s23 + $0x138] sm:$0xff] (%p18535_p12)  ;;  %v9680_v38 = vld [vmem:[%s12510_s23 + $0x140] sm:$0xff] (%p18535_p12) }
 0x8d6   : > { %9562 = vst [vmem:[%s12510_s23 + $0x190] sm:$0xff] %v11715_v2  ;;  %11728 = vtanh.f32 %v9446_v14  ;;  %9661 = vst [vmem:[%s17100_s22 + $0x1d0] sm:$0xff] (%p18535_p12), %v9660_v51  ;;  %v9682_v22 = vld [vmem:[%s12510_s23 + $0x148] sm:$0xff] (%p18535_p12)  ;;  %v9684_v59 = vld [vmem:[%s12510_s23 + $0x150] sm:$0xff] (%p18535_p12) }
 0x8d7   : > { %v11717_v21 = vpop.eup %11716  ;;  %9663 = vst [vmem:[%s17100_s22 + $0x1d8] sm:$0xff] (%p18535_p12), %v9662_v23  ;;  %9667 = vst [vmem:[%s17100_s22 + $0x208] sm:$0xff] (%p18535_p12), %v9666_v41  ;;  %v9686_v45 = vld [vmem:[%s12510_s23 + $0x158] sm:$0xff] (%p18535_p12)  ;;  %v9688_v26 = vld [vmem:[%s12510_s23 + $0x160] sm:$0xff] (%p18535_p12) }
 0x8d8   : > { %9563 = vst [vmem:[%s12510_s23 + $0x198] sm:$0xff] %v11717_v21  ;;  %9669 = vst [vmem:[%s17100_s22 + $0x210] sm:$0xff] (%p18535_p12), %v9668_v24  ;;  %v9696_v60 = vld [vmem:[%s12510_s23 + $0x180] sm:$0xff] (%p18535_p12)  ;;  %v9698_v57 = vld [vmem:[%s12510_s23 + $0x188] sm:$0xff] (%p18535_p12) }
 0x8d9   : > { %v11719_v53 = vpop.eup %11718  ;;  %9671 = vst [vmem:[%s17100_s22 + $0x218] sm:$0xff] (%p18535_p12), %v9670_v58  ;;  %9673 = vst [vmem:[%s17100_s22 + $0x240] sm:$0xff] (%p18535_p12), %v9672_v49  ;;  %v9692_v11 = vld [vmem:[%s12510_s23 + $0x170] sm:$0xff] (%p18535_p12)  ;;  %v9704_v19 = vld [vmem:[%s12510_s23 + $0x1a0] sm:$0xff] (%p18535_p12) }
 0x8da   : > { %9566 = vst [vmem:[%s12510_s23 + $0x1b0] sm:$0xff] %v11719_v53  ;;  %9675 = vst [vmem:[%s17100_s22 + $0x248] sm:$0xff] (%p18535_p12), %v9674_v16  ;;  %v9706_v3 = vld [vmem:[%s12510_s23 + $0x1a8] sm:$0xff] (%p18535_p12)  ;;  %v9712_v2 = vld [vmem:[%s12510_s23 + $0x1c0] sm:$0xff] (%p18535_p12) }
 0x8db   : > { %v11721_v35 = vpop.eup %11720  ;;  %9677 = vst [vmem:[%s17100_s22 + $0x250] sm:$0xff] (%p18535_p12), %v9676_v8  ;;  %9679 = vst [vmem:[%s17100_s22 + $0x258] sm:$0xff] (%p18535_p12), %v9678_v31  ;;  %v9694_v34 = vld [vmem:[%s12510_s23 + $0x178] sm:$0xff] (%p18535_p12)  ;;  %v9714_v21 = vld [vmem:[%s12510_s23 + $0x1c8] sm:$0xff] (%p18535_p12) }
 0x8dc   : > { %9567 = vst [vmem:[%s12510_s23 + $0x1b8] sm:$0xff] %v11721_v35  ;;  %9681 = vst [vmem:[%s17100_s22 + $0x280] sm:$0xff] (%p18535_p12), %v9680_v38 }
 0x8dd   : > { %v11723_v48 = vpop.eup %11722  ;;  %9683 = vst [vmem:[%s17100_s22 + $0x288] sm:$0xff] (%p18535_p12), %v9682_v22  ;;  %9685 = vst [vmem:[%s17100_s22 + $0x290] sm:$0xff] (%p18535_p12), %v9684_v59  ;;  %v9700_v61 = vld [vmem:[%s12510_s23 + $0x190] sm:$0xff] (%p18535_p12) }
 0x8de   : > { %9570 = vst [vmem:[%s12510_s23 + $0x1d0] sm:$0xff] %v11723_v48  ;;  %9687 = vst [vmem:[%s17100_s22 + $0x298] sm:$0xff] (%p18535_p12), %v9686_v45  ;;  %v9720_v48 = vld [vmem:[%s12510_s23 + $0x1e0] sm:$0xff] (%p18535_p12) }
 0x8df   : > { %v11725_v17 = vpop.eup %11724  ;;  %9689 = vst [vmem:[%s17100_s22 + $0x2c0] sm:$0xff] (%p18535_p12), %v9688_v26  ;;  %9693 = vst [vmem:[%s17100_s22 + $0x2d0] sm:$0xff] (%p18535_p12), %v9692_v11  ;;  %v9702_v9 = vld [vmem:[%s12510_s23 + $0x198] sm:$0xff] (%p18535_p12) }
 0x8e0   : > { %9571 = vst [vmem:[%s12510_s23 + $0x1d8] sm:$0xff] %v11725_v17  ;;  %9582 = sbr.rel (!%p18535_p12) target bundleno = 2285 (0x8ed), region = 136  ;;  %9695 = vst [vmem:[%s17100_s22 + $0x2d8] sm:$0xff] (%p18535_p12), %v9694_v34  ;;  %v9722_v17 = vld [vmem:[%s12510_s23 + $0x1e8] sm:$0xff] (%p18535_p12) }
 0x8e1   : > { %v11727_v56 = vpop.eup %11726  ;;  %9697 = vst [vmem:[%s17100_s22 + $0x300] sm:$0xff] (%p18535_p12), %v9696_v60  ;;  %9699 = vst [vmem:[%s17100_s22 + $0x308] sm:$0xff] (%p18535_p12), %v9698_v57  ;;  %v9708_v30 = vld [vmem:[%s12510_s23 + $0x1b0] sm:$0xff] (%p18535_p12) }
 0x8e2   : > { %9574 = vst [vmem:[%s12510_s23 + $0x1f0] sm:$0xff] %v11727_v56  ;;  %9701 = vst [vmem:[%s17100_s22 + $0x310] sm:$0xff] (%p18535_p12), %v9700_v61 }
 0x8e3   : > { %v11729_v27 = vpop.eup %11728  ;;  %9703 = vst [vmem:[%s17100_s22 + $0x318] sm:$0xff] (%p18535_p12), %v9702_v9  ;;  %9705 = vst [vmem:[%s17100_s22 + $0x340] sm:$0xff] (%p18535_p12), %v9704_v19  ;;  %v9710_v14 = vld [vmem:[%s12510_s23 + $0x1b8] sm:$0xff] (%p18535_p12) }
 0x8e4   : > { %9575 = vst [vmem:[%s12510_s23 + $0x1f8] sm:$0xff] %v11729_v27  ;;  %9707 = vst [vmem:[%s17100_s22 + $0x348] sm:$0xff] (%p18535_p12), %v9706_v3 }
 0x8e5   : > { %9709 = vst [vmem:[%s17100_s22 + $0x350] sm:$0xff] %v9708_v30  ;;  %9711 = vst [vmem:[%s17100_s22 + $0x358] sm:$0xff] %v9710_v14  ;;  %v9716_v53 = vld [vmem:[%s12510_s23 + $0x1d0] sm:$0xff] }
 0x8e6   : > { %9713 = vst [vmem:[%s17100_s22 + $0x380] sm:$0xff] %v9712_v2  ;;  %9715 = vst [vmem:[%s17100_s22 + $0x388] sm:$0xff] %v9714_v21 }
 0x8e7   : > { %v9718_v35 = vld [vmem:[%s12510_s23 + $0x1d8] sm:$0xff]  ;;  %9717 = vst [vmem:[%s17100_s22 + $0x390] sm:$0xff] %v9716_v53  ;;  %9721 = vst [vmem:[%s17100_s22 + $0x3c0] sm:$0xff] %v9720_v48 }
 0x8e8   : > { %9719 = vst [vmem:[%s17100_s22 + $0x398] sm:$0xff] %v9718_v35  ;;  %9723 = vst [vmem:[%s17100_s22 + $0x3c8] sm:$0xff] %v9722_v17 }
 0x8e9   : > { %v9724_v56 = vld [vmem:[%s12510_s23 + $0x1f0] sm:$0xff] }
 0x8ea   : > { %9725 = vst [vmem:[%s17100_s22 + $0x3d0] sm:$0xff] %v9724_v56 }
 0x8eb   : > { %v9726_v27 = vld [vmem:[%s12510_s23 + $0x1f8] sm:$0xff] }
 0x8ec   : > { %9727 = vst [vmem:[%s17100_s22 + $0x3d8] sm:$0xff] %v9726_v27 }
 0x8ed PF: > { %s33_s18 = sadd.s32 1, %s12162_s18   ;;  %s18538_s24 = sld [smem:[#allocation32_spill]] }
 0x8ee   : > { %p30_p13 = scmp.ge.s32.totalorder %s33_s18, 4   ;;  %s18539_s29 = smov %s12146_s30 }
 0x8ef   : > { %s18540_s30 = smov %s12150_s15  ;;  %s18541_s15 = smov %s12388_s26 }
 0x8f0   : > { %s18542_s16 = smov %s12158_s17  ;;  %32 = sbr.rel (!%p30_p13) target bundleno = 19 (0x13), region = 199 }
 0x8f3   : > { %s18543_s17 = smov %s18538_s24 }
 0x8f5   :  { %9743 = vsyncpa [#allocation4], 1 }
 0x8f6   :  { %9745 = vsyncpa [#allocation4 + $0x1], 1 }
 0x8f7   :  { %9746 = vsyncpa [#allocation6], 1 }
 0x8f8   :  { %9747 = vsyncpa [#allocation9], 1 }
 0x8f9   :  { %9748 = vsyncpa [#allocation12], 1 }
 0x8fa   :  { %9749 = vsyncpa [#allocation15], 1 }
 0x8fb   :  { %9750 = vsyncpa [#allocation18], 1 }
 0x8fc   :  { %9751 = vsyncpa [#allocation21], 1 }
 0x8fd   :  { %9753 = vsyncpa [#allocation21 + $0x1], 1 }

</bundles_post_ra>
